<compile_context>
chip_gen: v5e
topology: v5e:2x2
jax: 0.10.0
libtpu: 0.0.40
codegen_flags: <defaults>
</compile_context>

<pallas_src>
import functools

import jax
import jax.numpy as jnp
from jax import lax
from jax.experimental import pallas as pl
from jax.experimental.pallas import tpu as pltpu

LANE = 128
BF16 = jnp.bfloat16


def _round_up(v, m):
    return (v + m - 1) // m * m


def _choose_tiling(n):
    """Destination-row tile, source/key tile, padded node count."""
    n128 = _round_up(max(n, 1), LANE)
    k_tile = min(512, n128)                      # lane-aligned key tile
    if n128 <= 128:
        row_tile = 64
    elif n128 <= 1024:
        row_tile = 128
    else:
        row_tile = 256
    n_pad = _round_up(n, k_tile)                 # row_tile | k_tile (powers of two)
    if n_pad // row_tile < 2:                    # >=2 row tiles -> v7x megacore split
        row_tile = max(8, n_pad // 2)
    return row_tile, k_tile, n_pad


def _vmem_capacity():
    try:
        return int(pltpu.get_tpu_info().vmem_capacity_bytes)
    except Exception:                            # older jax / host-side tracing fallback
        return 64 * 1024 * 1024                  # v7x per-core capacity (smallest)


def _compiler_params(dims, per_step_bytes):
    cap = _vmem_capacity()
    limit = int(min(int(0.8 * cap), max(4 * per_step_bytes + (8 << 20), 32 << 20)))
    return pltpu.CompilerParams(dimension_semantics=dims, vmem_limit_bytes=limit)


# ----------------------------------------------------------------------------
# Shared fused epilogue: LayerNorm over the first `f_real` lanes + leaky_relu(0.1).
# gamma/beta are zero-padded past f_real, so padded lanes come out exactly 0.
# ----------------------------------------------------------------------------
def _ln_leaky(h, gamma, beta, f_real, eps=1e-5, slope=0.1):
    inv_f = 1.0 / float(f_real)
    mean = jnp.sum(h, axis=-1, keepdims=True) * inv_f       # padded lanes are 0
    cen = h - mean
    lane = lax.broadcasted_iota(jnp.int32, h.shape, 1)
    var = jnp.sum(jnp.where(lane < f_real, cen * cen, 0.0),
                  axis=-1, keepdims=True) * inv_f
    y = cen * lax.rsqrt(var + eps) * gamma + beta
    return jnp.where(y >= 0.0, y, slope * y)


# ----------------------------------------------------------------------------
# Projection kernel (hoisted out of the aggregation row-tile loop):
#   XW[r] = x @ W[r]  for every relation / attention head, stored in bf16.
# ----------------------------------------------------------------------------
def _proj_kernel(x_ref, w_ref, xw_ref):
    xw_ref[...] = jnp.dot(x_ref[...], w_ref[...],
                          preferred_element_type=jnp.float32).astype(xw_ref.dtype)


def project(x_bf, w_stack, *, row_tile):
    n_pad, fin = x_bf.shape
    r_dim, _, fout = w_stack.shape
    n_tiles = n_pad // row_tile
    blk = row_tile * fin * 2 + fin * fout * 2 + row_tile * fout * 2
    return pl.pallas_call(
        _proj_kernel,
        out_shape=jax.ShapeDtypeStruct((r_dim, n_pad, fout), BF16),
        grid_spec=pltpu.PrefetchScalarGridSpec(
            num_scalar_prefetch=0,
            grid=(r_dim, n_tiles),
            in_specs=[
                pl.BlockSpec((row_tile, fin), lambda r, i: (i, 0)),
                pl.BlockSpec((None, fin, fout), lambda r, i: (r, 0, 0)),   # None == squeezed
            ],
            out_specs=pl.BlockSpec((None, row_tile, fout), lambda r, i: (r, i, 0)),
        ),
        compiler_params=_compiler_params(("parallel", "parallel"), blk),
    )(x_bf, w_stack)


# ----------------------------------------------------------------------------
# RGCN aggregation (+ fused epilogue):
#   out[tile] = x[tile] @ W_root + bias + sum_{r,k} A_r[tile, k_tile] @ XW_r[k_tile]
# grid = (row_tiles, relations, key_tiles); the output block is resident across
# (r, k) and serves as the accumulator; zero adjacency blocks are skipped.
# ----------------------------------------------------------------------------
def _rgcn_agg_kernel(nnz_ref, xd_ref, wroot_ref, b_ref, a_ref, xw_ref, g_ref, bt_ref,
                     o_ref, *, f_real, epilogue):
    i = pl.program_id(0)
    r = pl.program_id(1)
    k = pl.program_id(2)
    num_r = pl.num_programs(1)
    num_k = pl.num_programs(2)

    @pl.when(jnp.logical_and(r == 0, k == 0))
    def _():                                   # root term + bias (dest tile only)
        o_ref[...] = (jnp.dot(xd_ref[...], wroot_ref[...],
                              preferred_element_type=jnp.float32) + b_ref[...])

    # block-sparse skip: only do the MXU work when this adjacency block has edges
    @pl.when(nnz_ref[(r * pl.num_programs(0) + i) * num_k + k] > 0)
    def _():
        o_ref[...] += jnp.dot(a_ref[...], xw_ref[...],
                              preferred_element_type=jnp.float32)

    @pl.when(jnp.logical_and(r == num_r - 1, k == num_k - 1))
    def _():
        h = o_ref[...]
        if epilogue == "ln_leaky":
            o_ref[...] = _ln_leaky(h, g_ref[...], bt_ref[...], f_real)
        else:                                  # "l2norm": F.normalize(p=2, dim=1)
            ssq = jnp.sum(h * h, axis=-1, keepdims=True)
            o_ref[...] = h * lax.rsqrt(jnp.maximum(ssq, 1e-24))


def rgcn_fused(nnz, x_bf, a_bf, xw_bf, w_root, bias, gamma, beta, *,
               f_real, epilogue, row_tile, k_tile):
    n_pad, fin = x_bf.shape
    num_rel = a_bf.shape[0]
    fout = w_root.shape[1]
    n_tiles = n_pad // row_tile
    k_tiles = n_pad // k_tile
    kern = functools.partial(_rgcn_agg_kernel, f_real=f_real, epilogue=epilogue)
    blk = (row_tile * k_tile * 2 + k_tile * fout * 2 + row_tile * fin * 2
           + fin * fout * 2 + row_tile * fout * 4 + 3 * fout * 4)
    return pl.pallas_call(
        kern,
        out_shape=jax.ShapeDtypeStruct((n_pad, fout), jnp.float32),
        grid_spec=pltpu.PrefetchScalarGridSpec(
            num_scalar_prefetch=1,             # per-block nonzero table (SMEM)
            grid=(n_tiles, num_rel, k_tiles),
            in_specs=[
                pl.BlockSpec((row_tile, fin), lambda i, r, k, nnz: (i, 0)),       # x dest
                pl.BlockSpec((fin, fout), lambda i, r, k, nnz: (0, 0)),           # W_root
                pl.BlockSpec((1, fout), lambda i, r, k, nnz: (0, 0)),             # bias
                pl.BlockSpec((None, row_tile, k_tile), lambda i, r, k, nnz: (r, i, k)),
                pl.BlockSpec((None, k_tile, fout), lambda i, r, k, nnz: (r, k, 0)),
                pl.BlockSpec((1, fout), lambda i, r, k, nnz: (0, 0)),             # gamma
                pl.BlockSpec((1, fout), lambda i, r, k, nnz: (0, 0)),             # beta
            ],
            out_specs=pl.BlockSpec((row_tile, fout), lambda i, r, k, nnz: (i, 0)),
        ),
        compiler_params=_compiler_params(("parallel", "arbitrary", "arbitrary"), blk),
    )(nnz, x_bf, w_root, bias, a_bf, xw_bf, gamma, beta)


# ----------------------------------------------------------------------------
# GATConv (heads=4, concat=False) aggregation + fused LN + leaky_relu(0.1).
# Flash-style online softmax over key tiles; projections / attention scalars
# are precomputed; all-zero adjacency blocks are skipped.
# ----------------------------------------------------------------------------
def _gat_agg_kernel(nnz_ref, xw_ref, asrc_ref, adst_ref, adj_ref, b_ref, g_ref, bt_ref,
                    o_ref, m_sc, l_sc, acc_sc, *, heads, f_real, n_real, row_tile):
    i = pl.program_id(0)
    k = pl.program_id(1)
    num_k = pl.num_programs(1)

    @pl.when(k == 0)
    def _():
        m_sc[...] = jnp.full(m_sc.shape, -1e30, jnp.float32)
        l_sc[...] = jnp.zeros(l_sc.shape, jnp.float32)
        acc_sc[...] = jnp.zeros(acc_sc.shape, jnp.float32)

    @pl.when(nnz_ref[i * num_k + k] > 0)       # skip all-zero adjacency blocks
    def _():
        adj = adj_ref[...].astype(jnp.float32)                 # (row_tile, k_tile)
        for hd in range(heads):                                # static unroll (4 heads)
            xw = xw_ref[hd]                                    # (k_tile, fh) bf16
            e = adst_ref[hd] + asrc_ref[hd]                    # (rt,1) + (1,kt)
            e = jnp.where(e >= 0.0, e, 0.2 * e)                # leaky_relu(0.2)
            e = jnp.where(adj > 0.0, e, -1e30)                 # mask non-edges
            m_prev = m_sc[hd]
            m_new = jnp.maximum(m_prev, jnp.max(e, axis=-1, keepdims=True))
            scale = jnp.exp(m_prev - m_new)
            p = jnp.exp(e - m_new) * adj
            l_sc[hd] = scale * l_sc[hd] + jnp.sum(p, axis=-1, keepdims=True)
            # TODO(synk): cast p to bf16 for full-rate MXU on very large graphs.
            acc_sc[hd] = scale * acc_sc[hd] + jnp.dot(
                p, xw.astype(jnp.float32), preferred_element_type=jnp.float32)
            m_sc[hd] = m_new

    @pl.when(k == num_k - 1)
    def _():
        res = jnp.zeros(o_ref.shape, jnp.float32)
        for hd in range(heads):
            inv = pl.reciprocal(jnp.maximum(l_sc[hd], 1e-30), approx=False)
            res = res + acc_sc[hd] * inv
        h = res * (1.0 / heads) + b_ref[...]                   # concat=False -> mean + bias
        y = _ln_leaky(h, g_ref[...], bt_ref[...], f_real)
        # zero padded destination rows so nothing non-finite can leak downstream
        rows = i * row_tile + lax.broadcasted_iota(jnp.int32, y.shape, 0)
        o_ref[...] = jnp.where(rows < n_real, y, 0.0)


def gat_fused(nnz, xw_bf, a_src, a_dst, adj_bf, bias, gamma, beta, *,
              f_real, n_real, row_tile, k_tile):
    heads, n_pad, fh = xw_bf.shape
    n_tiles = n_pad // row_tile
    k_tiles = n_pad // k_tile
    kern = functools.partial(_gat_agg_kernel, heads=heads, f_real=f_real,
                             n_real=n_real, row_tile=row_tile)
    blk = (heads * k_tile * fh * 2 + heads * k_tile * 4 + heads * row_tile * 4
           + row_tile * k_tile * 2 + row_tile * fh * 4 + 3 * fh * 4
           + heads * row_tile * (fh + 2) * 4)
    return pl.pallas_call(
        kern,
        out_shape=jax.ShapeDtypeStruct((n_pad, fh), jnp.float32),
        grid_spec=pltpu.PrefetchScalarGridSpec(
            num_scalar_prefetch=1,
            grid=(n_tiles, k_tiles),
            in_specs=[
                pl.BlockSpec((heads, k_tile, fh), lambda i, k, nnz: (0, k, 0)),   # XW_h
                pl.BlockSpec((heads, 1, k_tile), lambda i, k, nnz: (0, 0, k)),    # a_src
                pl.BlockSpec((heads, row_tile, 1), lambda i, k, nnz: (0, i, 0)),  # a_dst
                pl.BlockSpec((row_tile, k_tile), lambda i, k, nnz: (i, k)),       # adj tile
                pl.BlockSpec((1, fh), lambda i, k, nnz: (0, 0)),                  # bias
                pl.BlockSpec((1, fh), lambda i, k, nnz: (0, 0)),                  # gamma
                pl.BlockSpec((1, fh), lambda i, k, nnz: (0, 0)),                  # beta
            ],
            out_specs=pl.BlockSpec((row_tile, fh), lambda i, k, nnz: (i, 0)),
            scratch_shapes=[
                pltpu.VMEM((heads, row_tile, 1), jnp.float32),    # running max
                pltpu.VMEM((heads, row_tile, 1), jnp.float32),    # running sum
                pltpu.VMEM((heads, row_tile, fh), jnp.float32),   # running acc
            ],
        ),
        compiler_params=_compiler_params(("parallel", "arbitrary"), blk),
    )(nnz, xw_bf, a_src, a_dst, adj_bf, bias, gamma, beta)


# ----------------------------------------------------------------------------
# Parameter init (deterministic, glorot-uniform)
# ----------------------------------------------------------------------------
def _glorot(key, shape):
    fan_in, fan_out = shape[-2], shape[-1]
    s = jnp.sqrt(6.0 / (fan_in + fan_out))
    return jax.random.uniform(key, shape, jnp.float32, -s, s)


def init_rgcn_params(key, f_in, f_out, num_rel, num_bases):
    k1, k2, k3 = jax.random.split(key, 3)
    basis = _glorot(k1, (num_bases, f_in, f_out))
    comp = _glorot(k2, (num_rel, num_bases))
    w_rel = jnp.einsum("rb,bio->rio", comp, basis)     # basis decomposition (glue)
    return dict(w_rel=w_rel, w_root=_glorot(k3, (f_in, f_out)),
                bias=jnp.zeros((f_out,), jnp.float32))


def init_gat_params(key, f_in, f_out, heads):
    k1, k2, k3 = jax.random.split(key, 3)
    return dict(w=_glorot(k1, (f_in, heads * f_out)),
                att_src=_glorot(k2, (heads, f_out)),
                att_dst=_glorot(k3, (heads, f_out)),
                bias=jnp.zeros((f_out,), jnp.float32))


def init_ln_params(f):
    return dict(gamma=jnp.ones((f,), jnp.float32), beta=jnp.zeros((f,), jnp.float32))


# ----------------------------------------------------------------------------
# Forward: pad once to lane-dense bf16 layouts, run (project + aggregate) x 4,
# slice back.  dropout = identity (eval), residual branch dead in the reference.
# ----------------------------------------------------------------------------
def attention_rgcn_forward(x, a_norm, adj, params):
    n, f_in = x.shape
    hid = params["ln0"]["gamma"].shape[0]
    out_dim = params["rgcn2"]["w_root"].shape[1]
    heads, f_head = params["gat"]["att_src"].shape
    num_rel = a_norm.shape[0]

    row_tile, k_tile, n_pad = _choose_tiling(n)
    n_tiles, k_tiles = n_pad // row_tile, n_pad // k_tile
    fin_p, hid_p, out_p, fh_p = (_round_up(d, LANE)
                                 for d in (f_in, hid, out_dim, f_head))

    # pad first, cast to bf16 second: padded lanes/rows stay exactly zero
    xp = jnp.pad(x, ((0, n_pad - n), (0, fin_p - f_in))).astype(BF16)
    ap = jnp.pad(a_norm, ((0, 0), (0, n_pad - n), (0, n_pad - n))).astype(BF16)
    adjp = jnp.pad(adj, ((0, n_pad - n), (0, n_pad - n))).astype(BF16)

    # per-block nonzero tables (scalar-prefetched -> block-sparse compute skipping)
    nnz_rel = ((jnp.abs(ap) > 0)
               .reshape(num_rel, n_tiles, row_tile, k_tiles, k_tile)
               .any(axis=(2, 4)).astype(jnp.int32).reshape(-1))
    nnz_adj = ((jnp.abs(adjp) > 0)
               .reshape(n_tiles, row_tile, k_tiles, k_tile)
               .any(axis=(1, 3)).astype(jnp.int32).reshape(-1))

    def pad_rgcn(p, fi, fo, fip, fop):
        return dict(
            w_rel=jnp.pad(p["w_rel"], ((0, 0), (0, fip - fi), (0, fop - fo))).astype(BF16),
            w_root=jnp.pad(p["w_root"], ((0, fip - fi), (0, fop - fo))).astype(BF16),
            bias=jnp.pad(p["bias"], (0, fop - fo)).reshape(1, fop),
        )

    def pad_ln(p, f, fp):
        return (jnp.pad(p["gamma"], (0, fp - f)).reshape(1, fp),
                jnp.pad(p["beta"], (0, fp - f)).reshape(1, fp))

    r0 = pad_rgcn(params["rgcn0"], f_in, hid, fin_p, hid_p)
    r1 = pad_rgcn(params["rgcn1"], hid, hid, hid_p, hid_p)
    r2 = pad_rgcn(params["rgcn2"], hid, out_dim, hid_p, out_p)
    g0, b0 = pad_ln(params["ln0"], hid, hid_p)
    g1, b1 = pad_ln(params["ln1"], hid, hid_p)
    g2, b2 = pad_ln(params["ln2"], hid, hid_p)

    gp = params["gat"]
    w3 = gp["w"].reshape(hid, heads, f_head).transpose(1, 0, 2)      # (H, f_in, f_head)
    gat_w = jnp.pad(w3, ((0, 0), (0, hid_p - hid), (0, fh_p - f_head))).astype(BF16)
    att_src_p = jnp.pad(gp["att_src"], ((0, 0), (0, fh_p - f_head)))
    att_dst_p = jnp.pad(gp["att_dst"], ((0, 0), (0, fh_p - f_head)))
    gat_b = jnp.pad(gp["bias"], (0, fh_p - f_head)).reshape(1, fh_p)

    def rgcn_layer(h_bf, pr, gamma, beta, f_real, epilogue):
        xw = project(h_bf, pr["w_rel"], row_tile=row_tile)           # hoisted x @ W_r
        return rgcn_fused(nnz_rel, h_bf, ap, xw, pr["w_root"], pr["bias"], gamma, beta,
                          f_real=f_real, epilogue=epilogue,
                          row_tile=row_tile, k_tile=k_tile)

    # layers 0/1: RGCN + fused LN + leaky_relu(0.1)
    h = rgcn_layer(xp, r0, g0, b0, hid, "ln_leaky")
    h = rgcn_layer(h.astype(BF16), r1, g1, b1, hid, "ln_leaky")

    # layer 2: GAT (4 heads, concat=False) + fused LN + leaky_relu(0.1)
    h_bf = h.astype(BF16)
    xw_g = project(h_bf, gat_w, row_tile=row_tile)                   # hoisted x @ W_h
    xw_f = xw_g.astype(jnp.float32)
    a_src = (xw_f * att_src_p[:, None, :]).sum(-1).reshape(heads, 1, n_pad)
    a_dst = (xw_f * att_dst_p[:, None, :]).sum(-1).reshape(heads, n_pad, 1)
    h = gat_fused(nnz_adj, xw_g, a_src, a_dst, adjp, gat_b, g2, b2,
                  f_real=hid, n_real=n, row_tile=row_tile, k_tile=k_tile)

    # layer 3: RGCN + fused F.normalize(p=2, dim=1)
    dummy = jnp.zeros((1, out_p), jnp.float32)
    h = rgcn_layer(h.astype(BF16), r2, dummy, dummy, out_dim, "l2norm")

    # The reference module's residual branch is dead (prev_x is never assigned).
    return h[:n, :out_dim]


# ----------------------------------------------------------------------------
# Pure-JAX reference (same math; mirrors the kernel's bf16 MXU-input quantization
# with f32 accumulation) for a correctness check.
# ----------------------------------------------------------------------------
def _q(t):
    return t.astype(jnp.bfloat16).astype(jnp.float32)


def _rgcn_ref(x, a_norm, w_rel, w_root, bias):
    xq, aq = _q(x), _q(a_norm)
    out = xq @ _q(w_root) + bias
    for r in range(w_rel.shape[0]):
        xw = _q(xq @ _q(w_rel[r]))             # projection stored as bf16 in the kernel
        out = out + aq[r] @ xw
    return out


def _ln_leaky_ref(x, gamma, beta, eps=1e-5, slope=0.1):
    m = x.mean(-1, keepdims=True)
    v = ((x - m) ** 2).mean(-1, keepdims=True)
    y = (x - m) / jnp.sqrt(v + eps) * gamma + beta
    return jnp.where(y >= 0, y, slope * y)


def _gat_ref(x, adj, w, att_src, att_dst, bias):
    heads, f_out = att_src.shape
    xq, adjq = _q(x), _q(adj)
    acc = jnp.zeros((x.shape[0], f_out), jnp.float32)
    for h in range(heads):
        xh = _q(xq @ _q(w[:, h * f_out:(h + 1) * f_out]))
        a_s = (xh * att_src[h]).sum(-1)
        a_d = (xh * att_dst[h]).sum(-1)
        e = a_d[:, None] + a_s[None, :]
        e = jnp.where(e >= 0, e, 0.2 * e)
        e = jnp.where(adjq > 0, e, -1e30)
        p = jnp.exp(e - e.max(-1, keepdims=True)) * adjq
        attn = p / p.sum(-1, keepdims=True)
        acc = acc + attn @ xh
    return acc / heads + bias


def _forward_ref(x, a_norm, adj, params):
    h = _rgcn_ref(x, a_norm, **params["rgcn0"])
    h = _ln_leaky_ref(h, **params["ln0"])
    h = _rgcn_ref(h, a_norm, **params["rgcn1"])
    h = _ln_leaky_ref(h, **params["ln1"])
    h = _gat_ref(h, adj, **params["gat"])
    h = _ln_leaky_ref(h, **params["ln2"])
    h = _rgcn_ref(h, a_norm, **params["rgcn2"])
    nrm = jnp.sqrt((h * h).sum(-1, keepdims=True))
    return h / jnp.maximum(nrm, 1e-12)


if __name__ == "__main__":
    N, IN_DIM, HID, OUT_DIM = 16, 16, 32, 16
    NUM_REL, HEADS, E = 3, 4, 64
    NUM_BASES = min(NUM_REL, HID)

    key = jax.random.PRNGKey(0)
    kx, kg, kt, k0, k1, k2, k3 = jax.random.split(key, 7)

    # node features
    x = jax.random.normal(kx, (N, IN_DIM), jnp.float32)

    # deterministic synthetic graph: E unique directed edges (src != dst), one type each
    pairs = jnp.array([(i, j) for i in range(N) for j in range(N) if i != j],
                      dtype=jnp.int32)
    perm = jax.random.permutation(kg, pairs.shape[0])
    sel = pairs[perm[:E]]
    src, dst = sel[:, 0], sel[:, 1]
    edge_type = jax.random.randint(kt, (E,), 0, NUM_REL)

    # dense per-relation adjacency, mean-normalized over incoming edges (RGCN aggr='mean')
    A = jnp.zeros((NUM_REL, N, N), jnp.float32).at[edge_type, dst, src].add(1.0)
    deg = A.sum(-1, keepdims=True)
    A_norm = jnp.where(deg > 0, A / jnp.maximum(deg, 1.0), 0.0)

    # GAT adjacency: any-relation edges + self loops (PyG GATConv add_self_loops=True)
    adj = (A.sum(0) > 0).astype(jnp.float32)
    adj = jnp.maximum(adj, jnp.eye(N, dtype=jnp.float32))

    params = dict(
        rgcn0=init_rgcn_params(k0, IN_DIM, HID, NUM_REL, NUM_BASES),
        ln0=init_ln_params(HID),
        rgcn1=init_rgcn_params(k1, HID, HID, NUM_REL, NUM_BASES),
        ln1=init_ln_params(HID),
        gat=init_gat_params(k2, HID, HID, HEADS),
        ln2=init_ln_params(HID),
        rgcn2=init_rgcn_params(k3, HID, OUT_DIM, NUM_REL, NUM_BASES),
    )

    fwd = jax.jit(attention_rgcn_forward)
    out = jax.block_until_ready(fwd(x, A_norm, adj, params))

    with jax.default_matmul_precision("highest"):
        ref = jax.block_until_ready(_forward_ref(x, A_norm, adj, params))

    assert out.shape == (N, OUT_DIM)
    assert jnp.all(jnp.isfinite(out)), "non-finite values in Pallas output"
    assert jnp.allclose(out, ref, rtol=5e-3, atol=5e-3), "Pallas output mismatch vs reference"
    print("KERNEL_OK")
</pallas_src>

<mosaic_0001>
module attributes {stable_mosaic.version = 11 : i64} {
  func.func @_proj_kernel(%arg0: i32, %arg1: i32, %arg2: memref<64x128xbf16, #tpu.memory_space<vmem>>, %arg3: memref<1x128x128xbf16, #tpu.memory_space<vmem>>, %arg4: memref<1x64x128xbf16, #tpu.memory_space<vmem>>) attributes {dimension_semantics = [#tpu.dimension_semantics<parallel>, #tpu.dimension_semantics<parallel>], iteration_bounds = array<i64: 3, 2>, scalar_prefetch = 0 : i64, scratch_operands = 0 : i64, tpu.core_type = #tpu.core_type<tc>, window_params = [{transform_indices = @transform_0, window_bounds = array<i64: 64, 128>}, {transform_indices = @transform_1, window_bounds = array<i64: 1, 128, 128>}, {transform_indices = @transform_2, window_bounds = array<i64: 1, 64, 128>}]} {
    %c0 = arith.constant 0 : index
    %c0_0 = arith.constant 0 : index
    %0 = vector.load %arg2[%c0, %c0_0] : memref<64x128xbf16, #tpu.memory_space<vmem>>, vector<64x128xbf16>
    %c0_1 = arith.constant 0 : index
    %c0_2 = arith.constant 0 : index
    %c0_3 = arith.constant 0 : index
    %1 = vector.load %arg3[%c0_1, %c0_2, %c0_3] : memref<1x128x128xbf16, #tpu.memory_space<vmem>>, vector<1x128x128xbf16>
    %2 = vector.shape_cast %1 : vector<1x128x128xbf16> to vector<128x128xbf16>
    %cst = arith.constant dense<0.000000e+00> : vector<64x128xf32>
    %3 = tpu.matmul %0, %2, %cst {dimension_numbers = #tpu.dot_dimension_numbers<[1], [0], [0], [1], [0, 0, 1, 1], [], []>} : vector<64x128xbf16>, vector<128x128xbf16>, vector<64x128xf32> -> vector<64x128xf32>
    %4 = arith.truncf %3 : vector<64x128xf32> to vector<64x128xbf16>
    %c0_4 = arith.constant 0 : index
    %c0_5 = arith.constant 0 : index
    %c0_6 = arith.constant 0 : index
    %5 = vector.load %arg4[%c0_4, %c0_5, %c0_6] : memref<1x64x128xbf16, #tpu.memory_space<vmem>>, vector<1x64x128xbf16>
    %6 = vector.shape_cast %5 : vector<1x64x128xbf16> to vector<64x128xbf16>
    %7 = vector.shape_cast %4 : vector<64x128xbf16> to vector<1x64x128xbf16>
    tpu.vector_store %arg4[%c0_4, %c0_5, %c0_6], %7 {strides = array<i32>} : memref<1x64x128xbf16, #tpu.memory_space<vmem>>, vector<1x64x128xbf16>,
    return
  }
  func.func @transform_0(%arg0: i32, %arg1: i32) -> (i32, i32) {
    %c0_i32 = arith.constant 0 : i32
    %c0_i32_0 = arith.constant 0 : i32
    return %arg1, %c0_i32 : i32, i32
  }
  func.func @transform_1(%arg0: i32, %arg1: i32) -> (i32, i32, i32) {
    %c0_i32 = arith.constant 0 : i32
    %c0_i32_0 = arith.constant 0 : i32
    %c0_i32_1 = arith.constant 0 : i32
    return %arg0, %c0_i32, %c0_i32_0 : i32, i32, i32
  }
  func.func @transform_2(%arg0: i32, %arg1: i32) -> (i32, i32, i32) {
    %c0_i32 = arith.constant 0 : i32
    %c0_i32_0 = arith.constant 0 : i32
    return %arg0, %arg1, %c0_i32 : i32, i32, i32
  }
}

module attributes {stable_mosaic.version = 11 : i64} {
  func.func @_rgcn_agg_kernel(%arg0: i32, %arg1: i32, %arg2: i32, %arg3: memref<6xi32, #tpu.memory_space<smem>>, %arg4: memref<64x128xbf16, #tpu.memory_space<vmem>>, %arg5: memref<128x128xbf16, #tpu.memory_space<vmem>>, %arg6: memref<1x128xf32, #tpu.memory_space<vmem>>, %arg7: memref<1x64x128xbf16, #tpu.memory_space<vmem>>, %arg8: memref<1x128x128xbf16, #tpu.memory_space<vmem>>, %arg9: memref<1x128xf32, #tpu.memory_space<vmem>>, %arg10: memref<1x128xf32, #tpu.memory_space<vmem>>, %arg11: memref<64x128xf32, #tpu.memory_space<vmem>>) attributes {dimension_semantics = [#tpu.dimension_semantics<parallel>, #tpu.dimension_semantics<arbitrary>, #tpu.dimension_semantics<arbitrary>], iteration_bounds = array<i64: 2, 3, 1>, scalar_prefetch = 1 : i64, scratch_operands = 0 : i64, tpu.core_type = #tpu.core_type<tc>, window_params = [{transform_indices = @transform_0, window_bounds = array<i64: 64, 128>}, {pipeline_mode = #tpu.pipeline_mode<synchronous>, transform_indices = @transform_1, window_bounds = array<i64: 128, 128>}, {pipeline_mode = #tpu.pipeline_mode<synchronous>, transform_indices = @transform_2, window_bounds = array<i64: 1, 128>}, {transform_indices = @transform_3, window_bounds = array<i64: 1, 64, 128>}, {transform_indices = @transform_4, window_bounds = array<i64: 1, 128, 128>}, {pipeline_mode = #tpu.pipeline_mode<synchronous>, transform_indices = @transform_5, window_bounds = array<i64: 1, 128>}, {pipeline_mode = #tpu.pipeline_mode<synchronous>, transform_indices = @transform_6, window_bounds = array<i64: 1, 128>}, {transform_indices = @transform_7, window_bounds = array<i64: 64, 128>}]} {
    %c0_i32 = arith.constant 0 : i32
    %0 = arith.cmpi eq, %arg1, %c0_i32 : i32
    %c0_i32_0 = arith.constant 0 : i32
    %1 = arith.cmpi eq, %arg2, %c0_i32_0 : i32
    %2 = arith.andi %0, %1 : i1
    %3 = arith.extui %2 : i1 to i32
    %c0_i32_1 = arith.constant 0 : i32
    %4 = arith.cmpi ne, %3, %c0_i32_1 : i32
    scf.if %4 {
      %c0 = arith.constant 0 : index
      %c0_7 = arith.constant 0 : index
      %19 = vector.load %arg4[%c0, %c0_7] : memref<64x128xbf16, #tpu.memory_space<vmem>>, vector<64x128xbf16>
      %c0_8 = arith.constant 0 : index
      %c0_9 = arith.constant 0 : index
      %20 = vector.load %arg5[%c0_8, %c0_9] : memref<128x128xbf16, #tpu.memory_space<vmem>>, vector<128x128xbf16>
      %cst = arith.constant dense<0.000000e+00> : vector<64x128xf32>
      %21 = tpu.matmul %19, %20, %cst {dimension_numbers = #tpu.dot_dimension_numbers<[1], [0], [0], [1], [0, 0, 1, 1], [], []>} : vector<64x128xbf16>, vector<128x128xbf16>, vector<64x128xf32> -> vector<64x128xf32>
      %c0_10 = arith.constant 0 : index
      %c0_11 = arith.constant 0 : index
      %22 = vector.load %arg6[%c0_10, %c0_11] : memref<1x128xf32, #tpu.memory_space<vmem>>, vector<1x128xf32>
      %23 = vector.broadcast %22 : vector<1x128xf32> to vector<64x128xf32>
      %24 = arith.addf %21, %23 : vector<64x128xf32>
      %c0_12 = arith.constant 0 : index
      %c0_13 = arith.constant 0 : index
      %25 = vector.load %arg11[%c0_12, %c0_13] : memref<64x128xf32, #tpu.memory_space<vmem>>, vector<64x128xf32>
      tpu.vector_store %arg11[%c0_12, %c0_13], %24 {strides = array<i32>} : memref<64x128xf32, #tpu.memory_space<vmem>>, vector<64x128xf32>,
    } else {
    }
    %c2_i32 = arith.constant 2 : i32
    %5 = arith.muli %arg1, %c2_i32 : i32
    %6 = arith.addi %5, %arg0 : i32
    %c1_i32 = arith.constant 1 : i32
    %7 = arith.muli %6, %c1_i32 : i32
    %8 = arith.addi %7, %arg2 : i32
    %9 = arith.index_cast %8 : i32 to index
    %10 = memref.load %arg3[%9] : memref<6xi32, #tpu.memory_space<smem>>
    %c0_i32_2 = arith.constant 0 : i32
    %11 = arith.cmpi sgt, %10, %c0_i32_2 : i32
    %12 = arith.extui %11 : i1 to i32
    %c0_i32_3 = arith.constant 0 : i32
    %13 = arith.cmpi ne, %12, %c0_i32_3 : i32
    scf.if %13 {
      %c0 = arith.constant 0 : index
      %c0_7 = arith.constant 0 : index
      %19 = vector.load %arg11[%c0, %c0_7] : memref<64x128xf32, #tpu.memory_space<vmem>>, vector<64x128xf32>
      %c0_8 = arith.constant 0 : index
      %c0_9 = arith.constant 0 : index
      %c0_10 = arith.constant 0 : index
      %20 = vector.load %arg7[%c0_8, %c0_9, %c0_10] : memref<1x64x128xbf16, #tpu.memory_space<vmem>>, vector<1x64x128xbf16>
      %21 = vector.shape_cast %20 : vector<1x64x128xbf16> to vector<64x128xbf16>
      %c0_11 = arith.constant 0 : index
      %c0_12 = arith.constant 0 : index
      %c0_13 = arith.constant 0 : index
      %22 = vector.load %arg8[%c0_11, %c0_12, %c0_13] : memref<1x128x128xbf16, #tpu.memory_space<vmem>>, vector<1x128x128xbf16>
      %23 = vector.shape_cast %22 : vector<1x128x128xbf16> to vector<128x128xbf16>
      %cst = arith.constant dense<0.000000e+00> : vector<64x128xf32>
      %24 = tpu.matmul %21, %23, %cst {dimension_numbers = #tpu.dot_dimension_numbers<[1], [0], [0], [1], [0, 0, 1, 1], [], []>} : vector<64x128xbf16>, vector<128x128xbf16>, vector<64x128xf32> -> vector<64x128xf32>
      %25 = arith.addf %19, %24 : vector<64x128xf32>
      %c0_14 = arith.constant 0 : index
      %c0_15 = arith.constant 0 : index
      %26 = vector.load %arg11[%c0_14, %c0_15] : memref<64x128xf32, #tpu.memory_space<vmem>>, vector<64x128xf32>
      tpu.vector_store %arg11[%c0_14, %c0_15], %25 {strides = array<i32>} : memref<64x128xf32, #tpu.memory_space<vmem>>, vector<64x128xf32>,
    } else {
    }
    %c2_i32_4 = arith.constant 2 : i32
    %14 = arith.cmpi eq, %arg1, %c2_i32_4 : i32
    %c0_i32_5 = arith.constant 0 : i32
    %15 = arith.cmpi eq, %arg2, %c0_i32_5 : i32
    %16 = arith.andi %14, %15 : i1
    %17 = arith.extui %16 : i1 to i32
    %c0_i32_6 = arith.constant 0 : i32
    %18 = arith.cmpi ne, %17, %c0_i32_6 : i32
    scf.if %18 {
      %c0 = arith.constant 0 : index
      %c0_7 = arith.constant 0 : index
      %19 = vector.load %arg11[%c0, %c0_7] : memref<64x128xf32, #tpu.memory_space<vmem>>, vector<64x128xf32>
      %c0_8 = arith.constant 0 : index
      %c0_9 = arith.constant 0 : index
      %20 = vector.load %arg9[%c0_8, %c0_9] : memref<1x128xf32, #tpu.memory_space<vmem>>, vector<1x128xf32>
      %c0_10 = arith.constant 0 : index
      %c0_11 = arith.constant 0 : index
      %21 = vector.load %arg10[%c0_10, %c0_11] : memref<1x128xf32, #tpu.memory_space<vmem>>, vector<1x128xf32>
      %cst = arith.constant dense<0.000000e+00> : vector<64xf32>
      %22 = vector.multi_reduction <add>, %19, %cst [1] : vector<64x128xf32> to vector<64xf32>
      %23 = vector.shape_cast %22 : vector<64xf32> to vector<64x1xf32>
      %cst_12 = arith.constant 3.125000e-02 : f32
      %24 = vector.broadcast %cst_12 : f32 to vector<64x1xf32>
      %25 = arith.mulf %23, %24 : vector<64x1xf32>
      %26 = vector.broadcast %25 : vector<64x1xf32> to vector<64x128xf32>
      %27 = arith.subf %19, %26 : vector<64x128xf32>
      %28 = tpu.iota {dimensions = array<i32: 1>} : vector<64x128xi32>
      %c32_i32 = arith.constant 32 : i32
      %29 = vector.broadcast %c32_i32 : i32 to vector<64x128xi32>
      %30 = arith.cmpi slt, %28, %29 : vector<64x128xi32>
      %31 = arith.mulf %27, %27 : vector<64x128xf32>
      %cst_13 = arith.constant 0.000000e+00 : f32
      %32 = vector.broadcast %cst_13 : f32 to vector<64x128xf32>
      %33 = arith.select %30, %31, %32 : vector<64x128xi1>, vector<64x128xf32>
      %cst_14 = arith.constant dense<0.000000e+00> : vector<64xf32>
      %34 = vector.multi_reduction <add>, %33, %cst_14 [1] : vector<64x128xf32> to vector<64xf32>
      %35 = vector.shape_cast %34 : vector<64xf32> to vector<64x1xf32>
      %cst_15 = arith.constant 3.125000e-02 : f32
      %36 = vector.broadcast %cst_15 : f32 to vector<64x1xf32>
      %37 = arith.mulf %35, %36 : vector<64x1xf32>
      %cst_16 = arith.constant 9.99999974E-6 : f32
      %38 = vector.broadcast %cst_16 : f32 to vector<64x1xf32>
      %39 = arith.addf %37, %38 : vector<64x1xf32>
      %40 = math.rsqrt %39 : vector<64x1xf32>
      %41 = vector.broadcast %40 : vector<64x1xf32> to vector<64x128xf32>
      %42 = arith.mulf %27, %41 : vector<64x128xf32>
      %43 = vector.broadcast %20 : vector<1x128xf32> to vector<64x128xf32>
      %44 = arith.mulf %42, %43 : vector<64x128xf32>
      %45 = vector.broadcast %21 : vector<1x128xf32> to vector<64x128xf32>
      %46 = arith.addf %44, %45 : vector<64x128xf32>
      %cst_17 = arith.constant 0.000000e+00 : f32
      %47 = vector.broadcast %cst_17 : f32 to vector<64x128xf32>
      %48 = arith.cmpf oge, %46, %47 : vector<64x128xf32>
      %cst_18 = arith.constant 1.000000e-01 : f32
      %49 = vector.broadcast %cst_18 : f32 to vector<64x128xf32>
      %50 = arith.mulf %49, %46 : vector<64x128xf32>
      %51 = arith.select %48, %46, %50 : vector<64x128xi1>, vector<64x128xf32>
      %c0_19 = arith.constant 0 : index
      %c0_20 = arith.constant 0 : index
      %52 = vector.load %arg11[%c0_19, %c0_20] : memref<64x128xf32, #tpu.memory_space<vmem>>, vector<64x128xf32>
      tpu.vector_store %arg11[%c0_19, %c0_20], %51 {strides = array<i32>} : memref<64x128xf32, #tpu.memory_space<vmem>>, vector<64x128xf32>,
    } else {
    }
    return
  }
  func.func @transform_0(%arg0: i32, %arg1: i32, %arg2: i32, %arg3: memref<6xi32, #tpu.memory_space<smem>>) -> (i32, i32) {
    %c0_i32 = arith.constant 0 : i32
    %c0_i32_0 = arith.constant 0 : i32
    return %arg0, %c0_i32 : i32, i32
  }
  func.func @transform_1(%arg0: i32, %arg1: i32, %arg2: i32, %arg3: memref<6xi32, #tpu.memory_space<smem>>) -> (i32, i32) {
    %c0_i32 = arith.constant 0 : i32
    %c0_i32_0 = arith.constant 0 : i32
    %c0_i32_1 = arith.constant 0 : i32
    return %c0_i32, %c0_i32_0 : i32, i32
  }
  func.func @transform_2(%arg0: i32, %arg1: i32, %arg2: i32, %arg3: memref<6xi32, #tpu.memory_space<smem>>) -> (i32, i32) {
    %c0_i32 = arith.constant 0 : i32
    %c0_i32_0 = arith.constant 0 : i32
    %c0_i32_1 = arith.constant 0 : i32
    return %c0_i32, %c0_i32_0 : i32, i32
  }
  func.func @transform_3(%arg0: i32, %arg1: i32, %arg2: i32, %arg3: memref<6xi32, #tpu.memory_space<smem>>) -> (i32, i32, i32) {
    %c0_i32 = arith.constant 0 : i32
    return %arg1, %arg0, %arg2 : i32, i32, i32
  }
  func.func @transform_4(%arg0: i32, %arg1: i32, %arg2: i32, %arg3: memref<6xi32, #tpu.memory_space<smem>>) -> (i32, i32, i32) {
    %c0_i32 = arith.constant 0 : i32
    %c0_i32_0 = arith.constant 0 : i32
    return %arg1, %arg2, %c0_i32 : i32, i32, i32
  }
  func.func @transform_5(%arg0: i32, %arg1: i32, %arg2: i32, %arg3: memref<6xi32, #tpu.memory_space<smem>>) -> (i32, i32) {
    %c0_i32 = arith.constant 0 : i32
    %c0_i32_0 = arith.constant 0 : i32
    %c0_i32_1 = arith.constant 0 : i32
    return %c0_i32, %c0_i32_0 : i32, i32
  }
  func.func @transform_6(%arg0: i32, %arg1: i32, %arg2: i32, %arg3: memref<6xi32, #tpu.memory_space<smem>>) -> (i32, i32) {
    %c0_i32 = arith.constant 0 : i32
    %c0_i32_0 = arith.constant 0 : i32
    %c0_i32_1 = arith.constant 0 : i32
    return %c0_i32, %c0_i32_0 : i32, i32
  }
  func.func @transform_7(%arg0: i32, %arg1: i32, %arg2: i32, %arg3: memref<6xi32, #tpu.memory_space<smem>>) -> (i32, i32) {
    %c0_i32 = arith.constant 0 : i32
    %c0_i32_0 = arith.constant 0 : i32
    return %arg0, %c0_i32 : i32, i32
  }
}

module attributes {stable_mosaic.version = 11 : i64} {
  func.func @_proj_kernel(%arg0: i32, %arg1: i32, %arg2: memref<64x128xbf16, #tpu.memory_space<vmem>>, %arg3: memref<1x128x128xbf16, #tpu.memory_space<vmem>>, %arg4: memref<1x64x128xbf16, #tpu.memory_space<vmem>>) attributes {dimension_semantics = [#tpu.dimension_semantics<parallel>, #tpu.dimension_semantics<parallel>], iteration_bounds = array<i64: 4, 2>, scalar_prefetch = 0 : i64, scratch_operands = 0 : i64, tpu.core_type = #tpu.core_type<tc>, window_params = [{transform_indices = @transform_0, window_bounds = array<i64: 64, 128>}, {transform_indices = @transform_1, window_bounds = array<i64: 1, 128, 128>}, {transform_indices = @transform_2, window_bounds = array<i64: 1, 64, 128>}]} {
    %c0 = arith.constant 0 : index
    %c0_0 = arith.constant 0 : index
    %0 = vector.load %arg2[%c0, %c0_0] : memref<64x128xbf16, #tpu.memory_space<vmem>>, vector<64x128xbf16>
    %c0_1 = arith.constant 0 : index
    %c0_2 = arith.constant 0 : index
    %c0_3 = arith.constant 0 : index
    %1 = vector.load %arg3[%c0_1, %c0_2, %c0_3] : memref<1x128x128xbf16, #tpu.memory_space<vmem>>, vector<1x128x128xbf16>
    %2 = vector.shape_cast %1 : vector<1x128x128xbf16> to vector<128x128xbf16>
    %cst = arith.constant dense<0.000000e+00> : vector<64x128xf32>
    %3 = tpu.matmul %0, %2, %cst {dimension_numbers = #tpu.dot_dimension_numbers<[1], [0], [0], [1], [0, 0, 1, 1], [], []>} : vector<64x128xbf16>, vector<128x128xbf16>, vector<64x128xf32> -> vector<64x128xf32>
    %4 = arith.truncf %3 : vector<64x128xf32> to vector<64x128xbf16>
    %c0_4 = arith.constant 0 : index
    %c0_5 = arith.constant 0 : index
    %c0_6 = arith.constant 0 : index
    %5 = vector.load %arg4[%c0_4, %c0_5, %c0_6] : memref<1x64x128xbf16, #tpu.memory_space<vmem>>, vector<1x64x128xbf16>
    %6 = vector.shape_cast %5 : vector<1x64x128xbf16> to vector<64x128xbf16>
    %7 = vector.shape_cast %4 : vector<64x128xbf16> to vector<1x64x128xbf16>
    tpu.vector_store %arg4[%c0_4, %c0_5, %c0_6], %7 {strides = array<i32>} : memref<1x64x128xbf16, #tpu.memory_space<vmem>>, vector<1x64x128xbf16>,
    return
  }
  func.func @transform_0(%arg0: i32, %arg1: i32) -> (i32, i32) {
    %c0_i32 = arith.constant 0 : i32
    %c0_i32_0 = arith.constant 0 : i32
    return %arg1, %c0_i32 : i32, i32
  }
  func.func @transform_1(%arg0: i32, %arg1: i32) -> (i32, i32, i32) {
    %c0_i32 = arith.constant 0 : i32
    %c0_i32_0 = arith.constant 0 : i32
    %c0_i32_1 = arith.constant 0 : i32
    return %arg0, %c0_i32, %c0_i32_0 : i32, i32, i32
  }
  func.func @transform_2(%arg0: i32, %arg1: i32) -> (i32, i32, i32) {
    %c0_i32 = arith.constant 0 : i32
    %c0_i32_0 = arith.constant 0 : i32
    return %arg0, %arg1, %c0_i32 : i32, i32, i32
  }
}

module attributes {stable_mosaic.version = 11 : i64} {
  func.func @_gat_agg_kernel(%arg0: i32, %arg1: i32, %arg2: memref<2xi32, #tpu.memory_space<smem>>, %arg3: memref<4x128x128xbf16, #tpu.memory_space<vmem>>, %arg4: memref<4x1x128xf32, #tpu.memory_space<vmem>>, %arg5: memref<4x64x1xf32, #tpu.memory_space<vmem>>, %arg6: memref<64x128xbf16, #tpu.memory_space<vmem>>, %arg7: memref<1x128xf32, #tpu.memory_space<vmem>>, %arg8: memref<1x128xf32, #tpu.memory_space<vmem>>, %arg9: memref<1x128xf32, #tpu.memory_space<vmem>>, %arg10: memref<64x128xf32, #tpu.memory_space<vmem>>, %arg11: memref<4x64x1xf32, #tpu.memory_space<vmem>>, %arg12: memref<4x64x1xf32, #tpu.memory_space<vmem>>, %arg13: memref<4x64x128xf32, #tpu.memory_space<vmem>>) attributes {dimension_semantics = [#tpu.dimension_semantics<parallel>, #tpu.dimension_semantics<arbitrary>], iteration_bounds = array<i64: 2, 1>, scalar_prefetch = 1 : i64, scratch_operands = 3 : i64, tpu.core_type = #tpu.core_type<tc>, window_params = [{transform_indices = @transform_0, window_bounds = array<i64: 4, 128, 128>}, {transform_indices = @transform_1, window_bounds = array<i64: 4, 1, 128>}, {transform_indices = @transform_2, window_bounds = array<i64: 4, 64, 1>}, {transform_indices = @transform_3, window_bounds = array<i64: 64, 128>}, {pipeline_mode = #tpu.pipeline_mode<synchronous>, transform_indices = @transform_4, window_bounds = array<i64: 1, 128>}, {pipeline_mode = #tpu.pipeline_mode<synchronous>, transform_indices = @transform_5, window_bounds = array<i64: 1, 128>}, {pipeline_mode = #tpu.pipeline_mode<synchronous>, transform_indices = @transform_6, window_bounds = array<i64: 1, 128>}, {transform_indices = @transform_7, window_bounds = array<i64: 64, 128>}]} {
    %c0_i32 = arith.constant 0 : i32
    %0 = arith.cmpi eq, %arg1, %c0_i32 : i32
    %1 = arith.extui %0 : i1 to i32
    %c0_i32_0 = arith.constant 0 : i32
    %2 = arith.cmpi ne, %1, %c0_i32_0 : i32
    scf.if %2 {
      %cst = arith.constant -1.000000e+30 : f32
      %13 = vector.broadcast %cst : f32 to vector<4x64x1xf32>
      %c0 = arith.constant 0 : index
      %c0_5 = arith.constant 0 : index
      %c0_6 = arith.constant 0 : index
      %14 = vector.load %arg11[%c0, %c0_5, %c0_6] : memref<4x64x1xf32, #tpu.memory_space<vmem>>, vector<4x64x1xf32>
      tpu.vector_store %arg11[%c0, %c0_5, %c0_6], %13 {strides = array<i32>} : memref<4x64x1xf32, #tpu.memory_space<vmem>>, vector<4x64x1xf32>,
      %cst_7 = arith.constant 0.000000e+00 : f32
      %15 = vector.broadcast %cst_7 : f32 to vector<4x64x1xf32>
      %c0_8 = arith.constant 0 : index
      %c0_9 = arith.constant 0 : index
      %c0_10 = arith.constant 0 : index
      %16 = vector.load %arg12[%c0_8, %c0_9, %c0_10] : memref<4x64x1xf32, #tpu.memory_space<vmem>>, vector<4x64x1xf32>
      tpu.vector_store %arg12[%c0_8, %c0_9, %c0_10], %15 {strides = array<i32>} : memref<4x64x1xf32, #tpu.memory_space<vmem>>, vector<4x64x1xf32>,
      %cst_11 = arith.constant 0.000000e+00 : f32
      %17 = vector.broadcast %cst_11 : f32 to vector<4x64x128xf32>
      %c0_12 = arith.constant 0 : index
      %c0_13 = arith.constant 0 : index
      %c0_14 = arith.constant 0 : index
      %18 = vector.load %arg13[%c0_12, %c0_13, %c0_14] : memref<4x64x128xf32, #tpu.memory_space<vmem>>, vector<4x64x128xf32>
      tpu.vector_store %arg13[%c0_12, %c0_13, %c0_14], %17 {strides = array<i32>} : memref<4x64x128xf32, #tpu.memory_space<vmem>>, vector<4x64x128xf32>,
    } else {
    }
    %c1_i32 = arith.constant 1 : i32
    %3 = arith.muli %arg0, %c1_i32 : i32
    %4 = arith.addi %3, %arg1 : i32
    %5 = arith.index_cast %4 : i32 to index
    %6 = memref.load %arg2[%5] : memref<2xi32, #tpu.memory_space<smem>>
    %c0_i32_1 = arith.constant 0 : i32
    %7 = arith.cmpi sgt, %6, %c0_i32_1 : i32
    %8 = arith.extui %7 : i1 to i32
    %c0_i32_2 = arith.constant 0 : i32
    %9 = arith.cmpi ne, %8, %c0_i32_2 : i32
    scf.if %9 {
      %c0 = arith.constant 0 : index
      %c0_5 = arith.constant 0 : index
      %13 = vector.load %arg6[%c0, %c0_5] : memref<64x128xbf16, #tpu.memory_space<vmem>>, vector<64x128xbf16>
      %14 = arith.extf %13 : vector<64x128xbf16> to vector<64x128xf32>
      %c0_6 = arith.constant 0 : index
      %c0_7 = arith.constant 0 : index
      %c0_8 = arith.constant 0 : index
      %15 = vector.load %arg3[%c0_6, %c0_7, %c0_8] : memref<4x128x128xbf16, #tpu.memory_space<vmem>>, vector<1x128x128xbf16>
      %16 = vector.shape_cast %15 : vector<1x128x128xbf16> to vector<128x128xbf16>
      %c0_9 = arith.constant 0 : index
      %c0_10 = arith.constant 0 : index
      %c0_11 = arith.constant 0 : index
      %17 = vector.load %arg5[%c0_9, %c0_10, %c0_11] : memref<4x64x1xf32, #tpu.memory_space<vmem>>, vector<1x64x1xf32>
      %18 = vector.shape_cast %17 : vector<1x64x1xf32> to vector<64x1xf32>
      %c0_12 = arith.constant 0 : index
      %c0_13 = arith.constant 0 : index
      %c0_14 = arith.constant 0 : index
      %19 = vector.load %arg4[%c0_12, %c0_13, %c0_14] : memref<4x1x128xf32, #tpu.memory_space<vmem>>, vector<1x1x128xf32>
      %20 = vector.shape_cast %19 : vector<1x1x128xf32> to vector<1x128xf32>
      %21 = vector.broadcast %18 : vector<64x1xf32> to vector<64x128xf32>
      %22 = vector.broadcast %20 : vector<1x128xf32> to vector<64x128xf32>
      %23 = arith.addf %21, %22 : vector<64x128xf32>
      %cst = arith.constant 0.000000e+00 : f32
      %24 = vector.broadcast %cst : f32 to vector<64x128xf32>
      %25 = arith.cmpf oge, %23, %24 : vector<64x128xf32>
      %cst_15 = arith.constant 2.000000e-01 : f32
      %26 = vector.broadcast %cst_15 : f32 to vector<64x128xf32>
      %27 = arith.mulf %26, %23 : vector<64x128xf32>
      %28 = arith.select %25, %23, %27 : vector<64x128xi1>, vector<64x128xf32>
      %cst_16 = arith.constant 0.000000e+00 : f32
      %29 = vector.broadcast %cst_16 : f32 to vector<64x128xf32>
      %30 = arith.cmpf ogt, %14, %29 : vector<64x128xf32>
      %cst_17 = arith.constant -1.000000e+30 : f32
      %31 = vector.broadcast %cst_17 : f32 to vector<64x128xf32>
      %32 = arith.select %30, %28, %31 : vector<64x128xi1>, vector<64x128xf32>
      %c0_18 = arith.constant 0 : index
      %c0_19 = arith.constant 0 : index
      %c0_20 = arith.constant 0 : index
      %33 = vector.load %arg11[%c0_18, %c0_19, %c0_20] : memref<4x64x1xf32, #tpu.memory_space<vmem>>, vector<1x64x1xf32>
      %34 = vector.shape_cast %33 : vector<1x64x1xf32> to vector<64x1xf32>
      %cst_21 = arith.constant dense<0xFF800000> : vector<64xf32>
      %35 = vector.multi_reduction <maximumf>, %32, %cst_21 [1] : vector<64x128xf32> to vector<64xf32>
      %36 = vector.shape_cast %35 : vector<64xf32> to vector<64x1xf32>
      %37 = arith.maximumf %34, %36 : vector<64x1xf32>
      %38 = arith.subf %34, %37 : vector<64x1xf32>
      %39 = math.exp %38 : vector<64x1xf32>
      %40 = vector.broadcast %37 : vector<64x1xf32> to vector<64x128xf32>
      %41 = arith.subf %32, %40 : vector<64x128xf32>
      %42 = math.exp %41 : vector<64x128xf32>
      %43 = arith.mulf %42, %14 : vector<64x128xf32>
      %c0_22 = arith.constant 0 : index
      %c0_23 = arith.constant 0 : index
      %c0_24 = arith.constant 0 : index
      %44 = vector.load %arg12[%c0_22, %c0_23, %c0_24] : memref<4x64x1xf32, #tpu.memory_space<vmem>>, vector<1x64x1xf32>
      %45 = vector.shape_cast %44 : vector<1x64x1xf32> to vector<64x1xf32>
      %46 = arith.mulf %39, %45 : vector<64x1xf32>
      %cst_25 = arith.constant dense<0.000000e+00> : vector<64xf32>
      %47 = vector.multi_reduction <add>, %43, %cst_25 [1] : vector<64x128xf32> to vector<64xf32>
      %48 = vector.shape_cast %47 : vector<64xf32> to vector<64x1xf32>
      %49 = arith.addf %46, %48 : vector<64x1xf32>
      %c0_26 = arith.constant 0 : index
      %c0_27 = arith.constant 0 : index
      %c0_28 = arith.constant 0 : index
      %50 = vector.load %arg12[%c0_26, %c0_27, %c0_28] : memref<4x64x1xf32, #tpu.memory_space<vmem>>, vector<1x64x1xf32>
      %51 = vector.shape_cast %50 : vector<1x64x1xf32> to vector<64x1xf32>
      %52 = vector.shape_cast %49 : vector<64x1xf32> to vector<1x64x1xf32>
      tpu.vector_store %arg12[%c0_26, %c0_27, %c0_28], %52 {strides = array<i32>} : memref<4x64x1xf32, #tpu.memory_space<vmem>>, vector<1x64x1xf32>,
      %c0_29 = arith.constant 0 : index
      %c0_30 = arith.constant 0 : index
      %c0_31 = arith.constant 0 : index
      %53 = vector.load %arg13[%c0_29, %c0_30, %c0_31] : memref<4x64x128xf32, #tpu.memory_space<vmem>>, vector<1x64x128xf32>
      %54 = vector.shape_cast %53 : vector<1x64x128xf32> to vector<64x128xf32>
      %55 = vector.broadcast %39 : vector<64x1xf32> to vector<64x128xf32>
      %56 = arith.mulf %55, %54 : vector<64x128xf32>
      %57 = arith.extf %16 : vector<128x128xbf16> to vector<128x128xf32>
      %cst_32 = arith.constant dense<0.000000e+00> : vector<64x128xf32>
      %58 = tpu.matmul %43, %57, %cst_32 {dimension_numbers = #tpu.dot_dimension_numbers<[1], [0], [0], [1], [0, 0, 1, 1], [], []>} : vector<64x128xf32>, vector<128x128xf32>, vector<64x128xf32> -> vector<64x128xf32>
      %59 = arith.addf %56, %58 : vector<64x128xf32>
      %c0_33 = arith.constant 0 : index
      %c0_34 = arith.constant 0 : index
      %c0_35 = arith.constant 0 : index
      %60 = vector.load %arg13[%c0_33, %c0_34, %c0_35] : memref<4x64x128xf32, #tpu.memory_space<vmem>>, vector<1x64x128xf32>
      %61 = vector.shape_cast %60 : vector<1x64x128xf32> to vector<64x128xf32>
      %62 = vector.shape_cast %59 : vector<64x128xf32> to vector<1x64x128xf32>
      tpu.vector_store %arg13[%c0_33, %c0_34, %c0_35], %62 {strides = array<i32>} : memref<4x64x128xf32, #tpu.memory_space<vmem>>, vector<1x64x128xf32>,
      %c0_36 = arith.constant 0 : index
      %c0_37 = arith.constant 0 : index
      %c0_38 = arith.constant 0 : index
      %63 = vector.load %arg11[%c0_36, %c0_37, %c0_38] : memref<4x64x1xf32, #tpu.memory_space<vmem>>, vector<1x64x1xf32>
      %64 = vector.shape_cast %63 : vector<1x64x1xf32> to vector<64x1xf32>
      %65 = vector.shape_cast %37 : vector<64x1xf32> to vector<1x64x1xf32>
      tpu.vector_store %arg11[%c0_36, %c0_37, %c0_38], %65 {strides = array<i32>} : memref<4x64x1xf32, #tpu.memory_space<vmem>>, vector<1x64x1xf32>,
      %c1 = arith.constant 1 : index
      %c0_39 = arith.constant 0 : index
      %c0_40 = arith.constant 0 : index
      %66 = vector.load %arg3[%c1, %c0_39, %c0_40] : memref<4x128x128xbf16, #tpu.memory_space<vmem>>, vector<1x128x128xbf16>
      %67 = vector.shape_cast %66 : vector<1x128x128xbf16> to vector<128x128xbf16>
      %c1_41 = arith.constant 1 : index
      %c0_42 = arith.constant 0 : index
      %c0_43 = arith.constant 0 : index
      %68 = vector.load %arg5[%c1_41, %c0_42, %c0_43] : memref<4x64x1xf32, #tpu.memory_space<vmem>>, vector<1x64x1xf32>
      %69 = vector.shape_cast %68 : vector<1x64x1xf32> to vector<64x1xf32>
      %c1_44 = arith.constant 1 : index
      %c0_45 = arith.constant 0 : index
      %c0_46 = arith.constant 0 : index
      %70 = vector.load %arg4[%c1_44, %c0_45, %c0_46] : memref<4x1x128xf32, #tpu.memory_space<vmem>>, vector<1x1x128xf32>
      %71 = vector.shape_cast %70 : vector<1x1x128xf32> to vector<1x128xf32>
      %72 = vector.broadcast %69 : vector<64x1xf32> to vector<64x128xf32>
      %73 = vector.broadcast %71 : vector<1x128xf32> to vector<64x128xf32>
      %74 = arith.addf %72, %73 : vector<64x128xf32>
      %cst_47 = arith.constant 0.000000e+00 : f32
      %75 = vector.broadcast %cst_47 : f32 to vector<64x128xf32>
      %76 = arith.cmpf oge, %74, %75 : vector<64x128xf32>
      %cst_48 = arith.constant 2.000000e-01 : f32
      %77 = vector.broadcast %cst_48 : f32 to vector<64x128xf32>
      %78 = arith.mulf %77, %74 : vector<64x128xf32>
      %79 = arith.select %76, %74, %78 : vector<64x128xi1>, vector<64x128xf32>
      %cst_49 = arith.constant 0.000000e+00 : f32
      %80 = vector.broadcast %cst_49 : f32 to vector<64x128xf32>
      %81 = arith.cmpf ogt, %14, %80 : vector<64x128xf32>
      %cst_50 = arith.constant -1.000000e+30 : f32
      %82 = vector.broadcast %cst_50 : f32 to vector<64x128xf32>
      %83 = arith.select %81, %79, %82 : vector<64x128xi1>, vector<64x128xf32>
      %c1_51 = arith.constant 1 : index
      %c0_52 = arith.constant 0 : index
      %c0_53 = arith.constant 0 : index
      %84 = vector.load %arg11[%c1_51, %c0_52, %c0_53] : memref<4x64x1xf32, #tpu.memory_space<vmem>>, vector<1x64x1xf32>
      %85 = vector.shape_cast %84 : vector<1x64x1xf32> to vector<64x1xf32>
      %cst_54 = arith.constant dense<0xFF800000> : vector<64xf32>
      %86 = vector.multi_reduction <maximumf>, %83, %cst_54 [1] : vector<64x128xf32> to vector<64xf32>
      %87 = vector.shape_cast %86 : vector<64xf32> to vector<64x1xf32>
      %88 = arith.maximumf %85, %87 : vector<64x1xf32>
      %89 = arith.subf %85, %88 : vector<64x1xf32>
      %90 = math.exp %89 : vector<64x1xf32>
      %91 = vector.broadcast %88 : vector<64x1xf32> to vector<64x128xf32>
      %92 = arith.subf %83, %91 : vector<64x128xf32>
      %93 = math.exp %92 : vector<64x128xf32>
      %94 = arith.mulf %93, %14 : vector<64x128xf32>
      %c1_55 = arith.constant 1 : index
      %c0_56 = arith.constant 0 : index
      %c0_57 = arith.constant 0 : index
      %95 = vector.load %arg12[%c1_55, %c0_56, %c0_57] : memref<4x64x1xf32, #tpu.memory_space<vmem>>, vector<1x64x1xf32>
      %96 = vector.shape_cast %95 : vector<1x64x1xf32> to vector<64x1xf32>
      %97 = arith.mulf %90, %96 : vector<64x1xf32>
      %cst_58 = arith.constant dense<0.000000e+00> : vector<64xf32>
      %98 = vector.multi_reduction <add>, %94, %cst_58 [1] : vector<64x128xf32> to vector<64xf32>
      %99 = vector.shape_cast %98 : vector<64xf32> to vector<64x1xf32>
      %100 = arith.addf %97, %99 : vector<64x1xf32>
      %c1_59 = arith.constant 1 : index
      %c0_60 = arith.constant 0 : index
      %c0_61 = arith.constant 0 : index
      %101 = vector.load %arg12[%c1_59, %c0_60, %c0_61] : memref<4x64x1xf32, #tpu.memory_space<vmem>>, vector<1x64x1xf32>
      %102 = vector.shape_cast %101 : vector<1x64x1xf32> to vector<64x1xf32>
      %103 = vector.shape_cast %100 : vector<64x1xf32> to vector<1x64x1xf32>
      tpu.vector_store %arg12[%c1_59, %c0_60, %c0_61], %103 {strides = array<i32>} : memref<4x64x1xf32, #tpu.memory_space<vmem>>, vector<1x64x1xf32>,
      %c1_62 = arith.constant 1 : index
      %c0_63 = arith.constant 0 : index
      %c0_64 = arith.constant 0 : index
      %104 = vector.load %arg13[%c1_62, %c0_63, %c0_64] : memref<4x64x128xf32, #tpu.memory_space<vmem>>, vector<1x64x128xf32>
      %105 = vector.shape_cast %104 : vector<1x64x128xf32> to vector<64x128xf32>
      %106 = vector.broadcast %90 : vector<64x1xf32> to vector<64x128xf32>
      %107 = arith.mulf %106, %105 : vector<64x128xf32>
      %108 = arith.extf %67 : vector<128x128xbf16> to vector<128x128xf32>
      %cst_65 = arith.constant dense<0.000000e+00> : vector<64x128xf32>
      %109 = tpu.matmul %94, %108, %cst_65 {dimension_numbers = #tpu.dot_dimension_numbers<[1], [0], [0], [1], [0, 0, 1, 1], [], []>} : vector<64x128xf32>, vector<128x128xf32>, vector<64x128xf32> -> vector<64x128xf32>
      %110 = arith.addf %107, %109 : vector<64x128xf32>
      %c1_66 = arith.constant 1 : index
      %c0_67 = arith.constant 0 : index
      %c0_68 = arith.constant 0 : index
      %111 = vector.load %arg13[%c1_66, %c0_67, %c0_68] : memref<4x64x128xf32, #tpu.memory_space<vmem>>, vector<1x64x128xf32>
      %112 = vector.shape_cast %111 : vector<1x64x128xf32> to vector<64x128xf32>
      %113 = vector.shape_cast %110 : vector<64x128xf32> to vector<1x64x128xf32>
      tpu.vector_store %arg13[%c1_66, %c0_67, %c0_68], %113 {strides = array<i32>} : memref<4x64x128xf32, #tpu.memory_space<vmem>>, vector<1x64x128xf32>,
      %c1_69 = arith.constant 1 : index
      %c0_70 = arith.constant 0 : index
      %c0_71 = arith.constant 0 : index
      %114 = vector.load %arg11[%c1_69, %c0_70, %c0_71] : memref<4x64x1xf32, #tpu.memory_space<vmem>>, vector<1x64x1xf32>
      %115 = vector.shape_cast %114 : vector<1x64x1xf32> to vector<64x1xf32>
      %116 = vector.shape_cast %88 : vector<64x1xf32> to vector<1x64x1xf32>
      tpu.vector_store %arg11[%c1_69, %c0_70, %c0_71], %116 {strides = array<i32>} : memref<4x64x1xf32, #tpu.memory_space<vmem>>, vector<1x64x1xf32>,
      %c2 = arith.constant 2 : index
      %c0_72 = arith.constant 0 : index
      %c0_73 = arith.constant 0 : index
      %117 = vector.load %arg3[%c2, %c0_72, %c0_73] : memref<4x128x128xbf16, #tpu.memory_space<vmem>>, vector<1x128x128xbf16>
      %118 = vector.shape_cast %117 : vector<1x128x128xbf16> to vector<128x128xbf16>
      %c2_74 = arith.constant 2 : index
      %c0_75 = arith.constant 0 : index
      %c0_76 = arith.constant 0 : index
      %119 = vector.load %arg5[%c2_74, %c0_75, %c0_76] : memref<4x64x1xf32, #tpu.memory_space<vmem>>, vector<1x64x1xf32>
      %120 = vector.shape_cast %119 : vector<1x64x1xf32> to vector<64x1xf32>
      %c2_77 = arith.constant 2 : index
      %c0_78 = arith.constant 0 : index
      %c0_79 = arith.constant 0 : index
      %121 = vector.load %arg4[%c2_77, %c0_78, %c0_79] : memref<4x1x128xf32, #tpu.memory_space<vmem>>, vector<1x1x128xf32>
      %122 = vector.shape_cast %121 : vector<1x1x128xf32> to vector<1x128xf32>
      %123 = vector.broadcast %120 : vector<64x1xf32> to vector<64x128xf32>
      %124 = vector.broadcast %122 : vector<1x128xf32> to vector<64x128xf32>
      %125 = arith.addf %123, %124 : vector<64x128xf32>
      %cst_80 = arith.constant 0.000000e+00 : f32
      %126 = vector.broadcast %cst_80 : f32 to vector<64x128xf32>
      %127 = arith.cmpf oge, %125, %126 : vector<64x128xf32>
      %cst_81 = arith.constant 2.000000e-01 : f32
      %128 = vector.broadcast %cst_81 : f32 to vector<64x128xf32>
      %129 = arith.mulf %128, %125 : vector<64x128xf32>
      %130 = arith.select %127, %125, %129 : vector<64x128xi1>, vector<64x128xf32>
      %cst_82 = arith.constant 0.000000e+00 : f32
      %131 = vector.broadcast %cst_82 : f32 to vector<64x128xf32>
      %132 = arith.cmpf ogt, %14, %131 : vector<64x128xf32>
      %cst_83 = arith.constant -1.000000e+30 : f32
      %133 = vector.broadcast %cst_83 : f32 to vector<64x128xf32>
      %134 = arith.select %132, %130, %133 : vector<64x128xi1>, vector<64x128xf32>
      %c2_84 = arith.constant 2 : index
      %c0_85 = arith.constant 0 : index
      %c0_86 = arith.constant 0 : index
      %135 = vector.load %arg11[%c2_84, %c0_85, %c0_86] : memref<4x64x1xf32, #tpu.memory_space<vmem>>, vector<1x64x1xf32>
      %136 = vector.shape_cast %135 : vector<1x64x1xf32> to vector<64x1xf32>
      %cst_87 = arith.constant dense<0xFF800000> : vector<64xf32>
      %137 = vector.multi_reduction <maximumf>, %134, %cst_87 [1] : vector<64x128xf32> to vector<64xf32>
      %138 = vector.shape_cast %137 : vector<64xf32> to vector<64x1xf32>
      %139 = arith.maximumf %136, %138 : vector<64x1xf32>
      %140 = arith.subf %136, %139 : vector<64x1xf32>
      %141 = math.exp %140 : vector<64x1xf32>
      %142 = vector.broadcast %139 : vector<64x1xf32> to vector<64x128xf32>
      %143 = arith.subf %134, %142 : vector<64x128xf32>
      %144 = math.exp %143 : vector<64x128xf32>
      %145 = arith.mulf %144, %14 : vector<64x128xf32>
      %c2_88 = arith.constant 2 : index
      %c0_89 = arith.constant 0 : index
      %c0_90 = arith.constant 0 : index
      %146 = vector.load %arg12[%c2_88, %c0_89, %c0_90] : memref<4x64x1xf32, #tpu.memory_space<vmem>>, vector<1x64x1xf32>
      %147 = vector.shape_cast %146 : vector<1x64x1xf32> to vector<64x1xf32>
      %148 = arith.mulf %141, %147 : vector<64x1xf32>
      %cst_91 = arith.constant dense<0.000000e+00> : vector<64xf32>
      %149 = vector.multi_reduction <add>, %145, %cst_91 [1] : vector<64x128xf32> to vector<64xf32>
      %150 = vector.shape_cast %149 : vector<64xf32> to vector<64x1xf32>
      %151 = arith.addf %148, %150 : vector<64x1xf32>
      %c2_92 = arith.constant 2 : index
      %c0_93 = arith.constant 0 : index
      %c0_94 = arith.constant 0 : index
      %152 = vector.load %arg12[%c2_92, %c0_93, %c0_94] : memref<4x64x1xf32, #tpu.memory_space<vmem>>, vector<1x64x1xf32>
      %153 = vector.shape_cast %152 : vector<1x64x1xf32> to vector<64x1xf32>
      %154 = vector.shape_cast %151 : vector<64x1xf32> to vector<1x64x1xf32>
      tpu.vector_store %arg12[%c2_92, %c0_93, %c0_94], %154 {strides = array<i32>} : memref<4x64x1xf32, #tpu.memory_space<vmem>>, vector<1x64x1xf32>,
      %c2_95 = arith.constant 2 : index
      %c0_96 = arith.constant 0 : index
      %c0_97 = arith.constant 0 : index
      %155 = vector.load %arg13[%c2_95, %c0_96, %c0_97] : memref<4x64x128xf32, #tpu.memory_space<vmem>>, vector<1x64x128xf32>
      %156 = vector.shape_cast %155 : vector<1x64x128xf32> to vector<64x128xf32>
      %157 = vector.broadcast %141 : vector<64x1xf32> to vector<64x128xf32>
      %158 = arith.mulf %157, %156 : vector<64x128xf32>
      %159 = arith.extf %118 : vector<128x128xbf16> to vector<128x128xf32>
      %cst_98 = arith.constant dense<0.000000e+00> : vector<64x128xf32>
      %160 = tpu.matmul %145, %159, %cst_98 {dimension_numbers = #tpu.dot_dimension_numbers<[1], [0], [0], [1], [0, 0, 1, 1], [], []>} : vector<64x128xf32>, vector<128x128xf32>, vector<64x128xf32> -> vector<64x128xf32>
      %161 = arith.addf %158, %160 : vector<64x128xf32>
      %c2_99 = arith.constant 2 : index
      %c0_100 = arith.constant 0 : index
      %c0_101 = arith.constant 0 : index
      %162 = vector.load %arg13[%c2_99, %c0_100, %c0_101] : memref<4x64x128xf32, #tpu.memory_space<vmem>>, vector<1x64x128xf32>
      %163 = vector.shape_cast %162 : vector<1x64x128xf32> to vector<64x128xf32>
      %164 = vector.shape_cast %161 : vector<64x128xf32> to vector<1x64x128xf32>
      tpu.vector_store %arg13[%c2_99, %c0_100, %c0_101], %164 {strides = array<i32>} : memref<4x64x128xf32, #tpu.memory_space<vmem>>, vector<1x64x128xf32>,
      %c2_102 = arith.constant 2 : index
      %c0_103 = arith.constant 0 : index
      %c0_104 = arith.constant 0 : index
      %165 = vector.load %arg11[%c2_102, %c0_103, %c0_104] : memref<4x64x1xf32, #tpu.memory_space<vmem>>, vector<1x64x1xf32>
      %166 = vector.shape_cast %165 : vector<1x64x1xf32> to vector<64x1xf32>
      %167 = vector.shape_cast %139 : vector<64x1xf32> to vector<1x64x1xf32>
      tpu.vector_store %arg11[%c2_102, %c0_103, %c0_104], %167 {strides = array<i32>} : memref<4x64x1xf32, #tpu.memory_space<vmem>>, vector<1x64x1xf32>,
      %c3 = arith.constant 3 : index
      %c0_105 = arith.constant 0 : index
      %c0_106 = arith.constant 0 : index
      %168 = vector.load %arg3[%c3, %c0_105, %c0_106] : memref<4x128x128xbf16, #tpu.memory_space<vmem>>, vector<1x128x128xbf16>
      %169 = vector.shape_cast %168 : vector<1x128x128xbf16> to vector<128x128xbf16>
      %c3_107 = arith.constant 3 : index
      %c0_108 = arith.constant 0 : index
      %c0_109 = arith.constant 0 : index
      %170 = vector.load %arg5[%c3_107, %c0_108, %c0_109] : memref<4x64x1xf32, #tpu.memory_space<vmem>>, vector<1x64x1xf32>
      %171 = vector.shape_cast %170 : vector<1x64x1xf32> to vector<64x1xf32>
      %c3_110 = arith.constant 3 : index
      %c0_111 = arith.constant 0 : index
      %c0_112 = arith.constant 0 : index
      %172 = vector.load %arg4[%c3_110, %c0_111, %c0_112] : memref<4x1x128xf32, #tpu.memory_space<vmem>>, vector<1x1x128xf32>
      %173 = vector.shape_cast %172 : vector<1x1x128xf32> to vector<1x128xf32>
      %174 = vector.broadcast %171 : vector<64x1xf32> to vector<64x128xf32>
      %175 = vector.broadcast %173 : vector<1x128xf32> to vector<64x128xf32>
      %176 = arith.addf %174, %175 : vector<64x128xf32>
      %cst_113 = arith.constant 0.000000e+00 : f32
      %177 = vector.broadcast %cst_113 : f32 to vector<64x128xf32>
      %178 = arith.cmpf oge, %176, %177 : vector<64x128xf32>
      %cst_114 = arith.constant 2.000000e-01 : f32
      %179 = vector.broadcast %cst_114 : f32 to vector<64x128xf32>
      %180 = arith.mulf %179, %176 : vector<64x128xf32>
      %181 = arith.select %178, %176, %180 : vector<64x128xi1>, vector<64x128xf32>
      %cst_115 = arith.constant 0.000000e+00 : f32
      %182 = vector.broadcast %cst_115 : f32 to vector<64x128xf32>
      %183 = arith.cmpf ogt, %14, %182 : vector<64x128xf32>
      %cst_116 = arith.constant -1.000000e+30 : f32
      %184 = vector.broadcast %cst_116 : f32 to vector<64x128xf32>
      %185 = arith.select %183, %181, %184 : vector<64x128xi1>, vector<64x128xf32>
      %c3_117 = arith.constant 3 : index
      %c0_118 = arith.constant 0 : index
      %c0_119 = arith.constant 0 : index
      %186 = vector.load %arg11[%c3_117, %c0_118, %c0_119] : memref<4x64x1xf32, #tpu.memory_space<vmem>>, vector<1x64x1xf32>
      %187 = vector.shape_cast %186 : vector<1x64x1xf32> to vector<64x1xf32>
      %cst_120 = arith.constant dense<0xFF800000> : vector<64xf32>
      %188 = vector.multi_reduction <maximumf>, %185, %cst_120 [1] : vector<64x128xf32> to vector<64xf32>
      %189 = vector.shape_cast %188 : vector<64xf32> to vector<64x1xf32>
      %190 = arith.maximumf %187, %189 : vector<64x1xf32>
      %191 = arith.subf %187, %190 : vector<64x1xf32>
      %192 = math.exp %191 : vector<64x1xf32>
      %193 = vector.broadcast %190 : vector<64x1xf32> to vector<64x128xf32>
      %194 = arith.subf %185, %193 : vector<64x128xf32>
      %195 = math.exp %194 : vector<64x128xf32>
      %196 = arith.mulf %195, %14 : vector<64x128xf32>
      %c3_121 = arith.constant 3 : index
      %c0_122 = arith.constant 0 : index
      %c0_123 = arith.constant 0 : index
      %197 = vector.load %arg12[%c3_121, %c0_122, %c0_123] : memref<4x64x1xf32, #tpu.memory_space<vmem>>, vector<1x64x1xf32>
      %198 = vector.shape_cast %197 : vector<1x64x1xf32> to vector<64x1xf32>
      %199 = arith.mulf %192, %198 : vector<64x1xf32>
      %cst_124 = arith.constant dense<0.000000e+00> : vector<64xf32>
      %200 = vector.multi_reduction <add>, %196, %cst_124 [1] : vector<64x128xf32> to vector<64xf32>
      %201 = vector.shape_cast %200 : vector<64xf32> to vector<64x1xf32>
      %202 = arith.addf %199, %201 : vector<64x1xf32>
      %c3_125 = arith.constant 3 : index
      %c0_126 = arith.constant 0 : index
      %c0_127 = arith.constant 0 : index
      %203 = vector.load %arg12[%c3_125, %c0_126, %c0_127] : memref<4x64x1xf32, #tpu.memory_space<vmem>>, vector<1x64x1xf32>
      %204 = vector.shape_cast %203 : vector<1x64x1xf32> to vector<64x1xf32>
      %205 = vector.shape_cast %202 : vector<64x1xf32> to vector<1x64x1xf32>
      tpu.vector_store %arg12[%c3_125, %c0_126, %c0_127], %205 {strides = array<i32>} : memref<4x64x1xf32, #tpu.memory_space<vmem>>, vector<1x64x1xf32>,
      %c3_128 = arith.constant 3 : index
      %c0_129 = arith.constant 0 : index
      %c0_130 = arith.constant 0 : index
      %206 = vector.load %arg13[%c3_128, %c0_129, %c0_130] : memref<4x64x128xf32, #tpu.memory_space<vmem>>, vector<1x64x128xf32>
      %207 = vector.shape_cast %206 : vector<1x64x128xf32> to vector<64x128xf32>
      %208 = vector.broadcast %192 : vector<64x1xf32> to vector<64x128xf32>
      %209 = arith.mulf %208, %207 : vector<64x128xf32>
      %210 = arith.extf %169 : vector<128x128xbf16> to vector<128x128xf32>
      %cst_131 = arith.constant dense<0.000000e+00> : vector<64x128xf32>
      %211 = tpu.matmul %196, %210, %cst_131 {dimension_numbers = #tpu.dot_dimension_numbers<[1], [0], [0], [1], [0, 0, 1, 1], [], []>} : vector<64x128xf32>, vector<128x128xf32>, vector<64x128xf32> -> vector<64x128xf32>
      %212 = arith.addf %209, %211 : vector<64x128xf32>
      %c3_132 = arith.constant 3 : index
      %c0_133 = arith.constant 0 : index
      %c0_134 = arith.constant 0 : index
      %213 = vector.load %arg13[%c3_132, %c0_133, %c0_134] : memref<4x64x128xf32, #tpu.memory_space<vmem>>, vector<1x64x128xf32>
      %214 = vector.shape_cast %213 : vector<1x64x128xf32> to vector<64x128xf32>
      %215 = vector.shape_cast %212 : vector<64x128xf32> to vector<1x64x128xf32>
      tpu.vector_store %arg13[%c3_132, %c0_133, %c0_134], %215 {strides = array<i32>} : memref<4x64x128xf32, #tpu.memory_space<vmem>>, vector<1x64x128xf32>,
      %c3_135 = arith.constant 3 : index
      %c0_136 = arith.constant 0 : index
      %c0_137 = arith.constant 0 : index
      %216 = vector.load %arg11[%c3_135, %c0_136, %c0_137] : memref<4x64x1xf32, #tpu.memory_space<vmem>>, vector<1x64x1xf32>
      %217 = vector.shape_cast %216 : vector<1x64x1xf32> to vector<64x1xf32>
      %218 = vector.shape_cast %190 : vector<64x1xf32> to vector<1x64x1xf32>
      tpu.vector_store %arg11[%c3_135, %c0_136, %c0_137], %218 {strides = array<i32>} : memref<4x64x1xf32, #tpu.memory_space<vmem>>, vector<1x64x1xf32>,
    } else {
    }
    %c0_i32_3 = arith.constant 0 : i32
    %10 = arith.cmpi eq, %arg1, %c0_i32_3 : i32
    %11 = arith.extui %10 : i1 to i32
    %c0_i32_4 = arith.constant 0 : i32
    %12 = arith.cmpi ne, %11, %c0_i32_4 : i32
    scf.if %12 {
      %cst = arith.constant 0.000000e+00 : f32
      %13 = vector.broadcast %cst : f32 to vector<64x128xf32>
      %c0 = arith.constant 0 : index
      %c0_5 = arith.constant 0 : index
      %c0_6 = arith.constant 0 : index
      %14 = vector.load %arg12[%c0, %c0_5, %c0_6] : memref<4x64x1xf32, #tpu.memory_space<vmem>>, vector<1x64x1xf32>
      %15 = vector.shape_cast %14 : vector<1x64x1xf32> to vector<64x1xf32>
      %cst_7 = arith.constant 1.000000e-30 : f32
      %16 = vector.broadcast %cst_7 : f32 to vector<64x1xf32>
      %17 = arith.maximumf %15, %16 : vector<64x1xf32>
      %18 = tpu.reciprocal %17 : vector<64x1xf32> -> vector<64x1xf32>
      %c0_8 = arith.constant 0 : index
      %c0_9 = arith.constant 0 : index
      %c0_10 = arith.constant 0 : index
      %19 = vector.load %arg13[%c0_8, %c0_9, %c0_10] : memref<4x64x128xf32, #tpu.memory_space<vmem>>, vector<1x64x128xf32>
      %20 = vector.shape_cast %19 : vector<1x64x128xf32> to vector<64x128xf32>
      %21 = vector.broadcast %18 : vector<64x1xf32> to vector<64x128xf32>
      %22 = arith.mulf %20, %21 : vector<64x128xf32>
      %23 = arith.addf %13, %22 : vector<64x128xf32>
      %c1 = arith.constant 1 : index
      %c0_11 = arith.constant 0 : index
      %c0_12 = arith.constant 0 : index
      %24 = vector.load %arg12[%c1, %c0_11, %c0_12] : memref<4x64x1xf32, #tpu.memory_space<vmem>>, vector<1x64x1xf32>
      %25 = vector.shape_cast %24 : vector<1x64x1xf32> to vector<64x1xf32>
      %cst_13 = arith.constant 1.000000e-30 : f32
      %26 = vector.broadcast %cst_13 : f32 to vector<64x1xf32>
      %27 = arith.maximumf %25, %26 : vector<64x1xf32>
      %28 = tpu.reciprocal %27 : vector<64x1xf32> -> vector<64x1xf32>
      %c1_14 = arith.constant 1 : index
      %c0_15 = arith.constant 0 : index
      %c0_16 = arith.constant 0 : index
      %29 = vector.load %arg13[%c1_14, %c0_15, %c0_16] : memref<4x64x128xf32, #tpu.memory_space<vmem>>, vector<1x64x128xf32>
      %30 = vector.shape_cast %29 : vector<1x64x128xf32> to vector<64x128xf32>
      %31 = vector.broadcast %28 : vector<64x1xf32> to vector<64x128xf32>
      %32 = arith.mulf %30, %31 : vector<64x128xf32>
      %33 = arith.addf %23, %32 : vector<64x128xf32>
      %c2 = arith.constant 2 : index
      %c0_17 = arith.constant 0 : index
      %c0_18 = arith.constant 0 : index
      %34 = vector.load %arg12[%c2, %c0_17, %c0_18] : memref<4x64x1xf32, #tpu.memory_space<vmem>>, vector<1x64x1xf32>
      %35 = vector.shape_cast %34 : vector<1x64x1xf32> to vector<64x1xf32>
      %cst_19 = arith.constant 1.000000e-30 : f32
      %36 = vector.broadcast %cst_19 : f32 to vector<64x1xf32>
      %37 = arith.maximumf %35, %36 : vector<64x1xf32>
      %38 = tpu.reciprocal %37 : vector<64x1xf32> -> vector<64x1xf32>
      %c2_20 = arith.constant 2 : index
      %c0_21 = arith.constant 0 : index
      %c0_22 = arith.constant 0 : index
      %39 = vector.load %arg13[%c2_20, %c0_21, %c0_22] : memref<4x64x128xf32, #tpu.memory_space<vmem>>, vector<1x64x128xf32>
      %40 = vector.shape_cast %39 : vector<1x64x128xf32> to vector<64x128xf32>
      %41 = vector.broadcast %38 : vector<64x1xf32> to vector<64x128xf32>
      %42 = arith.mulf %40, %41 : vector<64x128xf32>
      %43 = arith.addf %33, %42 : vector<64x128xf32>
      %c3 = arith.constant 3 : index
      %c0_23 = arith.constant 0 : index
      %c0_24 = arith.constant 0 : index
      %44 = vector.load %arg12[%c3, %c0_23, %c0_24] : memref<4x64x1xf32, #tpu.memory_space<vmem>>, vector<1x64x1xf32>
      %45 = vector.shape_cast %44 : vector<1x64x1xf32> to vector<64x1xf32>
      %cst_25 = arith.constant 1.000000e-30 : f32
      %46 = vector.broadcast %cst_25 : f32 to vector<64x1xf32>
      %47 = arith.maximumf %45, %46 : vector<64x1xf32>
      %48 = tpu.reciprocal %47 : vector<64x1xf32> -> vector<64x1xf32>
      %c3_26 = arith.constant 3 : index
      %c0_27 = arith.constant 0 : index
      %c0_28 = arith.constant 0 : index
      %49 = vector.load %arg13[%c3_26, %c0_27, %c0_28] : memref<4x64x128xf32, #tpu.memory_space<vmem>>, vector<1x64x128xf32>
      %50 = vector.shape_cast %49 : vector<1x64x128xf32> to vector<64x128xf32>
      %51 = vector.broadcast %48 : vector<64x1xf32> to vector<64x128xf32>
      %52 = arith.mulf %50, %51 : vector<64x128xf32>
      %53 = arith.addf %43, %52 : vector<64x128xf32>
      %cst_29 = arith.constant 2.500000e-01 : f32
      %54 = vector.broadcast %cst_29 : f32 to vector<64x128xf32>
      %55 = arith.mulf %53, %54 : vector<64x128xf32>
      %c0_30 = arith.constant 0 : index
      %c0_31 = arith.constant 0 : index
      %56 = vector.load %arg7[%c0_30, %c0_31] : memref<1x128xf32, #tpu.memory_space<vmem>>, vector<1x128xf32>
      %57 = vector.broadcast %56 : vector<1x128xf32> to vector<64x128xf32>
      %58 = arith.addf %55, %57 : vector<64x128xf32>
      %c0_32 = arith.constant 0 : index
      %c0_33 = arith.constant 0 : index
      %59 = vector.load %arg8[%c0_32, %c0_33] : memref<1x128xf32, #tpu.memory_space<vmem>>, vector<1x128xf32>
      %c0_34 = arith.constant 0 : index
      %c0_35 = arith.constant 0 : index
      %60 = vector.load %arg9[%c0_34, %c0_35] : memref<1x128xf32, #tpu.memory_space<vmem>>, vector<1x128xf32>
      %cst_36 = arith.constant dense<0.000000e+00> : vector<64xf32>
      %61 = vector.multi_reduction <add>, %58, %cst_36 [1] : vector<64x128xf32> to vector<64xf32>
      %62 = vector.shape_cast %61 : vector<64xf32> to vector<64x1xf32>
      %cst_37 = arith.constant 3.125000e-02 : f32
      %63 = vector.broadcast %cst_37 : f32 to vector<64x1xf32>
      %64 = arith.mulf %62, %63 : vector<64x1xf32>
      %65 = vector.broadcast %64 : vector<64x1xf32> to vector<64x128xf32>
      %66 = arith.subf %58, %65 : vector<64x128xf32>
      %67 = tpu.iota {dimensions = array<i32: 1>} : vector<64x128xi32>
      %c32_i32 = arith.constant 32 : i32
      %68 = vector.broadcast %c32_i32 : i32 to vector<64x128xi32>
      %69 = arith.cmpi slt, %67, %68 : vector<64x128xi32>
      %70 = arith.mulf %66, %66 : vector<64x128xf32>
      %cst_38 = arith.constant 0.000000e+00 : f32
      %71 = vector.broadcast %cst_38 : f32 to vector<64x128xf32>
      %72 = arith.select %69, %70, %71 : vector<64x128xi1>, vector<64x128xf32>
      %cst_39 = arith.constant dense<0.000000e+00> : vector<64xf32>
      %73 = vector.multi_reduction <add>, %72, %cst_39 [1] : vector<64x128xf32> to vector<64xf32>
      %74 = vector.shape_cast %73 : vector<64xf32> to vector<64x1xf32>
      %cst_40 = arith.constant 3.125000e-02 : f32
      %75 = vector.broadcast %cst_40 : f32 to vector<64x1xf32>
      %76 = arith.mulf %74, %75 : vector<64x1xf32>
      %cst_41 = arith.constant 9.99999974E-6 : f32
      %77 = vector.broadcast %cst_41 : f32 to vector<64x1xf32>
      %78 = arith.addf %76, %77 : vector<64x1xf32>
      %79 = math.rsqrt %78 : vector<64x1xf32>
      %80 = vector.broadcast %79 : vector<64x1xf32> to vector<64x128xf32>
      %81 = arith.mulf %66, %80 : vector<64x128xf32>
      %82 = vector.broadcast %59 : vector<1x128xf32> to vector<64x128xf32>
      %83 = arith.mulf %81, %82 : vector<64x128xf32>
      %84 = vector.broadcast %60 : vector<1x128xf32> to vector<64x128xf32>
      %85 = arith.addf %83, %84 : vector<64x128xf32>
      %cst_42 = arith.constant 0.000000e+00 : f32
      %86 = vector.broadcast %cst_42 : f32 to vector<64x128xf32>
      %87 = arith.cmpf oge, %85, %86 : vector<64x128xf32>
      %cst_43 = arith.constant 1.000000e-01 : f32
      %88 = vector.broadcast %cst_43 : f32 to vector<64x128xf32>
      %89 = arith.mulf %88, %85 : vector<64x128xf32>
      %90 = arith.select %87, %85, %89 : vector<64x128xi1>, vector<64x128xf32>
      %c64_i32 = arith.constant 64 : i32
      %91 = arith.muli %arg0, %c64_i32 : i32
      %92 = tpu.iota {dimensions = array<i32: 0>} : vector<64x128xi32>
      %93 = vector.broadcast %91 : i32 to vector<64x128xi32>
      %94 = arith.addi %93, %92 : vector<64x128xi32>
      %c16_i32 = arith.constant 16 : i32
      %95 = vector.broadcast %c16_i32 : i32 to vector<64x128xi32>
      %96 = arith.cmpi slt, %94, %95 : vector<64x128xi32>
      %cst_44 = arith.constant 0.000000e+00 : f32
      %97 = vector.broadcast %cst_44 : f32 to vector<64x128xf32>
      %98 = arith.select %96, %90, %97 : vector<64x128xi1>, vector<64x128xf32>
      %c0_45 = arith.constant 0 : index
      %c0_46 = arith.constant 0 : index
      %99 = vector.load %arg10[%c0_45, %c0_46] : memref<64x128xf32, #tpu.memory_space<vmem>>, vector<64x128xf32>
      tpu.vector_store %arg10[%c0_45, %c0_46], %98 {strides = array<i32>} : memref<64x128xf32, #tpu.memory_space<vmem>>, vector<64x128xf32>,
    } else {
    }
    return
  }
  func.func @transform_0(%arg0: i32, %arg1: i32, %arg2: memref<2xi32, #tpu.memory_space<smem>>) -> (i32, i32, i32) {
    %c0_i32 = arith.constant 0 : i32
    %c0_i32_0 = arith.constant 0 : i32
    %c0_i32_1 = arith.constant 0 : i32
    return %c0_i32, %arg1, %c0_i32_0 : i32, i32, i32
  }
  func.func @transform_1(%arg0: i32, %arg1: i32, %arg2: memref<2xi32, #tpu.memory_space<smem>>) -> (i32, i32, i32) {
    %c0_i32 = arith.constant 0 : i32
    %c0_i32_0 = arith.constant 0 : i32
    %c0_i32_1 = arith.constant 0 : i32
    return %c0_i32, %c0_i32_0, %arg1 : i32, i32, i32
  }
  func.func @transform_2(%arg0: i32, %arg1: i32, %arg2: memref<2xi32, #tpu.memory_space<smem>>) -> (i32, i32, i32) {
    %c0_i32 = arith.constant 0 : i32
    %c0_i32_0 = arith.constant 0 : i32
    %c0_i32_1 = arith.constant 0 : i32
    return %c0_i32, %arg0, %c0_i32_0 : i32, i32, i32
  }
  func.func @transform_3(%arg0: i32, %arg1: i32, %arg2: memref<2xi32, #tpu.memory_space<smem>>) -> (i32, i32) {
    %c0_i32 = arith.constant 0 : i32
    return %arg0, %arg1 : i32, i32
  }
  func.func @transform_4(%arg0: i32, %arg1: i32, %arg2: memref<2xi32, #tpu.memory_space<smem>>) -> (i32, i32) {
    %c0_i32 = arith.constant 0 : i32
    %c0_i32_0 = arith.constant 0 : i32
    %c0_i32_1 = arith.constant 0 : i32
    return %c0_i32, %c0_i32_0 : i32, i32
  }
  func.func @transform_5(%arg0: i32, %arg1: i32, %arg2: memref<2xi32, #tpu.memory_space<smem>>) -> (i32, i32) {
    %c0_i32 = arith.constant 0 : i32
    %c0_i32_0 = arith.constant 0 : i32
    %c0_i32_1 = arith.constant 0 : i32
    return %c0_i32, %c0_i32_0 : i32, i32
  }
  func.func @transform_6(%arg0: i32, %arg1: i32, %arg2: memref<2xi32, #tpu.memory_space<smem>>) -> (i32, i32) {
    %c0_i32 = arith.constant 0 : i32
    %c0_i32_0 = arith.constant 0 : i32
    %c0_i32_1 = arith.constant 0 : i32
    return %c0_i32, %c0_i32_0 : i32, i32
  }
  func.func @transform_7(%arg0: i32, %arg1: i32, %arg2: memref<2xi32, #tpu.memory_space<smem>>) -> (i32, i32) {
    %c0_i32 = arith.constant 0 : i32
    %c0_i32_0 = arith.constant 0 : i32
    return %arg0, %c0_i32 : i32, i32
  }
}

module attributes {stable_mosaic.version = 11 : i64} {
  func.func @_rgcn_agg_kernel(%arg0: i32, %arg1: i32, %arg2: i32, %arg3: memref<6xi32, #tpu.memory_space<smem>>, %arg4: memref<64x128xbf16, #tpu.memory_space<vmem>>, %arg5: memref<128x128xbf16, #tpu.memory_space<vmem>>, %arg6: memref<1x128xf32, #tpu.memory_space<vmem>>, %arg7: memref<1x64x128xbf16, #tpu.memory_space<vmem>>, %arg8: memref<1x128x128xbf16, #tpu.memory_space<vmem>>, %arg9: memref<1x128xf32, #tpu.memory_space<vmem>>, %arg10: memref<1x128xf32, #tpu.memory_space<vmem>>, %arg11: memref<64x128xf32, #tpu.memory_space<vmem>>) attributes {dimension_semantics = [#tpu.dimension_semantics<parallel>, #tpu.dimension_semantics<arbitrary>, #tpu.dimension_semantics<arbitrary>], iteration_bounds = array<i64: 2, 3, 1>, scalar_prefetch = 1 : i64, scratch_operands = 0 : i64, tpu.core_type = #tpu.core_type<tc>, window_params = [{transform_indices = @transform_0, window_bounds = array<i64: 64, 128>}, {pipeline_mode = #tpu.pipeline_mode<synchronous>, transform_indices = @transform_1, window_bounds = array<i64: 128, 128>}, {pipeline_mode = #tpu.pipeline_mode<synchronous>, transform_indices = @transform_2, window_bounds = array<i64: 1, 128>}, {transform_indices = @transform_3, window_bounds = array<i64: 1, 64, 128>}, {transform_indices = @transform_4, window_bounds = array<i64: 1, 128, 128>}, {pipeline_mode = #tpu.pipeline_mode<synchronous>, transform_indices = @transform_5, window_bounds = array<i64: 1, 128>}, {pipeline_mode = #tpu.pipeline_mode<synchronous>, transform_indices = @transform_6, window_bounds = array<i64: 1, 128>}, {transform_indices = @transform_7, window_bounds = array<i64: 64, 128>}]} {
    %c0_i32 = arith.constant 0 : i32
    %0 = arith.cmpi eq, %arg1, %c0_i32 : i32
    %c0_i32_0 = arith.constant 0 : i32
    %1 = arith.cmpi eq, %arg2, %c0_i32_0 : i32
    %2 = arith.andi %0, %1 : i1
    %3 = arith.extui %2 : i1 to i32
    %c0_i32_1 = arith.constant 0 : i32
    %4 = arith.cmpi ne, %3, %c0_i32_1 : i32
    scf.if %4 {
      %c0 = arith.constant 0 : index
      %c0_7 = arith.constant 0 : index
      %19 = vector.load %arg4[%c0, %c0_7] : memref<64x128xbf16, #tpu.memory_space<vmem>>, vector<64x128xbf16>
      %c0_8 = arith.constant 0 : index
      %c0_9 = arith.constant 0 : index
      %20 = vector.load %arg5[%c0_8, %c0_9] : memref<128x128xbf16, #tpu.memory_space<vmem>>, vector<128x128xbf16>
      %cst = arith.constant dense<0.000000e+00> : vector<64x128xf32>
      %21 = tpu.matmul %19, %20, %cst {dimension_numbers = #tpu.dot_dimension_numbers<[1], [0], [0], [1], [0, 0, 1, 1], [], []>} : vector<64x128xbf16>, vector<128x128xbf16>, vector<64x128xf32> -> vector<64x128xf32>
      %c0_10 = arith.constant 0 : index
      %c0_11 = arith.constant 0 : index
      %22 = vector.load %arg6[%c0_10, %c0_11] : memref<1x128xf32, #tpu.memory_space<vmem>>, vector<1x128xf32>
      %23 = vector.broadcast %22 : vector<1x128xf32> to vector<64x128xf32>
      %24 = arith.addf %21, %23 : vector<64x128xf32>
      %c0_12 = arith.constant 0 : index
      %c0_13 = arith.constant 0 : index
      %25 = vector.load %arg11[%c0_12, %c0_13] : memref<64x128xf32, #tpu.memory_space<vmem>>, vector<64x128xf32>
      tpu.vector_store %arg11[%c0_12, %c0_13], %24 {strides = array<i32>} : memref<64x128xf32, #tpu.memory_space<vmem>>, vector<64x128xf32>,
    } else {
    }
    %c2_i32 = arith.constant 2 : i32
    %5 = arith.muli %arg1, %c2_i32 : i32
    %6 = arith.addi %5, %arg0 : i32
    %c1_i32 = arith.constant 1 : i32
    %7 = arith.muli %6, %c1_i32 : i32
    %8 = arith.addi %7, %arg2 : i32
    %9 = arith.index_cast %8 : i32 to index
    %10 = memref.load %arg3[%9] : memref<6xi32, #tpu.memory_space<smem>>
    %c0_i32_2 = arith.constant 0 : i32
    %11 = arith.cmpi sgt, %10, %c0_i32_2 : i32
    %12 = arith.extui %11 : i1 to i32
    %c0_i32_3 = arith.constant 0 : i32
    %13 = arith.cmpi ne, %12, %c0_i32_3 : i32
    scf.if %13 {
      %c0 = arith.constant 0 : index
      %c0_7 = arith.constant 0 : index
      %19 = vector.load %arg11[%c0, %c0_7] : memref<64x128xf32, #tpu.memory_space<vmem>>, vector<64x128xf32>
      %c0_8 = arith.constant 0 : index
      %c0_9 = arith.constant 0 : index
      %c0_10 = arith.constant 0 : index
      %20 = vector.load %arg7[%c0_8, %c0_9, %c0_10] : memref<1x64x128xbf16, #tpu.memory_space<vmem>>, vector<1x64x128xbf16>
      %21 = vector.shape_cast %20 : vector<1x64x128xbf16> to vector<64x128xbf16>
      %c0_11 = arith.constant 0 : index
      %c0_12 = arith.constant 0 : index
      %c0_13 = arith.constant 0 : index
      %22 = vector.load %arg8[%c0_11, %c0_12, %c0_13] : memref<1x128x128xbf16, #tpu.memory_space<vmem>>, vector<1x128x128xbf16>
      %23 = vector.shape_cast %22 : vector<1x128x128xbf16> to vector<128x128xbf16>
      %cst = arith.constant dense<0.000000e+00> : vector<64x128xf32>
      %24 = tpu.matmul %21, %23, %cst {dimension_numbers = #tpu.dot_dimension_numbers<[1], [0], [0], [1], [0, 0, 1, 1], [], []>} : vector<64x128xbf16>, vector<128x128xbf16>, vector<64x128xf32> -> vector<64x128xf32>
      %25 = arith.addf %19, %24 : vector<64x128xf32>
      %c0_14 = arith.constant 0 : index
      %c0_15 = arith.constant 0 : index
      %26 = vector.load %arg11[%c0_14, %c0_15] : memref<64x128xf32, #tpu.memory_space<vmem>>, vector<64x128xf32>
      tpu.vector_store %arg11[%c0_14, %c0_15], %25 {strides = array<i32>} : memref<64x128xf32, #tpu.memory_space<vmem>>, vector<64x128xf32>,
    } else {
    }
    %c2_i32_4 = arith.constant 2 : i32
    %14 = arith.cmpi eq, %arg1, %c2_i32_4 : i32
    %c0_i32_5 = arith.constant 0 : i32
    %15 = arith.cmpi eq, %arg2, %c0_i32_5 : i32
    %16 = arith.andi %14, %15 : i1
    %17 = arith.extui %16 : i1 to i32
    %c0_i32_6 = arith.constant 0 : i32
    %18 = arith.cmpi ne, %17, %c0_i32_6 : i32
    scf.if %18 {
      %c0 = arith.constant 0 : index
      %c0_7 = arith.constant 0 : index
      %19 = vector.load %arg11[%c0, %c0_7] : memref<64x128xf32, #tpu.memory_space<vmem>>, vector<64x128xf32>
      %20 = arith.mulf %19, %19 : vector<64x128xf32>
      %cst = arith.constant dense<0.000000e+00> : vector<64xf32>
      %21 = vector.multi_reduction <add>, %20, %cst [1] : vector<64x128xf32> to vector<64xf32>
      %22 = vector.shape_cast %21 : vector<64xf32> to vector<64x1xf32>
      %cst_8 = arith.constant 1.000000e-24 : f32
      %23 = vector.broadcast %cst_8 : f32 to vector<64x1xf32>
      %24 = arith.maximumf %22, %23 : vector<64x1xf32>
      %25 = math.rsqrt %24 : vector<64x1xf32>
      %26 = vector.broadcast %25 : vector<64x1xf32> to vector<64x128xf32>
      %27 = arith.mulf %19, %26 : vector<64x128xf32>
      %c0_9 = arith.constant 0 : index
      %c0_10 = arith.constant 0 : index
      %28 = vector.load %arg11[%c0_9, %c0_10] : memref<64x128xf32, #tpu.memory_space<vmem>>, vector<64x128xf32>
      tpu.vector_store %arg11[%c0_9, %c0_10], %27 {strides = array<i32>} : memref<64x128xf32, #tpu.memory_space<vmem>>, vector<64x128xf32>,
    } else {
    }
    return
  }
  func.func @transform_0(%arg0: i32, %arg1: i32, %arg2: i32, %arg3: memref<6xi32, #tpu.memory_space<smem>>) -> (i32, i32) {
    %c0_i32 = arith.constant 0 : i32
    %c0_i32_0 = arith.constant 0 : i32
    return %arg0, %c0_i32 : i32, i32
  }
  func.func @transform_1(%arg0: i32, %arg1: i32, %arg2: i32, %arg3: memref<6xi32, #tpu.memory_space<smem>>) -> (i32, i32) {
    %c0_i32 = arith.constant 0 : i32
    %c0_i32_0 = arith.constant 0 : i32
    %c0_i32_1 = arith.constant 0 : i32
    return %c0_i32, %c0_i32_0 : i32, i32
  }
  func.func @transform_2(%arg0: i32, %arg1: i32, %arg2: i32, %arg3: memref<6xi32, #tpu.memory_space<smem>>) -> (i32, i32) {
    %c0_i32 = arith.constant 0 : i32
    %c0_i32_0 = arith.constant 0 : i32
    %c0_i32_1 = arith.constant 0 : i32
    return %c0_i32, %c0_i32_0 : i32, i32
  }
  func.func @transform_3(%arg0: i32, %arg1: i32, %arg2: i32, %arg3: memref<6xi32, #tpu.memory_space<smem>>) -> (i32, i32, i32) {
    %c0_i32 = arith.constant 0 : i32
    return %arg1, %arg0, %arg2 : i32, i32, i32
  }
  func.func @transform_4(%arg0: i32, %arg1: i32, %arg2: i32, %arg3: memref<6xi32, #tpu.memory_space<smem>>) -> (i32, i32, i32) {
    %c0_i32 = arith.constant 0 : i32
    %c0_i32_0 = arith.constant 0 : i32
    return %arg1, %arg2, %c0_i32 : i32, i32, i32
  }
  func.func @transform_5(%arg0: i32, %arg1: i32, %arg2: i32, %arg3: memref<6xi32, #tpu.memory_space<smem>>) -> (i32, i32) {
    %c0_i32 = arith.constant 0 : i32
    %c0_i32_0 = arith.constant 0 : i32
    %c0_i32_1 = arith.constant 0 : i32
    return %c0_i32, %c0_i32_0 : i32, i32
  }
  func.func @transform_6(%arg0: i32, %arg1: i32, %arg2: i32, %arg3: memref<6xi32, #tpu.memory_space<smem>>) -> (i32, i32) {
    %c0_i32 = arith.constant 0 : i32
    %c0_i32_0 = arith.constant 0 : i32
    %c0_i32_1 = arith.constant 0 : i32
    return %c0_i32, %c0_i32_0 : i32, i32
  }
  func.func @transform_7(%arg0: i32, %arg1: i32, %arg2: i32, %arg3: memref<6xi32, #tpu.memory_space<smem>>) -> (i32, i32) {
    %c0_i32 = arith.constant 0 : i32
    %c0_i32_0 = arith.constant 0 : i32
    return %arg0, %c0_i32 : i32, i32
  }
}

</mosaic_0001>

<bundles_post_ra>
// kernel: attention_rgcn_forward.8
= control target key start
LH: loop header
LB: loop body
LE: loop exit
PB: predicated region body
PF: predicated region fallthrough
CT: control target
= control target key end

     0   :  { %s643_s9 = smov 0   ;;  %s645_s10 = smov 0   ;;  %s714_s0 = inlined_call_operand.vmem [shape: bf16[128,128], index: 0, kind: input, shape index: {}]   ;;  %s715_s1 = inlined_call_operand.vmem [shape: bf16[3,128,128], index: 1, kind: input, shape index: {}]   ;;  %s716_s2 = inlined_call_operand.vmem [shape: bf16[3,128,128], index: 2, kind: output, shape index: {}]  }
   0x1   :  { %s647_s11 = smov 0   ;;  %s649_s12 = smov 0  }
   0x2   :  { %s651_s13 = smov 0  }
   0x3 LB: > { %s21_s14 = sadd.s32 1, %s618_s11  ;;  %s24_s15 = sadd.s32 1, %s622_s12  ;;  %s626_s13 = sphi %s651_s13, %s12_s13   ;;  %s622_s12 = sphi %s649_s12, %s720_s12   ;;  %s618_s11 = sphi %s647_s11, %s719_s11   ;;  %s614_s10 = sphi %s645_s10, %s718_s10   ;;  %s610_s9 = sphi %s643_s9, %s717_s9  }
   0x4   : > { %p22_p0 = scmp.ge.s32.totalorder %s21_s14, 2  ;;  %p430_p1 = scmp.ge.s32.totalorder %s626_s13, 1 }
   0x5   : > { %p137_p2 = scmp.lt.s32.totalorder %s626_s13, 7 }
   0x6   : > { %s722_s14 = smov (%p22_p0, %s21_s14), 0  ;;  %s724_s15 = smov (!%p22_p0, %s24_s15), %s622_s12 }
   0x7   : > { %p138_p3 = pnand %p430_p1, %p137_p2  ;;  %p26_p4 = scmp.ge.s32.totalorder %s724_s15, 3 }
   0x8   : > { %p174_p5 = scmp.lt.s32.totalorder (!%p138_p3), %s614_s10, 2  ;;  %s431_s20 = sshll.u32 (!%p138_p3), %s610_s9, 3 }
   0x9   : > { %s726_s15 = smov (%p26_p4, %s724_s15), 0  ;;  %141 = sbr.rel (%p138_p3) target bundleno = 194 (0xc2), region = 28 }
   0xa   : > { %p169_p6 = scmp.lt.s32.totalorder (!%p138_p3), %s431_s20, 15 }
   0xe   : > { %s728_s10 = smov (!%p174_p5, %s614_s10), 2  ;;  %s730_s20 = smov (!%p169_p6, %s431_s20), 15 }
   0xf   : > { %s488_s16 = sshll.u32 %s728_s10, 6  ;;  %s432_s21 = sshll.u32 %s730_s20, 2 }
  0x10   : > { %s681_s19 = scalar_lea.vmem %s715_s1, %s488_s16  ;;  %s172_s24 = scalar_lea.vmem %s714_s0, %s432_s21 }
  0x11   : > { %v500_v0 = vld [vmem:[%s681_s19 + $0x38] sm:$0xff]  ;;  %v499_v1 = vld [vmem:[%s681_s19 + $0x30] sm:$0xff]  ;;  %v498_v2 = vld [vmem:[%s681_s19 + $0x28] sm:$0xff]  ;;  %s436_s25 = sshll.u32 %s728_s10, 4 }
  0x12   : > { %285 = vmatpush.bf16.msra.mxu0 %v500_v0  ;;  %524 = vmatpush.bf16.msra.mxu1 %v500_v0  ;;  %v497_v3 = vld [vmem:[%s681_s19 + $0x20] sm:$0xff]  ;;  %v496_v4 = vld [vmem:[%s681_s19 + $0x18] sm:$0xff]  ;;  %v495_v5 = vld [vmem:[%s681_s19 + $0x10] sm:$0xff]  ;;  %s185_s26 = sadd.s32 %s436_s25, %s730_s20 }
  0x13   : > { %525 = vmatpush.bf16.msra.mxu2 %v500_v0  ;;  %526 = vmatpush.bf16.msra.mxu3 %v500_v0  ;;  %v494_v6 = vld [vmem:[%s681_s19 + $0x8] sm:$0xff]  ;;  %v493_v7 = vld [vmem:[%s681_s19] sm:$0xff]  ;;  %v491_v10 = vld [vmem:[%s172_s24 + $0x10] sm:$0xff]  ;;  %s437_s27 = sshll.u32 %s185_s26, 2 }
  0x14   : > { %v489_v8 = vld [vmem:[%s172_s24] sm:$0xff]  ;;  %v490_v9 = vld [vmem:[%s172_s24 + $0x8] sm:$0xff]  ;;  %v492_v11 = vld [vmem:[%s172_s24 + $0x18] sm:$0xff]  ;;  %s187_s30 = scalar_lea.vmem %s716_s2, %s437_s27 }
  0x16   : > { %286 = vmatpush.bf16.msra.mxu0 %v499_v1  ;;  %527 = vmatpush.bf16.msra.mxu1 %v499_v1 }
  0x17   : > { %528 = vmatpush.bf16.msra.mxu2 %v499_v1  ;;  %529 = vmatpush.bf16.msra.mxu3 %v499_v1 }
  0x1a   : > { %287 = vmatpush.bf16.msra.mxu0 %v498_v2  ;;  %530 = vmatpush.bf16.msra.mxu1 %v498_v2 }
  0x1b   : > { %531 = vmatpush.bf16.msra.mxu2 %v498_v2  ;;  %532 = vmatpush.bf16.msra.mxu3 %v498_v2 }
  0x1e   : > { %288 = vmatpush.bf16.msra.mxu0 %v497_v3  ;;  %533 = vmatpush.bf16.msra.mxu1 %v497_v3 }
  0x1f   : > { %534 = vmatpush.bf16.msra.mxu2 %v497_v3  ;;  %535 = vmatpush.bf16.msra.mxu3 %v497_v3 }
  0x22   : > { %289 = vmatpush.bf16.msra.mxu0 %v496_v4  ;;  %536 = vmatpush.bf16.msra.mxu1 %v496_v4 }
  0x23   : > { %537 = vmatpush.bf16.msra.mxu2 %v496_v4  ;;  %538 = vmatpush.bf16.msra.mxu3 %v496_v4 }
  0x26   : > { %290 = vmatpush.bf16.msra.mxu0 %v495_v5  ;;  %539 = vmatpush.bf16.msra.mxu1 %v495_v5 }
  0x27   : > { %540 = vmatpush.bf16.msra.mxu2 %v495_v5  ;;  %541 = vmatpush.bf16.msra.mxu3 %v495_v5 }
  0x2a   : > { %291 = vmatpush.bf16.msra.mxu0 %v494_v6  ;;  %542 = vmatpush.bf16.msra.mxu1 %v494_v6 }
  0x2b   : > { %543 = vmatpush.bf16.msra.mxu2 %v494_v6  ;;  %544 = vmatpush.bf16.msra.mxu3 %v494_v6 }
  0x2e   : > { %292 = vmatpush.bf16.msra.mxu0 %v493_v7  ;;  %545 = vmatpush.bf16.msra.mxu1 %v493_v7 }
  0x2f   : > { %546 = vmatpush.bf16.msra.mxu2 %v493_v7  ;;  %547 = vmatpush.bf16.msra.mxu3 %v493_v7 }
  0x31   : > { %293 = vmatmul.bf16.vlgmr.msra.gmra.mxu0 %v489_v8  ;;  %298 = vmatmul.bf16.vlgmr.msra.gmra.mxu1 %v490_v9 }
  0x32   : > { %303 = vmatmul.bf16.vlgmr.msra.gmra.mxu2 %v491_v10  ;;  %308 = vmatmul.bf16.vlgmr.msra.gmra.mxu3 %v492_v11 }
  0xae   : > { %v294_v12 = vpop.f32.mrf.mxu0  ;;  %v299_v13 = vpop.f32.mrf.mxu1 }
  0xb5   : > { %v304_v14 = vpop.f32.mrf.mxu2  ;;  %v309_v15 = vpop.f32.mrf.mxu3 }
  0xb6   : > { %v296_v16 = vpop.f32.mrf.mxu0  ;;  %v301_v17 = vpop.f32.mrf.mxu1 }
  0xb7   : > { %v504_v18 = vpack.c.bf16 %v296_v16, %v294_v12  ;;  %v509_v19 = vpack.c.bf16 %v301_v17, %v299_v13 }
  0xb9   : > { %505 = vst [vmem:[%s187_s30] sm:$0xff] %v504_v18  }
  0xba   : > { %521 = vst [vmem:[%s187_s30 + $0x8] sm:$0xff] %v509_v19  }
  0xbd   : > { %v306_v20 = vpop.f32.mrf.mxu2  ;;  %v311_v21 = vpop.f32.mrf.mxu3 }
  0xbe   : > { %v514_v22 = vpack.c.bf16 %v306_v20, %v304_v14  ;;  %v519_v23 = vpack.c.bf16 %v311_v21, %v309_v15 }
  0xc0   : > { %522 = vst [vmem:[%s187_s30 + $0x10] sm:$0xff] %v514_v22  }
  0xc1   : > { %523 = vst [vmem:[%s187_s30 + $0x18] sm:$0xff] %v519_v23  }
  0xc2 PF: > { %s12_s13 = sadd.s32 1, %s626_s13   ;;  %s717_s9 = smov %s618_s11 }
  0xc3   : > { %p9_p7 = scmp.ge.s32.totalorder %s12_s13, 8   ;;  %s718_s10 = smov %s622_s12 }
  0xc4   : > { %s719_s11 = smov %s722_s14  ;;  %s720_s12 = smov %s726_s15 }
  0xc5   :  { %11 = sbr.rel (!%p9_p7) target bundleno = 3 (0x3), region = 61 }

// kernel: attention_rgcn_forward.12
= control target key start
LH: loop header
LB: loop body
LE: loop exit
PB: predicated region body
PF: predicated region fallthrough
CT: control target
= control target key end

     0   :  { %s643_s9 = smov 0   ;;  %s645_s10 = smov 0   ;;  %s714_s0 = inlined_call_operand.vmem [shape: bf16[128,128], index: 0, kind: input, shape index: {}]   ;;  %s715_s1 = inlined_call_operand.vmem [shape: bf16[4,128,128], index: 1, kind: input, shape index: {}]   ;;  %s716_s2 = inlined_call_operand.vmem [shape: bf16[4,128,128], index: 2, kind: output, shape index: {}]  }
   0x1   :  { %s647_s11 = smov 0   ;;  %s649_s12 = smov 0  }
   0x2   :  { %s651_s13 = smov 0  }
   0x3 LB: > { %s21_s14 = sadd.s32 1, %s618_s11  ;;  %s24_s15 = sadd.s32 1, %s622_s12  ;;  %s626_s13 = sphi %s651_s13, %s12_s13   ;;  %s622_s12 = sphi %s649_s12, %s720_s12   ;;  %s618_s11 = sphi %s647_s11, %s719_s11   ;;  %s614_s10 = sphi %s645_s10, %s718_s10   ;;  %s610_s9 = sphi %s643_s9, %s717_s9  }
   0x4   : > { %p22_p0 = scmp.ge.s32.totalorder %s21_s14, 2  ;;  %p430_p1 = scmp.ge.s32.totalorder %s626_s13, 1 }
   0x5   : > { %p137_p2 = scmp.lt.s32.totalorder %s626_s13, 9 }
   0x6   : > { %s722_s14 = smov (%p22_p0, %s21_s14), 0  ;;  %s724_s15 = smov (!%p22_p0, %s24_s15), %s622_s12 }
   0x7   : > { %p138_p3 = pnand %p430_p1, %p137_p2  ;;  %p26_p4 = scmp.ge.s32.totalorder %s724_s15, 4 }
   0x8   : > { %p174_p5 = scmp.lt.s32.totalorder (!%p138_p3), %s614_s10, 3  ;;  %s431_s20 = sshll.u32 (!%p138_p3), %s610_s9, 3 }
   0x9   : > { %s726_s15 = smov (%p26_p4, %s724_s15), 0  ;;  %141 = sbr.rel (%p138_p3) target bundleno = 194 (0xc2), region = 28 }
   0xa   : > { %p169_p6 = scmp.lt.s32.totalorder (!%p138_p3), %s431_s20, 15 }
   0xe   : > { %s728_s10 = smov (!%p174_p5, %s614_s10), 3  ;;  %s730_s20 = smov (!%p169_p6, %s431_s20), 15 }
   0xf   : > { %s488_s16 = sshll.u32 %s728_s10, 6  ;;  %s432_s21 = sshll.u32 %s730_s20, 2 }
  0x10   : > { %s681_s19 = scalar_lea.vmem %s715_s1, %s488_s16  ;;  %s172_s24 = scalar_lea.vmem %s714_s0, %s432_s21 }
  0x11   : > { %v500_v0 = vld [vmem:[%s681_s19 + $0x38] sm:$0xff]  ;;  %v499_v1 = vld [vmem:[%s681_s19 + $0x30] sm:$0xff]  ;;  %v498_v2 = vld [vmem:[%s681_s19 + $0x28] sm:$0xff]  ;;  %s436_s25 = sshll.u32 %s728_s10, 4 }
  0x12   : > { %285 = vmatpush.bf16.msra.mxu0 %v500_v0  ;;  %524 = vmatpush.bf16.msra.mxu1 %v500_v0  ;;  %v497_v3 = vld [vmem:[%s681_s19 + $0x20] sm:$0xff]  ;;  %v496_v4 = vld [vmem:[%s681_s19 + $0x18] sm:$0xff]  ;;  %v495_v5 = vld [vmem:[%s681_s19 + $0x10] sm:$0xff]  ;;  %s185_s26 = sadd.s32 %s436_s25, %s730_s20 }
  0x13   : > { %525 = vmatpush.bf16.msra.mxu2 %v500_v0  ;;  %526 = vmatpush.bf16.msra.mxu3 %v500_v0  ;;  %v494_v6 = vld [vmem:[%s681_s19 + $0x8] sm:$0xff]  ;;  %v493_v7 = vld [vmem:[%s681_s19] sm:$0xff]  ;;  %v491_v10 = vld [vmem:[%s172_s24 + $0x10] sm:$0xff]  ;;  %s437_s27 = sshll.u32 %s185_s26, 2 }
  0x14   : > { %v489_v8 = vld [vmem:[%s172_s24] sm:$0xff]  ;;  %v490_v9 = vld [vmem:[%s172_s24 + $0x8] sm:$0xff]  ;;  %v492_v11 = vld [vmem:[%s172_s24 + $0x18] sm:$0xff]  ;;  %s187_s30 = scalar_lea.vmem %s716_s2, %s437_s27 }
  0x16   : > { %286 = vmatpush.bf16.msra.mxu0 %v499_v1  ;;  %527 = vmatpush.bf16.msra.mxu1 %v499_v1 }
  0x17   : > { %528 = vmatpush.bf16.msra.mxu2 %v499_v1  ;;  %529 = vmatpush.bf16.msra.mxu3 %v499_v1 }
  0x1a   : > { %287 = vmatpush.bf16.msra.mxu0 %v498_v2  ;;  %530 = vmatpush.bf16.msra.mxu1 %v498_v2 }
  0x1b   : > { %531 = vmatpush.bf16.msra.mxu2 %v498_v2  ;;  %532 = vmatpush.bf16.msra.mxu3 %v498_v2 }
  0x1e   : > { %288 = vmatpush.bf16.msra.mxu0 %v497_v3  ;;  %533 = vmatpush.bf16.msra.mxu1 %v497_v3 }
  0x1f   : > { %534 = vmatpush.bf16.msra.mxu2 %v497_v3  ;;  %535 = vmatpush.bf16.msra.mxu3 %v497_v3 }
  0x22   : > { %289 = vmatpush.bf16.msra.mxu0 %v496_v4  ;;  %536 = vmatpush.bf16.msra.mxu1 %v496_v4 }
  0x23   : > { %537 = vmatpush.bf16.msra.mxu2 %v496_v4  ;;  %538 = vmatpush.bf16.msra.mxu3 %v496_v4 }
  0x26   : > { %290 = vmatpush.bf16.msra.mxu0 %v495_v5  ;;  %539 = vmatpush.bf16.msra.mxu1 %v495_v5 }
  0x27   : > { %540 = vmatpush.bf16.msra.mxu2 %v495_v5  ;;  %541 = vmatpush.bf16.msra.mxu3 %v495_v5 }
  0x2a   : > { %291 = vmatpush.bf16.msra.mxu0 %v494_v6  ;;  %542 = vmatpush.bf16.msra.mxu1 %v494_v6 }
  0x2b   : > { %543 = vmatpush.bf16.msra.mxu2 %v494_v6  ;;  %544 = vmatpush.bf16.msra.mxu3 %v494_v6 }
  0x2e   : > { %292 = vmatpush.bf16.msra.mxu0 %v493_v7  ;;  %545 = vmatpush.bf16.msra.mxu1 %v493_v7 }
  0x2f   : > { %546 = vmatpush.bf16.msra.mxu2 %v493_v7  ;;  %547 = vmatpush.bf16.msra.mxu3 %v493_v7 }
  0x31   : > { %293 = vmatmul.bf16.vlgmr.msra.gmra.mxu0 %v489_v8  ;;  %298 = vmatmul.bf16.vlgmr.msra.gmra.mxu1 %v490_v9 }
  0x32   : > { %303 = vmatmul.bf16.vlgmr.msra.gmra.mxu2 %v491_v10  ;;  %308 = vmatmul.bf16.vlgmr.msra.gmra.mxu3 %v492_v11 }
  0xae   : > { %v294_v12 = vpop.f32.mrf.mxu0  ;;  %v299_v13 = vpop.f32.mrf.mxu1 }
  0xb5   : > { %v304_v14 = vpop.f32.mrf.mxu2  ;;  %v309_v15 = vpop.f32.mrf.mxu3 }
  0xb6   : > { %v296_v16 = vpop.f32.mrf.mxu0  ;;  %v301_v17 = vpop.f32.mrf.mxu1 }
  0xb7   : > { %v504_v18 = vpack.c.bf16 %v296_v16, %v294_v12  ;;  %v509_v19 = vpack.c.bf16 %v301_v17, %v299_v13 }
  0xb9   : > { %505 = vst [vmem:[%s187_s30] sm:$0xff] %v504_v18  }
  0xba   : > { %521 = vst [vmem:[%s187_s30 + $0x8] sm:$0xff] %v509_v19  }
  0xbd   : > { %v306_v20 = vpop.f32.mrf.mxu2  ;;  %v311_v21 = vpop.f32.mrf.mxu3 }
  0xbe   : > { %v514_v22 = vpack.c.bf16 %v306_v20, %v304_v14  ;;  %v519_v23 = vpack.c.bf16 %v311_v21, %v309_v15 }
  0xc0   : > { %522 = vst [vmem:[%s187_s30 + $0x10] sm:$0xff] %v514_v22  }
  0xc1   : > { %523 = vst [vmem:[%s187_s30 + $0x18] sm:$0xff] %v519_v23  }
  0xc2 PF: > { %s12_s13 = sadd.s32 1, %s626_s13   ;;  %s717_s9 = smov %s618_s11 }
  0xc3   : > { %p9_p7 = scmp.ge.s32.totalorder %s12_s13, 10   ;;  %s718_s10 = smov %s622_s12 }
  0xc4   : > { %s719_s11 = smov %s722_s14  ;;  %s720_s12 = smov %s726_s15 }
  0xc5   :  { %11 = sbr.rel (!%p9_p7) target bundleno = 3 (0x3), region = 61 }

// kernel: attention_rgcn_forward.9
= control target key start
LH: loop header
LB: loop body
LE: loop exit
PB: predicated region body
PF: predicated region fallthrough
CT: control target
= control target key end

     0   :  { %s1348_s30 = smov [#allocation3]   ;;  %s1671_s0 = inlined_call_operand.vmem [shape: s32[6], index: 0, kind: input, shape index: {}]   ;;  %s1672_s1 = inlined_call_operand.vmem [shape: bf16[128,128], index: 1, kind: input, shape index: {}]   ;;  %s1673_s2 = inlined_call_operand.vmem [shape: bf16[128,128], index: 2, kind: input, shape index: {}]   ;;  %s1674_s3 = inlined_call_operand.vmem [shape: f32[1,128], index: 3, kind: input, shape index: {}]   ;;  %s1675_s4 = inlined_call_operand.vmem [shape: bf16[3,128,128], index: 4, kind: input, shape index: {}]   ;;  %s1676_s5 = inlined_call_operand.vmem [shape: bf16[3,128,128], index: 5, kind: input, shape index: {}]   ;;  %s1677_s6 = inlined_call_operand.vmem [shape: f32[1,128], index: 6, kind: input, shape index: {}]   ;;  %s1678_s7 = inlined_call_operand.vmem [shape: f32[1,128], index: 7, kind: input, shape index: {}]   ;;  %s1679_s8 = inlined_call_operand.vmem [shape: f32[128,128], index: 8, kind: output, shape index: {}]  }
   0x1   :  { %s14_s29 = sshll.u32 %s1671_s0, 4  ;;  %s15_s29 = int_to_ptr.vmem [resolvable:$true] %s14_s29 }
   0x2   :  { %17 = dma.vmem_to_smem %s15_s29, 16, %s1348_s30, [#allocation2] }
   0x3   :  { %1326 = dma.done.wait [#allocation2], 16 }
   0x4   :  { %1327 = vsyncadd [#allocation2], 4294967280 }
   0x5   :  { %20 = sfence }
   0x6   :  { %s1397_s9 = smov 0   ;;  %s1399_s10 = smov 0  }
   0x7   :  { %s1401_s11 = smov 0   ;;  %s1403_s12 = smov 0  }
   0x8   :  { %s1405_s13 = smov 0  }
   0x9 LB: > { %s41_s0 = sadd.s32 1, %s1338_s11  ;;  %s45_s14 = sadd.s32 1, %s1342_s12  ;;  %s1346_s13 = sphi %s1405_s13, %s26_s13   ;;  %s1342_s12 = sphi %s1403_s12, %s1689_s12   ;;  %s1338_s11 = sphi %s1401_s11, %s1688_s11   ;;  %s1334_s10 = sphi %s1399_s10, %s1687_s10   ;;  %s1330_s9 = sphi %s1397_s9, %s1686_s9  }
   0xa   : > { %p43_p0 = scmp.ge.s32.totalorder %s41_s0, 3  ;;  %p1047_p1 = scmp.ge.s32.totalorder %s1346_s13, 1 }
   0xb   : > { %p305_p2 = scmp.lt.s32.totalorder %s1346_s13, 7 }
   0xc   : > { %s1691_s0 = smov (%p43_p0, %s41_s0), 0  ;;  %s1693_s14 = smov (!%p43_p0, %s45_s14), %s1342_s12 }
   0xd   : > { %1680 = sst [smem:[#allocation5_spill]] %s1691_s0  ;;  %p306_p3 = pnand %p1047_p1, %p305_p2 }
   0xe   : > { %p47_p4 = scmp.ge.s32.totalorder %s1693_s14, 2  ;;  %s1048_s15 = sshll.u32 (!%p306_p3), %s1334_s10, 3 }
   0xf   : > { %309 = sbr.rel (%p306_p3) target bundleno = 690 (0x2b2), region = 48  ;;  %p365_p5 = scmp.lt.s32.totalorder (!%p306_p3), %s1330_s9, 2 }
  0x10   : > { %s1695_s14 = smov (%p47_p4, %s1693_s14), 0  ;;  %p359_p6 = scmp.lt.s32.totalorder (!%p306_p3), %s1048_s15, 15 }
  0x11   : > { %1681 = sst [smem:[#allocation6_spill]] %s1695_s14  ;;  %p393_p7 = scmp.eq.s32.totalorder (!%p306_p3), %s1330_s9, 0 }
  0x14   : > { %s366_s16 = scalar_select %p365_p5, %s1330_s9, 2  ;;  %v1172_v0 = vld [vmem:[%s1673_s2 + $0x38] sm:$0xff] (%p393_p7)  ;;  %v1171_v1 = vld [vmem:[%s1673_s2 + $0x30] sm:$0xff] (%p393_p7)  ;;  %v1170_v2 = vld [vmem:[%s1673_s2 + $0x28] sm:$0xff] (%p393_p7) }
  0x15   : > { %s1697_s15 = smov (!%p359_p6, %s1048_s15), 15  ;;  %499 = vmatpush.bf16.msra.mxu0 (%p393_p7), %v1172_v0  ;;  %1186 = vmatpush.bf16.msra.mxu1 (%p393_p7), %v1172_v0  ;;  %v1169_v3 = vld [vmem:[%s1673_s2 + $0x20] sm:$0xff] (%p393_p7)  ;;  %v1168_v4 = vld [vmem:[%s1673_s2 + $0x18] sm:$0xff] (%p393_p7)  ;;  %v1167_v5 = vld [vmem:[%s1673_s2 + $0x10] sm:$0xff] (%p393_p7) }
  0x16   : > { %s1051_s17 = sshll.u32 %s366_s16, 4  ;;  %s1159_s18 = sshll.u32 %s366_s16, 6  ;;  %1187 = vmatpush.bf16.msra.mxu2 (%p393_p7), %v1172_v0  ;;  %1188 = vmatpush.bf16.msra.mxu3 (%p393_p7), %v1172_v0  ;;  %v1166_v6 = vld [vmem:[%s1673_s2 + $0x8] sm:$0xff] (%p393_p7)  ;;  %v1165_v7 = vld [vmem:[%s1673_s2] sm:$0xff] (%p393_p7) }
  0x17   : > { %s1049_s19 = sshll.u32 %s1697_s15, 2  ;;  %s373_s20 = sadd.s32 %s1051_s17, %s1697_s15  ;;  %v1275_v12 = vld [vmem:[%s1674_s3] ss:$0 sm:$0xff] (%p393_p7) }
  0x18   : > { %s1438_s23 = scalar_lea.vmem %s1672_s1, %s1049_s19  ;;  %s1052_s24 = sshll.u32 %s373_s20, 2 }
  0x19   : > { %s1443_s27 = scalar_lea.vmem %s1675_s4, %s1052_s24  ;;  %s1448_s30 = scalar_lea.vmem %s1676_s5, %s1159_s18  ;;  %500 = vmatpush.bf16.msra.mxu0 (%p393_p7), %v1171_v1  ;;  %1189 = vmatpush.bf16.msra.mxu1 (%p393_p7), %v1171_v1  ;;  %v1161_v8 = vld [vmem:[%s1438_s23] sm:$0xff] (%p393_p7)  ;;  %v1162_v9 = vld [vmem:[%s1438_s23 + $0x8] sm:$0xff] (%p393_p7)  ;;  %v1163_v10 = vld [vmem:[%s1438_s23 + $0x10] sm:$0xff] (%p393_p7) }
  0x1a   : > { %s1056_s14 = sshll.u32 %s1697_s15, 3  ;;  %398 = sbr.rel (!%p393_p7) target bundleno = 197 (0xc5), region = 52  ;;  %1190 = vmatpush.bf16.msra.mxu2 (%p393_p7), %v1171_v1  ;;  %1191 = vmatpush.bf16.msra.mxu3 (%p393_p7), %v1171_v1  ;;  %v1164_v11 = vld [vmem:[%s1438_s23 + $0x18] sm:$0xff] (%p393_p7) }
  0x1b   : > { %s1453_s17 = scalar_lea.vmem %s1679_s8, %s1056_s14 }
  0x1d   : > { %501 = vmatpush.bf16.msra.mxu0 (%p393_p7), %v1170_v2  ;;  %1192 = vmatpush.bf16.msra.mxu1 (%p393_p7), %v1170_v2 }
  0x1e   : > { %1193 = vmatpush.bf16.msra.mxu2 (%p393_p7), %v1170_v2  ;;  %1194 = vmatpush.bf16.msra.mxu3 (%p393_p7), %v1170_v2 }
  0x21   : > { %502 = vmatpush.bf16.msra.mxu0 %v1169_v3  ;;  %1195 = vmatpush.bf16.msra.mxu1 %v1169_v3 }
  0x22   : > { %1196 = vmatpush.bf16.msra.mxu2 %v1169_v3  ;;  %1197 = vmatpush.bf16.msra.mxu3 %v1169_v3 }
  0x25   : > { %503 = vmatpush.bf16.msra.mxu0 %v1168_v4  ;;  %1198 = vmatpush.bf16.msra.mxu1 %v1168_v4 }
  0x26   : > { %1199 = vmatpush.bf16.msra.mxu2 %v1168_v4  ;;  %1200 = vmatpush.bf16.msra.mxu3 %v1168_v4 }
  0x29   : > { %504 = vmatpush.bf16.msra.mxu0 %v1167_v5  ;;  %1201 = vmatpush.bf16.msra.mxu1 %v1167_v5 }
  0x2a   : > { %1202 = vmatpush.bf16.msra.mxu2 %v1167_v5  ;;  %1203 = vmatpush.bf16.msra.mxu3 %v1167_v5 }
  0x2d   : > { %505 = vmatpush.bf16.msra.mxu0 %v1166_v6  ;;  %1204 = vmatpush.bf16.msra.mxu1 %v1166_v6 }
  0x2e   : > { %1205 = vmatpush.bf16.msra.mxu2 %v1166_v6  ;;  %1206 = vmatpush.bf16.msra.mxu3 %v1166_v6 }
  0x31   : > { %506 = vmatpush.bf16.msra.mxu0 %v1165_v7  ;;  %1207 = vmatpush.bf16.msra.mxu1 %v1165_v7 }
  0x32   : > { %1208 = vmatpush.bf16.msra.mxu2 %v1165_v7  ;;  %1209 = vmatpush.bf16.msra.mxu3 %v1165_v7 }
  0x34   : > { %507 = vmatmul.bf16.vlgmr.msra.gmra.mxu0 %v1161_v8  ;;  %512 = vmatmul.bf16.vlgmr.msra.gmra.mxu1 %v1162_v9 }
  0x35   : > { %517 = vmatmul.bf16.vlgmr.msra.gmra.mxu2 %v1163_v10  ;;  %522 = vmatmul.bf16.vlgmr.msra.gmra.mxu3 %v1164_v11 }
  0xb1   : > { %v508_v13 = vpop.f32.mrf.mxu0  ;;  %v513_v14 = vpop.f32.mrf.mxu1 }
  0xb2   : > { %v509_v15 = vadd.f32 %v1275_v12, %v508_v13  ;;  %v514_v16 = vadd.f32 %v1275_v12, %v513_v14 }
  0xb4   : > { %528 = vst [vmem:[%s1453_s17] sm:$0xff] %v509_v15 }
  0xb5   : > { %530 = vst [vmem:[%s1453_s17 + $0x10] sm:$0xff] %v514_v16 }
  0xb8   : > { %v518_v17 = vpop.f32.mrf.mxu2  ;;  %v523_v18 = vpop.f32.mrf.mxu3 }
  0xb9   : > { %v519_v19 = vadd.f32 %v1275_v12, %v518_v17  ;;  %v524_v20 = vadd.f32 %v1275_v12, %v523_v18  ;;  %v510_v21 = vpop.f32.mrf.mxu0  ;;  %v515_v22 = vpop.f32.mrf.mxu1 }
  0xba   : > { %v511_v23 = vadd.f32 %v1275_v12, %v510_v21  ;;  %v516_v24 = vadd.f32 %v1275_v12, %v515_v22 }
  0xbb   : > { %532 = vst [vmem:[%s1453_s17 + $0x20] sm:$0xff] %v519_v19 }
  0xbc   : > { %534 = vst [vmem:[%s1453_s17 + $0x30] sm:$0xff] %v524_v20 }
  0xbd   : > { %529 = vst [vmem:[%s1453_s17 + $0x8] sm:$0xff] %v511_v23 }
  0xbe   : > { %531 = vst [vmem:[%s1453_s17 + $0x18] sm:$0xff] %v516_v24 }
  0xc0   : > { %v520_v25 = vpop.f32.mrf.mxu2  ;;  %v525_v26 = vpop.f32.mrf.mxu3 }
  0xc1   : > { %v521_v27 = vadd.f32 %v1275_v12, %v520_v25  ;;  %v526_v28 = vadd.f32 %v1275_v12, %v525_v26 }
  0xc3   : > { %533 = vst [vmem:[%s1453_s17 + $0x28] sm:$0xff] %v521_v27 }
  0xc4   : > { %535 = vst [vmem:[%s1453_s17 + $0x38] sm:$0xff] %v526_v28 }
  0xc5 PF: > { %s1106_s23 = sshll.u32 %s1330_s9, 1 }
  0xc6   : > { %s537_s15 = sadd.s32 %s1334_s10, %s1106_s23 }
  0xc7   : > { %s539_s18 = sld [smem:[#allocation3 + %s537_s15]] }
  0xcd   : > { %p1107_p8 = scmp.le.s32.totalorder %s539_s18, 0 }
  0xcf   : > { %543 = sbr.rel (%p1107_p8) target bundleno = 389 (0x185), region = 56 }
  0xd4   : > { %v1184_v29 = vld [vmem:[%s1448_s30 + $0x38] sm:$0xff]  ;;  %v1183_v30 = vld [vmem:[%s1448_s30 + $0x30] sm:$0xff]  ;;  %v1182_v31 = vld [vmem:[%s1448_s30 + $0x28] sm:$0xff] }
  0xd5   : > { %648 = vmatpush.bf16.msra.mxu0 %v1184_v29  ;;  %1210 = vmatpush.bf16.msra.mxu1 %v1184_v29  ;;  %v1181_v32 = vld [vmem:[%s1448_s30 + $0x20] sm:$0xff]  ;;  %v1180_v33 = vld [vmem:[%s1448_s30 + $0x18] sm:$0xff]  ;;  %v1179_v34 = vld [vmem:[%s1448_s30 + $0x10] sm:$0xff] }
  0xd6   : > { %1211 = vmatpush.bf16.msra.mxu2 %v1184_v29  ;;  %1212 = vmatpush.bf16.msra.mxu3 %v1184_v29  ;;  %v1178_v35 = vld [vmem:[%s1448_s30 + $0x8] sm:$0xff]  ;;  %v1177_v36 = vld [vmem:[%s1448_s30] sm:$0xff]  ;;  %v1175_v39 = vld [vmem:[%s1443_s27 + $0x10] sm:$0xff] }
  0xd7   : > { %v1173_v37 = vld [vmem:[%s1443_s27] sm:$0xff]  ;;  %v1174_v38 = vld [vmem:[%s1443_s27 + $0x8] sm:$0xff]  ;;  %v1176_v40 = vld [vmem:[%s1443_s27 + $0x18] sm:$0xff] }
  0xd8   : > { %v544_v41 = vld [vmem:[%s1453_s17] sm:$0xff]  ;;  %v546_v42 = vld [vmem:[%s1453_s17 + $0x10] sm:$0xff]  ;;  %v545_v49 = vld [vmem:[%s1453_s17 + $0x8] sm:$0xff] }
  0xd9   : > { %649 = vmatpush.bf16.msra.mxu0 %v1183_v30  ;;  %1213 = vmatpush.bf16.msra.mxu1 %v1183_v30  ;;  %v548_v47 = vld [vmem:[%s1453_s17 + $0x20] sm:$0xff]  ;;  %v550_v48 = vld [vmem:[%s1453_s17 + $0x30] sm:$0xff]  ;;  %v547_v50 = vld [vmem:[%s1453_s17 + $0x18] sm:$0xff] }
  0xda   : > { %1214 = vmatpush.bf16.msra.mxu2 %v1183_v30  ;;  %1215 = vmatpush.bf16.msra.mxu3 %v1183_v30  ;;  %v549_v59 = vld [vmem:[%s1453_s17 + $0x28] sm:$0xff]  ;;  %v551_v60 = vld [vmem:[%s1453_s17 + $0x38] sm:$0xff] }
  0xdd   : > { %650 = vmatpush.bf16.msra.mxu0 %v1182_v31  ;;  %1216 = vmatpush.bf16.msra.mxu1 %v1182_v31 }
  0xde   : > { %1217 = vmatpush.bf16.msra.mxu2 %v1182_v31  ;;  %1218 = vmatpush.bf16.msra.mxu3 %v1182_v31 }
  0xe1   : > { %651 = vmatpush.bf16.msra.mxu0 %v1181_v32  ;;  %1219 = vmatpush.bf16.msra.mxu1 %v1181_v32 }
  0xe2   : > { %1220 = vmatpush.bf16.msra.mxu2 %v1181_v32  ;;  %1221 = vmatpush.bf16.msra.mxu3 %v1181_v32 }
  0xe5   : > { %652 = vmatpush.bf16.msra.mxu0 %v1180_v33  ;;  %1222 = vmatpush.bf16.msra.mxu1 %v1180_v33 }
  0xe6   : > { %1223 = vmatpush.bf16.msra.mxu2 %v1180_v33  ;;  %1224 = vmatpush.bf16.msra.mxu3 %v1180_v33 }
  0xe9   : > { %653 = vmatpush.bf16.msra.mxu0 %v1179_v34  ;;  %1225 = vmatpush.bf16.msra.mxu1 %v1179_v34 }
  0xea   : > { %1226 = vmatpush.bf16.msra.mxu2 %v1179_v34  ;;  %1227 = vmatpush.bf16.msra.mxu3 %v1179_v34 }
  0xed   : > { %654 = vmatpush.bf16.msra.mxu0 %v1178_v35  ;;  %1228 = vmatpush.bf16.msra.mxu1 %v1178_v35 }
  0xee   : > { %1229 = vmatpush.bf16.msra.mxu2 %v1178_v35  ;;  %1230 = vmatpush.bf16.msra.mxu3 %v1178_v35 }
  0xf1   : > { %655 = vmatpush.bf16.msra.mxu0 %v1177_v36  ;;  %1231 = vmatpush.bf16.msra.mxu1 %v1177_v36 }
  0xf2   : > { %1232 = vmatpush.bf16.msra.mxu2 %v1177_v36  ;;  %1233 = vmatpush.bf16.msra.mxu3 %v1177_v36 }
  0xf4   : > { %656 = vmatmul.bf16.vlgmr.msra.gmra.mxu0 %v1173_v37  ;;  %661 = vmatmul.bf16.vlgmr.msra.gmra.mxu1 %v1174_v38 }
  0xf5   : > { %666 = vmatmul.bf16.vlgmr.msra.gmra.mxu2 %v1175_v39  ;;  %671 = vmatmul.bf16.vlgmr.msra.gmra.mxu3 %v1176_v40 }
 0x171   : > { %v657_v43 = vpop.f32.mrf.mxu0  ;;  %v662_v44 = vpop.f32.mrf.mxu1 }
 0x172   : > { %v677_v45 = vadd.f32 %v657_v43, %v544_v41  ;;  %v679_v46 = vadd.f32 %v662_v44, %v546_v42 }
 0x174   : > { %685 = vst [vmem:[%s1453_s17] sm:$0xff] %v677_v45 }
 0x175   : > { %687 = vst [vmem:[%s1453_s17 + $0x10] sm:$0xff] %v679_v46 }
 0x178   : > { %v667_v51 = vpop.f32.mrf.mxu2  ;;  %v672_v52 = vpop.f32.mrf.mxu3 }
 0x179   : > { %v681_v53 = vadd.f32 %v667_v51, %v548_v47  ;;  %v683_v54 = vadd.f32 %v672_v52, %v550_v48  ;;  %v659_v55 = vpop.f32.mrf.mxu0  ;;  %v664_v56 = vpop.f32.mrf.mxu1 }
 0x17a   : > { %v678_v57 = vadd.f32 %v659_v55, %v545_v49  ;;  %v680_v58 = vadd.f32 %v664_v56, %v547_v50 }
 0x17b   : > { %689 = vst [vmem:[%s1453_s17 + $0x20] sm:$0xff] %v681_v53 }
 0x17c   : > { %691 = vst [vmem:[%s1453_s17 + $0x30] sm:$0xff] %v683_v54 }
 0x17d   : > { %686 = vst [vmem:[%s1453_s17 + $0x8] sm:$0xff] %v678_v57 }
 0x17e   : > { %688 = vst [vmem:[%s1453_s17 + $0x18] sm:$0xff] %v680_v58 }
 0x180   : > { %v669_v61 = vpop.f32.mrf.mxu2  ;;  %v674_v62 = vpop.f32.mrf.mxu3 }
 0x181   : > { %v682_v63 = vadd.f32 %v669_v61, %v549_v59  ;;  %v684_v0 = vadd.f32 %v674_v62, %v551_v60 }
 0x183   : > { %690 = vst [vmem:[%s1453_s17 + $0x28] sm:$0xff] %v682_v63 }
 0x184   : > { %692 = vst [vmem:[%s1453_s17 + $0x38] sm:$0xff] %v684_v0 }
 0x185 PF: > { %p693_p9 = scmp.eq.s32.totalorder %s1330_s9, 2 }
 0x186   : > { %v702_v1 = vld [vmem:[%s1453_s17 + $0x20] sm:$0xff] (%p693_p9)  ;;  %v700_v2 = vld [vmem:[%s1453_s17 + $0x10] sm:$0xff] (%p693_p9)  ;;  %v701_v5 = vld [vmem:[%s1453_s17 + $0x18] sm:$0xff] (%p693_p9)  ;;  %v740_v9 = vlaneseq (%p693_p9) }
 0x187   : > { %697 = sbr.rel (!%p693_p9) target bundleno = 690 (0x2b2), region = 60  ;;  %v698_v3 = vld [vmem:[%s1453_s17] sm:$0xff] (%p693_p9)  ;;  %716 = vadd.xlane.f32.xlu2 (%p693_p9), %v702_v1  ;;  %712 = vadd.xlane.f32.xlu1 (%p693_p9), %v700_v2  ;;  %v699_v6 = vld [vmem:[%s1453_s17 + $0x8] sm:$0xff] (%p693_p9)  ;;  %v704_v8 = vld [vmem:[%s1453_s17 + $0x30] sm:$0xff] (%p693_p9) }
 0x188   : > { %708 = vadd.xlane.f32.xlu0 (%p693_p9), %v698_v3  ;;  %v741_v12 = vand.u32 (%p693_p9), 127, %v740_v9 }
 0x18a   : > { %v703_v4 = vld [vmem:[%s1453_s17 + $0x28] sm:$0xff] (%p693_p9)  ;;  %vm742_vm0 = vcmp.lt.s32.totalorder (%p693_p9), %v741_v12, 32 }
 0x18b   : > { %v705_v7 = vld [vmem:[%s1453_s17 + $0x38] sm:$0xff] (%p693_p9) }
 0x18f   : > { %718 = vadd.xlane.f32.xlu2 %v703_v4  ;;  %714 = vadd.xlane.f32.xlu1 %v701_v5 }
 0x190   : > { %710 = vadd.xlane.f32.xlu0 %v699_v6 }
 0x197   : > { %722 = vadd.xlane.f32.xlu1 %v705_v7 }
 0x198   : > { %720 = vadd.xlane.f32.xlu0 %v704_v8 }
 0x1fa   : > { %v717_v10 = vpop.xlane.xlu2 %716  ;;  %v713_v11 = vpop.xlane.xlu1 %712 }
 0x1fb   : > { %v726_v13 = vmul.f32 0.03125, %v713_v11  ;;  %v709_v14 = vpop.xlane.xlu0 %708  ;;  %v728_v27 = vmul.f32 0.03125, %v717_v10 }
 0x1fc   : > { %v724_v15 = vmul.f32 0.03125, %v709_v14 }
 0x1fd   : > { %v1533_v16 = vsub.f32 %v700_v2, %v726_v13  ;;  %v1553_v34 = vsub.f32 %v702_v1, %v728_v27 }
 0x1fe   : > { %v1535_v17 = vsub.f32 %v698_v3, %v724_v15 }
 0x1ff   : > { %v745_v18 = vmul.f32 %v1533_v16, %v1533_v16  ;;  %v747_v43 = vmul.f32 %v1553_v34, %v1553_v34 }
 0x200   : > { %v743_v19 = vmul.f32 %v1535_v17, %v1535_v17 }
 0x201   : > { %v753_v20 = vsel %vm742_vm0, %v745_v18, 0.0  ;;  %v755_v46 = vsel %vm742_vm0, %v747_v43, 0.0 }
 0x202   : > { %v719_v21 = vpop.xlane.xlu2 %718  ;;  %763 = vadd.xlane.f32.xlu1 %v753_v20  ;;  %v715_v22 = vpop.xlane.xlu1 %714  ;;  %v751_v23 = vsel %vm742_vm0, %v743_v19, 0.0 }
 0x203   : > { %v729_v24 = vmul.f32 0.03125, %v719_v21  ;;  %v727_v25 = vmul.f32 0.03125, %v715_v22  ;;  %759 = vadd.xlane.f32.xlu2 %v751_v23  ;;  %v711_v26 = vpop.xlane.xlu0 %710 }
 0x204   : > { %v725_v28 = vmul.f32 0.03125, %v711_v26 }
 0x205   : > { %v1543_v29 = vsub.f32 %v703_v4, %v729_v24  ;;  %v1545_v30 = vsub.f32 %v701_v5, %v727_v25  ;;  %v1584_v24 = vld [vmem:[%s1677_s6] ss:$0 sm:$0xff] }
 0x206   : > { %v1547_v31 = vsub.f32 %v699_v6, %v725_v28 }
 0x207   : > { %v748_v32 = vmul.f32 %v1543_v29, %v1543_v29  ;;  %v746_v33 = vmul.f32 %v1545_v30, %v1545_v30 }
 0x208   : > { %v744_v35 = vmul.f32 %v1547_v31, %v1547_v31 }
 0x209   : > { %v756_v36 = vsel %vm742_vm0, %v748_v32, 0.0  ;;  %v754_v37 = vsel %vm742_vm0, %v746_v33, 0.0 }
 0x20a   : > { %769 = vadd.xlane.f32.xlu1 %v756_v36  ;;  %v752_v38 = vsel %vm742_vm0, %v744_v35, 0.0  ;;  %v723_v39 = vpop.xlane.xlu1 %722  ;;  %v1594_v35 = vld [vmem:[%s1678_s7] ss:$0 sm:$0xff] }
 0x20b   : > { %765 = vadd.xlane.f32.xlu2 %v754_v37  ;;  %761 = vadd.xlane.f32.xlu0 %v752_v38  ;;  %v721_v40 = vpop.xlane.xlu0 %720  ;;  %v731_v42 = vmul.f32 0.03125, %v723_v39 }
 0x20c   : > { %v730_v41 = vmul.f32 0.03125, %v721_v40 }
 0x20d   : > { %v1564_v45 = vsub.f32 %v705_v7, %v731_v42 }
 0x20e   : > { %v1562_v44 = vsub.f32 %v704_v8, %v730_v41 }
 0x20f   : > { %v750_v49 = vmul.f32 %v1564_v45, %v1564_v45 }
 0x210   : > { %v749_v47 = vmul.f32 %v1562_v44, %v1562_v44 }
 0x211   : > { %v758_v50 = vsel %vm742_vm0, %v750_v49, 0.0 }
 0x212   : > { %v757_v48 = vsel %vm742_vm0, %v749_v47, 0.0 }
 0x213   : > { %767 = vadd.xlane.f32.xlu0 %v755_v46  ;;  %771 = vadd.xlane.f32.xlu2 %v757_v48 }
 0x21b   : > { %773 = vadd.xlane.f32.xlu0 %v758_v50 }
 0x275   : > { %v764_v51 = vpop.xlane.xlu1 %763 }
 0x276   : > { %v777_v52 = vmul.f32 0.03125, %v764_v51  ;;  %v760_v53 = vpop.xlane.xlu2 %759 }
 0x277   : > { %v775_v54 = vmul.f32 0.03125, %v760_v53 }
 0x278   : > { %v785_v55 = vadd.f32 1e-05, %v777_v52 }
 0x279   : > { %v783_v56 = vadd.f32 1e-05, %v775_v54 }
 0x27a   : > { %1278 = vrsqrt.f32 %v785_v55  ;;  %vm817_vm1 = vweird.f32 %v785_v55 }
 0x27b   : > { %1280 = vrsqrt.f32 %v783_v56  ;;  %vm797_vm5 = vweird.f32 %v783_v56 }
 0x27d   : > { %v770_v57 = vpop.xlane.xlu1 %769 }
 0x27e   : > { %v780_v58 = vmul.f32 0.03125, %v770_v57  ;;  %v766_v59 = vpop.xlane.xlu2 %765  ;;  %v762_v60 = vpop.xlane.xlu0 %761 }
 0x27f   : > { %v778_v61 = vmul.f32 0.03125, %v766_v59  ;;  %v776_v62 = vmul.f32 0.03125, %v762_v60 }
 0x280   : > { %v1279_v63 = vpop.eup %1278  ;;  %v788_v0 = vadd.f32 1e-05, %v780_v58 }
 0x281   : > { %v1281_v1 = vpop.eup %1280  ;;  %v812_v2 = vmul.f32 %v1279_v63, %v785_v55  ;;  %v1573_v3 = vadd.f32 1e-05, %v778_v61  ;;  %v1575_v4 = vadd.f32 1e-05, %v776_v62  ;;  %vm818_vm2 = vweird.f32 %v1279_v63 }
 0x282   : > { %v792_v5 = vmul.f32 %v1281_v1, %v783_v56  ;;  %1282 = vrsqrt.f32 %v788_v0  ;;  %vm798_vm3 = vweird.f32 %v1281_v1  ;;  %vm819_vm4 = vmor %vm817_vm1, %vm818_vm2  ;;  %vm847_vm7 = vweird.f32 %v788_v0 }
 0x283   : > { %v813_v6 = vmul.f32 %v1279_v63, %v812_v2  ;;  %1284 = vrsqrt.f32 %v1573_v3  ;;  %vm799_vm6 = vmor %vm797_vm5, %vm798_vm3  ;;  %vm827_vm9 = vweird.f32 %v1573_v3  ;;  %vm807_vm12 = vweird.f32 %v1575_v4 }
 0x284   : > { %v793_v7 = vmul.f32 %v1281_v1, %v792_v5  ;;  %1286 = vrsqrt.f32 %v1575_v4 }
 0x285   : > { %v814_v8 = vmul.f32 0.5, %v813_v6 }
 0x286   : > { %v794_v9 = vmul.f32 0.5, %v793_v7  ;;  %v772_v10 = vpop.xlane.xlu2 %771  ;;  %v768_v11 = vpop.xlane.xlu0 %767 }
 0x287   : > { %v815_v12 = vsub.f32 1.5, %v814_v8  ;;  %v781_v13 = vmul.f32 0.03125, %v772_v10  ;;  %v779_v14 = vmul.f32 0.03125, %v768_v11 }
 0x288   : > { %v1283_v15 = vpop.eup %1282  ;;  %v795_v18 = vsub.f32 1.5, %v794_v9 }
 0x289   : > { %v1285_v19 = vpop.eup %1284  ;;  %v816_v20 = vmul.f32 %v1279_v63, %v815_v12  ;;  %v842_v21 = vmul.f32 %v1283_v15, %v788_v0  ;;  %v1579_v22 = vadd.f32 1e-05, %v781_v13  ;;  %v1588_v27 = vadd.f32 1e-05, %v779_v14 }
 0x28a   : > { %v1287_v23 = vpop.eup %1286  ;;  %v796_v25 = vmul.f32 %v1281_v1, %v795_v18  ;;  %v822_v26 = vmul.f32 %v1285_v19, %v1573_v3  ;;  %vm848_vm8 = vweird.f32 %v1283_v15  ;;  %vm828_vm11 = vweird.f32 %v1285_v19 }
 0x28b   : > { %v820_v28 = vsel %vm819_vm4, %v1279_v63, %v816_v20  ;;  %v843_v32 = vmul.f32 %v1283_v15, %v842_v21  ;;  %v802_v33 = vmul.f32 %v1287_v23, %v1575_v4  ;;  %1288 = vrsqrt.f32 %v1579_v22  ;;  %vm1605_vm10 = vmor %vm847_vm7, %vm848_vm8 }
 0x28c   : > { %v873_v36 = vmul.f32 %v820_v28, %v1533_v16  ;;  %v800_v37 = vsel %vm799_vm6, %v1281_v1, %v796_v25  ;;  %v823_v38 = vmul.f32 %v1285_v19, %v822_v26  ;;  %1290 = vrsqrt.f32 %v1588_v27  ;;  %vm829_vm0 = vmor %vm827_vm9, %vm828_vm11 }
 0x28d   : > { %v871_v39 = vmul.f32 %v800_v37, %v1535_v17  ;;  %v844_v40 = vmul.f32 0.5, %v843_v32  ;;  %v803_v41 = vmul.f32 %v1287_v23, %v802_v33  ;;  %vm808_vm13 = vweird.f32 %v1287_v23 }
 0x28e   : > { %v884_v42 = vmul.f32 %v1584_v24, %v873_v36  ;;  %v824_v43 = vmul.f32 0.5, %v823_v38  ;;  %v774_v46 = vpop.xlane.xlu0 %773  ;;  %vm809_vm1 = vmor %vm807_vm12, %vm808_vm13  ;;  %vm857_vm2 = vweird.f32 %v1579_v22  ;;  %vm837_vm9 = vweird.f32 %v1588_v27 }
 0x28f   : > { %v882_v47 = vmul.f32 %v1584_v24, %v871_v39  ;;  %v845_v16 = vsub.f32 1.5, %v844_v40  ;;  %v804_v48 = vmul.f32 0.5, %v803_v41  ;;  %v782_v49 = vmul.f32 0.03125, %v774_v46 }
 0x290   : > { %v895_v50 = vadd.f32 %v1594_v35, %v884_v42  ;;  %v825_v51 = vsub.f32 1.5, %v824_v43 }
 0x291   : > { %v893_v52 = vadd.f32 %v1594_v35, %v882_v47  ;;  %v846_v53 = vmul.f32 %v1283_v15, %v845_v16  ;;  %v805_v54 = vsub.f32 1.5, %v804_v48  ;;  %v1289_v55 = vpop.eup %1288  ;;  %v1611_v58 = vadd.f32 1e-05, %v782_v49 }
 0x292   : > { %vm903_vm14 = vcmp.ge.f32.partialorder %v895_v50, 0.0  ;;  %v911_v56 = vmul.f32 0.1, %v895_v50  ;;  %v826_v57 = vmul.f32 %v1285_v19, %v825_v51  ;;  %v1291_v62 = vpop.eup %1290  ;;  %v852_v2 = vmul.f32 %v1289_v55, %v1579_v22 }
 0x293   : > { %vm901_vm15 = vcmp.ge.f32.partialorder %v893_v52, 0.0  ;;  %v909_v59 = vmul.f32 0.1, %v893_v52  ;;  %v850_v60 = vsel %vm1605_vm10, %v1283_v15, %v846_v53  ;;  %v806_v61 = vmul.f32 %v1287_v23, %v805_v54 }
 0x294   : > { %v919_v63 = vsel %vm903_vm14, %v895_v50, %v911_v56  ;;  %v876_v0 = vmul.f32 %v850_v60, %v1543_v29  ;;  %v830_v1 = vsel %vm829_vm0, %v1285_v19, %v826_v57  ;;  %v853_v9 = vmul.f32 %v1289_v55, %v852_v2 }
 0x295   : > { %927 = vst [vmem:[%s1453_s17 + $0x10] sm:$0xff] %v919_v63  ;;  %v917_v5 = vsel %vm901_vm15, %v893_v52, %v909_v59  ;;  %v874_v6 = vmul.f32 %v830_v1, %v1545_v30  ;;  %v810_v7 = vsel %vm809_vm1, %v1287_v23, %v806_v61  ;;  %v832_v29 = vmul.f32 %v1291_v62, %v1588_v27 }
 0x296   : > { %925 = vst [vmem:[%s1453_s17] sm:$0xff] %v917_v5  ;;  %v887_v3 = vmul.f32 %v1584_v24, %v876_v0  ;;  %v872_v8 = vmul.f32 %v810_v7, %v1547_v31  ;;  %1292 = vrsqrt.f32 %v1611_v58  ;;  %v854_v12 = vmul.f32 0.5, %v853_v9 }
 0x297   : > { %v885_v10 = vmul.f32 %v1584_v24, %v874_v6  ;;  %v833_v13 = vmul.f32 %v1291_v62, %v832_v29  ;;  %vm858_vm3 = vweird.f32 %v1289_v55  ;;  %vm838_vm8 = vweird.f32 %v1291_v62 }
 0x298   : > { %v898_v4 = vadd.f32 %v1594_v35, %v887_v3  ;;  %v883_v11 = vmul.f32 %v1584_v24, %v872_v8  ;;  %v855_v15 = vsub.f32 1.5, %v854_v12  ;;  %vm859_vm7 = vmor %vm857_vm2, %vm858_vm3  ;;  %vm867_vm13 = vweird.f32 %v1611_v58 }
 0x299   : > { %v896_v30 = vadd.f32 %v1594_v35, %v885_v10  ;;  %v834_v19 = vmul.f32 0.5, %v833_v13  ;;  %vm839_vm10 = vmor %vm837_vm9, %vm838_vm8 }
 0x29a   : > { %vm906_vm4 = vcmp.ge.f32.partialorder %v898_v4, 0.0  ;;  %v914_v31 = vmul.f32 0.1, %v898_v4  ;;  %v894_v14 = vadd.f32 %v1594_v35, %v883_v11  ;;  %v856_v23 = vmul.f32 %v1289_v55, %v855_v15 }
 0x29b   : > { %vm904_vm5 = vcmp.ge.f32.partialorder %v896_v30, 0.0  ;;  %v912_v18 = vmul.f32 0.1, %v896_v30  ;;  %v835_v28 = vsub.f32 1.5, %v834_v19 }
 0x29c   : > { %v922_v20 = vsel %vm906_vm4, %v898_v4, %v914_v31  ;;  %vm902_vm6 = vcmp.ge.f32.partialorder %v894_v14, 0.0  ;;  %v910_v21 = vmul.f32 0.1, %v894_v14  ;;  %v1293_v25 = vpop.eup %1292  ;;  %v860_v33 = vsel %vm859_vm7, %v1289_v55, %v856_v23 }
 0x29d   : > { %930 = vst [vmem:[%s1453_s17 + $0x28] sm:$0xff] %v922_v20  ;;  %v920_v26 = vsel %vm904_vm5, %v896_v30, %v912_v18  ;;  %v862_v36 = vmul.f32 %v1293_v25, %v1611_v58  ;;  %v877_v37 = vmul.f32 %v860_v33, %v1562_v44  ;;  %v836_v38 = vmul.f32 %v1291_v62, %v835_v28 }
 0x29e   : > { %928 = vst [vmem:[%s1453_s17 + $0x18] sm:$0xff] %v920_v26  ;;  %v918_v32 = vsel %vm902_vm6, %v894_v14, %v910_v21  ;;  %vm868_vm11 = vweird.f32 %v1293_v25 }
 0x29f   : > { %926 = vst [vmem:[%s1453_s17 + $0x8] sm:$0xff] %v918_v32  ;;  %v863_v39 = vmul.f32 %v1293_v25, %v862_v36  ;;  %v888_v40 = vmul.f32 %v1584_v24, %v877_v37  ;;  %v840_v22 = vsel %vm839_vm10, %v1291_v62, %v836_v38  ;;  %vm869_vm14 = vmor %vm867_vm13, %vm868_vm11 }
 0x2a0   : > { %v875_v41 = vmul.f32 %v840_v22, %v1553_v34 }
 0x2a1   : > { %v864_v42 = vmul.f32 0.5, %v863_v39  ;;  %v899_v43 = vadd.f32 %v1594_v35, %v888_v40 }
 0x2a2   : > { %v886_v46 = vmul.f32 %v1584_v24, %v875_v41 }
 0x2a3   : > { %v865_v47 = vsub.f32 1.5, %v864_v42  ;;  %vm907_vm12 = vcmp.ge.f32.partialorder %v899_v43, 0.0  ;;  %v915_v44 = vmul.f32 0.1, %v899_v43 }
 0x2a4   : > { %v897_v27 = vadd.f32 %v1594_v35, %v886_v46 }
 0x2a5   : > { %v866_v16 = vmul.f32 %v1293_v25, %v865_v47  ;;  %v923_v48 = vsel %vm907_vm12, %v899_v43, %v915_v44 }
 0x2a6   : > { %931 = vst [vmem:[%s1453_s17 + $0x30] sm:$0xff] %v923_v48  ;;  %vm905_vm15 = vcmp.ge.f32.partialorder %v897_v27, 0.0  ;;  %v913_v34 = vmul.f32 0.1, %v897_v27 }
 0x2a7   : > { %v870_v49 = vsel %vm869_vm14, %v1293_v25, %v866_v16 }
 0x2a8   : > { %v878_v50 = vmul.f32 %v870_v49, %v1564_v45  ;;  %v921_v17 = vsel %vm905_vm15, %v897_v27, %v913_v34 }
 0x2a9   : > { %929 = vst [vmem:[%s1453_s17 + $0x20] sm:$0xff] %v921_v17 }
 0x2aa   : > { %v889_v51 = vmul.f32 %v1584_v24, %v878_v50 }
 0x2ac   : > { %v900_v52 = vadd.f32 %v1594_v35, %v889_v51 }
 0x2ae   : > { %vm908_vm0 = vcmp.ge.f32.partialorder %v900_v52, 0.0  ;;  %v916_v53 = vmul.f32 0.1, %v900_v52 }
 0x2b0   : > { %v924_v54 = vsel %vm908_vm0, %v900_v52, %v916_v53 }
 0x2b1   : > { %932 = vst [vmem:[%s1453_s17 + $0x38] sm:$0xff] %v924_v54 }
 0x2b2 PF: > { %s26_s13 = sadd.s32 1, %s1346_s13   ;;  %s1684_s0 = sld [smem:[#allocation5_spill]] }
 0x2b3   : > { %p23_p10 = scmp.ge.s32.totalorder %s26_s13, 8   ;;  %s1685_s14 = sld [smem:[#allocation6_spill]] }
 0x2b4   : > { %s1686_s9 = smov %s1338_s11  ;;  %s1687_s10 = smov %s1342_s12 }
 0x2b5   :  { %25 = sbr.rel (!%p23_p10) target bundleno = 9 (0x9), region = 96 }
 0x2b8   : > { %s1688_s11 = smov %s1684_s0 }
 0x2b9   : > { %s1689_s12 = smov %s1685_s14 }

// kernel: attention_rgcn_forward.15
= control target key start
LH: loop header
LB: loop body
LE: loop exit
PB: predicated region body
PF: predicated region fallthrough
CT: control target
= control target key end

     0   :  { %s1247_s30 = smov [#allocation3]   ;;  %s1518_s0 = inlined_call_operand.vmem [shape: s32[6], index: 0, kind: input, shape index: {}]   ;;  %s1519_s1 = inlined_call_operand.vmem [shape: bf16[128,128], index: 1, kind: input, shape index: {}]   ;;  %s1520_s2 = inlined_call_operand.vmem [shape: bf16[128,128], index: 2, kind: input, shape index: {}]   ;;  %s1521_s3 = inlined_call_operand.vmem [shape: f32[1,128], index: 3, kind: input, shape index: {}]   ;;  %s1522_s4 = inlined_call_operand.vmem [shape: bf16[3,128,128], index: 4, kind: input, shape index: {}]   ;;  %s1523_s5 = inlined_call_operand.vmem [shape: bf16[3,128,128], index: 5, kind: input, shape index: {}]   ;;  %s1524_s6 = inlined_call_operand.vmem [shape: f32[1,128], index: 6, kind: input, shape index: {}, may-alias: {6,7}]   ;;  %s1525_s7 = inlined_call_operand.vmem [shape: f32[1,128], index: 7, kind: input, shape index: {}, may-alias: {6,7}]   ;;  %s1526_s8 = inlined_call_operand.vmem [shape: f32[128,128], index: 8, kind: output, shape index: {}]  }
   0x1   :  { %s14_s29 = sshll.u32 %s1518_s0, 4  ;;  %s15_s29 = int_to_ptr.vmem [resolvable:$true] %s14_s29 }
   0x2   :  { %17 = dma.vmem_to_smem %s15_s29, 16, %s1247_s30, [#allocation2] }
   0x3   :  { %1225 = dma.done.wait [#allocation2], 16 }
   0x4   :  { %1226 = vsyncadd [#allocation2], 4294967280 }
   0x5   :  { %20 = sfence }
   0x6   :  { %s1296_s9 = smov 0   ;;  %s1298_s10 = smov 0  }
   0x7   :  { %s1300_s6 = smov 0   ;;  %s1302_s7 = smov 0  }
   0x8   :  { %s1304_s11 = smov 0  }
   0x9 LB: > { %s41_s0 = sadd.s32 1, %s1237_s6  ;;  %s45_s12 = sadd.s32 1, %s1241_s7  ;;  %s1245_s11 = sphi %s1304_s11, %s26_s11   ;;  %s1241_s7 = sphi %s1302_s7, %s1530_s7   ;;  %s1237_s6 = sphi %s1300_s6, %s1529_s6   ;;  %s1233_s10 = sphi %s1298_s10, %s1528_s10   ;;  %s1229_s9 = sphi %s1296_s9, %s1527_s9  }
   0xa   : > { %p43_p0 = scmp.ge.s32.totalorder %s41_s0, 3  ;;  %p948_p1 = scmp.ge.s32.totalorder %s1245_s11, 1 }
   0xb   : > { %p305_p2 = scmp.lt.s32.totalorder %s1245_s11, 7 }
   0xc   : > { %s1532_s0 = smov (%p43_p0, %s41_s0), 0  ;;  %s1534_s12 = smov (!%p43_p0, %s45_s12), %s1241_s7 }
   0xd   : > { %p306_p3 = pnand %p948_p1, %p305_p2  ;;  %p47_p4 = scmp.ge.s32.totalorder %s1534_s12, 2 }
   0xe   : > { %s949_s13 = sshll.u32 (!%p306_p3), %s1233_s10, 3  ;;  %p365_p5 = scmp.lt.s32.totalorder (!%p306_p3), %s1229_s9, 2 }
   0xf   : > { %s1536_s12 = smov (%p47_p4, %s1534_s12), 0  ;;  %309 = sbr.rel (%p306_p3) target bundleno = 552 (0x228), region = 48 }
  0x10   : > { %p359_p6 = scmp.lt.s32.totalorder (!%p306_p3), %s949_s13, 15  ;;  %p393_p7 = scmp.eq.s32.totalorder (!%p306_p3), %s1229_s9, 0 }
  0x14   : > { %s366_s14 = scalar_select %p365_p5, %s1229_s9, 2  ;;  %v1073_v0 = vld [vmem:[%s1520_s2 + $0x38] sm:$0xff] (%p393_p7)  ;;  %v1072_v1 = vld [vmem:[%s1520_s2 + $0x30] sm:$0xff] (%p393_p7)  ;;  %v1071_v2 = vld [vmem:[%s1520_s2 + $0x28] sm:$0xff] (%p393_p7) }
  0x15   : > { %s1538_s13 = smov (!%p359_p6, %s949_s13), 15  ;;  %499 = vmatpush.bf16.msra.mxu0 (%p393_p7), %v1073_v0  ;;  %1087 = vmatpush.bf16.msra.mxu1 (%p393_p7), %v1073_v0  ;;  %v1070_v3 = vld [vmem:[%s1520_s2 + $0x20] sm:$0xff] (%p393_p7)  ;;  %v1069_v4 = vld [vmem:[%s1520_s2 + $0x18] sm:$0xff] (%p393_p7)  ;;  %v1068_v5 = vld [vmem:[%s1520_s2 + $0x10] sm:$0xff] (%p393_p7) }
  0x16   : > { %s952_s15 = sshll.u32 %s366_s14, 4  ;;  %s1060_s16 = sshll.u32 %s366_s14, 6  ;;  %1088 = vmatpush.bf16.msra.mxu2 (%p393_p7), %v1073_v0  ;;  %1089 = vmatpush.bf16.msra.mxu3 (%p393_p7), %v1073_v0  ;;  %v1067_v6 = vld [vmem:[%s1520_s2 + $0x8] sm:$0xff] (%p393_p7)  ;;  %v1066_v7 = vld [vmem:[%s1520_s2] sm:$0xff] (%p393_p7) }
  0x17   : > { %s950_s17 = sshll.u32 %s1538_s13, 2  ;;  %s373_s18 = sadd.s32 %s952_s15, %s1538_s13  ;;  %v1176_v12 = vld [vmem:[%s1521_s3] ss:$0 sm:$0xff] (%p393_p7) }
  0x18   : > { %s1337_s21 = scalar_lea.vmem %s1519_s1, %s950_s17  ;;  %s953_s22 = sshll.u32 %s373_s18, 2 }
  0x19   : > { %s1342_s25 = scalar_lea.vmem %s1522_s4, %s953_s22  ;;  %s1347_s28 = scalar_lea.vmem %s1523_s5, %s1060_s16  ;;  %500 = vmatpush.bf16.msra.mxu0 (%p393_p7), %v1072_v1  ;;  %1090 = vmatpush.bf16.msra.mxu1 (%p393_p7), %v1072_v1  ;;  %v1062_v8 = vld [vmem:[%s1337_s21] sm:$0xff] (%p393_p7)  ;;  %v1063_v9 = vld [vmem:[%s1337_s21 + $0x8] sm:$0xff] (%p393_p7)  ;;  %v1064_v10 = vld [vmem:[%s1337_s21 + $0x10] sm:$0xff] (%p393_p7) }
  0x1a   : > { %s957_s29 = sshll.u32 %s1538_s13, 3  ;;  %398 = sbr.rel (!%p393_p7) target bundleno = 197 (0xc5), region = 52  ;;  %1091 = vmatpush.bf16.msra.mxu2 (%p393_p7), %v1072_v1  ;;  %1092 = vmatpush.bf16.msra.mxu3 (%p393_p7), %v1072_v1  ;;  %v1065_v11 = vld [vmem:[%s1337_s21 + $0x18] sm:$0xff] (%p393_p7) }
  0x1b   : > { %s1352_s15 = scalar_lea.vmem %s1526_s8, %s957_s29 }
  0x1d   : > { %501 = vmatpush.bf16.msra.mxu0 (%p393_p7), %v1071_v2  ;;  %1093 = vmatpush.bf16.msra.mxu1 (%p393_p7), %v1071_v2 }
  0x1e   : > { %1094 = vmatpush.bf16.msra.mxu2 (%p393_p7), %v1071_v2  ;;  %1095 = vmatpush.bf16.msra.mxu3 (%p393_p7), %v1071_v2 }
  0x21   : > { %502 = vmatpush.bf16.msra.mxu0 %v1070_v3  ;;  %1096 = vmatpush.bf16.msra.mxu1 %v1070_v3 }
  0x22   : > { %1097 = vmatpush.bf16.msra.mxu2 %v1070_v3  ;;  %1098 = vmatpush.bf16.msra.mxu3 %v1070_v3 }
  0x25   : > { %503 = vmatpush.bf16.msra.mxu0 %v1069_v4  ;;  %1099 = vmatpush.bf16.msra.mxu1 %v1069_v4 }
  0x26   : > { %1100 = vmatpush.bf16.msra.mxu2 %v1069_v4  ;;  %1101 = vmatpush.bf16.msra.mxu3 %v1069_v4 }
  0x29   : > { %504 = vmatpush.bf16.msra.mxu0 %v1068_v5  ;;  %1102 = vmatpush.bf16.msra.mxu1 %v1068_v5 }
  0x2a   : > { %1103 = vmatpush.bf16.msra.mxu2 %v1068_v5  ;;  %1104 = vmatpush.bf16.msra.mxu3 %v1068_v5 }
  0x2d   : > { %505 = vmatpush.bf16.msra.mxu0 %v1067_v6  ;;  %1105 = vmatpush.bf16.msra.mxu1 %v1067_v6 }
  0x2e   : > { %1106 = vmatpush.bf16.msra.mxu2 %v1067_v6  ;;  %1107 = vmatpush.bf16.msra.mxu3 %v1067_v6 }
  0x31   : > { %506 = vmatpush.bf16.msra.mxu0 %v1066_v7  ;;  %1108 = vmatpush.bf16.msra.mxu1 %v1066_v7 }
  0x32   : > { %1109 = vmatpush.bf16.msra.mxu2 %v1066_v7  ;;  %1110 = vmatpush.bf16.msra.mxu3 %v1066_v7 }
  0x34   : > { %507 = vmatmul.bf16.vlgmr.msra.gmra.mxu0 %v1062_v8  ;;  %512 = vmatmul.bf16.vlgmr.msra.gmra.mxu1 %v1063_v9 }
  0x35   : > { %517 = vmatmul.bf16.vlgmr.msra.gmra.mxu2 %v1064_v10  ;;  %522 = vmatmul.bf16.vlgmr.msra.gmra.mxu3 %v1065_v11 }
  0xb1   : > { %v508_v13 = vpop.f32.mrf.mxu0  ;;  %v513_v14 = vpop.f32.mrf.mxu1 }
  0xb2   : > { %v509_v15 = vadd.f32 %v1176_v12, %v508_v13  ;;  %v514_v16 = vadd.f32 %v1176_v12, %v513_v14 }
  0xb4   : > { %528 = vst [vmem:[%s1352_s15] sm:$0xff] %v509_v15 }
  0xb5   : > { %530 = vst [vmem:[%s1352_s15 + $0x10] sm:$0xff] %v514_v16 }
  0xb8   : > { %v518_v17 = vpop.f32.mrf.mxu2  ;;  %v523_v18 = vpop.f32.mrf.mxu3 }
  0xb9   : > { %v519_v19 = vadd.f32 %v1176_v12, %v518_v17  ;;  %v524_v20 = vadd.f32 %v1176_v12, %v523_v18  ;;  %v510_v21 = vpop.f32.mrf.mxu0  ;;  %v515_v22 = vpop.f32.mrf.mxu1 }
  0xba   : > { %v511_v23 = vadd.f32 %v1176_v12, %v510_v21  ;;  %v516_v24 = vadd.f32 %v1176_v12, %v515_v22 }
  0xbb   : > { %532 = vst [vmem:[%s1352_s15 + $0x20] sm:$0xff] %v519_v19 }
  0xbc   : > { %534 = vst [vmem:[%s1352_s15 + $0x30] sm:$0xff] %v524_v20 }
  0xbd   : > { %529 = vst [vmem:[%s1352_s15 + $0x8] sm:$0xff] %v511_v23 }
  0xbe   : > { %531 = vst [vmem:[%s1352_s15 + $0x18] sm:$0xff] %v516_v24 }
  0xc0   : > { %v520_v25 = vpop.f32.mrf.mxu2  ;;  %v525_v26 = vpop.f32.mrf.mxu3 }
  0xc1   : > { %v521_v27 = vadd.f32 %v1176_v12, %v520_v25  ;;  %v526_v28 = vadd.f32 %v1176_v12, %v525_v26 }
  0xc3   : > { %533 = vst [vmem:[%s1352_s15 + $0x28] sm:$0xff] %v521_v27 }
  0xc4   : > { %535 = vst [vmem:[%s1352_s15 + $0x38] sm:$0xff] %v526_v28 }
  0xc5 PF: > { %s1007_s21 = sshll.u32 %s1229_s9, 1 }
  0xc6   : > { %s537_s13 = sadd.s32 %s1233_s10, %s1007_s21 }
  0xc7   : > { %s539_s16 = sld [smem:[#allocation3 + %s537_s13]] }
  0xcd   : > { %p1008_p8 = scmp.le.s32.totalorder %s539_s16, 0 }
  0xcf   : > { %543 = sbr.rel (%p1008_p8) target bundleno = 389 (0x185), region = 56 }
  0xd4   : > { %v1085_v29 = vld [vmem:[%s1347_s28 + $0x38] sm:$0xff]  ;;  %v1084_v30 = vld [vmem:[%s1347_s28 + $0x30] sm:$0xff]  ;;  %v1083_v31 = vld [vmem:[%s1347_s28 + $0x28] sm:$0xff] }
  0xd5   : > { %648 = vmatpush.bf16.msra.mxu0 %v1085_v29  ;;  %1111 = vmatpush.bf16.msra.mxu1 %v1085_v29  ;;  %v1082_v32 = vld [vmem:[%s1347_s28 + $0x20] sm:$0xff]  ;;  %v1081_v33 = vld [vmem:[%s1347_s28 + $0x18] sm:$0xff]  ;;  %v1080_v34 = vld [vmem:[%s1347_s28 + $0x10] sm:$0xff] }
  0xd6   : > { %1112 = vmatpush.bf16.msra.mxu2 %v1085_v29  ;;  %1113 = vmatpush.bf16.msra.mxu3 %v1085_v29  ;;  %v1079_v35 = vld [vmem:[%s1347_s28 + $0x8] sm:$0xff]  ;;  %v1078_v36 = vld [vmem:[%s1347_s28] sm:$0xff]  ;;  %v1076_v39 = vld [vmem:[%s1342_s25 + $0x10] sm:$0xff] }
  0xd7   : > { %v1074_v37 = vld [vmem:[%s1342_s25] sm:$0xff]  ;;  %v1075_v38 = vld [vmem:[%s1342_s25 + $0x8] sm:$0xff]  ;;  %v1077_v40 = vld [vmem:[%s1342_s25 + $0x18] sm:$0xff] }
  0xd8   : > { %v544_v41 = vld [vmem:[%s1352_s15] sm:$0xff]  ;;  %v546_v42 = vld [vmem:[%s1352_s15 + $0x10] sm:$0xff]  ;;  %v545_v49 = vld [vmem:[%s1352_s15 + $0x8] sm:$0xff] }
  0xd9   : > { %649 = vmatpush.bf16.msra.mxu0 %v1084_v30  ;;  %1114 = vmatpush.bf16.msra.mxu1 %v1084_v30  ;;  %v548_v47 = vld [vmem:[%s1352_s15 + $0x20] sm:$0xff]  ;;  %v550_v48 = vld [vmem:[%s1352_s15 + $0x30] sm:$0xff]  ;;  %v547_v50 = vld [vmem:[%s1352_s15 + $0x18] sm:$0xff] }
  0xda   : > { %1115 = vmatpush.bf16.msra.mxu2 %v1084_v30  ;;  %1116 = vmatpush.bf16.msra.mxu3 %v1084_v30  ;;  %v549_v59 = vld [vmem:[%s1352_s15 + $0x28] sm:$0xff]  ;;  %v551_v60 = vld [vmem:[%s1352_s15 + $0x38] sm:$0xff] }
  0xdd   : > { %650 = vmatpush.bf16.msra.mxu0 %v1083_v31  ;;  %1117 = vmatpush.bf16.msra.mxu1 %v1083_v31 }
  0xde   : > { %1118 = vmatpush.bf16.msra.mxu2 %v1083_v31  ;;  %1119 = vmatpush.bf16.msra.mxu3 %v1083_v31 }
  0xe1   : > { %651 = vmatpush.bf16.msra.mxu0 %v1082_v32  ;;  %1120 = vmatpush.bf16.msra.mxu1 %v1082_v32 }
  0xe2   : > { %1121 = vmatpush.bf16.msra.mxu2 %v1082_v32  ;;  %1122 = vmatpush.bf16.msra.mxu3 %v1082_v32 }
  0xe5   : > { %652 = vmatpush.bf16.msra.mxu0 %v1081_v33  ;;  %1123 = vmatpush.bf16.msra.mxu1 %v1081_v33 }
  0xe6   : > { %1124 = vmatpush.bf16.msra.mxu2 %v1081_v33  ;;  %1125 = vmatpush.bf16.msra.mxu3 %v1081_v33 }
  0xe9   : > { %653 = vmatpush.bf16.msra.mxu0 %v1080_v34  ;;  %1126 = vmatpush.bf16.msra.mxu1 %v1080_v34 }
  0xea   : > { %1127 = vmatpush.bf16.msra.mxu2 %v1080_v34  ;;  %1128 = vmatpush.bf16.msra.mxu3 %v1080_v34 }
  0xed   : > { %654 = vmatpush.bf16.msra.mxu0 %v1079_v35  ;;  %1129 = vmatpush.bf16.msra.mxu1 %v1079_v35 }
  0xee   : > { %1130 = vmatpush.bf16.msra.mxu2 %v1079_v35  ;;  %1131 = vmatpush.bf16.msra.mxu3 %v1079_v35 }
  0xf1   : > { %655 = vmatpush.bf16.msra.mxu0 %v1078_v36  ;;  %1132 = vmatpush.bf16.msra.mxu1 %v1078_v36 }
  0xf2   : > { %1133 = vmatpush.bf16.msra.mxu2 %v1078_v36  ;;  %1134 = vmatpush.bf16.msra.mxu3 %v1078_v36 }
  0xf4   : > { %656 = vmatmul.bf16.vlgmr.msra.gmra.mxu0 %v1074_v37  ;;  %661 = vmatmul.bf16.vlgmr.msra.gmra.mxu1 %v1075_v38 }
  0xf5   : > { %666 = vmatmul.bf16.vlgmr.msra.gmra.mxu2 %v1076_v39  ;;  %671 = vmatmul.bf16.vlgmr.msra.gmra.mxu3 %v1077_v40 }
 0x171   : > { %v657_v43 = vpop.f32.mrf.mxu0  ;;  %v662_v44 = vpop.f32.mrf.mxu1 }
 0x172   : > { %v677_v45 = vadd.f32 %v657_v43, %v544_v41  ;;  %v679_v46 = vadd.f32 %v662_v44, %v546_v42 }
 0x174   : > { %685 = vst [vmem:[%s1352_s15] sm:$0xff] %v677_v45 }
 0x175   : > { %687 = vst [vmem:[%s1352_s15 + $0x10] sm:$0xff] %v679_v46 }
 0x178   : > { %v667_v51 = vpop.f32.mrf.mxu2  ;;  %v672_v52 = vpop.f32.mrf.mxu3 }
 0x179   : > { %v681_v53 = vadd.f32 %v667_v51, %v548_v47  ;;  %v683_v54 = vadd.f32 %v672_v52, %v550_v48  ;;  %v659_v55 = vpop.f32.mrf.mxu0  ;;  %v664_v56 = vpop.f32.mrf.mxu1 }
 0x17a   : > { %v678_v57 = vadd.f32 %v659_v55, %v545_v49  ;;  %v680_v58 = vadd.f32 %v664_v56, %v547_v50 }
 0x17b   : > { %689 = vst [vmem:[%s1352_s15 + $0x20] sm:$0xff] %v681_v53 }
 0x17c   : > { %691 = vst [vmem:[%s1352_s15 + $0x30] sm:$0xff] %v683_v54 }
 0x17d   : > { %686 = vst [vmem:[%s1352_s15 + $0x8] sm:$0xff] %v678_v57 }
 0x17e   : > { %688 = vst [vmem:[%s1352_s15 + $0x18] sm:$0xff] %v680_v58 }
 0x180   : > { %v669_v61 = vpop.f32.mrf.mxu2  ;;  %v674_v62 = vpop.f32.mrf.mxu3 }
 0x181   : > { %v682_v63 = vadd.f32 %v669_v61, %v549_v59  ;;  %v684_v0 = vadd.f32 %v674_v62, %v551_v60 }
 0x183   : > { %690 = vst [vmem:[%s1352_s15 + $0x28] sm:$0xff] %v682_v63 }
 0x184   : > { %692 = vst [vmem:[%s1352_s15 + $0x38] sm:$0xff] %v684_v0 }
 0x185 PF: > { %p693_p9 = scmp.eq.s32.totalorder %s1229_s9, 2 }
 0x186   : > { %v1425_v1 = vld [vmem:[%s1352_s15 + $0x20] sm:$0xff] (%p693_p9)  ;;  %v1428_v2 = vld [vmem:[%s1352_s15 + $0x10] sm:$0xff] (%p693_p9)  ;;  %v1443_v8 = vld [vmem:[%s1352_s15 + $0x18] sm:$0xff] (%p693_p9) }
 0x187   : > { %697 = sbr.rel (!%p693_p9) target bundleno = 552 (0x228), region = 60  ;;  %v1431_v3 = vld [vmem:[%s1352_s15] sm:$0xff] (%p693_p9)  ;;  %v710_v4 = vmul.f32 (%p693_p9), %v1425_v1, %v1425_v1  ;;  %v708_v5 = vmul.f32 (%p693_p9), %v1428_v2, %v1428_v2  ;;  %v1446_v9 = vld [vmem:[%s1352_s15 + $0x8] sm:$0xff] (%p693_p9)  ;;  %v709_v11 = vmul.f32 (%p693_p9), %v1443_v8, %v1443_v8  ;;  %v1458_v14 = vld [vmem:[%s1352_s15 + $0x30] sm:$0xff] (%p693_p9) }
 0x188   : > { %v706_v6 = vmul.f32 (%p693_p9), %v1431_v3, %v1431_v3  ;;  %v707_v12 = vmul.f32 (%p693_p9), %v1446_v9, %v1446_v9  ;;  %v712_v16 = vmul.f32 (%p693_p9), %v1458_v14, %v1458_v14 }
 0x189   : > { %722 = vadd.xlane.f32.xlu2 (%p693_p9), %v710_v4  ;;  %718 = vadd.xlane.f32.xlu1 (%p693_p9), %v708_v5 }
 0x18a   : > { %714 = vadd.xlane.f32.xlu0 (%p693_p9), %v706_v6  ;;  %v1440_v7 = vld [vmem:[%s1352_s15 + $0x28] sm:$0xff] (%p693_p9) }
 0x18b   : > { %v711_v10 = vmul.f32 (%p693_p9), %v1440_v7, %v1440_v7  ;;  %v1455_v13 = vld [vmem:[%s1352_s15 + $0x38] sm:$0xff] (%p693_p9) }
 0x18c   : > { %v713_v15 = vmul.f32 %v1455_v13, %v1455_v13 }
 0x191   : > { %724 = vadd.xlane.f32.xlu2 %v711_v10  ;;  %720 = vadd.xlane.f32.xlu1 %v709_v11 }
 0x192   : > { %716 = vadd.xlane.f32.xlu0 %v707_v12 }
 0x199   : > { %728 = vadd.xlane.f32.xlu1 %v713_v15 }
 0x19a   : > { %726 = vadd.xlane.f32.xlu0 %v712_v16 }
 0x1fc   : > { %v723_v17 = vpop.xlane.xlu2 %722  ;;  %v719_v18 = vpop.xlane.xlu1 %718 }
 0x1fd   : > { %v734_v19 = vmax.f32 %v723_v17, 1e-24  ;;  %v732_v20 = vmax.f32 %v719_v18, 1e-24  ;;  %v715_v21 = vpop.xlane.xlu0 %714 }
 0x1fe   : > { %v730_v22 = vmax.f32 %v715_v21, 1e-24 }
 0x1ff   : > { %1177 = vrsqrt.f32 %v734_v19  ;;  %vm784_vm0 = vweird.f32 %v734_v19  ;;  %vm764_vm2 = vweird.f32 %v732_v20 }
 0x200   : > { %1179 = vrsqrt.f32 %v732_v20  ;;  %vm744_vm6 = vweird.f32 %v730_v22 }
 0x201   : > { %1181 = vrsqrt.f32 %v730_v22 }
 0x204   : > { %v725_v23 = vpop.xlane.xlu2 %724  ;;  %v721_v24 = vpop.xlane.xlu1 %720 }
 0x205   : > { %v1178_v25 = vpop.eup %1177  ;;  %v1464_v26 = vmax.f32 %v725_v23, 1e-24  ;;  %v1466_v27 = vmax.f32 %v721_v24, 1e-24  ;;  %v717_v28 = vpop.xlane.xlu0 %716 }
 0x206   : > { %v1180_v29 = vpop.eup %1179  ;;  %v779_v30 = vmul.f32 %v1178_v25, %v734_v19  ;;  %v1468_v31 = vmax.f32 %v717_v28, 1e-24  ;;  %vm785_vm1 = vweird.f32 %v1178_v25 }
 0x207   : > { %v1182_v32 = vpop.eup %1181  ;;  %v759_v33 = vmul.f32 %v1180_v29, %v732_v20  ;;  %1183 = vrsqrt.f32 %v1464_v26  ;;  %vm765_vm3 = vweird.f32 %v1180_v29  ;;  %vm786_vm5 = vmor %vm784_vm0, %vm785_vm1  ;;  %vm794_vm9 = vweird.f32 %v1464_v26 }
 0x208   : > { %v780_v34 = vmul.f32 %v1178_v25, %v779_v30  ;;  %v739_v35 = vmul.f32 %v1182_v32, %v730_v22  ;;  %1185 = vrsqrt.f32 %v1466_v27  ;;  %vm745_vm4 = vweird.f32 %v1182_v32  ;;  %vm766_vm7 = vmor %vm764_vm2, %vm765_vm3 }
 0x209   : > { %v760_v36 = vmul.f32 %v1180_v29, %v759_v33  ;;  %1187 = vrsqrt.f32 %v1468_v31  ;;  %vm746_vm8 = vmor %vm744_vm6, %vm745_vm4  ;;  %vm774_vm14 = vweird.f32 %v1466_v27  ;;  %vm754_vm0 = vweird.f32 %v1468_v31 }
 0x20a   : > { %v781_v37 = vmul.f32 0.5, %v780_v34  ;;  %v740_v38 = vmul.f32 %v1182_v32, %v739_v35 }
 0x20b   : > { %v761_v39 = vmul.f32 0.5, %v760_v36 }
 0x20c   : > { %v782_v40 = vsub.f32 1.5, %v781_v37  ;;  %v741_v41 = vmul.f32 0.5, %v740_v38  ;;  %v729_v42 = vpop.xlane.xlu1 %728 }
 0x20d   : > { %v1184_v43 = vpop.eup %1183  ;;  %v762_v44 = vsub.f32 1.5, %v761_v39  ;;  %v1473_v45 = vmax.f32 %v729_v42, 1e-24  ;;  %v727_v57 = vpop.xlane.xlu0 %726 }
 0x20e   : > { %v1186_v46 = vpop.eup %1185  ;;  %v783_v47 = vmul.f32 %v1178_v25, %v782_v40  ;;  %v742_v48 = vsub.f32 1.5, %v741_v41  ;;  %v789_v49 = vmul.f32 %v1184_v43, %v1464_v26  ;;  %v736_v6 = vmax.f32 %v727_v57, 1e-24 }
 0x20f   : > { %v1188_v50 = vpop.eup %1187  ;;  %v763_v51 = vmul.f32 %v1180_v29, %v762_v44  ;;  %v769_v52 = vmul.f32 %v1186_v46, %v1466_v27  ;;  %1189 = vrsqrt.f32 %v1473_v45  ;;  %vm795_vm10 = vweird.f32 %v1184_v43 }
 0x210   : > { %v787_v53 = vsel %vm786_vm5, %v1178_v25, %v783_v47  ;;  %v743_v54 = vmul.f32 %v1182_v32, %v742_v48  ;;  %v790_v55 = vmul.f32 %v1184_v43, %v789_v49  ;;  %v749_v56 = vmul.f32 %v1188_v50, %v1468_v31  ;;  %vm796_vm13 = vmor %vm794_vm9, %vm795_vm10 }
 0x211   : > { %v822_v58 = vmul.f32 %v787_v53, %v1425_v1  ;;  %v767_v59 = vsel %vm766_vm7, %v1180_v29, %v763_v51  ;;  %v770_v60 = vmul.f32 %v1186_v46, %v769_v52  ;;  %vm775_vm11 = vweird.f32 %v1186_v46 }
 0x212   : > { %v820_v61 = vmul.f32 %v767_v59, %v1428_v2  ;;  %v747_v62 = vsel %vm746_vm8, %v1182_v32, %v743_v54  ;;  %v791_v63 = vmul.f32 0.5, %v790_v55  ;;  %v750_v0 = vmul.f32 %v1188_v50, %v749_v56  ;;  %vm776_vm15 = vmor %vm774_vm14, %vm775_vm11 }
 0x213   : > { %830 = vst [vmem:[%s1352_s15 + $0x20] sm:$0xff] %v822_v58  ;;  %v818_v4 = vmul.f32 %v747_v62, %v1431_v3  ;;  %v771_v5 = vmul.f32 0.5, %v770_v60  ;;  %1191 = vrsqrt.f32 %v736_v6  ;;  %vm755_vm12 = vweird.f32 %v1188_v50 }
 0x214   : > { %828 = vst [vmem:[%s1352_s15 + $0x10] sm:$0xff] %v820_v61  ;;  %v792_v10 = vsub.f32 1.5, %v791_v63  ;;  %v751_v1 = vmul.f32 0.5, %v750_v0  ;;  %vm756_vm1 = vmor %vm754_vm0, %vm755_vm12  ;;  %vm814_vm3 = vweird.f32 %v1473_v45  ;;  %vm804_vm6 = vweird.f32 %v736_v6 }
 0x215   : > { %v1190_v11 = vpop.eup %1189  ;;  %826 = vst [vmem:[%s1352_s15] sm:$0xff] %v818_v4  ;;  %v772_v12 = vsub.f32 1.5, %v771_v5 }
 0x216   : > { %v793_v2 = vmul.f32 %v1184_v43, %v792_v10  ;;  %v752_v15 = vsub.f32 1.5, %v751_v1  ;;  %v809_v16 = vmul.f32 %v1190_v11, %v1473_v45  ;;  %vm815_vm2 = vweird.f32 %v1190_v11 }
 0x217   : > { %v773_v3 = vmul.f32 %v1186_v46, %v772_v12  ;;  %vm816_vm4 = vmor %vm814_vm3, %vm815_vm2 }
 0x218   : > { %v797_v17 = vsel %vm796_vm13, %v1184_v43, %v793_v2  ;;  %v753_v18 = vmul.f32 %v1188_v50, %v752_v15  ;;  %v810_v19 = vmul.f32 %v1190_v11, %v809_v16 }
 0x219   : > { %v823_v20 = vmul.f32 %v797_v17, %v1440_v7  ;;  %v777_v21 = vsel %vm776_vm15, %v1186_v46, %v773_v3  ;;  %v1192_v25 = vpop.eup %1191 }
 0x21a   : > { %v821_v22 = vmul.f32 %v777_v21, %v1443_v8  ;;  %v757_v23 = vsel %vm756_vm1, %v1188_v50, %v753_v18  ;;  %v811_v24 = vmul.f32 0.5, %v810_v19  ;;  %v799_v28 = vmul.f32 %v1192_v25, %v736_v6 }
 0x21b   : > { %831 = vst [vmem:[%s1352_s15 + $0x28] sm:$0xff] %v823_v20  ;;  %v819_v26 = vmul.f32 %v757_v23, %v1446_v9  ;;  %vm805_vm5 = vweird.f32 %v1192_v25 }
 0x21c   : > { %829 = vst [vmem:[%s1352_s15 + $0x18] sm:$0xff] %v821_v22  ;;  %v812_v27 = vsub.f32 1.5, %v811_v24  ;;  %v800_v7 = vmul.f32 %v1192_v25, %v799_v28  ;;  %vm806_vm7 = vmor %vm804_vm6, %vm805_vm5 }
 0x21d   : > { %827 = vst [vmem:[%s1352_s15 + $0x8] sm:$0xff] %v819_v26 }
 0x21e   : > { %v813_v29 = vmul.f32 %v1190_v11, %v812_v27  ;;  %v801_v8 = vmul.f32 0.5, %v800_v7 }
 0x220   : > { %v817_v30 = vsel %vm816_vm4, %v1190_v11, %v813_v29  ;;  %v802_v32 = vsub.f32 1.5, %v801_v8 }
 0x221   : > { %v825_v31 = vmul.f32 %v817_v30, %v1455_v13 }
 0x222   : > { %v803_v33 = vmul.f32 %v1192_v25, %v802_v32 }
 0x223   : > { %833 = vst [vmem:[%s1352_s15 + $0x38] sm:$0xff] %v825_v31 }
 0x224   : > { %v807_v9 = vsel %vm806_vm7, %v1192_v25, %v803_v33 }
 0x225   : > { %v824_v34 = vmul.f32 %v807_v9, %v1458_v14 }
 0x227   : > { %832 = vst [vmem:[%s1352_s15 + $0x30] sm:$0xff] %v824_v34 }
 0x228 PF: > { %s26_s11 = sadd.s32 1, %s1245_s11   ;;  %s1527_s9 = smov %s1237_s6 }
 0x229   : > { %p23_p10 = scmp.ge.s32.totalorder %s26_s11, 8   ;;  %s1528_s10 = smov %s1241_s7 }
 0x22a   : > { %s1529_s6 = smov %s1532_s0  ;;  %s1530_s7 = smov %s1536_s12 }
 0x22b   :  { %25 = sbr.rel (!%p23_p10) target bundleno = 9 (0x9), region = 96 }

// kernel: attention_rgcn_forward.13
= control target key start
LH: loop header
LB: loop body
LE: loop exit
PB: predicated region body
PF: predicated region fallthrough
CT: control target
= control target key end

     0   :  { %s4130_s30 = smov [#allocation6]   ;;  %s6267_s0 = inlined_call_operand.vmem [shape: s32[2], index: 0, kind: input, shape index: {}]   ;;  %s6268_s1 = inlined_call_operand.vmem [shape: bf16[4,128,128], index: 1, kind: input, shape index: {}]   ;;  %s6269_s2 = inlined_call_operand.vmem [shape: f32[4,1,128], index: 2, kind: input, shape index: {}]   ;;  %s6270_s3 = inlined_call_operand.vmem [shape: f32[4,128,1], index: 3, kind: input, shape index: {}]   ;;  %s6271_s4 = inlined_call_operand.vmem [shape: bf16[128,128], index: 4, kind: input, shape index: {}]   ;;  %s6272_s5 = inlined_call_operand.vmem [shape: f32[1,128], index: 5, kind: input, shape index: {}]   ;;  %s6273_s6 = inlined_call_operand.vmem [shape: f32[1,128], index: 6, kind: input, shape index: {}]   ;;  %s6274_s7 = inlined_call_operand.vmem [shape: f32[1,128], index: 7, kind: input, shape index: {}]   ;;  %s6275_s8 = inlined_call_operand.vmem [shape: f32[128,128], index: 8, kind: output, shape index: {}]  }
   0x1   :  { %s14_s29 = sshll.u32 %s6267_s0, 4  ;;  %s15_s29 = int_to_ptr.vmem [resolvable:$true] %s14_s29 }
   0x2   :  { %17 = dma.vmem_to_smem %s15_s29, 16, %s4130_s30, [#allocation5] }
   0x3   :  { %4108 = dma.done.wait [#allocation5], 16 }
   0x4   :  { %4109 = vsyncadd [#allocation5], 4294967280 }
   0x5   :  { %20 = sfence }
   0x6   :  { %s4183_s9 = smov 0   ;;  %s4185_s10 = smov 0  }
   0x7   :  { %s4187_s11 = smov 0   ;;  %s4189_s12 = smov 0  }
   0x8   :  { %s4191_s13 = smov 0  }
   0x9 LB: > { %s38_s0 = sadd.s32 1, %s4124_s12  ;;  %p104_p1 = scmp.ne.s32.totalorder %s4116_s10, %s4112_s9  ;;  %s4128_s13 = sphi %s4191_s13, %s26_s13   ;;  %s4124_s12 = sphi %s4189_s12, %s6402_s12   ;;  %s4120_s11 = sphi %s4187_s11, %s6401_s11   ;;  %s4116_s10 = sphi %s4185_s10, %s6400_s10   ;;  %s4112_s9 = sphi %s4183_s9, %s6399_s9  }
   0xa   : > { %p40_p0 = scmp.ge.s32.totalorder %s38_s0, 2  ;;  %p105_p2 = scmp.eq.s32.totalorder %s4128_s13, 0 }
   0xb   : > { %s97_s15 = sadd.s32 1, %s4116_s10  ;;  %p3542_p5 = scmp.ge.s32.totalorder %s4128_s13, 2 }
   0xc   : > { %s6404_s0 = smov (%p40_p0, %s38_s0), 0  ;;  %p106_p3 = por %p105_p2, %p104_p1 }
   0xd   : > { %s94_s14 = ssub.s32 %s4124_s12, %s6404_s0  ;;  %271 = sbr.rel (%p3542_p5) target bundleno = 54 (0x36), region = 36 }
   0xe   : > { %p95_p4 = scmp.eq.s32.totalorder %s94_s14, 0 }
  0x10   : > { %s4218_s16 = scalar_select %p95_p4, %s4116_s10, %s97_s15  }
  0x12   : > { %274 = sbr.rel (!%p106_p3) target bundleno = 54 (0x36), region = 40  ;;  %s276_s17 = sand.u32 (%p106_p3), 1, %s4116_s10  }
  0x13   : > { %s3631_s18 = sshll.u32 (%p106_p3), %s4124_s12, 6  ;;  %s3543_s19 = sshll.u32 (%p106_p3), %s276_s17, 8 }
  0x14   : > { %s4226_s22 = scalar_lea.vmem (%p106_p3), %s6270_s3, %s3631_s18  ;;  %s4231_s23 = scalar_lea.vmem (%p106_p3), [#allocation7], %s3543_s19 }
  0x15   : > { %v372_v0 = vld [vmem:[%s4226_s22] sm:$0xff] (%p106_p3)  ;;  %v374_v1 = vld [vmem:[%s4226_s22 + $0x8] sm:$0xff] (%p106_p3)  ;;  %v376_v2 = vld [vmem:[%s4226_s22 + $0x10] sm:$0xff] (%p106_p3) }
  0x16   : > { %373 = vst [vmem:[%s4231_s23] sm:$0xff] (%p106_p3), %v372_v0  ;;  %v378_v3 = vld [vmem:[%s4226_s22 + $0x18] sm:$0xff] (%p106_p3)  ;;  %v380_v4 = vld [vmem:[%s4226_s22 + $0x20] sm:$0xff] (%p106_p3)  ;;  %v382_v5 = vld [vmem:[%s4226_s22 + $0x28] sm:$0xff] (%p106_p3) }
  0x17   : > { %375 = vst [vmem:[%s4231_s23 + $0x8] sm:$0xff] %v374_v1  ;;  %v384_v6 = vld [vmem:[%s4226_s22 + $0x30] sm:$0xff]  ;;  %v386_v7 = vld [vmem:[%s4226_s22 + $0x38] sm:$0xff]  ;;  %v388_v8 = vld [vmem:[%s4226_s22 + $0x80] sm:$0xff] }
  0x18   : > { %377 = vst [vmem:[%s4231_s23 + $0x10] sm:$0xff] %v376_v2  ;;  %v390_v9 = vld [vmem:[%s4226_s22 + $0x88] sm:$0xff]  ;;  %v392_v10 = vld [vmem:[%s4226_s22 + $0x90] sm:$0xff]  ;;  %v394_v11 = vld [vmem:[%s4226_s22 + $0x98] sm:$0xff] }
  0x19   : > { %379 = vst [vmem:[%s4231_s23 + $0x18] sm:$0xff] %v378_v3  ;;  %v396_v12 = vld [vmem:[%s4226_s22 + $0xa0] sm:$0xff]  ;;  %v398_v13 = vld [vmem:[%s4226_s22 + $0xa8] sm:$0xff]  ;;  %v400_v14 = vld [vmem:[%s4226_s22 + $0xb0] sm:$0xff] }
  0x1a   : > { %381 = vst [vmem:[%s4231_s23 + $0x20] sm:$0xff] %v380_v4  ;;  %v402_v15 = vld [vmem:[%s4226_s22 + $0xb8] sm:$0xff]  ;;  %v404_v16 = vld [vmem:[%s4226_s22 + $0x100] sm:$0xff]  ;;  %v406_v17 = vld [vmem:[%s4226_s22 + $0x108] sm:$0xff] }
  0x1b   : > { %383 = vst [vmem:[%s4231_s23 + $0x28] sm:$0xff] %v382_v5  ;;  %v408_v18 = vld [vmem:[%s4226_s22 + $0x110] sm:$0xff]  ;;  %v410_v19 = vld [vmem:[%s4226_s22 + $0x118] sm:$0xff]  ;;  %v412_v20 = vld [vmem:[%s4226_s22 + $0x120] sm:$0xff] }
  0x1c   : > { %385 = vst [vmem:[%s4231_s23 + $0x30] sm:$0xff] %v384_v6  ;;  %v414_v21 = vld [vmem:[%s4226_s22 + $0x128] sm:$0xff]  ;;  %v416_v22 = vld [vmem:[%s4226_s22 + $0x130] sm:$0xff]  ;;  %v418_v23 = vld [vmem:[%s4226_s22 + $0x138] sm:$0xff] }
  0x1d   : > { %387 = vst [vmem:[%s4231_s23 + $0x38] sm:$0xff] %v386_v7  ;;  %v420_v24 = vld [vmem:[%s4226_s22 + $0x180] sm:$0xff]  ;;  %v422_v25 = vld [vmem:[%s4226_s22 + $0x188] sm:$0xff]  ;;  %v424_v26 = vld [vmem:[%s4226_s22 + $0x190] sm:$0xff] }
  0x1e   : > { %389 = vst [vmem:[%s4231_s23 + $0x40] sm:$0xff] %v388_v8  ;;  %v426_v27 = vld [vmem:[%s4226_s22 + $0x198] sm:$0xff]  ;;  %v428_v28 = vld [vmem:[%s4226_s22 + $0x1a0] sm:$0xff]  ;;  %v430_v29 = vld [vmem:[%s4226_s22 + $0x1a8] sm:$0xff] }
  0x1f   : > { %391 = vst [vmem:[%s4231_s23 + $0x48] sm:$0xff] %v390_v9  ;;  %v432_v30 = vld [vmem:[%s4226_s22 + $0x1b0] sm:$0xff]  ;;  %v434_v31 = vld [vmem:[%s4226_s22 + $0x1b8] sm:$0xff] }
  0x20   : > { %393 = vst [vmem:[%s4231_s23 + $0x50] sm:$0xff] %v392_v10 }
  0x21   : > { %395 = vst [vmem:[%s4231_s23 + $0x58] sm:$0xff] %v394_v11 }
  0x22   : > { %397 = vst [vmem:[%s4231_s23 + $0x60] sm:$0xff] %v396_v12 }
  0x23   : > { %399 = vst [vmem:[%s4231_s23 + $0x68] sm:$0xff] %v398_v13 }
  0x24   : > { %401 = vst [vmem:[%s4231_s23 + $0x70] sm:$0xff] %v400_v14 }
  0x25   : > { %403 = vst [vmem:[%s4231_s23 + $0x78] sm:$0xff] %v402_v15 }
  0x26   : > { %405 = vst [vmem:[%s4231_s23 + $0x80] sm:$0xff] %v404_v16 }
  0x27   : > { %407 = vst [vmem:[%s4231_s23 + $0x88] sm:$0xff] %v406_v17 }
  0x28   : > { %409 = vst [vmem:[%s4231_s23 + $0x90] sm:$0xff] %v408_v18 }
  0x29   : > { %411 = vst [vmem:[%s4231_s23 + $0x98] sm:$0xff] %v410_v19 }
  0x2a   : > { %413 = vst [vmem:[%s4231_s23 + $0xa0] sm:$0xff] %v412_v20 }
  0x2b   : > { %415 = vst [vmem:[%s4231_s23 + $0xa8] sm:$0xff] %v414_v21 }
  0x2c   : > { %417 = vst [vmem:[%s4231_s23 + $0xb0] sm:$0xff] %v416_v22 }
  0x2d   : > { %419 = vst [vmem:[%s4231_s23 + $0xb8] sm:$0xff] %v418_v23 }
  0x2e   : > { %421 = vst [vmem:[%s4231_s23 + $0xc0] sm:$0xff] %v420_v24 }
  0x2f   : > { %423 = vst [vmem:[%s4231_s23 + $0xc8] sm:$0xff] %v422_v25 }
  0x30   : > { %425 = vst [vmem:[%s4231_s23 + $0xd0] sm:$0xff] %v424_v26 }
  0x31   : > { %427 = vst [vmem:[%s4231_s23 + $0xd8] sm:$0xff] %v426_v27 }
  0x32   : > { %429 = vst [vmem:[%s4231_s23 + $0xe0] sm:$0xff] %v428_v28 }
  0x33   : > { %431 = vst [vmem:[%s4231_s23 + $0xe8] sm:$0xff] %v430_v29 }
  0x34   : > { %433 = vst [vmem:[%s4231_s23 + $0xf0] sm:$0xff] %v432_v30 }
  0x35   : > { %435 = vst [vmem:[%s4231_s23 + $0xf8] sm:$0xff] %v434_v31 }
  0x36 PF: > { %p3546_p6 = scmp.ge.s32.totalorder %s4128_s13, 1  ;;  %p452_p7 = scmp.lt.s32.totalorder %s4128_s13, 3 }
  0x38   : > { %p453_p8 = pnand %p3546_p6, %p452_p7 }
  0x39   : > { %s459_s24 = sand.u32 (!%p453_p8), 1, %s4112_s9   ;;  %s3548_s25 = sshll.u32 (!%p453_p8), %s4120_s11, 3 }
  0x3a   : > { %456 = sbr.rel (%p453_p8) target bundleno = 2199 (0x897), region = 82  ;;  %s4298_s26 = sshll.u32 (!%p453_p8), %s459_s24, 8 }
  0x3b   : > { %p517_p9 = scmp.lt.s32.totalorder (!%p453_p8), %s3548_s25, 15  ;;  %s4303_s27 = sld [smem:[#allocation6 + %s4120_s11]] (!%p453_p8) }
  0x3c   : > { %s4442_s19 = scalar_lea.vmem (!%p453_p8), [#allocation7], %s4298_s26 }
  0x3f   : > { %vm535_vm0 = vcmask 7168   ;;  %v4131_v32 = vmov -1e+30   ;;  %s6406_s25 = smov (!%p517_p9, %s3548_s25), 15  ;;  %v4132_v33 = vmov 0.0  }
  0x40   : > { %536 = vst.msk [vmem:[#allocation2] sm:$0xff] %vm535_vm0, %v4131_v32  ;;  %s3549_s28 = sshll.u32 %s6406_s25, 2  ;;  %s3551_s29 = sshll.u32 %s6406_s25, 3 }
  0x41   : > { %537 = vst.msk [vmem:[#allocation2 + $0x8] sm:$0xff] %vm535_vm0, %v4131_v32  ;;  %s4311_s14 = scalar_lea.vmem %s6271_s4, %s3549_s28  ;;  %s4316_s18 = scalar_lea.vmem %s6275_s8, %s3551_s29 }
  0x42   : > { %538 = vst.msk [vmem:[#allocation2 + $0x10] sm:$0xff] %vm535_vm0, %v4131_v32  ;;  %p3552_p10 = scmp.le.s32.totalorder %s4303_s27, 0 }
  0x43   : > { %539 = vst.msk [vmem:[#allocation2 + $0x18] sm:$0xff] %vm535_vm0, %v4131_v32 }
  0x44   : > { %540 = vst.msk [vmem:[#allocation2 + $0x20] sm:$0xff] %vm535_vm0, %v4131_v32 }
  0x45   : > { %541 = vst.msk [vmem:[#allocation2 + $0x28] sm:$0xff] %vm535_vm0, %v4131_v32 }
  0x46   : > { %542 = vst.msk [vmem:[#allocation2 + $0x30] sm:$0xff] %vm535_vm0, %v4131_v32 }
  0x47   : > { %543 = vst.msk [vmem:[#allocation2 + $0x38] sm:$0xff] %vm535_vm0, %v4131_v32 }
  0x48   : > { %544 = vst.msk [vmem:[#allocation2 + $0x40] sm:$0xff] %vm535_vm0, %v4131_v32 }
  0x49   : > { %545 = vst.msk [vmem:[#allocation2 + $0x48] sm:$0xff] %vm535_vm0, %v4131_v32 }
  0x4a   : > { %546 = vst.msk [vmem:[#allocation2 + $0x50] sm:$0xff] %vm535_vm0, %v4131_v32 }
  0x4b   : > { %547 = vst.msk [vmem:[#allocation2 + $0x58] sm:$0xff] %vm535_vm0, %v4131_v32 }
  0x4c   : > { %548 = vst.msk [vmem:[#allocation2 + $0x60] sm:$0xff] %vm535_vm0, %v4131_v32 }
  0x4d   : > { %549 = vst.msk [vmem:[#allocation2 + $0x68] sm:$0xff] %vm535_vm0, %v4131_v32 }
  0x4e   : > { %550 = vst.msk [vmem:[#allocation2 + $0x70] sm:$0xff] %vm535_vm0, %v4131_v32 }
  0x4f   : > { %551 = vst.msk [vmem:[#allocation2 + $0x78] sm:$0xff] %vm535_vm0, %v4131_v32 }
  0x50   : > { %552 = vst.msk [vmem:[#allocation2 + $0x80] sm:$0xff] %vm535_vm0, %v4131_v32 }
  0x51   : > { %553 = vst.msk [vmem:[#allocation2 + $0x88] sm:$0xff] %vm535_vm0, %v4131_v32 }
  0x52   : > { %554 = vst.msk [vmem:[#allocation2 + $0x90] sm:$0xff] %vm535_vm0, %v4131_v32 }
  0x53   : > { %555 = vst.msk [vmem:[#allocation2 + $0x98] sm:$0xff] %vm535_vm0, %v4131_v32 }
  0x54   : > { %556 = vst.msk [vmem:[#allocation2 + $0xa0] sm:$0xff] %vm535_vm0, %v4131_v32 }
  0x55   : > { %557 = vst.msk [vmem:[#allocation2 + $0xa8] sm:$0xff] %vm535_vm0, %v4131_v32 }
  0x56   : > { %558 = vst.msk [vmem:[#allocation2 + $0xb0] sm:$0xff] %vm535_vm0, %v4131_v32 }
  0x57   : > { %559 = vst.msk [vmem:[#allocation2 + $0xb8] sm:$0xff] %vm535_vm0, %v4131_v32 }
  0x58   : > { %560 = vst.msk [vmem:[#allocation2 + $0xc0] sm:$0xff] %vm535_vm0, %v4131_v32 }
  0x59   : > { %561 = vst.msk [vmem:[#allocation2 + $0xc8] sm:$0xff] %vm535_vm0, %v4131_v32 }
  0x5a   : > { %562 = vst.msk [vmem:[#allocation2 + $0xd0] sm:$0xff] %vm535_vm0, %v4131_v32 }
  0x5b   : > { %563 = vst.msk [vmem:[#allocation2 + $0xd8] sm:$0xff] %vm535_vm0, %v4131_v32 }
  0x5c   : > { %564 = vst.msk [vmem:[#allocation2 + $0xe0] sm:$0xff] %vm535_vm0, %v4131_v32 }
  0x5d   : > { %565 = vst.msk [vmem:[#allocation2 + $0xe8] sm:$0xff] %vm535_vm0, %v4131_v32 }
  0x5e   : > { %566 = vst.msk [vmem:[#allocation2 + $0xf0] sm:$0xff] %vm535_vm0, %v4131_v32 }
  0x5f   : > { %567 = vst.msk [vmem:[#allocation2 + $0xf8] sm:$0xff] %vm535_vm0, %v4131_v32 }
  0x60   : > { %568 = vst.msk [vmem:[#allocation3] sm:$0xff] %vm535_vm0, %v4132_v33 }
  0x61   : > { %569 = vst.msk [vmem:[#allocation3 + $0x8] sm:$0xff] %vm535_vm0, %v4132_v33 }
  0x62   : > { %570 = vst.msk [vmem:[#allocation3 + $0x10] sm:$0xff] %vm535_vm0, %v4132_v33 }
  0x63   : > { %571 = vst.msk [vmem:[#allocation3 + $0x18] sm:$0xff] %vm535_vm0, %v4132_v33 }
  0x64   : > { %572 = vst.msk [vmem:[#allocation3 + $0x20] sm:$0xff] %vm535_vm0, %v4132_v33 }
  0x65   : > { %573 = vst.msk [vmem:[#allocation3 + $0x28] sm:$0xff] %vm535_vm0, %v4132_v33 }
  0x66   : > { %574 = vst.msk [vmem:[#allocation3 + $0x30] sm:$0xff] %vm535_vm0, %v4132_v33 }
  0x67   : > { %575 = vst.msk [vmem:[#allocation3 + $0x38] sm:$0xff] %vm535_vm0, %v4132_v33 }
  0x68   : > { %576 = vst.msk [vmem:[#allocation3 + $0x40] sm:$0xff] %vm535_vm0, %v4132_v33 }
  0x69   : > { %577 = vst.msk [vmem:[#allocation3 + $0x48] sm:$0xff] %vm535_vm0, %v4132_v33 }
  0x6a   : > { %578 = vst.msk [vmem:[#allocation3 + $0x50] sm:$0xff] %vm535_vm0, %v4132_v33 }
  0x6b   : > { %579 = vst.msk [vmem:[#allocation3 + $0x58] sm:$0xff] %vm535_vm0, %v4132_v33 }
  0x6c   : > { %580 = vst.msk [vmem:[#allocation3 + $0x60] sm:$0xff] %vm535_vm0, %v4132_v33 }
  0x6d   : > { %581 = vst.msk [vmem:[#allocation3 + $0x68] sm:$0xff] %vm535_vm0, %v4132_v33 }
  0x6e   : > { %582 = vst.msk [vmem:[#allocation3 + $0x70] sm:$0xff] %vm535_vm0, %v4132_v33 }
  0x6f   : > { %583 = vst.msk [vmem:[#allocation3 + $0x78] sm:$0xff] %vm535_vm0, %v4132_v33 }
  0x70   : > { %584 = vst.msk [vmem:[#allocation3 + $0x80] sm:$0xff] %vm535_vm0, %v4132_v33 }
  0x71   : > { %585 = vst.msk [vmem:[#allocation3 + $0x88] sm:$0xff] %vm535_vm0, %v4132_v33 }
  0x72   : > { %586 = vst.msk [vmem:[#allocation3 + $0x90] sm:$0xff] %vm535_vm0, %v4132_v33 }
  0x73   : > { %587 = vst.msk [vmem:[#allocation3 + $0x98] sm:$0xff] %vm535_vm0, %v4132_v33 }
  0x74   : > { %588 = vst.msk [vmem:[#allocation3 + $0xa0] sm:$0xff] %vm535_vm0, %v4132_v33 }
  0x75   : > { %589 = vst.msk [vmem:[#allocation3 + $0xa8] sm:$0xff] %vm535_vm0, %v4132_v33 }
  0x76   : > { %590 = vst.msk [vmem:[#allocation3 + $0xb0] sm:$0xff] %vm535_vm0, %v4132_v33 }
  0x77   : > { %591 = vst.msk [vmem:[#allocation3 + $0xb8] sm:$0xff] %vm535_vm0, %v4132_v33 }
  0x78   : > { %592 = vst.msk [vmem:[#allocation3 + $0xc0] sm:$0xff] %vm535_vm0, %v4132_v33 }
  0x79   : > { %593 = vst.msk [vmem:[#allocation3 + $0xc8] sm:$0xff] %vm535_vm0, %v4132_v33 }
  0x7a   : > { %594 = vst.msk [vmem:[#allocation3 + $0xd0] sm:$0xff] %vm535_vm0, %v4132_v33 }
  0x7b   : > { %595 = vst.msk [vmem:[#allocation3 + $0xd8] sm:$0xff] %vm535_vm0, %v4132_v33 }
  0x7c   : > { %596 = vst.msk [vmem:[#allocation3 + $0xe0] sm:$0xff] %vm535_vm0, %v4132_v33 }
  0x7d   : > { %597 = vst.msk [vmem:[#allocation3 + $0xe8] sm:$0xff] %vm535_vm0, %v4132_v33 }
  0x7e   : > { %598 = vst.msk [vmem:[#allocation3 + $0xf0] sm:$0xff] %vm535_vm0, %v4132_v33 }
  0x7f   : > { %599 = vst.msk [vmem:[#allocation3 + $0xf8] sm:$0xff] %vm535_vm0, %v4132_v33 }
  0x80   : > { %600 = vst [vmem:[#allocation4 + $0xb0] sm:$0xff] %v4132_v33 }
  0x81   : > { %601 = vst [vmem:[#allocation4] sm:$0xff] %v4132_v33 }
  0x82   : > { %602 = vst [vmem:[#allocation4 + $0xd8] sm:$0xff] %v4132_v33 }
  0x83   : > { %603 = vst [vmem:[#allocation4 + $0x18] sm:$0xff] %v4132_v33 }
  0x84   : > { %604 = vst [vmem:[#allocation4 + $0x50] sm:$0xff] %v4132_v33 }
  0x85   : > { %605 = vst [vmem:[#allocation4 + $0x68] sm:$0xff] %v4132_v33 }
  0x86   : > { %606 = vst [vmem:[#allocation4 + $0x30] sm:$0xff] %v4132_v33 }
  0x87   : > { %607 = vst [vmem:[#allocation4 + $0x48] sm:$0xff] %v4132_v33 }
  0x88   : > { %608 = vst [vmem:[#allocation4 + $0x80] sm:$0xff] %v4132_v33 }
  0x89   : > { %609 = vst [vmem:[#allocation4 + $0x88] sm:$0xff] %v4132_v33 }
  0x8a   : > { %610 = vst [vmem:[#allocation4 + $0xe8] sm:$0xff] %v4132_v33 }
  0x8b   : > { %611 = vst [vmem:[#allocation4 + $0xb8] sm:$0xff] %v4132_v33 }
  0x8c   : > { %612 = vst [vmem:[#allocation4 + $0x60] sm:$0xff] %v4132_v33 }
  0x8d   : > { %613 = vst [vmem:[#allocation4 + $0xf0] sm:$0xff] %v4132_v33 }
  0x8e   : > { %614 = vst [vmem:[#allocation4 + $0x8] sm:$0xff] %v4132_v33 }
  0x8f   : > { %615 = vst [vmem:[#allocation4 + $0x78] sm:$0xff] %v4132_v33 }
  0x90   : > { %616 = vst [vmem:[#allocation4 + $0x38] sm:$0xff] %v4132_v33 }
  0x91   : > { %617 = vst [vmem:[#allocation4 + $0x58] sm:$0xff] %v4132_v33 }
  0x92   : > { %618 = vst [vmem:[#allocation4 + $0x40] sm:$0xff] %v4132_v33 }
  0x93   : > { %619 = vst [vmem:[#allocation4 + $0xc8] sm:$0xff] %v4132_v33 }
  0x94   : > { %620 = vst [vmem:[#allocation4 + $0xe0] sm:$0xff] %v4132_v33 }
  0x95   : > { %621 = vst [vmem:[#allocation4 + $0x90] sm:$0xff] %v4132_v33 }
  0x96   : > { %622 = vst [vmem:[#allocation4 + $0x70] sm:$0xff] %v4132_v33 }
  0x97   : > { %623 = vst [vmem:[#allocation4 + $0xc0] sm:$0xff] %v4132_v33 }
  0x98   : > { %624 = vst [vmem:[#allocation4 + $0xa8] sm:$0xff] %v4132_v33 }
  0x99   : > { %625 = vst [vmem:[#allocation4 + $0xd0] sm:$0xff] %v4132_v33 }
  0x9a   : > { %626 = vst [vmem:[#allocation4 + $0x10] sm:$0xff] %v4132_v33 }
  0x9b   : > { %627 = vst [vmem:[#allocation4 + $0x28] sm:$0xff] %v4132_v33  ;;  %637 = sbr.rel (%p3552_p10) target bundleno = 1673 (0x689), region = 94 }
  0x9c   : > { %628 = vst [vmem:[#allocation4 + $0xa0] sm:$0xff] %v4132_v33 }
  0x9d   : > { %629 = vst [vmem:[#allocation4 + $0xf8] sm:$0xff] %v4132_v33 }
  0x9e   : > { %630 = vst [vmem:[#allocation4 + $0x20] sm:$0xff] %v4132_v33 }
  0x9f   : > { %631 = vst [vmem:[#allocation4 + $0x98] sm:$0xff] %v4132_v33 }
  0xa0   : > { %v674_v34 = vld [vmem:[%s4442_s19 + $0x20] sm:$0xff]  ;;  %v672_v35 = vld [vmem:[%s4442_s19 + $0x10] sm:$0xff]  ;;  %v4133_v37 = vmov 0   ;;  %v675_v38 = vld [vmem:[%s4442_s19 + $0x28] sm:$0xff] }
  0xa1   : > { %v670_v36 = vld [vmem:[%s4442_s19] sm:$0xff]  ;;  %3857 = vset.pattern.permute.xlu2 %v4133_v37  ;;  %3856 = vset.pattern.permute.xlu1 %v4133_v37  ;;  %v673_v39 = vld [vmem:[%s4442_s19 + $0x18] sm:$0xff]  ;;  %v671_v40 = vld [vmem:[%s4442_s19 + $0x8] sm:$0xff] }
  0xa2   : > { %3855 = vset.pattern.permute.xlu0 %v4133_v37  ;;  %701 = vperm.xlu2 %3857, %v674_v34   ;;  %v3569_v41 = vld [vmem:[%s4442_s19 + $0x40] sm:$0xff]  ;;  %v677_v42 = vld [vmem:[%s4442_s19 + $0x38] sm:$0xff]  ;;  %v676_v43 = vld [vmem:[%s4442_s19 + $0x30] sm:$0xff] }
  0xa3   : > { %691 = vperm.xlu1 %3856, %v672_v35   ;;  %681 = vperm.xlu0 %3855, %v670_v36   ;;  %v3572_v44 = vld [vmem:[%s4442_s19 + $0x58] sm:$0xff]  ;;  %v3571_v45 = vld [vmem:[%s4442_s19 + $0x50] sm:$0xff]  ;;  %v3570_v46 = vld [vmem:[%s4442_s19 + $0x48] sm:$0xff] }
  0xa4   : > { %v3575_v47 = vld [vmem:[%s4442_s19 + $0x70] sm:$0xff]  ;;  %v3574_v48 = vld [vmem:[%s4442_s19 + $0x68] sm:$0xff]  ;;  %v3573_v49 = vld [vmem:[%s4442_s19 + $0x60] sm:$0xff] }
  0xa5   : > { %v3776_v51 = vld [vmem:[%s4311_s14 + $0x8] sm:$0xff]   ;;  %v3633_v52 = vld [vmem:[%s4311_s14] sm:$0xff]   ;;  %v3777_v10 = vld [vmem:[%s4311_s14 + $0x10] sm:$0xff]  }
  0xa6   : > { %v3858_v53 = vld [vmem:[%s6269_s2] ss:$0 sm:$0xff]  ;;  %v4465_v54 = vunpack.c.l.bf16 %v3776_v51  ;;  %v4467_v55 = vunpack.c.l.bf16 %v3633_v52  ;;  %v4479_v3 = vunpack.c.h.bf16 %v3633_v52  ;;  %v4483_v8 = vunpack.c.h.bf16 %v3776_v51  ;;  %v3778_v19 = vld [vmem:[%s4311_s14 + $0x18] sm:$0xff]   ;;  %v4502_v21 = vld [vmem:[%s6269_s2 + $0x1] ss:$0 sm:$0xff] }
  0xa7   : > { %v4497_v20 = vunpack.c.h.bf16 %v3777_v10  ;;  %v4506_v25 = vunpack.c.l.bf16 %v3777_v10  ;;  %v4508_v28 = vunpack.c.l.bf16 %v3778_v19 }
  0xa8   : > { %vm756_vm1 = vcmp.gt.f32.partialorder %v4465_v54, 0.0  ;;  %vm754_vm2 = vcmp.gt.f32.partialorder %v4467_v55, 0.0  ;;  %vm755_vm5 = vcmp.gt.f32.partialorder %v4479_v3, 0.0  ;;  %vm757_vm8 = vcmp.gt.f32.partialorder %v4483_v8, 0.0 }
  0xa9   : > { %vm759_vm11 = vcmp.gt.f32.partialorder %v4497_v20, 0.0  ;;  %vm758_vm13 = vcmp.gt.f32.partialorder %v4506_v25, 0.0  ;;  %vm760_vm14 = vcmp.gt.f32.partialorder %v4508_v28, 0.0 }
  0xaa   : > { %706 = vperm.xlu2 %3857, %v675_v38  }
  0xab   : > { %696 = vperm.xlu1 %3856, %v673_v39   ;;  %686 = vperm.xlu0 %3855, %v671_v40  }
  0xb2   : > { %1114 = vperm.xlu2 %3857, %v3569_v41  }
  0xb3   : > { %716 = vperm.xlu1 %3856, %v677_v42   ;;  %711 = vperm.xlu0 %3855, %v676_v43   ;;  %v4529_v43 = vunpack.c.h.bf16 %v3778_v19  ;;  %v3576_v19 = vld [vmem:[%s4442_s19 + $0x78] sm:$0xff] }
  0xba   : > { %1129 = vperm.xlu2 %3857, %v3572_v44  }
  0xbb   : > { %1124 = vperm.xlu1 %3856, %v3571_v45   ;;  %1119 = vperm.xlu0 %3855, %v3570_v46  }
  0xc2   : > { %1144 = vperm.xlu2 %3857, %v3575_v47  }
  0xc3   : > { %1139 = vperm.xlu1 %3856, %v3574_v48   ;;  %1134 = vperm.xlu0 %3855, %v3573_v49  }
  0xfc   : > { %v702_v50 = vpop.permute.xlu2 %701 }
  0xfd   : > { %v726_v13 = vadd.f32 %v3858_v53, %v702_v50 }
  0xff   : > { %v742_v26 = vmul.f32 0.2, %v726_v13  ;;  %vm734_vm10 = vcmp.ge.f32.partialorder %v726_v13, 0.0 }
 0x101   : > { %v750_v33 = vsel %vm734_vm10, %v726_v13, %v742_v26 }
 0x102   : > { %v4526_v38 = vsel %vm758_vm13, %v750_v33, -1e+30 }
 0x104   : > { %v707_v60 = vpop.permute.xlu2 %706 }
 0x105   : > { %v727_v9 = vadd.f32 %v3858_v53, %v707_v60 }
 0x107   : > { %v743_v22 = vmul.f32 0.2, %v727_v9  ;;  %vm735_vm9 = vcmp.ge.f32.partialorder %v727_v9, 0.0 }
 0x109   : > { %v751_v31 = vsel %vm735_vm9, %v727_v9, %v743_v22  ;;  %v4579_v22 = vld [vmem:[#allocation2 + $0x10] sm:$0xff] }
 0x10a   : > { %v4520_v37 = vsel %vm759_vm11, %v751_v31, -1e+30  ;;  %v4587_v31 = vld [vmem:[#allocation2 + $0x18] sm:$0xff] }
 0x10c   : > { %v1115_v14 = vpop.permute.xlu2 %1114 }
 0x10d   : > { %v1155_v29 = vadd.f32 %v4502_v21, %v1115_v14 }
 0x10f   : > { %v1171_v39 = vmul.f32 0.2, %v1155_v29  ;;  %vm1163_vm15 = vcmp.ge.f32.partialorder %v1155_v29, 0.0 }
 0x111   : > { %v1179_v47 = vsel %vm1163_vm15, %v1155_v29, %v1171_v39  ;;  %v4592_v39 = vld [vmem:[#allocation2 + $0x30] sm:$0xff] }
 0x112   : > { %v4541_v52 = vsel %vm754_vm2, %v1179_v47, -1e+30 }
 0x114   : > { %v1130_v35 = vpop.permute.xlu2 %1129 }
 0x115   : > { %v692_v56 = vpop.permute.xlu1 %691  ;;  %v682_v57 = vpop.permute.xlu0 %681  ;;  %v1158_v45 = vadd.f32 %v4502_v21, %v1130_v35 }
 0x116   : > { %v724_v58 = vadd.f32 %v3858_v53, %v692_v56  ;;  %v722_v59 = vadd.f32 %v3858_v53, %v682_v57 }
 0x117   : > { %v1174_v56 = vmul.f32 0.2, %v1158_v45 }
 0x118   : > { %vm732_vm3 = vcmp.ge.f32.partialorder %v724_v58, 0.0  ;;  %v740_v61 = vmul.f32 0.2, %v724_v58  ;;  %vm730_vm4 = vcmp.ge.f32.partialorder %v722_v59, 0.0  ;;  %v738_v62 = vmul.f32 0.2, %v722_v59 }
 0x11a   : > { %v748_v63 = vsel %vm732_vm3, %v724_v58, %v740_v61  ;;  %v746_v0 = vsel %vm730_vm4, %v722_v59, %v738_v62 }
 0x11b   : > { %v4473_v1 = vsel %vm756_vm1, %v748_v63, -1e+30  ;;  %v4477_v2 = vsel %vm754_vm2, %v746_v0, -1e+30 }
 0x11c   : > { %782 = vmax.xlane.f32.xlu1 %v4473_v1  ;;  %778 = vmax.xlane.f32.xlu2 %v4477_v2  ;;  %v1145_v57 = vpop.permute.xlu2 %1144 }
 0x11d   : > { %v697_v4 = vpop.permute.xlu1 %696  ;;  %v687_v5 = vpop.permute.xlu0 %686  ;;  %v1161_v62 = vadd.f32 %v4502_v21, %v1145_v57  ;;  %v777_v57 = vld [vmem:[#allocation2 + $0x38] sm:$0xff] }
 0x11e   : > { %v725_v6 = vadd.f32 %v3858_v53, %v697_v4  ;;  %v723_v7 = vadd.f32 %v3858_v53, %v687_v5 }
 0x11f   : > { %v1177_v10 = vmul.f32 0.2, %v1161_v62 }
 0x120   : > { %vm731_vm6 = vcmp.ge.f32.partialorder %v723_v7, 0.0  ;;  %v739_v11 = vmul.f32 0.2, %v723_v7  ;;  %vm733_vm7 = vcmp.ge.f32.partialorder %v725_v6, 0.0  ;;  %v741_v12 = vmul.f32 0.2, %v725_v6 }
 0x122   : > { %v747_v15 = vsel %vm731_vm6, %v723_v7, %v739_v11  ;;  %v749_v16 = vsel %vm733_vm7, %v725_v6, %v741_v12  ;;  %vm761_vm6 = vcmp.gt.f32.partialorder %v4529_v43, 0.0  ;;  %vm1166_vm7 = vcmp.ge.f32.partialorder %v1158_v45, 0.0 }
 0x123   : > { %v4490_v17 = vsel %vm755_vm5, %v747_v15, -1e+30  ;;  %v4494_v18 = vsel %vm757_vm8, %v749_v16, -1e+30  ;;  %v1182_v0 = vsel %vm1166_vm7, %v1158_v45, %v1174_v56  ;;  %v4612_v56 = vld [vmem:[#allocation2 + $0x40] sm:$0xff] }
 0x124   : > { %780 = vmax.xlane.f32.xlu0 %v4490_v17  ;;  %784 = vmax.xlane.f32.xlu2 %v4494_v18  ;;  %v4559_v9 = vsel %vm757_vm8, %v1182_v0, -1e+30 }
 0x125   : > { %v717_v23 = vpop.permute.xlu1 %716  ;;  %v712_v24 = vpop.permute.xlu0 %711 }
 0x126   : > { %v728_v27 = vadd.f32 %v3858_v53, %v712_v24  ;;  %v729_v32 = vadd.f32 %v3858_v53, %v717_v23  ;;  %v770_v23 = vld [vmem:[#allocation2] sm:$0xff] }
 0x128   : > { %vm736_vm12 = vcmp.ge.f32.partialorder %v728_v27, 0.0  ;;  %v744_v30 = vmul.f32 0.2, %v728_v27  ;;  %v745_v40 = vmul.f32 0.2, %v729_v32  ;;  %vm737_vm3 = vcmp.ge.f32.partialorder %v729_v32, 0.0 }
 0x12a   : > { %v752_v34 = vsel %vm736_vm12, %v728_v27, %v744_v30  ;;  %v753_v49 = vsel %vm737_vm3, %v729_v32, %v745_v40  ;;  %vm1169_vm12 = vcmp.ge.f32.partialorder %v1161_v62, 0.0  ;;  %v771_v30 = vld [vmem:[#allocation2 + $0x8] sm:$0xff] }
 0x12b   : > { %v4516_v36 = vsel %vm760_vm14, %v752_v34, -1e+30  ;;  %v4547_v53 = vsel %vm761_vm6, %v753_v49, -1e+30  ;;  %v1185_v13 = vsel %vm1169_vm12, %v1161_v62, %v1177_v10  ;;  %v4594_v40 = vld [vmem:[#allocation2 + $0x28] sm:$0xff]  ;;  %v4630_v10 = vld [vmem:[#allocation2 + $0x58] sm:$0xff] }
 0x12c   : > { %790 = vmax.xlane.f32.xlu1 %v4516_v36  ;;  %788 = vmax.xlane.f32.xlu0 %v4520_v37  ;;  %v4570_v15 = vsel %vm760_vm14, %v1185_v13, -1e+30 }
 0x12d   : > { %786 = vmax.xlane.f32.xlu2 %v4526_v38  ;;  %v1125_v41 = vpop.permute.xlu1 %1124  ;;  %v1120_v42 = vpop.permute.xlu0 %1119 }
 0x12e   : > { %v1157_v44 = vadd.f32 %v4502_v21, %v1125_v41  ;;  %v1156_v48 = vadd.f32 %v4502_v21, %v1120_v42  ;;  %v774_v41 = vld [vmem:[#allocation2 + $0x20] sm:$0xff] }
 0x130   : > { %v1173_v46 = vmul.f32 0.2, %v1157_v44  ;;  %vm1165_vm4 = vcmp.ge.f32.partialorder %v1157_v44, 0.0  ;;  %v1172_v59 = vmul.f32 0.2, %v1156_v48  ;;  %vm1164_vm9 = vcmp.ge.f32.partialorder %v1156_v48, 0.0 }
 0x132   : > { %v1181_v50 = vsel %vm1165_vm4, %v1157_v44, %v1173_v46  ;;  %v1180_v5 = vsel %vm1164_vm9, %v1156_v48, %v1172_v59 }
 0x133   : > { %v4537_v51 = vsel %vm756_vm1, %v1181_v50, -1e+30  ;;  %v4565_v11 = vsel %vm755_vm5, %v1180_v5, -1e+30  ;;  %v4610_v50 = vld [vmem:[#allocation2 + $0x50] sm:$0xff] }
 0x134   : > { %1208 = vmax.xlane.f32.xlu0 %v4537_v51  ;;  %1204 = vmax.xlane.f32.xlu1 %v4541_v52 }
 0x135   : > { %792 = vmax.xlane.f32.xlu2 %v4547_v53  ;;  %v1140_v58 = vpop.permute.xlu1 %1139  ;;  %v1135_v61 = vpop.permute.xlu0 %1134 }
 0x136   : > { %v1160_v60 = vadd.f32 %v4502_v21, %v1140_v58  ;;  %v1159_v4 = vadd.f32 %v4502_v21, %v1135_v61 }
 0x138   : > { %v1176_v63 = vmul.f32 0.2, %v1160_v60  ;;  %vm1168_vm10 = vcmp.ge.f32.partialorder %v1160_v60, 0.0  ;;  %v1175_v12 = vmul.f32 0.2, %v1159_v4  ;;  %vm1167_vm15 = vcmp.ge.f32.partialorder %v1159_v4, 0.0 }
 0x13a   : > { %v1184_v6 = vsel %vm1168_vm10, %v1160_v60, %v1176_v63  ;;  %v1183_v14 = vsel %vm1167_vm15, %v1159_v4, %v1175_v12  ;;  %v4632_v12 = vld [vmem:[#allocation2 + $0x48] sm:$0xff] }
 0x13b   : > { %v4555_v7 = vsel %vm759_vm11, %v1184_v6, -1e+30  ;;  %v4575_v16 = vsel %vm758_vm13, %v1183_v14, -1e+30  ;;  %v4628_v6 = vld [vmem:[#allocation2 + $0x68] sm:$0xff] }
 0x13c   : > { %1214 = vmax.xlane.f32.xlu0 %v4555_v7  ;;  %1210 = vmax.xlane.f32.xlu1 %v4559_v9 }
 0x13d   : > { %1206 = vmax.xlane.f32.xlu2 %v4565_v11 }
 0x144   : > { %1216 = vmax.xlane.f32.xlu1 %v4570_v15 }
 0x145   : > { %1212 = vmax.xlane.f32.xlu2 %v4575_v16 }
 0x150   : > { %1149 = vperm.xlu0 %3855, %v3576_v19  }
 0x18f   : > { %v783_v24 = vpop.xlane.xlu1 %782  ;;  %v779_v26 = vpop.xlane.xlu2 %778 }
 0x190   : > { %v4582_v27 = vmax.f32 %v4579_v22, %v783_v24  ;;  %v794_v29 = vmax.f32 %v770_v23, %v779_v26 }
 0x192   : > { %1078 = vst.msk [vmem:[#allocation2 + $0x10] sm:$0xff] %vm535_vm0, %v4582_v27  ;;  %828 = vperm.xlu0 %3855, %v794_v29   ;;  %v802_v5 = vsub.f32 %v770_v23, %v794_v29 }
 0x193   : > { %1076 = vst.msk [vmem:[#allocation2] sm:$0xff] %vm535_vm0, %v794_v29 }
 0x194   : > { %v810_v24 = vmul.f32 1.442695, %v802_v5 }
 0x197   : > { %v781_v32 = vpop.xlane.xlu0 %780  ;;  %v785_v33 = vpop.xlane.xlu2 %784 }
 0x198   : > { %v795_v34 = vmax.f32 %v771_v30, %v781_v32  ;;  %v797_v35 = vmax.f32 %v4587_v31, %v785_v33 }
 0x19a   : > { %1077 = vst.msk [vmem:[#allocation2 + $0x8] sm:$0xff] %vm535_vm0, %v795_v34  ;;  %833 = vperm.xlu1 %3856, %v795_v34   ;;  %843 = vperm.xlu0 %3855, %v797_v35   ;;  %v803_v4 = vsub.f32 %v771_v30, %v795_v34  ;;  %v805_v34 = vsub.f32 %v4587_v31, %v797_v35 }
 0x19b   : > { %1079 = vst.msk [vmem:[#allocation2 + $0x18] sm:$0xff] %vm535_vm0, %v797_v35 }
 0x19c   : > { %v812_v13 = vmul.f32 1.442695, %v803_v4 }
 0x19e   : > { %3862 = vpow2.f32 %v812_v13 }
 0x19f   : > { %v791_v42 = vpop.xlane.xlu1 %790  ;;  %v789_v44 = vpop.xlane.xlu0 %788  ;;  %3864 = vpow2.f32 %v810_v24 }
 0x1a0   : > { %v4597_v45 = vmax.f32 %v4592_v39, %v791_v42  ;;  %v4600_v46 = vmax.f32 %v4594_v40, %v789_v44  ;;  %v787_v47 = vpop.xlane.xlu2 %786 }
 0x1a1   : > { %v798_v48 = vmax.f32 %v774_v41, %v787_v47  ;;  %v4658_v47 = vld [vmem:[#allocation2 + $0x70] sm:$0xff] }
 0x1a2   : > { %1082 = vst.msk [vmem:[#allocation2 + $0x30] sm:$0xff] %vm535_vm0, %v4597_v45  ;;  %v807_v49 = vsub.f32 %v4594_v40, %v4600_v46  ;;  %853 = vperm.xlu0 %3855, %v4600_v46  }
 0x1a3   : > { %1081 = vst.msk [vmem:[#allocation2 + $0x28] sm:$0xff] %vm535_vm0, %v4600_v46  ;;  %848 = vperm.xlu1 %3856, %v798_v48   ;;  %v806_v44 = vsub.f32 %v774_v41, %v798_v48 }
 0x1a4   : > { %1080 = vst.msk [vmem:[#allocation2 + $0x20] sm:$0xff] %vm535_vm0, %v798_v48  ;;  %v4665_v5 = vpop.eup %3862  ;;  %v808_v48 = vsub.f32 %v4592_v39, %v4597_v45 }
 0x1a5   : > { %v818_v31 = vmul.f32 1.442695, %v806_v44  ;;  %v4670_v41 = vpop.eup %3864 }
 0x1a6   : > { %v822_v24 = vmul.f32 1.442695, %v808_v48  ;;  %v3784_v48 = vld [vmem:[%s6268_s1 + $0x30] sm:$0xff]  }
 0x1a7   : > { %v1209_v58 = vpop.xlane.xlu0 %1208  ;;  %v1205_v59 = vpop.xlane.xlu1 %1204 }
 0x1a8   : > { %v4615_v60 = vmax.f32 %v4610_v50, %v1209_v58  ;;  %v4618_v61 = vmax.f32 %v4612_v56, %v1205_v59  ;;  %v793_v62 = vpop.xlane.xlu2 %792  ;;  %v4660_v58 = vld [vmem:[#allocation2 + $0x60] sm:$0xff]  ;;  %v816_v59 = vmul.f32 1.442695, %v805_v34 }
 0x1a9   : > { %v801_v63 = vmax.f32 %v777_v57, %v793_v62 }
 0x1aa   : > { %1505 = vst.msk [vmem:[#allocation2 + $0x50] sm:$0xff] %vm535_vm0, %v4615_v60  ;;  %1254 = vperm.xlu0 %3855, %v4618_v61   ;;  %3866 = vpow2.f32 %v816_v59 }
 0x1ab   : > { %1503 = vst.msk [vmem:[#allocation2 + $0x40] sm:$0xff] %vm535_vm0, %v4618_v61  ;;  %863 = vperm.xlu1 %3856, %v801_v63   ;;  %3868 = vpow2.f32 %v818_v31 }
 0x1ac   : > { %1083 = vst.msk [vmem:[#allocation2 + $0x38] sm:$0xff] %vm535_vm0, %v801_v63  ;;  %3870 = vpow2.f32 %v822_v24 }
 0x1af   : > { %v1215_v14 = vpop.xlane.xlu0 %1214  ;;  %v1211_v19 = vpop.xlane.xlu1 %1210 }
 0x1b0   : > { %v4635_v26 = vmax.f32 %v4628_v6, %v1215_v14  ;;  %v4638_v30 = vmax.f32 %v4630_v10, %v1211_v19  ;;  %v1207_v32 = vpop.xlane.xlu2 %1206  ;;  %v809_v19 = vsub.f32 %v777_v57, %v801_v63  ;;  %v4682_v34 = vpop.eup %3866 }
 0x1b1   : > { %v4641_v23 = vmax.f32 %v4632_v12, %v1207_v32  ;;  %v4684_v44 = vpop.eup %3868 }
 0x1b2   : > { %1508 = vst.msk [vmem:[#allocation2 + $0x68] sm:$0xff] %vm535_vm0, %v4635_v26  ;;  %1269 = vperm.xlu0 %3855, %v4638_v30   ;;  %v824_v32 = vmul.f32 1.442695, %v809_v19  ;;  %v4693_v63 = vpop.eup %3870 }
 0x1b3   : > { %1506 = vst.msk [vmem:[#allocation2 + $0x58] sm:$0xff] %vm535_vm0, %v4638_v30  ;;  %1259 = vperm.xlu1 %3856, %v4641_v23  }
 0x1b4   : > { %1504 = vst.msk [vmem:[#allocation2 + $0x48] sm:$0xff] %vm535_vm0, %v4641_v23  ;;  %3872 = vpow2.f32 %v824_v32  ;;  %v3675_v32 = vunpack.c.h.bf16 %v3784_v48 }
 0x1b7   : > { %v1217_v62 = vpop.xlane.xlu1 %1216 }
 0x1b8   : > { %v4663_v35 = vmax.f32 %v4658_v47, %v1217_v62  ;;  %v1213_v4 = vpop.xlane.xlu2 %1212 }
 0x1b9   : > { %v4668_v13 = vmax.f32 %v4660_v58, %v1213_v4 }
 0x1ba   : > { %1509 = vst.msk [vmem:[#allocation2 + $0x70] sm:$0xff] %vm535_vm0, %v4663_v35  ;;  %962 = vperm.xlu0 %3855, %v4665_v5   ;;  %v4696_v31 = vpop.eup %3872 }
 0x1bb   : > { %1507 = vst.msk [vmem:[#allocation2 + $0x60] sm:$0xff] %vm535_vm0, %v4668_v13  ;;  %957 = vperm.xlu1 %3856, %v4670_v41  }
 0x1c2   : > { %v1150_v59 = vpop.permute.xlu0 %1149  ;;  %972 = vperm.xlu0 %3855, %v4682_v34  }
 0x1c3   : > { %v1162_v39 = vadd.f32 %v4502_v21, %v1150_v59  ;;  %977 = vperm.xlu1 %3856, %v4684_v44   ;;  %v3785_v21 = vld [vmem:[%s6268_s1 + $0x38] sm:$0xff]   ;;  %v3674_v59 = vunpack.c.l.bf16 %v3784_v48 }
 0x1c4   : > { %v3679_v19 = vunpack.c.h.bf16 %v3785_v21  ;;  %v3678_v24 = vunpack.c.l.bf16 %v3785_v21  ;;  %v3781_v48 = vld [vmem:[%s6268_s1 + $0x18] sm:$0xff]  }
 0x1c5   : > { %v1178_v62 = vmul.f32 0.2, %v1162_v39  ;;  %vm1170_vm3 = vcmp.ge.f32.partialorder %v1162_v39, 0.0 }
 0x1c6   : > { %1019 = vmatpush.msra.mxu0 %v3679_v19  ;;  %v3663_v19 = vunpack.c.h.bf16 %v3781_v48 }
 0x1c7   : > { %v1186_v4 = vsel %vm1170_vm3, %v1162_v39, %v1178_v62  ;;  %v3783_v39 = vld [vmem:[%s6268_s1 + $0x28] sm:$0xff]   ;;  %v3782_v62 = vld [vmem:[%s6268_s1 + $0x20] sm:$0xff]  }
 0x1c8   : > { %v4691_v57 = vsel %vm761_vm6, %v1186_v4, -1e+30  ;;  %1020 = vmatpush.msra.mxu0 %v3678_v24  ;;  %v3671_v4 = vunpack.c.h.bf16 %v3783_v39  ;;  %v3670_v29 = vunpack.c.l.bf16 %v3783_v39  ;;  %v3667_v21 = vunpack.c.h.bf16 %v3782_v62  ;;  %v3779_v39 = vld [vmem:[%s6268_s1 + $0x8] sm:$0xff]  }
 0x1c9   : > { %1218 = vmax.xlane.f32.xlu2 %v4691_v57  ;;  %v3666_v14 = vunpack.c.l.bf16 %v3782_v62  ;;  %v3662_v24 = vunpack.c.l.bf16 %v3781_v48  ;;  %v804_v62 = vsub.f32 %v4579_v22, %v4582_v27  ;;  %v3654_v48 = vunpack.c.l.bf16 %v3779_v39 }
 0x1ca   : > { %987 = vperm.xlu0 %3855, %v4693_v63   ;;  %1021 = vmatpush.msra.mxu0 %v3675_v32  ;;  %v3780_v32 = vld [vmem:[%s6268_s1 + $0x10] sm:$0xff]  }
 0x1cb   : > { %992 = vperm.xlu1 %3856, %v4696_v31  }
 0x1cc   : > { %1022 = vmatpush.msra.mxu0 %v3674_v59  ;;  %v3659_v59 = vunpack.c.h.bf16 %v3780_v32 }
 0x1ce   : > { %1023 = vmatpush.msra.mxu0 %v3671_v4  ;;  %v3655_v4 = vunpack.c.h.bf16 %v3779_v39  ;;  %v3791_v39 = vld [vmem:[%s6268_s1 + $0x68] sm:$0xff]  }
 0x1d0   : > { %1024 = vmatpush.msra.mxu0 %v3670_v29  ;;  %v3658_v29 = vunpack.c.l.bf16 %v3780_v32  ;;  %v3792_v32 = vld [vmem:[%s6268_s1 + $0x70] sm:$0xff]  }
 0x1d1   : > { %v3707_v22 = vunpack.c.h.bf16 %v3792_v32 }
 0x1d2   : > { %1279 = vperm.xlu0 %3855, %v4635_v26   ;;  %1025 = vmatpush.msra.mxu0 %v3667_v21 }
 0x1d3   : > { %1274 = vperm.xlu1 %3856, %v4668_v13  }
 0x1d4   : > { %1026 = vmatpush.msra.mxu0 %v3666_v14  ;;  %v3793_v14 = vld [vmem:[%s6268_s1 + $0x78] sm:$0xff]  }
 0x1d5   : > { %v3711_v21 = vunpack.c.h.bf16 %v3793_v14 }
 0x1d6   : > { %1027 = vmatpush.msra.mxu0 %v3663_v19  ;;  %v814_v19 = vmul.f32 1.442695, %v804_v62  ;;  %v3702_v62 = vunpack.c.l.bf16 %v3791_v39 }
 0x1d7   : > { %1446 = vmatpush.msra.mxu1 %v3711_v21  ;;  %v3790_v21 = vld [vmem:[%s6268_s1 + $0x60] sm:$0xff]  }
 0x1d8   : > { %1028 = vmatpush.msra.mxu0 %v3662_v24  ;;  %v3649_v24 = vld [vmem:[%s6268_s1] sm:$0xff]   ;;  %3874 = vpow2.f32 %v814_v19  ;;  %v3698_v19 = vunpack.c.l.bf16 %v3790_v21 }
 0x1da   : > { %1029 = vmatpush.msra.mxu0 %v3659_v59  ;;  %v3651_v59 = vunpack.c.h.bf16 %v3649_v24 }
 0x1dc   : > { %1030 = vmatpush.msra.mxu0 %v3658_v29  ;;  %v3706_v29 = vunpack.c.l.bf16 %v3792_v32 }
 0x1de   : > { %1031 = vmatpush.msra.mxu0 %v3655_v4  ;;  %v820_v4 = vmul.f32 1.442695, %v807_v49  ;;  %v3788_v49 = vld [vmem:[%s6268_s1 + $0x50] sm:$0xff]  }
 0x1df   : > { %v3691_v32 = vunpack.c.h.bf16 %v3788_v49 }
 0x1e0   : > { %1032 = vmatpush.msra.mxu0 %v3654_v48  ;;  %v3699_v48 = vunpack.c.h.bf16 %v3790_v21  ;;  %3876 = vpow2.f32 %v820_v4  ;;  %v3786_v4 = vld [vmem:[%s6268_s1 + $0x40] sm:$0xff]  }
 0x1e1   : > { %838 = vperm.xlu2 %3857, %v4582_v27   ;;  %v3650_v27 = vunpack.c.l.bf16 %v3649_v24  ;;  %v3789_v24 = vld [vmem:[%s6268_s1 + $0x58] sm:$0xff]  }
 0x1e2   : > { %1033 = vmatpush.msra.mxu0 %v3651_v59  ;;  %v3695_v40 = vunpack.c.h.bf16 %v3789_v24  ;;  %v3694_v46 = vunpack.c.l.bf16 %v3789_v24 }
 0x1e4   : > { %1034 = vmatpush.msra.mxu0 %v3650_v27  ;;  %v3787_v27 = vld [vmem:[%s6268_s1 + $0x48] sm:$0xff]  }
 0x1e9   : > { %858 = vperm.xlu2 %3857, %v4597_v45   ;;  %v3710_v45 = vunpack.c.l.bf16 %v3793_v14  ;;  %v3703_v14 = vunpack.c.h.bf16 %v3791_v39 }
 0x1eb   : > { %1447 = vmatpush.msra.mxu1 %v3710_v45  ;;  %v4746_v45 = vpop.eup %3874 }
 0x1ec   : > { %v4755_v59 = vpop.eup %3876 }
 0x1ed   : > { %1448 = vmatpush.msra.mxu1 %v3707_v22  ;;  %v3690_v22 = vunpack.c.l.bf16 %v3788_v49 }
 0x1ef   : > { %1449 = vmatpush.msra.mxu1 %v3706_v29  ;;  %v3687_v29 = vunpack.c.h.bf16 %v3787_v27 }
 0x1f1   : > { %1264 = vperm.xlu2 %3857, %v4615_v60   ;;  %1450 = vmatpush.msra.mxu1 %v3703_v14 }
 0x1f3   : > { %1451 = vmatpush.msra.mxu1 %v3702_v62  ;;  %v3686_v62 = vunpack.c.l.bf16 %v3787_v27 }
 0x1f5   : > { %1452 = vmatpush.msra.mxu1 %v3699_v48  ;;  %v3683_v48 = vunpack.c.h.bf16 %v3786_v4 }
 0x1f7   : > { %1453 = vmatpush.msra.mxu1 %v3698_v19  ;;  %v3682_v19 = vunpack.c.l.bf16 %v3786_v4 }
 0x1f9   : > { %967 = vperm.xlu2 %3857, %v4746_v45   ;;  %1454 = vmatpush.msra.mxu1 %v3695_v40 }
 0x1fb   : > { %1455 = vmatpush.msra.mxu1 %v3694_v46 }
 0x1fd   : > { %1456 = vmatpush.msra.mxu1 %v3691_v32 }
 0x1ff   : > { %1457 = vmatpush.msra.mxu1 %v3690_v22 }
 0x201   : > { %982 = vperm.xlu2 %3857, %v4755_v59   ;;  %1458 = vmatpush.msra.mxu1 %v3687_v29 }
 0x203   : > { %1459 = vmatpush.msra.mxu1 %v3686_v62 }
 0x204   : > { %v829_v39 = vpop.permute.xlu0 %828 }
 0x205   : > { %v866_v14 = vsub.f32 %v4477_v2, %v829_v39  ;;  %1460 = vmatpush.msra.mxu1 %v3683_v48 }
 0x207   : > { %v874_v21 = vmul.f32 1.442695, %v866_v14  ;;  %1461 = vmatpush.msra.mxu1 %v3682_v19 }
 0x209   : > { %3878 = vpow2.f32 %v874_v21  ;;  %1284 = vperm.xlu2 %3857, %v4663_v35  }
 0x20c   : > { %v834_v24 = vpop.permute.xlu1 %833  ;;  %v844_v40 = vpop.permute.xlu0 %843 }
 0x20d   : > { %v867_v46 = vsub.f32 %v4490_v17, %v834_v24  ;;  %v869_v2 = vsub.f32 %v4494_v18, %v844_v40 }
 0x20f   : > { %v3879_v49 = vpop.eup %3878  ;;  %v876_v32 = vmul.f32 1.442695, %v867_v46  ;;  %v880_v22 = vmul.f32 1.442695, %v869_v2 }
 0x210   : > { %v890_v27 = vmul.f32 %v3879_v49, %v4467_v55 }
 0x211   : > { %3880 = vpow2.f32 %v876_v32 }
 0x212   : > { %3882 = vpow2.f32 %v880_v22  ;;  %1035 = vmatmul.f32.vlgmr.msra.gmra.mxu0 %v890_v27  ;;  %914 = vadd.xlane.f32.xlu0 %v890_v27 }
 0x214   : > { %v4769_v29 = vpop.permute.xlu0 %853 }
 0x215   : > { %v849_v39 = vpop.permute.xlu1 %848 }
 0x216   : > { %v870_v2 = vsub.f32 %v4526_v38, %v849_v39 }
 0x217   : > { %v3881_v14 = vpop.eup %3880 }
 0x218   : > { %v3883_v62 = vpop.eup %3882  ;;  %v891_v4 = vmul.f32 %v3881_v14, %v4479_v3  ;;  %v882_v22 = vmul.f32 1.442695, %v870_v2 }
 0x219   : > { %v4773_v17 = vmul.f32 %v3883_v62, %v4483_v8 }
 0x21a   : > { %1038 = vmatmul.f32.gmra.mxu0 %v891_v4 }
 0x21b   : > { %920 = vadd.xlane.f32.xlu0 %v4773_v17 }
 0x21c   : > { %v1255_v18 = vpop.permute.xlu0 %1254 }
 0x21d   : > { %v1292_v21 = vsub.f32 %v4541_v52, %v1255_v18  ;;  %v864_v48 = vpop.permute.xlu1 %863 }
 0x21e   : > { %v873_v52 = vsub.f32 %v4547_v53, %v864_v48 }
 0x21f   : > { %v1300_v19 = vmul.f32 1.442695, %v1292_v21  ;;  %v4790_v21 = vld [vmem:[#allocation2 + $0x78] sm:$0xff] }
 0x221   : > { %3884 = vpow2.f32 %v1300_v19 }
 0x224   : > { %v1270_v19 = vpop.permute.xlu0 %1269 }
 0x225   : > { %v1260_v24 = vpop.permute.xlu1 %1259 }
 0x226   : > { %v1293_v40 = vsub.f32 %v4565_v11, %v1260_v24  ;;  %v888_v11 = vmul.f32 1.442695, %v873_v52 }
 0x227   : > { %v3885_v46 = vpop.eup %3884 }
 0x228   : > { %v1302_v49 = vmul.f32 1.442695, %v1293_v40  ;;  %v4780_v32 = vmul.f32 %v3885_v46, %v4467_v55 }
 0x22a   : > { %3886 = vpow2.f32 %v1302_v49  ;;  %1462 = vmatmul.f32.vlgmr.msra.gmra.mxu1 %v4780_v32 }
 0x22b   : > { %3888 = vpow2.f32 %v882_v22 }
 0x22c   : > { %3890 = vpow2.f32 %v888_v11  ;;  %v4807_v52 = vpop.permute.xlu0 %962 }
 0x22d   : > { %v4783_v27 = vpop.permute.xlu1 %957 }
 0x230   : > { %v3887_v14 = vpop.eup %3886 }
 0x231   : > { %v1317_v62 = vmul.f32 %v3887_v14, %v4479_v3  ;;  %v3889_v38 = vpop.eup %3888 }
 0x232   : > { %916 = vadd.xlane.f32.xlu2 %v891_v4  ;;  %v894_v18 = vmul.f32 %v3889_v38, %v4506_v25  ;;  %v3891_v40 = vpop.eup %3890 }
 0x233   : > { %1465 = vmatmul.f32.gmra.mxu1 %v1317_v62  ;;  %v4803_v48 = vmul.f32 %v3891_v40, %v4529_v43 }
 0x234   : > { %v4811_v33 = vpop.permute.xlu0 %972 }
 0x235   : > { %v4787_v39 = vpop.permute.xlu1 %977 }
 0x23a   : > { %922 = vadd.xlane.f32.xlu2 %v894_v18 }
 0x23c   : > { %v1219_v24 = vpop.xlane.xlu2 %1218 }
 0x23d   : > { %v4792_v46 = vpop.permute.xlu1 %992  ;;  %v4795_v53 = vmax.f32 %v4790_v21, %v1219_v24 }
 0x23f   : > { %1510 = vst.msk [vmem:[#allocation2 + $0x78] sm:$0xff] %vm535_vm0, %v4795_v53  ;;  %1289 = vperm.xlu1 %3856, %v4795_v53  }
 0x242   : > { %928 = vadd.xlane.f32.xlu2 %v4803_v48 }
 0x244   : > { %v839_v2 = vpop.permute.xlu2 %838 }
 0x245   : > { %v1275_v49 = vpop.permute.xlu1 %1274  ;;  %v868_v22 = vsub.f32 %v4473_v1, %v839_v2 }
 0x246   : > { %v1296_v14 = vsub.f32 %v4575_v16, %v1275_v49 }
 0x247   : > { %v878_v11 = vmul.f32 1.442695, %v868_v22  ;;  %v1295_v22 = vsub.f32 %v4559_v9, %v1270_v19 }
 0x248   : > { %v1308_v38 = vmul.f32 1.442695, %v1296_v14 }
 0x24a   : > { %3892 = vpow2.f32 %v1308_v38  ;;  %1343 = vadd.xlane.f32.xlu2 %v1317_v62 }
 0x24b   : > { %3894 = vpow2.f32 %v878_v11  ;;  %v4820_v11 = vpop.permute.xlu0 %987 }
 0x24c   : > { %v859_v24 = vpop.permute.xlu2 %858 }
 0x24d   : > { %v872_v4 = vsub.f32 %v4516_v36, %v859_v24 }
 0x24f   : > { %v886_v40 = vmul.f32 1.442695, %v872_v4  ;;  %v871_v4 = vsub.f32 %v4520_v37, %v4769_v29 }
 0x250   : > { %v3893_v0 = vpop.eup %3892 }
 0x251   : > { %v3895_v42 = vpop.eup %3894  ;;  %3896 = vpow2.f32 %v886_v40  ;;  %v1320_v1 = vmul.f32 %v3893_v0, %v4506_v25  ;;  %v1306_v0 = vmul.f32 1.442695, %v1295_v22  ;;  %v884_v38 = vmul.f32 1.442695, %v871_v4  ;;  %v898_v4 = vld [vmem:[#allocation3] sm:$0xff] }
 0x252   : > { %v892_v2 = vmul.f32 %v3895_v42, %v4465_v54 }
 0x253   : > { %1349 = vadd.xlane.f32.xlu2 %v1320_v1  ;;  %v1280_v19 = vpop.permute.xlu0 %1279 }
 0x254   : > { %1041 = vmatmul.f32.gmra.mxu0 %v892_v2  ;;  %v1265_v16 = vpop.permute.xlu2 %1264  ;;  %v1297_v40 = vsub.f32 %v4555_v7, %v1280_v19 }
 0x255   : > { %v1294_v49 = vsub.f32 %v4537_v51, %v1265_v16 }
 0x257   : > { %v3897_v62 = vpop.eup %3896  ;;  %v1304_v14 = vmul.f32 1.442695, %v1294_v49  ;;  %v1310_v49 = vmul.f32 1.442695, %v1297_v40 }
 0x258   : > { %v896_v36 = vmul.f32 %v3897_v62, %v4508_v28 }
 0x259   : > { %3898 = vpow2.f32 %v1304_v14 }
 0x25a   : > { %926 = vadd.xlane.f32.xlu0 %v896_v36  ;;  %3900 = vpow2.f32 %v1306_v0 }
 0x25b   : > { %3902 = vpow2.f32 %v884_v38 }
 0x25c   : > { %1044 = vmatmul.f32.gmra.mxu0 %v4773_v17  ;;  %v4823_v42 = vpop.permute.xlu2 %967  ;;  %3904 = vpow2.f32 %v1310_v49 }
 0x25f   : > { %v3899_v51 = vpop.eup %3898 }
 0x260   : > { %v1318_v9 = vmul.f32 %v3899_v51, %v4465_v54  ;;  %v3901_v29 = vpop.eup %3900  ;;  %v901_v51 = vld [vmem:[#allocation3 + $0x18] sm:$0xff] }
 0x261   : > { %v3903_v24 = vpop.eup %3902  ;;  %v1319_v17 = vmul.f32 %v3901_v29, %v4483_v8 }
 0x262   : > { %1341 = vadd.xlane.f32.xlu0 %v4780_v32  ;;  %1468 = vmatmul.f32.gmra.mxu1 %v1318_v9  ;;  %v895_v16 = vmul.f32 %v3903_v24, %v4497_v20  ;;  %v3905_v22 = vpop.eup %3904  ;;  %v909_v24 = vmul.f32 %v4682_v34, %v901_v51  ;;  %v905_v51 = vld [vmem:[#allocation3 + $0x38] sm:$0xff] }
 0x263   : > { %v1321_v14 = vmul.f32 %v3905_v22, %v4497_v20 }
 0x264   : > { %1047 = vmatmul.f32.gmra.mxu0 %v894_v18  ;;  %v4827_v37 = vpop.permute.xlu2 %982 }
 0x269   : > { %918 = vadd.xlane.f32.xlu1 %v892_v2 }
 0x26a   : > { %1347 = vadd.xlane.f32.xlu0 %v1319_v17  ;;  %1471 = vmatmul.f32.gmra.mxu1 %v1319_v17  ;;  %v1234_v17 = vsub.f32 %v4658_v47, %v4663_v35 }
 0x26c   : > { %1050 = vmatmul.f32.gmra.mxu0 %v895_v16  ;;  %v1285_v62 = vpop.permute.xlu2 %1284  ;;  %v1248_v34 = vmul.f32 1.442695, %v1234_v17 }
 0x26d   : > { %v1298_v32 = vsub.f32 %v4570_v15, %v1285_v62  ;;  %v6276_v15 = vsub.f32 %v4632_v12, %v4641_v23 }
 0x26f   : > { %v1312_v18 = vmul.f32 1.442695, %v1298_v32  ;;  %v1238_v0 = vmul.f32 1.442695, %v6276_v15 }
 0x271   : > { %3906 = vpow2.f32 %v1312_v18  ;;  %924 = vadd.xlane.f32.xlu1 %v895_v16 }
 0x272   : > { %1474 = vmatmul.f32.gmra.mxu1 %v1320_v1  ;;  %v906_v1 = vmul.f32 %v4670_v41, %v898_v4  ;;  %3908 = vpow2.f32 %v1238_v0  ;;  %v6278_v41 = vsub.f32 %v4612_v56, %v4618_v61  ;;  %v6279_v56 = vsub.f32 %v4660_v58, %v4668_v13  ;;  %v899_v58 = vld [vmem:[#allocation3 + $0x8] sm:$0xff]  ;;  %v902_v0 = vld [vmem:[#allocation3 + $0x20] sm:$0xff] }
 0x273   : > { %v3595_v13 = vld [vmem:[%s4442_s19 + $0x88] sm:$0xff] }
 0x274   : > { %1053 = vmatmul.f32.gmra.mxu0 %v896_v36  ;;  %v1236_v40 = vmul.f32 1.442695, %v6278_v41  ;;  %v1244_v61 = vmul.f32 1.442695, %v6279_v56 }
 0x277   : > { %v3907_v7 = vpop.eup %3906 }
 0x278   : > { %v1322_v2 = vmul.f32 %v3907_v7, %v4508_v28  ;;  %v4844_v29 = vpop.eup %3908 }
 0x279   : > { %1345 = vadd.xlane.f32.xlu1 %v1318_v9  ;;  %v6277_v9 = vsub.f32 %v4630_v10, %v4638_v30 }
 0x27a   : > { %1477 = vmatmul.f32.gmra.mxu1 %v1321_v14  ;;  %1353 = vadd.xlane.f32.xlu0 %v1322_v2 }
 0x27b   : > { %v1242_v19 = vmul.f32 1.442695, %v6277_v9 }
 0x27c   : > { %1056 = vmatmul.f32.gmra.mxu0 %v4803_v48  ;;  %v947_v48 = vld [vmem:[#allocation4 + $0xb0] sm:$0xff] }
 0x27d   : > { %v995_v12 = vmul.f32 %v4783_v27, %v947_v48  ;;  %3910 = vpow2.f32 %v1242_v19  ;;  %v948_v27 = vld [vmem:[#allocation4] sm:$0xff]  ;;  %v913_v48 = vmul.f32 %v4696_v31, %v905_v51 }
 0x27e   : > { %3912 = vpow2.f32 %v1236_v40  ;;  %v996_v62 = vmul.f32 %v4807_v52, %v948_v27  ;;  %v6280_v52 = vsub.f32 %v4790_v21, %v4795_v53  ;;  %v3598_v21 = vld [vmem:[%s4442_s19 + $0xa0] sm:$0xff]  ;;  %v910_v53 = vmul.f32 %v4684_v44, %v902_v0  ;;  %v1326_v44 = vld [vmem:[#allocation3 + $0x48] sm:$0xff] }
 0x27f   : > { %3914 = vpow2.f32 %v1248_v34  ;;  %v1334_v40 = vmul.f32 %v4844_v29, %v1326_v44  ;;  %v1230_v27 = vsub.f32 %v4610_v50, %v4615_v60  ;;  %v6281_v50 = vsub.f32 %v4628_v6, %v4635_v26  ;;  %v3594_v44 = vld [vmem:[%s4442_s19 + $0x80] sm:$0xff] }
 0x280   : > { %3916 = vpow2.f32 %v1244_v61  ;;  %v1250_v22 = vmul.f32 1.442695, %v6280_v52  ;;  %v949_v61 = vld [vmem:[#allocation4 + $0xd8] sm:$0xff] }
 0x281   : > { %1351 = vadd.xlane.f32.xlu1 %v1321_v14  ;;  %v907_v14 = vmul.f32 %v4665_v5, %v899_v58  ;;  %v1240_v56 = vmul.f32 1.442695, %v1230_v27  ;;  %v997_v52 = vmul.f32 %v4823_v42, %v949_v61  ;;  %v1246_v60 = vmul.f32 1.442695, %v6281_v50  ;;  %v3597_v27 = vld [vmem:[%s4442_s19 + $0x98] sm:$0xff]  ;;  %v954_v50 = vld [vmem:[#allocation4 + $0x48] sm:$0xff] }
 0x282   : > { %1480 = vmatmul.f32.gmra.mxu1 %v1322_v2  ;;  %3918 = vpow2.f32 %v1250_v22 }
 0x283   : > { %v4855_v49 = vpop.eup %3910 }
 0x284   : > { %v4862_v32 = vpop.eup %3912 }
 0x285   : > { %v915_v36 = vpop.xlane.xlu0 %914  ;;  %v4865_v18 = vpop.eup %3914 }
 0x286   : > { %v930_v38 = vadd.f32 %v915_v36, %v906_v1  ;;  %v3917_v7 = vpop.eup %3916 }
 0x288   : > { %939 = vst.msk [vmem:[#allocation3] sm:$0xff] %vm535_vm0, %v930_v38  ;;  %v4874_v15 = vpop.eup %3918  ;;  %v3596_v38 = vld [vmem:[%s4442_s19 + $0x90] sm:$0xff] }
 0x28e   : > { %v921_v23 = vpop.xlane.xlu0 %920  ;;  %1389 = vperm.xlu0 %3855, %v4844_v29  }
 0x28f   : > { %v933_v10 = vadd.f32 %v921_v23, %v909_v24  ;;  %v1036_v30 = vpop.f32.mrf.mxu0  ;;  %v3599_v23 = vld [vmem:[%s4442_s19 + $0xa8] sm:$0xff] }
 0x290   : > { %v1060_v16 = vadd.f32 %v1036_v30, %v995_v12 }
 0x291   : > { %942 = vst.msk [vmem:[#allocation3 + $0x18] sm:$0xff] %vm535_vm0, %v933_v10 }
 0x292   : > { %1068 = vst [vmem:[#allocation4 + $0xb0] sm:$0xff] %v1060_v16 }
 0x296   : > { %1399 = vperm.xlu0 %3855, %v4855_v49  }
 0x297   : > { %v1039_v47 = vpop.f32.mrf.mxu0 }
 0x298   : > { %v1061_v35 = vadd.f32 %v1039_v47, %v996_v62  ;;  %v904_v62 = vld [vmem:[#allocation3 + $0x30] sm:$0xff] }
 0x299   : > { %v912_v29 = vmul.f32 %v4693_v63, %v904_v62  ;;  %v953_v62 = vld [vmem:[#allocation4 + $0x30] sm:$0xff] }
 0x29a   : > { %1069 = vst [vmem:[#allocation4] sm:$0xff] %v1061_v35  ;;  %1384 = vperm.xlu1 %3856, %v4862_v32  }
 0x29e   : > { %1414 = vperm.xlu0 %3855, %v4865_v18  }
 0x2a2   : > { %1404 = vperm.xlu1 %3856, %v3917_v7  }
 0x2a5   : > { %v917_v2 = vpop.xlane.xlu2 %916 }
 0x2a6   : > { %v931_v4 = vadd.f32 %v917_v2, %v907_v14  ;;  %1546 = vperm.xlu0 %3855, %v3595_v13   ;;  %v950_v14 = vld [vmem:[#allocation4 + $0x18] sm:$0xff] }
 0x2a7   : > { %v998_v42 = vmul.f32 %v4811_v33, %v950_v14  ;;  %v4899_v0 = vpop.f32.mrf.mxu1 }
 0x2a8   : > { %940 = vst.msk [vmem:[#allocation3 + $0x8] sm:$0xff] %vm535_vm0, %v931_v4 }
 0x2aa   : > { %1419 = vperm.xlu1 %3856, %v4874_v15  }
 0x2ad   : > { %v923_v1 = vpop.xlane.xlu2 %922 }
 0x2ae   : > { %v934_v36 = vadd.f32 %v923_v1, %v910_v53  ;;  %1561 = vperm.xlu0 %3855, %v3598_v21   ;;  %v900_v21 = vld [vmem:[#allocation3 + $0x10] sm:$0xff]  ;;  %v1328_v1 = vld [vmem:[#allocation3 + $0x58] sm:$0xff] }
 0x2af   : > { %v908_v26 = vmul.f32 %v4746_v45, %v900_v21 }
 0x2b0   : > { %943 = vst.msk [vmem:[#allocation3 + $0x20] sm:$0xff] %vm535_vm0, %v934_v36  ;;  %v1336_v36 = vmul.f32 %v4855_v49, %v1328_v1  ;;  %v1466_v45 = vpop.f32.mrf.mxu1 }
 0x2b1   : > { %v1290_v5 = vpop.permute.xlu1 %1289 }
 0x2b2   : > { %v1299_v9 = vsub.f32 %v4691_v57, %v1290_v5  ;;  %1551 = vperm.xlu1 %3856, %v3596_v38   ;;  %v1329_v57 = vld [vmem:[#allocation3 + $0x60] sm:$0xff]  ;;  %v951_v38 = vld [vmem:[#allocation4 + $0x50] sm:$0xff] }
 0x2b3   : > { %v1337_v31 = vmul.f32 %v3917_v7, %v1329_v57  ;;  %v1325_v7 = vld [vmem:[#allocation3 + $0x40] sm:$0xff] }
 0x2b4   : > { %v1314_v19 = vmul.f32 1.442695, %v1299_v9  ;;  %v1333_v13 = vmul.f32 %v4862_v32, %v1325_v7 }
 0x2b5   : > { %v929_v24 = vpop.xlane.xlu2 %928 }
 0x2b6   : > { %3920 = vpow2.f32 %v1314_v19  ;;  %v937_v12 = vadd.f32 %v929_v24, %v913_v48  ;;  %v999_v19 = vmul.f32 %v4787_v39, %v951_v38  ;;  %v903_v48 = vld [vmem:[#allocation3 + $0x28] sm:$0xff]  ;;  %v1327_v39 = vld [vmem:[#allocation3 + $0x50] sm:$0xff] }
 0x2b7   : > { %3922 = vpow2.f32 %v1240_v56 }
 0x2b8   : > { %946 = vst.msk [vmem:[#allocation3 + $0x38] sm:$0xff] %vm535_vm0, %v937_v12  ;;  %3924 = vpow2.f32 %v1246_v60 }
 0x2ba   : > { %1566 = vperm.xlu1 %3856, %v3599_v23   ;;  %v911_v23 = vmul.f32 %v4755_v59, %v903_v48  ;;  %v1378_v48 = vld [vmem:[#allocation4 + $0x60] sm:$0xff] }
 0x2bc   : > { %v3921_v41 = vpop.eup %3920 }
 0x2bd   : > { %v1344_v17 = vpop.xlane.xlu2 %1343  ;;  %v1323_v10 = vmul.f32 %v3921_v41, %v4529_v43  ;;  %v3923_v2 = vpop.eup %3922  ;;  %v952_v41 = vld [vmem:[#allocation4 + $0x68] sm:$0xff] }
 0x2be   : > { %v1358_v30 = vadd.f32 %v1344_v17, %v1334_v40  ;;  %v3925_v9 = vpop.eup %3924  ;;  %v1000_v17 = vmul.f32 %v4827_v37, %v952_v41  ;;  %v1001_v37 = vmul.f32 %v4820_v11, %v953_v62  ;;  %v1332_v62 = vld [vmem:[#allocation3 + $0x78] sm:$0xff] }
 0x2bf   : > { %1355 = vadd.xlane.f32.xlu2 %v1323_v10  ;;  %1483 = vmatmul.f32.gmra.mxu1 %v1323_v10 }
 0x2c0   : > { %1366 = vst.msk [vmem:[#allocation3 + $0x48] sm:$0xff] %vm535_vm0, %v1358_v30  ;;  %v1331_v30 = vld [vmem:[#allocation3 + $0x70] sm:$0xff] }
 0x2c6   : > { %v1350_v16 = vpop.xlane.xlu2 %1349 }
 0x2c7   : > { %v1361_v34 = vadd.f32 %v1350_v16, %v1337_v31  ;;  %v1335_v16 = vmul.f32 %v3923_v2, %v1327_v39 }
 0x2c9   : > { %1369 = vst.msk [vmem:[#allocation3 + $0x60] sm:$0xff] %vm535_vm0, %v1361_v34  ;;  %v1339_v34 = vmul.f32 %v4865_v18, %v1331_v30 }
 0x2cd   : > { %v927_v47 = vpop.xlane.xlu0 %926 }
 0x2ce   : > { %v936_v35 = vadd.f32 %v927_v47, %v912_v29  ;;  %v1330_v47 = vld [vmem:[#allocation3 + $0x68] sm:$0xff] }
 0x2d0   : > { %945 = vst.msk [vmem:[#allocation3 + $0x30] sm:$0xff] %vm535_vm0, %v936_v35 }
 0x2d1   : > { %v1042_v22 = vpop.f32.mrf.mxu0 }
 0x2d2   : > { %v1062_v58 = vadd.f32 %v1042_v22, %v997_v52  ;;  %v1338_v22 = vmul.f32 %v3925_v9, %v1330_v47 }
 0x2d4   : > { %1070 = vst [vmem:[#allocation4 + $0xd8] sm:$0xff] %v1062_v58  ;;  %v3600_v58 = vld [vmem:[%s4442_s19 + $0xb0] sm:$0xff] }
 0x2d5   : > { %v1342_v63 = vpop.xlane.xlu0 %1341 }
 0x2d6   : > { %v1357_v4 = vadd.f32 %v1342_v63, %v1333_v13  ;;  %v1002_v13 = vmul.f32 %v4792_v46, %v954_v50  ;;  %v1380_v46 = vld [vmem:[#allocation4 + $0x8] sm:$0xff] }
 0x2d7   : > { %1394 = vperm.xlu2 %3857, %v3923_v2   ;;  %v1375_v2 = vld [vmem:[#allocation4 + $0x88] sm:$0xff] }
 0x2d8   : > { %1365 = vst.msk [vmem:[#allocation3 + $0x40] sm:$0xff] %vm535_vm0, %v1357_v4 }
 0x2d9   : > { %v1045_v53 = vpop.f32.mrf.mxu0 }
 0x2da   : > { %v1063_v6 = vadd.f32 %v1045_v53, %v998_v42  ;;  %v1377_v53 = vld [vmem:[#allocation4 + $0xb8] sm:$0xff] }
 0x2dc   : > { %1071 = vst [vmem:[#allocation4 + $0x18] sm:$0xff] %v1063_v6  ;;  %v919_v32 = vpop.xlane.xlu1 %918 }
 0x2dd   : > { %v932_v5 = vadd.f32 %v919_v32, %v908_v26  ;;  %v1348_v51 = vpop.xlane.xlu0 %1347  ;;  %v1374_v32 = vld [vmem:[#allocation4 + $0x80] sm:$0xff] }
 0x2de   : > { %v1360_v33 = vadd.f32 %v1348_v51, %v1336_v36 }
 0x2df   : > { %941 = vst.msk [vmem:[#allocation3 + $0x10] sm:$0xff] %vm535_vm0, %v932_v5  ;;  %1409 = vperm.xlu2 %3857, %v3925_v9   ;;  %v4911_v57 = vpop.f32.mrf.mxu1 }
 0x2e0   : > { %1368 = vst.msk [vmem:[#allocation3 + $0x58] sm:$0xff] %vm535_vm0, %v1360_v33 }
 0x2e1   : > { %v1048_v24 = vpop.f32.mrf.mxu0 }
 0x2e2   : > { %v1064_v12 = vadd.f32 %v1048_v24, %v999_v19 }
 0x2e4   : > { %1072 = vst [vmem:[#allocation4 + $0x50] sm:$0xff] %v1064_v12  ;;  %v925_v49 = vpop.xlane.xlu1 %924 }
 0x2e5   : > { %v935_v40 = vadd.f32 %v925_v49, %v911_v23  ;;  %v4927_v23 = vld [vmem:[%s6269_s2 + $0x2] ss:$0 sm:$0xff] }
 0x2e7   : > { %944 = vst.msk [vmem:[#allocation3 + $0x28] sm:$0xff] %vm535_vm0, %v935_v40  ;;  %1541 = vperm.xlu2 %3857, %v3594_v44   ;;  %v1472_v7 = vpop.f32.mrf.mxu1 }
 0x2e9   : > { %v1051_v10 = vpop.f32.mrf.mxu0 }
 0x2ea   : > { %v1065_v31 = vadd.f32 %v1051_v10, %v1000_v17 }
 0x2ec   : > { %1073 = vst [vmem:[#allocation4 + $0x68] sm:$0xff] %v1065_v31  ;;  %v1346_v59 = vpop.xlane.xlu1 %1345 }
 0x2ed   : > { %v1359_v56 = vadd.f32 %v1346_v59, %v1335_v16  ;;  %v1354_v29 = vpop.xlane.xlu0 %1353 }
 0x2ee   : > { %v1363_v61 = vadd.f32 %v1354_v29, %v1339_v34  ;;  %v1340_v29 = vmul.f32 %v4874_v15, %v1332_v62 }
 0x2ef   : > { %1367 = vst.msk [vmem:[#allocation3 + $0x50] sm:$0xff] %vm535_vm0, %v1359_v56  ;;  %1556 = vperm.xlu2 %3857, %v3597_v27   ;;  %v1475_v11 = vpop.f32.mrf.mxu1 }
 0x2f0   : > { %1371 = vst.msk [vmem:[#allocation3 + $0x70] sm:$0xff] %vm535_vm0, %v1363_v61 }
 0x2f1   : > { %v1054_v35 = vpop.f32.mrf.mxu0 }
 0x2f2   : > { %v1066_v52 = vadd.f32 %v1054_v35, %v1001_v37 }
 0x2f4   : > { %1074 = vst [vmem:[#allocation4 + $0x30] sm:$0xff] %v1066_v52  ;;  %v1352_v18 = vpop.xlane.xlu1 %1351  ;;  %v1381_v52 = vld [vmem:[#allocation4 + $0x78] sm:$0xff] }
 0x2f5   : > { %v1362_v60 = vadd.f32 %v1352_v18, %v1338_v22  ;;  %v1376_v22 = vld [vmem:[#allocation4 + $0xe8] sm:$0xff] }
 0x2f7   : > { %1370 = vst.msk [vmem:[#allocation3 + $0x68] sm:$0xff] %vm535_vm0, %v1362_v60  ;;  %1571 = vperm.xlu2 %3857, %v3600_v58   ;;  %v4921_v1 = vpop.f32.mrf.mxu1 }
 0x2f9   : > { %v1057_v14 = vpop.f32.mrf.mxu0 }
 0x2fa   : > { %v1067_v63 = vadd.f32 %v1057_v14, %v1002_v13  ;;  %v1379_v13 = vld [vmem:[#allocation4 + $0xf0] sm:$0xff] }
 0x2fc   : > { %1075 = vst [vmem:[#allocation4 + $0x48] sm:$0xff] %v1067_v63 }
 0x2ff   : > { %v1481_v19 = vpop.f32.mrf.mxu1 }
 0x300   : > { %v1390_v4 = vpop.permute.xlu0 %1389 }
 0x301   : > { %v1423_v42 = vmul.f32 %v1390_v4, %v1375_v2 }
 0x303   : > { %v1488_v21 = vadd.f32 %v1466_v45, %v1423_v42 }
 0x305   : > { %1496 = vst [vmem:[#allocation4 + $0x88] sm:$0xff] %v1488_v21 }
 0x308   : > { %v1400_v6 = vpop.permute.xlu0 %1399 }
 0x309   : > { %v1425_v26 = vmul.f32 %v1400_v6, %v1377_v53 }
 0x30b   : > { %v1490_v36 = vadd.f32 %v1472_v7, %v1425_v26 }
 0x30c   : > { %v1385_v38 = vpop.permute.xlu1 %1384 }
 0x30d   : > { %1498 = vst [vmem:[#allocation4 + $0xb8] sm:$0xff] %v1490_v36  ;;  %v1422_v5 = vmul.f32 %v1385_v38, %v1374_v32 }
 0x30f   : > { %v1487_v51 = vadd.f32 %v4899_v0, %v1422_v5 }
 0x310   : > { %v1415_v9 = vpop.permute.xlu0 %1414 }
 0x311   : > { %1495 = vst [vmem:[#allocation4 + $0x80] sm:$0xff] %v1487_v51  ;;  %v1428_v33 = vmul.f32 %v1415_v9, %v1380_v46 }
 0x313   : > { %v1493_v24 = vadd.f32 %v1481_v19, %v1428_v33 }
 0x314   : > { %v1405_v45 = vpop.permute.xlu1 %1404 }
 0x315   : > { %1501 = vst [vmem:[#allocation4 + $0x8] sm:$0xff] %v1493_v24  ;;  %v1426_v12 = vmul.f32 %v1405_v45, %v1378_v48 }
 0x317   : > { %v1491_v49 = vadd.f32 %v1475_v11, %v1426_v12  ;;  %v3601_v11 = vld [vmem:[%s4442_s19 + $0xb8] sm:$0xff]  ;;  %v4976_v12 = vld [vmem:[#allocation2 + $0x88] sm:$0xff] }
 0x318   : > { %v1547_v44 = vpop.permute.xlu0 %1546 }
 0x319   : > { %1499 = vst [vmem:[#allocation4 + $0x60] sm:$0xff] %v1491_v49  ;;  %v1583_v41 = vadd.f32 %v4927_v23, %v1547_v44 }
 0x31b   : > { %v1599_v0 = vmul.f32 0.2, %v1583_v41  ;;  %vm1591_vm4 = vcmp.ge.f32.partialorder %v1583_v41, 0.0 }
 0x31c   : > { %v1420_v40 = vpop.permute.xlu1 %1419 }
 0x31d   : > { %v1607_v17 = vsel %vm1591_vm4, %v1583_v41, %v1599_v0  ;;  %v1429_v18 = vmul.f32 %v1420_v40, %v1381_v52  ;;  %v4986_v0 = vld [vmem:[#allocation2 + $0x90] sm:$0xff] }
 0x31e   : > { %v4932_v39 = vsel %vm755_vm5, %v1607_v17, -1e+30 }
 0x320   : > { %1633 = vmax.xlane.f32.xlu2 %v4932_v39  ;;  %v1562_v4 = vpop.permute.xlu0 %1561 }
 0x321   : > { %v1586_v53 = vadd.f32 %v4927_v23, %v1562_v4 }
 0x323   : > { %v1602_v32 = vmul.f32 0.2, %v1586_v53  ;;  %vm1594_vm12 = vcmp.ge.f32.partialorder %v1586_v53, 0.0 }
 0x324   : > { %v1552_v10 = vpop.permute.xlu1 %1551 }
 0x325   : > { %v1584_v30 = vadd.f32 %v4927_v23, %v1552_v10  ;;  %v1610_v5 = vsel %vm1594_vm12, %v1586_v53, %v1602_v32  ;;  %v3621_v53 = vld [vmem:[%s4442_s19 + $0xd0] sm:$0xff]  ;;  %v3624_v32 = vld [vmem:[%s4442_s19 + $0xe8] sm:$0xff] }
 0x326   : > { %v4962_v51 = vsel %vm758_vm13, %v1610_v5, -1e+30 }
 0x327   : > { %v1600_v31 = vmul.f32 0.2, %v1584_v30  ;;  %vm1592_vm7 = vcmp.ge.f32.partialorder %v1584_v30, 0.0 }
 0x329   : > { %v1608_v16 = vsel %vm1592_vm7, %v1584_v30, %v1600_v31  ;;  %v4995_v30 = vld [vmem:[#allocation2 + $0xa8] sm:$0xff] }
 0x32a   : > { %v4938_v59 = vsel %vm756_vm1, %v1608_v16, -1e+30 }
 0x32b   : > { %1635 = vmax.xlane.f32.xlu0 %v4938_v59 }
 0x32c   : > { %v1567_v34 = vpop.permute.xlu1 %1566 }
 0x32d   : > { %v1587_v27 = vadd.f32 %v4927_v23, %v1567_v34 }
 0x32f   : > { %v1603_v56 = vmul.f32 0.2, %v1587_v27  ;;  %vm1595_vm9 = vcmp.ge.f32.partialorder %v1587_v27, 0.0 }
 0x331   : > { %v1611_v61 = vsel %vm1595_vm9, %v1587_v27, %v1603_v56 }
 0x332   : > { %v1356_v37 = vpop.xlane.xlu2 %1355  ;;  %v4945_v47 = vsel %vm759_vm11, %v1611_v61, -1e+30 }
 0x333   : > { %v1364_v35 = vadd.f32 %v1356_v37, %v1340_v29  ;;  %1641 = vmax.xlane.f32.xlu0 %v4945_v47  ;;  %v5010_v37 = vld [vmem:[#allocation2 + $0x80] sm:$0xff] }
 0x335   : > { %1372 = vst.msk [vmem:[#allocation3 + $0x78] sm:$0xff] %vm535_vm0, %v1364_v35 }
 0x33a   : > { %v1395_v7 = vpop.permute.xlu2 %1394 }
 0x33b   : > { %v1424_v58 = vmul.f32 %v1395_v7, %v1376_v22  ;;  %v5022_v7 = vld [vmem:[#allocation2 + $0x98] sm:$0xff] }
 0x33c   : > { %v1484_v50 = vpop.f32.mrf.mxu1 }
 0x33d   : > { %v1489_v15 = vadd.f32 %v4911_v57, %v1424_v58  ;;  %v1494_v60 = vadd.f32 %v1484_v50, %v1429_v18 }
 0x33f   : > { %1497 = vst [vmem:[#allocation4 + $0xe8] sm:$0xff] %v1489_v15 }
 0x340   : > { %1502 = vst [vmem:[#allocation4 + $0x78] sm:$0xff] %v1494_v60 }
 0x342   : > { %v1410_v14 = vpop.permute.xlu2 %1409 }
 0x343   : > { %v1427_v63 = vmul.f32 %v1410_v14, %v1379_v13  ;;  %v5040_v14 = vld [vmem:[#allocation2 + $0xb0] sm:$0xff] }
 0x345   : > { %v1492_v2 = vadd.f32 %v4921_v1, %v1427_v63 }
 0x347   : > { %1500 = vst [vmem:[#allocation4 + $0xf0] sm:$0xff] %v1492_v2  ;;  %1576 = vperm.xlu0 %3855, %v3601_v11   ;;  %v3619_v11 = vld [vmem:[%s4442_s19 + $0xc0] sm:$0xff] }
 0x34a   : > { %v1542_v42 = vpop.permute.xlu2 %1541 }
 0x34b   : > { %v1582_v21 = vadd.f32 %v4927_v23, %v1542_v42  ;;  %v3801_v42 = vld [vmem:[%s6268_s1 + $0xb8] sm:$0xff]  }
 0x34d   : > { %v1598_v6 = vmul.f32 0.2, %v1582_v21  ;;  %vm1590_vm10 = vcmp.ge.f32.partialorder %v1582_v21, 0.0 }
 0x34f   : > { %v1606_v57 = vsel %vm1590_vm10, %v1582_v21, %v1598_v6  ;;  %v3743_v21 = vunpack.c.h.bf16 %v3801_v42  ;;  %v3620_v6 = vld [vmem:[%s4442_s19 + $0xc8] sm:$0xff] }
 0x350   : > { %v4956_v26 = vsel %vm754_vm2, %v1606_v57, -1e+30  ;;  %v3622_v57 = vld [vmem:[%s4442_s19 + $0xd8] sm:$0xff] }
 0x351   : > { %1631 = vmax.xlane.f32.xlu1 %v4956_v26  ;;  %1873 = vmatpush.msra.mxu2 %v3743_v21 }
 0x352   : > { %v1557_v36 = vpop.permute.xlu2 %1556 }
 0x353   : > { %v1585_v1 = vadd.f32 %v4927_v23, %v1557_v36  ;;  %v3625_v36 = vld [vmem:[%s4442_s19 + $0xf0] sm:$0xff] }
 0x355   : > { %v1601_v38 = vmul.f32 0.2, %v1585_v1  ;;  %vm1593_vm15 = vcmp.ge.f32.partialorder %v1585_v1, 0.0 }
 0x357   : > { %v1609_v46 = vsel %vm1593_vm15, %v1585_v1, %v1601_v38  ;;  %v3742_v1 = vunpack.c.l.bf16 %v3801_v42  ;;  %v3800_v38 = vld [vmem:[%s6268_s1 + $0xb0] sm:$0xff]  }
 0x358   : > { %v4966_v9 = vsel %vm757_vm8, %v1609_v46, -1e+30  ;;  %v3739_v5 = vunpack.c.h.bf16 %v3800_v38  ;;  %v3738_v46 = vunpack.c.l.bf16 %v3800_v38 }
 0x359   : > { %1639 = vmax.xlane.f32.xlu1 %v4962_v51  ;;  %1637 = vmax.xlane.f32.xlu2 %v4966_v9 }
 0x35a   : > { %v1572_v33 = vpop.permute.xlu2 %1571  ;;  %1874 = vmatpush.msra.mxu2 %v3742_v1 }
 0x35b   : > { %v1588_v19 = vadd.f32 %v4927_v23, %v1572_v33  ;;  %v3799_v33 = vld [vmem:[%s6268_s1 + $0xa8] sm:$0xff]  }
 0x35c   : > { %1875 = vmatpush.msra.mxu2 %v3739_v5  ;;  %v3623_v5 = vld [vmem:[%s4442_s19 + $0xe0] sm:$0xff] }
 0x35d   : > { %v1604_v48 = vmul.f32 0.2, %v1588_v19  ;;  %vm1596_vm3 = vcmp.ge.f32.partialorder %v1588_v19, 0.0 }
 0x35e   : > { %1876 = vmatpush.msra.mxu2 %v3738_v46 }
 0x35f   : > { %v1612_v24 = vsel %vm1596_vm3, %v1588_v19, %v1604_v48  ;;  %v3735_v19 = vunpack.c.h.bf16 %v3799_v33  ;;  %v3734_v48 = vunpack.c.l.bf16 %v3799_v33 }
 0x360   : > { %v4973_v45 = vsel %vm760_vm14, %v1612_v24, -1e+30  ;;  %v3798_v24 = vld [vmem:[%s6268_s1 + $0xa0] sm:$0xff]  }
 0x361   : > { %1643 = vmax.xlane.f32.xlu2 %v4973_v45  ;;  %1877 = vmatpush.msra.mxu2 %v3735_v19 }
 0x363   : > { %1878 = vmatpush.msra.mxu2 %v3734_v48 }
 0x393   : > { %v1634_v49 = vpop.xlane.xlu2 %1633 }
 0x394   : > { %v4979_v44 = vmax.f32 %v4976_v12, %v1634_v49  ;;  %v3731_v49 = vunpack.c.h.bf16 %v3798_v24 }
 0x396   : > { %v1656_v41 = vsub.f32 %v4976_v12, %v4979_v44  ;;  %1931 = vst.msk [vmem:[#allocation2 + $0x88] sm:$0xff] %vm535_vm0, %v4979_v44  ;;  %1686 = vperm.xlu2 %3857, %v4979_v44   ;;  %1879 = vmatpush.msra.mxu2 %v3731_v49 }
 0x39e   : > { %v1636_v40 = vpop.xlane.xlu0 %1635 }
 0x39f   : > { %v4989_v17 = vmax.f32 %v4986_v0, %v1636_v40  ;;  %v3730_v40 = vunpack.c.l.bf16 %v3798_v24 }
 0x3a1   : > { %v1657_v10 = vsub.f32 %v4986_v0, %v4989_v17  ;;  %1932 = vst.msk [vmem:[#allocation2 + $0x90] sm:$0xff] %vm535_vm0, %v4989_v17  ;;  %1880 = vmatpush.msra.mxu2 %v3730_v40 }
 0x3a6   : > { %v1642_v31 = vpop.xlane.xlu0 %1641 }
 0x3a7   : > { %v4998_v16 = vmax.f32 %v4995_v30, %v1642_v31  ;;  %v3797_v31 = vld [vmem:[%s6268_s1 + $0x98] sm:$0xff]  }
 0x3a9   : > { %1935 = vst.msk [vmem:[#allocation2 + $0xa8] sm:$0xff] %vm535_vm0, %v4998_v16 }
 0x3b9   : > { %v1577_v27 = vpop.permute.xlu0 %1576 }
 0x3ba   : > { %v1589_v62 = vadd.f32 %v4927_v23, %v1577_v27  ;;  %v5020_v23 = vld [vmem:[#allocation2 + $0xa0] sm:$0xff]  ;;  %v3727_v27 = vunpack.c.h.bf16 %v3797_v31 }
 0x3bc   : > { %v1605_v56 = vmul.f32 0.2, %v1589_v62  ;;  %vm1597_vm4 = vcmp.ge.f32.partialorder %v1589_v62, 0.0  ;;  %1881 = vmatpush.msra.mxu2 %v3727_v27 }
 0x3be   : > { %v1613_v29 = vsel %vm1597_vm4, %v1589_v62, %v1605_v56  ;;  %v3726_v62 = vunpack.c.l.bf16 %v3797_v31  ;;  %v3796_v56 = vld [vmem:[%s6268_s1 + $0x90] sm:$0xff]  }
 0x3bf   : > { %v5007_v61 = vsel %vm761_vm6, %v1613_v29, -1e+30  ;;  %v3723_v29 = vunpack.c.h.bf16 %v3796_v56 }
 0x3c0   : > { %1645 = vmax.xlane.f32.xlu1 %v5007_v61  ;;  %1882 = vmatpush.msra.mxu2 %v3726_v62 }
 0x3c2   : > { %1883 = vmatpush.msra.mxu2 %v3723_v29 }
 0x3c4   : > { %v1632_v35 = vpop.xlane.xlu1 %1631 }
 0x3c5   : > { %v5013_v52 = vmax.f32 %v5010_v37, %v1632_v35  ;;  %v3722_v35 = vunpack.c.l.bf16 %v3796_v56 }
 0x3c7   : > { %v1655_v22 = vsub.f32 %v5010_v37, %v5013_v52  ;;  %1930 = vst.msk [vmem:[#allocation2 + $0x80] sm:$0xff] %vm535_vm0, %v5013_v52  ;;  %1681 = vperm.xlu0 %3855, %v5013_v52   ;;  %1884 = vmatpush.msra.mxu2 %v3722_v35  ;;  %v5105_v35 = vld [vmem:[%s6269_s2 + $0x3] ss:$0 sm:$0xff] }
 0x3c8   : > { %v1752_v52 = vld [vmem:[#allocation3 + $0x80] sm:$0xff] }
 0x3cc   : > { %v1640_v18 = vpop.xlane.xlu1 %1639  ;;  %v1638_v58 = vpop.xlane.xlu2 %1637 }
 0x3cd   : > { %v5025_v50 = vmax.f32 %v5020_v23, %v1640_v18  ;;  %v5028_v15 = vmax.f32 %v5022_v7, %v1638_v58  ;;  %v3795_v18 = vld [vmem:[%s6268_s1 + $0x88] sm:$0xff]  }
 0x3ce   : > { %v3719_v58 = vunpack.c.h.bf16 %v3795_v18 }
 0x3cf   : > { %v1659_v60 = vsub.f32 %v5020_v23, %v5025_v50  ;;  %1934 = vst.msk [vmem:[#allocation2 + $0xa0] sm:$0xff] %vm535_vm0, %v5025_v50  ;;  %v1658_v13 = vsub.f32 %v5022_v7, %v5028_v15  ;;  %1701 = vperm.xlu2 %3857, %v5025_v50   ;;  %1696 = vperm.xlu0 %3855, %v5028_v15  }
 0x3d0   : > { %1933 = vst.msk [vmem:[#allocation2 + $0x98] sm:$0xff] %vm535_vm0, %v5028_v15  ;;  %1885 = vmatpush.msra.mxu2 %v3719_v58 }
 0x3d4   : > { %v1644_v63 = vpop.xlane.xlu2 %1643 }
 0x3d5   : > { %v5044_v2 = vmax.f32 %v5040_v14, %v1644_v63  ;;  %v3718_v63 = vunpack.c.l.bf16 %v3795_v18 }
 0x3d7   : > { %1936 = vst.msk [vmem:[#allocation2 + $0xb0] sm:$0xff] %vm535_vm0, %v5044_v2  ;;  %1968 = vperm.xlu2 %3857, %v3619_v11   ;;  %1706 = vperm.xlu0 %3855, %v4998_v16   ;;  %v3794_v11 = vld [vmem:[%s6268_s1 + $0x80] sm:$0xff]  }
 0x3d8   : > { %1886 = vmatpush.msra.mxu2 %v3718_v63  ;;  %v3715_v42 = vunpack.c.h.bf16 %v3794_v11  ;;  %v3714_v21 = vunpack.c.l.bf16 %v3794_v11 }
 0x3d9   : > { %1691 = vperm.xlu1 %3856, %v4989_v17  }
 0x3da   : > { %1887 = vmatpush.msra.mxu2 %v3715_v42 }
 0x3dc   : > { %1888 = vmatpush.msra.mxu2 %v3714_v21 }
 0x3df   : > { %1978 = vperm.xlu2 %3857, %v3621_v53   ;;  %1973 = vperm.xlu0 %3855, %v3620_v6   ;;  %v5082_v53 = vld [vmem:[#allocation2 + $0xb8] sm:$0xff] }
 0x3e1   : > { %1711 = vperm.xlu1 %3856, %v5044_v2  }
 0x3e7   : > { %1983 = vperm.xlu0 %3855, %v3622_v57  }
 0x3ef   : > { %1993 = vperm.xlu0 %3855, %v3624_v32  }
 0x3f7   : > { %1998 = vperm.xlu0 %3855, %v3625_v36   ;;  %v1687_v36 = vpop.permute.xlu2 %1686 }
 0x3f8   : > { %v1720_v46 = vsub.f32 %v4932_v39, %v1687_v36 }
 0x3fa   : > { %v1729_v19 = vmul.f32 1.442695, %v1720_v46  ;;  %v3626_v46 = vld [vmem:[%s4442_s19 + $0xf8] sm:$0xff] }
 0x433   : > { %v1646_v6 = vpop.xlane.xlu1 %1645 }
 0x434   : > { %v5085_v57 = vmax.f32 %v5082_v53, %v1646_v6 }
 0x436   : > { %v1662_v32 = vsub.f32 %v5082_v53, %v5085_v57  ;;  %1937 = vst.msk [vmem:[#allocation2 + $0xb8] sm:$0xff] %vm535_vm0, %v5085_v57  ;;  %1716 = vperm.xlu1 %3856, %v5085_v57  }
 0x438   : > { %v1677_v44 = vmul.f32 1.442695, %v1662_v32 }
 0x439   : > { %v1682_v1 = vpop.permute.xlu0 %1681 }
 0x43a   : > { %v1719_v38 = vsub.f32 %v4956_v26, %v1682_v1  ;;  %v1702_v26 = vpop.permute.xlu2 %1701 }
 0x43b   : > { %v1723_v42 = vsub.f32 %v4962_v51, %v1702_v26 }
 0x43c   : > { %v1727_v33 = vmul.f32 1.442695, %v1719_v38 }
 0x43d   : > { %v1735_v1 = vmul.f32 1.442695, %v1723_v42 }
 0x43e   : > { %3926 = vpow2.f32 %v1727_v33  ;;  %1988 = vperm.xlu1 %3856, %v3623_v5  }
 0x43f   : > { %3928 = vpow2.f32 %v1729_v19 }
 0x441   : > { %v1697_v48 = vpop.permute.xlu0 %1696 }
 0x442   : > { %v1722_v39 = vsub.f32 %v4966_v9, %v1697_v48  ;;  %v1969_v21 = vpop.permute.xlu2 %1968 }
 0x443   : > { %v2009_v5 = vadd.f32 %v5105_v35, %v1969_v21 }
 0x444   : > { %v3927_v24 = vpop.eup %3926  ;;  %v1733_v58 = vmul.f32 1.442695, %v1722_v39 }
 0x445   : > { %v1743_v49 = vmul.f32 %v3927_v24, %v4467_v55  ;;  %v3929_v31 = vpop.eup %3928  ;;  %v2025_v19 = vmul.f32 0.2, %v2009_v5 }
 0x446   : > { %v5098_v56 = vmul.f32 %v3929_v31, %v4479_v3 }
 0x447   : > { %1889 = vmatmul.f32.vlgmr.msra.gmra.mxu2 %v1743_v49  ;;  %1768 = vadd.xlane.f32.xlu2 %v1743_v49 }
 0x449   : > { %v1707_v40 = vpop.permute.xlu0 %1706 }
 0x44a   : > { %v1724_v51 = vsub.f32 %v4945_v47, %v1707_v40  ;;  %v1979_v48 = vpop.permute.xlu2 %1978 }
 0x44b   : > { %v1692_v27 = vpop.permute.xlu1 %1691 }
 0x44c   : > { %v1721_v62 = vsub.f32 %v4938_v59, %v1692_v27  ;;  %v1737_v24 = vmul.f32 1.442695, %v1724_v51  ;;  %v2011_v27 = vadd.f32 %v5105_v35, %v1979_v48 }
 0x44e   : > { %v1731_v29 = vmul.f32 1.442695, %v1721_v62  ;;  %vm2019_vm9 = vcmp.ge.f32.partialorder %v2011_v27, 0.0 }
 0x44f   : > { %1892 = vmatmul.f32.gmra.mxu2 %v5098_v56 }
 0x450   : > { %3930 = vpow2.f32 %v1731_v29  ;;  %v2027_v29 = vmul.f32 0.2, %v2011_v27 }
 0x451   : > { %v1974_v18 = vpop.permute.xlu0 %1973  ;;  %3932 = vpow2.f32 %v1733_v58 }
 0x452   : > { %v2010_v59 = vadd.f32 %v5105_v35, %v1974_v18  ;;  %3934 = vpow2.f32 %v1735_v1 }
 0x453   : > { %v1712_v49 = vpop.permute.xlu1 %1711  ;;  %3936 = vpow2.f32 %v1737_v24 }
 0x454   : > { %v2026_v63 = vmul.f32 0.2, %v2010_v59  ;;  %vm2018_vm7 = vcmp.ge.f32.partialorder %v2010_v59, 0.0  ;;  %v1725_v26 = vsub.f32 %v4973_v45, %v1712_v49 }
 0x456   : > { %v3931_v11 = vpop.eup %3930  ;;  %v2034_v9 = vsel %vm2018_vm7, %v2010_v59, %v2026_v63  ;;  %v1739_v18 = vmul.f32 1.442695, %v1725_v26  ;;  %v2035_v63 = vsel %vm2019_vm9, %v2011_v27, %v2027_v29  ;;  %v1663_v27 = vmul.f32 1.442695, %v1655_v22 }
 0x457   : > { %v5111_v6 = vsel %vm755_vm5, %v2034_v9, -1e+30  ;;  %v5114_v36 = vmul.f32 %v3931_v11, %v4465_v54  ;;  %v3933_v38 = vpop.eup %3932  ;;  %vm2017_vm5 = vcmp.ge.f32.partialorder %v2009_v5, 0.0  ;;  %v5139_v45 = vsel %vm756_vm1, %v2035_v63, -1e+30 }
 0x458   : > { %2060 = vmax.xlane.f32.xlu0 %v5111_v6  ;;  %v5122_v33 = vmul.f32 %v3933_v38, %v4483_v8  ;;  %v3935_v31 = vpop.eup %3934  ;;  %v2033_v62 = vsel %vm2017_vm5, %v2009_v5, %v2025_v19  ;;  %3938 = vpow2.f32 %v1739_v18 }
 0x459   : > { %1895 = vmatmul.f32.gmra.mxu2 %v5114_v36  ;;  %v1984_v39 = vpop.permute.xlu0 %1983  ;;  %v5129_v47 = vsel %vm754_vm2, %v2033_v62, -1e+30  ;;  %v5132_v40 = vmul.f32 %v3935_v31, %v4506_v25  ;;  %v3937_v58 = vpop.eup %3936 }
 0x45a   : > { %v2012_v59 = vadd.f32 %v5105_v35, %v1984_v39  ;;  %v5142_v11 = vmul.f32 %v3937_v58, %v4497_v20 }
 0x45c   : > { %v2028_v42 = vmul.f32 0.2, %v2012_v59  ;;  %vm2020_vm2 = vcmp.ge.f32.partialorder %v2012_v59, 0.0 }
 0x45e   : > { %v3939_v21 = vpop.eup %3938  ;;  %v2036_v38 = vsel %vm2020_vm2, %v2012_v59, %v2028_v42 }
 0x45f   : > { %2003 = vperm.xlu2 %3857, %v3626_v46   ;;  %v5149_v5 = vsel %vm757_vm8, %v2036_v38, -1e+30  ;;  %v5152_v46 = vmul.f32 %v3939_v21, %v4508_v28 }
 0x461   : > { %1898 = vmatmul.f32.gmra.mxu2 %v5122_v33  ;;  %v1994_v9 = vpop.permute.xlu0 %1993 }
 0x462   : > { %v2014_v1 = vadd.f32 %v5105_v35, %v1994_v9 }
 0x464   : > { %v2030_v51 = vmul.f32 0.2, %v2014_v1  ;;  %vm2022_vm1 = vcmp.ge.f32.partialorder %v2014_v1, 0.0 }
 0x466   : > { %v2038_v19 = vsel %vm2022_vm1, %v2014_v1, %v2030_v51  ;;  %v5185_v51 = vld [vmem:[#allocation2 + $0xc8] sm:$0xff] }
 0x467   : > { %v5158_v48 = vsel %vm759_vm11, %v2038_v19, -1e+30 }
 0x468   : > { %2058 = vmax.xlane.f32.xlu1 %v5129_v47 }
 0x469   : > { %1901 = vmatmul.f32.gmra.mxu2 %v5132_v40  ;;  %v1999_v62 = vpop.permute.xlu0 %1998 }
 0x46a   : > { %v2015_v18 = vadd.f32 %v5105_v35, %v1999_v62 }
 0x46c   : > { %v2031_v22 = vmul.f32 0.2, %v2015_v18  ;;  %vm2023_vm11 = vcmp.ge.f32.partialorder %v2015_v18, 0.0 }
 0x46e   : > { %v2039_v1 = vsel %vm2023_vm11, %v2015_v18, %v2031_v22 }
 0x46f   : > { %v5182_v38 = vsel %vm760_vm14, %v2039_v1, -1e+30 }
 0x470   : > { %2062 = vmax.xlane.f32.xlu1 %v5139_v45 }
 0x471   : > { %1904 = vmatmul.f32.gmra.mxu2 %v5142_v11 }
 0x478   : > { %2064 = vmax.xlane.f32.xlu1 %v5149_v5 }
 0x479   : > { %1907 = vmatmul.f32.gmra.mxu2 %v5152_v46 }
 0x480   : > { %2068 = vmax.xlane.f32.xlu1 %v5158_v48 }
 0x4a8   : > { %v1717_v24 = vpop.permute.xlu1 %1716 }
 0x4a9   : > { %v1726_v49 = vsub.f32 %v5007_v61, %v1717_v24 }
 0x4ab   : > { %v1741_v31 = vmul.f32 1.442695, %v1726_v49  ;;  %v3809_v49 = vld [vmem:[%s6268_s1 + $0xf8] sm:$0xff]  }
 0x4ac   : > { %v3775_v4 = vunpack.c.h.bf16 %v3809_v49 }
 0x4ad   : > { %3940 = vpow2.f32 %v1741_v31  ;;  %v5195_v31 = vld [vmem:[#allocation2 + $0xc0] sm:$0xff] }
 0x4ae   : > { %3942 = vpow2.f32 %v1663_v27  ;;  %2300 = vmatpush.msra.mxu3 %v3775_v4  ;;  %v3807_v4 = vld [vmem:[%s6268_s1 + $0xe8] sm:$0xff]  }
 0x4b0   : > { %v1989_v26 = vpop.permute.xlu1 %1988 }
 0x4b1   : > { %v2013_v39 = vadd.f32 %v5105_v35, %v1989_v26  ;;  %v3774_v26 = vunpack.c.l.bf16 %v3809_v49  ;;  %v3806_v49 = vld [vmem:[%s6268_s1 + $0xe0] sm:$0xff]  }
 0x4b3   : > { %v3941_v29 = vpop.eup %3940  ;;  %v2029_v58 = vmul.f32 0.2, %v2013_v39  ;;  %vm2021_vm8 = vcmp.ge.f32.partialorder %v2013_v39, 0.0  ;;  %2301 = vmatpush.msra.mxu3 %v3774_v26  ;;  %v3763_v26 = vunpack.c.h.bf16 %v3806_v49 }
 0x4b4   : > { %v5168_v59 = vmul.f32 %v3941_v29, %v4529_v43  ;;  %v5170_v63 = vpop.eup %3942 }
 0x4b5   : > { %v2037_v61 = vsel %vm2021_vm8, %v2013_v39, %v2029_v58  ;;  %v1760_v42 = vmul.f32 %v5170_v63, %v1752_v52  ;;  %v5205_v39 = vld [vmem:[#allocation2 + $0xd0] sm:$0xff] }
 0x4b6   : > { %1910 = vmatmul.f32.gmra.mxu2 %v5168_v59  ;;  %v5175_v37 = vsel %vm758_vm13, %v2037_v61, -1e+30  ;;  %v5215_v61 = vld [vmem:[#allocation2 + $0xd8] sm:$0xff] }
 0x4b7   : > { %2066 = vmax.xlane.f32.xlu0 %v5175_v37 }
 0x4ba   : > { %v1769_v9 = vpop.xlane.xlu2 %1768 }
 0x4bb   : > { %v1784_v21 = vadd.f32 %v1769_v9, %v1760_v42  ;;  %v5225_v9 = vld [vmem:[#allocation2 + $0xe8] sm:$0xff] }
 0x4bd   : > { %1792 = vst.msk [vmem:[#allocation3 + $0x80] sm:$0xff] %vm535_vm0, %v1784_v21 }
 0x4bf   : > { %2070 = vmax.xlane.f32.xlu0 %v5182_v38 }
 0x4cb   : > { %v2061_v19 = vpop.xlane.xlu0 %2060 }
 0x4cc   : > { %v5188_v24 = vmax.f32 %v5185_v51, %v2061_v19 }
 0x4ce   : > { %2358 = vst.msk [vmem:[#allocation2 + $0xc8] sm:$0xff] %vm535_vm0, %v5188_v24  ;;  %2113 = vperm.xlu1 %3856, %v5188_v24  }
 0x4db   : > { %v2059_v27 = vpop.xlane.xlu1 %2058 }
 0x4dc   : > { %v5198_v62 = vmax.f32 %v5195_v31, %v2059_v27  ;;  %v2004_v27 = vpop.permute.xlu2 %2003 }
 0x4de   : > { %2357 = vst.msk [vmem:[#allocation2 + $0xc0] sm:$0xff] %vm535_vm0, %v5198_v62  ;;  %2108 = vperm.xlu2 %3857, %v5198_v62  }
 0x4e3   : > { %v2063_v29 = vpop.xlane.xlu1 %2062 }
 0x4e4   : > { %v5208_v18 = vmax.f32 %v5205_v39, %v2063_v29  ;;  %v2016_v29 = vadd.f32 %v5105_v35, %v2004_v27  ;;  %v3808_v35 = vld [vmem:[%s6268_s1 + $0xf0] sm:$0xff]  }
 0x4e5   : > { %v3771_v27 = vunpack.c.h.bf16 %v3808_v35  ;;  %v3770_v34 = vunpack.c.l.bf16 %v3808_v35  ;;  %v3805_v35 = vld [vmem:[%s6268_s1 + $0xd8] sm:$0xff]  }
 0x4e6   : > { %v2084_v58 = vsub.f32 %v5205_v39, %v5208_v18  ;;  %2359 = vst.msk [vmem:[#allocation2 + $0xd0] sm:$0xff] %vm535_vm0, %v5208_v18  ;;  %2118 = vperm.xlu0 %3855, %v5208_v18   ;;  %vm2024_vm13 = vcmp.ge.f32.partialorder %v2016_v29, 0.0 }
 0x4e7   : > { %2302 = vmatpush.msra.mxu3 %v3771_v27  ;;  %v3804_v27 = vld [vmem:[%s6268_s1 + $0xd0] sm:$0xff]  }
 0x4e9   : > { %2303 = vmatpush.msra.mxu3 %v3770_v34  ;;  %v3758_v34 = vunpack.c.l.bf16 %v3805_v35 }
 0x4eb   : > { %v2065_v52 = vpop.xlane.xlu1 %2064 }
 0x4ec   : > { %v5218_v22 = vmax.f32 %v5215_v61, %v2065_v52  ;;  %v2032_v52 = vmul.f32 0.2, %v2016_v29 }
 0x4ee   : > { %2360 = vst.msk [vmem:[#allocation2 + $0xd8] sm:$0xff] %vm535_vm0, %v5218_v22  ;;  %2123 = vperm.xlu1 %3856, %v5218_v22  }
 0x4f3   : > { %v2069_v21 = vpop.xlane.xlu1 %2068 }
 0x4f4   : > { %v5228_v1 = vmax.f32 %v5225_v9, %v2069_v21  ;;  %v2040_v21 = vsel %vm2024_vm13, %v2016_v29, %v2032_v52  ;;  %v3767_v29 = vunpack.c.h.bf16 %v3807_v4  ;;  %v3766_v52 = vunpack.c.l.bf16 %v3807_v4 }
 0x4f5   : > { %v5241_v42 = vsel %vm761_vm6, %v2040_v21, -1e+30  ;;  %v3762_v21 = vunpack.c.l.bf16 %v3806_v49  ;;  %v3755_v4 = vunpack.c.h.bf16 %v3804_v27 }
 0x4f6   : > { %v2087_v19 = vsub.f32 %v5225_v9, %v5228_v1  ;;  %2362 = vst.msk [vmem:[#allocation2 + $0xe8] sm:$0xff] %vm535_vm0, %v5228_v1  ;;  %2133 = vperm.xlu1 %3856, %v5228_v1   ;;  %2304 = vmatpush.msra.mxu3 %v3767_v29  ;;  %v3754_v29 = vunpack.c.l.bf16 %v3804_v27  ;;  %v6282_v1 = vsub.f32 %v4995_v30, %v4998_v16 }
 0x4f7   : > { %v6283_v30 = vsub.f32 %v5195_v31, %v5198_v62 }
 0x4f8   : > { %2305 = vmatpush.msra.mxu3 %v3766_v52  ;;  %v3803_v52 = vld [vmem:[%s6268_s1 + $0xc8] sm:$0xff]  }
 0x4f9   : > { %v3751_v49 = vunpack.c.h.bf16 %v3803_v52  ;;  %v2090_v16 = vmul.f32 1.442695, %v6283_v30 }
 0x4fa   : > { %2306 = vmatpush.msra.mxu3 %v3763_v26  ;;  %v3802_v26 = vld [vmem:[%s6268_s1 + $0xc0] sm:$0xff]  }
 0x4fc   : > { %2307 = vmatpush.msra.mxu3 %v3762_v21  ;;  %v3747_v21 = vunpack.c.h.bf16 %v3802_v26 }
 0x507   : > { %2072 = vmax.xlane.f32.xlu2 %v5241_v42 }
 0x50f   : > { %1772 = vadd.xlane.f32.xlu2 %v5114_v36  ;;  %v3759_v36 = vunpack.c.h.bf16 %v3805_v35  ;;  %v3746_v35 = vunpack.c.l.bf16 %v3802_v26 }
 0x511   : > { %2308 = vmatpush.msra.mxu3 %v3759_v36  ;;  %v5269_v36 = vld [vmem:[#allocation2 + $0xe0] sm:$0xff] }
 0x513   : > { %2309 = vmatpush.msra.mxu3 %v3758_v34 }
 0x515   : > { %2310 = vmatpush.msra.mxu3 %v3755_v4  ;;  %v5280_v4 = vld [vmem:[#allocation2 + $0xf0] sm:$0xff] }
 0x517   : > { %1776 = vadd.xlane.f32.xlu2 %v5132_v40  ;;  %2311 = vmatpush.msra.mxu3 %v3754_v29  ;;  %v3750_v40 = vunpack.c.l.bf16 %v3803_v52 }
 0x519   : > { %2312 = vmatpush.msra.mxu3 %v3751_v49 }
 0x51b   : > { %2313 = vmatpush.msra.mxu3 %v3750_v40 }
 0x51d   : > { %2314 = vmatpush.msra.mxu3 %v3747_v21 }
 0x51f   : > { %1778 = vadd.xlane.f32.xlu2 %v5142_v11  ;;  %2315 = vmatpush.msra.mxu3 %v3746_v35  ;;  %v1671_v11 = vmul.f32 1.442695, %v1659_v60 }
 0x527   : > { %1780 = vadd.xlane.f32.xlu2 %v5152_v46 }
 0x52a   : > { %v2067_v34 = vpop.xlane.xlu0 %2066 }
 0x52b   : > { %v5272_v27 = vmax.f32 %v5269_v36, %v2067_v34 }
 0x52d   : > { %2361 = vst.msk [vmem:[#allocation2 + $0xe0] sm:$0xff] %vm535_vm0, %v5272_v27  ;;  %2128 = vperm.xlu0 %3855, %v5272_v27  }
 0x52f   : > { %1782 = vadd.xlane.f32.xlu2 %v5168_v59  ;;  %v1665_v59 = vmul.f32 1.442695, %v1656_v41 }
 0x532   : > { %v2071_v46 = vpop.xlane.xlu0 %2070 }
 0x533   : > { %v5283_v29 = vmax.f32 %v5280_v4, %v2071_v46 }
 0x535   : > { %2363 = vst.msk [vmem:[#allocation2 + $0xf0] sm:$0xff] %vm535_vm0, %v5283_v29  ;;  %2138 = vperm.xlu0 %3855, %v5283_v29  }
 0x538   : > { %v2109_v49 = vpop.permute.xlu2 %2108 }
 0x539   : > { %v2146_v40 = vsub.f32 %v5129_v47, %v2109_v49  ;;  %v5345_v49 = vld [vmem:[#allocation2 + $0xf8] sm:$0xff] }
 0x53b   : > { %v2154_v26 = vmul.f32 1.442695, %v2146_v40  ;;  %v5349_v40 = vpop.f32.mrf.mxu2 }
 0x53d   : > { %3944 = vpow2.f32 %v2154_v26 }
 0x53e   : > { %3946 = vpow2.f32 %v1665_v59 }
 0x540   : > { %v2114_v21 = vpop.permute.xlu1 %2113 }
 0x541   : > { %v2147_v35 = vsub.f32 %v5111_v6, %v2114_v21 }
 0x543   : > { %v3945_v34 = vpop.eup %3944  ;;  %v2156_v46 = vmul.f32 1.442695, %v2147_v35  ;;  %v1893_v21 = vpop.f32.mrf.mxu2  ;;  %v1756_v35 = vld [vmem:[#allocation3 + $0xa0] sm:$0xff] }
 0x544   : > { %v5299_v52 = vmul.f32 %v3945_v34, %v4467_v55  ;;  %v5301_v47 = vpop.eup %3946  ;;  %v2094_v55 = vmul.f32 1.442695, %v2084_v58  ;;  %v6284_v34 = vsub.f32 %v5215_v61, %v5218_v22  ;;  %v6286_v61 = vsub.f32 %v5280_v4, %v5283_v29 }
 0x545   : > { %3948 = vpow2.f32 %v2156_v46 }
 0x546   : > { %2316 = vmatmul.f32.vlgmr.msra.gmra.mxu3 %v5299_v52  ;;  %3950 = vpow2.f32 %v1671_v11  ;;  %v2096_v46 = vmul.f32 1.442695, %v6284_v34  ;;  %v2102_v22 = vmul.f32 1.442695, %v6286_v61 }
 0x547   : > { %1816 = vperm.xlu2 %3857, %v5301_v47   ;;  %3952 = vpow2.f32 %v1677_v44 }
 0x548   : > { %3954 = vpow2.f32 %v2094_v55  ;;  %v6285_v55 = vsub.f32 %v5040_v14, %v5044_v2 }
 0x54b   : > { %v3949_v12 = vpop.eup %3948 }
 0x54c   : > { %v5309_v41 = vmul.f32 %v3949_v12, %v4479_v3  ;;  %v3951_v23 = vpop.eup %3950  ;;  %v2100_v3 = vmul.f32 1.442695, %v2087_v19  ;;  %v1673_v19 = vmul.f32 1.442695, %v6282_v1 }
 0x54d   : > { %v5315_v50 = vpop.eup %3952  ;;  %v1764_v12 = vmul.f32 %v3951_v23, %v1756_v35 }
 0x54e   : > { %2319 = vmatmul.f32.gmra.mxu3 %v5309_v41  ;;  %v5322_v32 = vpop.eup %3954 }
 0x54f   : > { %1831 = vperm.xlu2 %3857, %v3951_v23  }
 0x557   : > { %1846 = vperm.xlu2 %3857, %v5315_v50  }
 0x558   : > { %v2119_v60 = vpop.permute.xlu0 %2118 }
 0x559   : > { %v2148_v53 = vsub.f32 %v5139_v45, %v2119_v60  ;;  %v1675_v60 = vmul.f32 1.442695, %v6285_v55 }
 0x55b   : > { %v2158_v57 = vmul.f32 1.442695, %v2148_v53  ;;  %v5376_v53 = vpop.f32.mrf.mxu2 }
 0x55d   : > { %3956 = vpow2.f32 %v2158_v57  ;;  %v1757_v57 = vld [vmem:[#allocation3 + $0xa8] sm:$0xff] }
 0x55e   : > { %3958 = vpow2.f32 %v2100_v3 }
 0x55f   : > { %1770 = vadd.xlane.f32.xlu0 %v5098_v56  ;;  %2248 = vperm.xlu2 %3857, %v5322_v32  }
 0x560   : > { %v2124_v6 = vpop.permute.xlu1 %2123 }
 0x561   : > { %v2149_v39 = vsub.f32 %v5149_v5, %v2124_v6  ;;  %v1669_v5 = vmul.f32 1.442695, %v1658_v13 }
 0x563   : > { %v3957_v18 = vpop.eup %3956  ;;  %v2160_v58 = vmul.f32 1.442695, %v2149_v39  ;;  %v5387_v2 = vpop.f32.mrf.mxu2 }
 0x564   : > { %v5328_v45 = vmul.f32 %v3957_v18, %v4465_v54  ;;  %v5330_v11 = vpop.eup %3958  ;;  %v1667_v54 = vmul.f32 1.442695, %v1657_v10  ;;  %v1754_v10 = vld [vmem:[#allocation3 + $0x90] sm:$0xff] }
 0x565   : > { %3960 = vpow2.f32 %v2160_v58  ;;  %v1758_v18 = vld [vmem:[#allocation3 + $0xb0] sm:$0xff] }
 0x566   : > { %2322 = vmatmul.f32.gmra.mxu3 %v5328_v45  ;;  %3962 = vpow2.f32 %v1669_v5 }
 0x567   : > { %2263 = vperm.xlu2 %3857, %v5330_v11   ;;  %3964 = vpow2.f32 %v1667_v54 }
 0x568   : > { %3966 = vpow2.f32 %v1673_v19  ;;  %v2134_v5 = vpop.permute.xlu1 %2133 }
 0x569   : > { %3968 = vpow2.f32 %v2090_v16 }
 0x56a   : > { %3970 = vpow2.f32 %v2096_v46 }
 0x56b   : > { %v3961_v9 = vpop.eup %3960  ;;  %3972 = vpow2.f32 %v1675_v60  ;;  %v1902_v1 = vpop.f32.mrf.mxu2 }
 0x56c   : > { %v2173_v56 = vmul.f32 %v3961_v9, %v4483_v8  ;;  %v5347_v8 = vpop.eup %3962  ;;  %3974 = vpow2.f32 %v2102_v22  ;;  %v1759_v9 = vld [vmem:[#allocation3 + $0xb8] sm:$0xff] }
 0x56d   : > { %v5360_v17 = vpop.eup %3964 }
 0x56e   : > { %2325 = vmatmul.f32.gmra.mxu3 %v2173_v56  ;;  %v1762_v13 = vmul.f32 %v5360_v17, %v1754_v10  ;;  %v2151_v10 = vsub.f32 %v5158_v48, %v2134_v5  ;;  %v2230_v5 = vld [vmem:[#allocation4 + $0x10] sm:$0xff] }
 0x573   : > { %1811 = vperm.xlu0 %3855, %v5170_v63   ;;  %v3967_v63 = vpop.eup %3966  ;;  %v5399_v34 = vpop.f32.mrf.mxu2 }
 0x574   : > { %v5370_v44 = vpop.eup %3968  ;;  %v1765_v23 = vmul.f32 %v3967_v63, %v1757_v57 }
 0x575   : > { %v5383_v3 = vpop.eup %3970 }
 0x576   : > { %v3973_v14 = vpop.eup %3972 }
 0x577   : > { %v1766_v58 = vmul.f32 %v3973_v14, %v1758_v18  ;;  %v5389_v4 = vpop.eup %3974  ;;  %v6288_v18 = vsub.f32 %v5269_v36, %v5272_v27 }
 0x57a   : > { %v2073_v7 = vpop.xlane.xlu2 %2072 }
 0x57b   : > { %v5352_v15 = vmax.f32 %v5345_v49, %v2073_v7  ;;  %1826 = vperm.xlu0 %3855, %v5347_v8   ;;  %v1767_v7 = vmul.f32 %v5315_v50, %v1759_v9  ;;  %v5406_v61 = vpop.f32.mrf.mxu2 }
 0x57d   : > { %v2089_v0 = vsub.f32 %v5345_v49, %v5352_v15  ;;  %2364 = vst.msk [vmem:[#allocation2 + $0xf8] sm:$0xff] %vm535_vm0, %v5352_v15  ;;  %2143 = vperm.xlu1 %3856, %v5352_v15  }
 0x582   : > { %v1773_v26 = vpop.xlane.xlu2 %1772 }
 0x583   : > { %v1786_v59 = vadd.f32 %v1773_v26, %v1762_v13  ;;  %1836 = vperm.xlu0 %3855, %v3967_v63   ;;  %v2164_v13 = vmul.f32 1.442695, %v2151_v10  ;;  %v1804_v10 = vld [vmem:[#allocation4 + $0xc8] sm:$0xff] }
 0x585   : > { %1794 = vst.msk [vmem:[#allocation3 + $0x90] sm:$0xff] %vm535_vm0, %v1786_v59  ;;  %v1802_v59 = vld [vmem:[#allocation4 + $0x58] sm:$0xff] }
 0x58a   : > { %v1777_v31 = vpop.xlane.xlu2 %1776 }
 0x58b   : > { %v1788_v62 = vadd.f32 %v1777_v31, %v1764_v12  ;;  %2238 = vperm.xlu0 %3855, %v5370_v44  }
 0x58d   : > { %1796 = vst.msk [vmem:[#allocation3 + $0xa0] sm:$0xff] %vm535_vm0, %v1788_v62  ;;  %v1805_v62 = vld [vmem:[#allocation4 + $0xe0] sm:$0xff] }
 0x590   : > { %2195 = vadd.xlane.f32.xlu2 %v5299_v52 }
 0x592   : > { %v1779_v6 = vpop.xlane.xlu2 %1778 }
 0x593   : > { %v1789_v39 = vadd.f32 %v1779_v6, %v1765_v23  ;;  %2253 = vperm.xlu0 %3855, %v5383_v3   ;;  %v1911_v6 = vpop.f32.mrf.mxu2 }
 0x595   : > { %1797 = vst.msk [vmem:[#allocation3 + $0xa8] sm:$0xff] %vm535_vm0, %v1789_v39 }
 0x598   : > { %2201 = vadd.xlane.f32.xlu2 %v2173_v56 }
 0x59a   : > { %v1781_v29 = vpop.xlane.xlu2 %1780 }
 0x59b   : > { %v1790_v52 = vadd.f32 %v1781_v29, %v1766_v58  ;;  %2268 = vperm.xlu0 %3855, %v5389_v4   ;;  %v2098_v58 = vmul.f32 1.442695, %v6288_v18  ;;  %v1753_v29 = vld [vmem:[#allocation3 + $0x88] sm:$0xff] }
 0x59d   : > { %1798 = vst.msk [vmem:[#allocation3 + $0xb0] sm:$0xff] %vm535_vm0, %v1790_v52 }
 0x59f   : > { %v2129_v54 = vpop.permute.xlu0 %2128 }
 0x5a0   : > { %v2150_v19 = vsub.f32 %v5175_v37, %v2129_v54 }
 0x5a2   : > { %v2162_v56 = vmul.f32 1.442695, %v2150_v19  ;;  %v1783_v30 = vpop.xlane.xlu2 %1782 }
 0x5a3   : > { %v1791_v16 = vadd.f32 %v1783_v30, %v1767_v7 }
 0x5a4   : > { %3976 = vpow2.f32 %v2162_v56 }
 0x5a5   : > { %1799 = vst.msk [vmem:[#allocation3 + $0xb8] sm:$0xff] %vm535_vm0, %v1791_v16  ;;  %3978 = vpow2.f32 %v2164_v13 }
 0x5a7   : > { %v2139_v63 = vpop.permute.xlu0 %2138  ;;  %1774 = vadd.xlane.f32.xlu1 %v5122_v33 }
 0x5a8   : > { %v2152_v26 = vsub.f32 %v5182_v38, %v2139_v63 }
 0x5aa   : > { %v3977_v35 = vpop.eup %3976  ;;  %v2166_v37 = vmul.f32 1.442695, %v2152_v26  ;;  %v1817_v50 = vpop.permute.xlu2 %1816 }
 0x5ab   : > { %v1850_v48 = vmul.f32 %v1817_v50, %v1802_v59  ;;  %v2174_v46 = vmul.f32 %v3977_v35, %v4506_v25  ;;  %v3979_v31 = vpop.eup %3978  ;;  %v1808_v25 = vld [vmem:[#allocation4 + $0xc0] sm:$0xff]  ;;  %v1806_v59 = vld [vmem:[#allocation4 + $0x90] sm:$0xff] }
 0x5ac   : > { %3980 = vpow2.f32 %v2166_v37  ;;  %v5404_v57 = vmul.f32 %v3979_v31, %v4497_v20  ;;  %v6287_v20 = vsub.f32 %v5185_v51, %v5188_v24  ;;  %v2104_v24 = vmul.f32 1.442695, %v2089_v0 }
 0x5ad   : > { %v1915_v12 = vadd.f32 %v1893_v21, %v1850_v48  ;;  %2328 = vmatmul.f32.gmra.mxu3 %v2174_v46 }
 0x5af   : > { %1923 = vst [vmem:[#allocation4 + $0x58] sm:$0xff] %v1915_v12 }
 0x5b2   : > { %v3981_v55 = vpop.eup %3980  ;;  %v1832_v33 = vpop.permute.xlu2 %1831 }
 0x5b3   : > { %v1853_v60 = vmul.f32 %v1832_v33, %v1805_v62  ;;  %v2176_v38 = vmul.f32 %v3981_v55, %v4508_v28  ;;  %v2092_v28 = vmul.f32 1.442695, %v6287_v20  ;;  %v2179_v62 = vld [vmem:[#allocation3 + $0xc0] sm:$0xff] }
 0x5b4   : > { %v2187_v55 = vmul.f32 %v5370_v44, %v2179_v62  ;;  %v1755_v44 = vld [vmem:[#allocation3 + $0x98] sm:$0xff] }
 0x5b5   : > { %v1918_v22 = vadd.f32 %v1902_v1, %v1853_v60  ;;  %2207 = vadd.xlane.f32.xlu2 %v2176_v38  ;;  %2331 = vmatmul.f32.gmra.mxu3 %v5404_v57  ;;  %3982 = vpow2.f32 %v2092_v28  ;;  %v2231_v60 = vld [vmem:[#allocation4 + $0x28] sm:$0xff]  ;;  %v1763_v20 = vmul.f32 %v5347_v8, %v1755_v44 }
 0x5b6   : > { %3984 = vpow2.f32 %v2098_v58  ;;  %v2185_v58 = vld [vmem:[#allocation3 + $0xf0] sm:$0xff] }
 0x5b7   : > { %1926 = vst [vmem:[#allocation4 + $0xe0] sm:$0xff] %v1918_v22  ;;  %3986 = vpow2.f32 %v2104_v24 }
 0x5ba   : > { %v1847_v21 = vpop.permute.xlu2 %1846 }
 0x5bb   : > { %v1856_v23 = vmul.f32 %v1847_v21, %v1808_v25  ;;  %v5417_v52 = vpop.eup %3982  ;;  %v2182_v21 = vld [vmem:[#allocation3 + $0xd8] sm:$0xff] }
 0x5bd   : > { %v1921_v39 = vadd.f32 %v1911_v6, %v1856_v23  ;;  %2334 = vmatmul.f32.gmra.mxu3 %v2176_v38 }
 0x5bf   : > { %1929 = vst [vmem:[#allocation4 + $0xc0] sm:$0xff] %v1921_v39 }
 0x5c0   : > { %1821 = vperm.xlu1 %3856, %v5360_v17   ;;  %v1761_v17 = vmul.f32 %v5301_v47, %v1753_v29  ;;  %v1801_v47 = vld [vmem:[#allocation4 + $0x38] sm:$0xff]  ;;  %v2193_v29 = vmul.f32 %v5389_v4, %v2185_v58  ;;  %v1807_v4 = vld [vmem:[#allocation4 + $0x70] sm:$0xff] }
 0x5c2   : > { %v2249_v54 = vpop.permute.xlu2 %2248 }
 0x5c3   : > { %v2278_v15 = vmul.f32 %v2249_v54, %v2230_v5 }
 0x5c5   : > { %2197 = vadd.xlane.f32.xlu0 %v5309_v41  ;;  %v5425_v41 = vpop.eup %3984 }
 0x5c6   : > { %v5428_v27 = vpop.eup %3986 }
 0x5c8   : > { %1841 = vperm.xlu1 %3856, %v3973_v14  }
 0x5c9   : > { %v2317_v36 = vpop.f32.mrf.mxu3 }
 0x5ca   : > { %v2264_v48 = vpop.permute.xlu2 %2263 }
 0x5cd   : > { %2203 = vadd.xlane.f32.xlu0 %v2174_v46  ;;  %v2228_v46 = vld [vmem:[#allocation4 + $0xa8] sm:$0xff] }
 0x5d0   : > { %2243 = vperm.xlu1 %3856, %v5417_v52  }
 0x5d1   : > { %v5431_v14 = vpop.f32.mrf.mxu3 }
 0x5d2   : > { %v1771_v9 = vpop.xlane.xlu0 %1770 }
 0x5d3   : > { %v1785_v51 = vadd.f32 %v1771_v9, %v1761_v17 }
 0x5d5   : > { %1793 = vst.msk [vmem:[#allocation3 + $0x88] sm:$0xff] %vm535_vm0, %v1785_v51  ;;  %v1803_v51 = vld [vmem:[#allocation4 + $0x40] sm:$0xff] }
 0x5d8   : > { %2258 = vperm.xlu1 %3856, %v5425_v41  }
 0x5e0   : > { %2273 = vperm.xlu1 %3856, %v5428_v27  }
 0x5e5   : > { %v1812_v1 = vpop.permute.xlu0 %1811 }
 0x5e6   : > { %v1849_v49 = vmul.f32 %v1812_v1, %v1801_v47  ;;  %v2180_v47 = vld [vmem:[#allocation3 + $0xc8] sm:$0xff] }
 0x5e7   : > { %v2188_v54 = vmul.f32 %v5417_v52, %v2180_v47 }
 0x5e8   : > { %v1914_v0 = vadd.f32 %v5349_v40, %v1849_v49 }
 0x5e9   : > { %v2323_v19 = vpop.f32.mrf.mxu3 }
 0x5ea   : > { %1922 = vst [vmem:[#allocation4 + $0x38] sm:$0xff] %v1914_v0  ;;  %v2343_v7 = vadd.f32 %v2323_v19, %v2278_v15 }
 0x5ec   : > { %2351 = vst [vmem:[#allocation4 + $0x10] sm:$0xff] %v2343_v7 }
 0x5ed   : > { %v1827_v56 = vpop.permute.xlu0 %1826 }
 0x5ee   : > { %v1852_v30 = vmul.f32 %v1827_v56, %v1804_v10  ;;  %v2234_v10 = vld [vmem:[#allocation4 + $0x20] sm:$0xff] }
 0x5ef   : > { %v2144_v16 = vpop.permute.xlu1 %2143  ;;  %v2183_v56 = vld [vmem:[#allocation3 + $0xe0] sm:$0xff] }
 0x5f0   : > { %v1917_v13 = vadd.f32 %v5387_v2, %v1852_v30  ;;  %v2153_v63 = vsub.f32 %v5241_v42, %v2144_v16 }
 0x5f1   : > { %v2326_v25 = vpop.f32.mrf.mxu3 }
 0x5f2   : > { %1925 = vst [vmem:[#allocation4 + $0xc8] sm:$0xff] %v1917_v13  ;;  %v2168_v26 = vmul.f32 1.442695, %v2153_v63  ;;  %v2229_v63 = vld [vmem:[#allocation4 + $0xd0] sm:$0xff] }
 0x5f4   : > { %3988 = vpow2.f32 %v2168_v26 }
 0x5f5   : > { %v1837_v35 = vpop.permute.xlu0 %1836 }
 0x5f6   : > { %v1854_v37 = vmul.f32 %v1837_v35, %v1806_v59 }
 0x5f8   : > { %v1919_v40 = vadd.f32 %v5399_v34, %v1854_v37 }
 0x5fa   : > { %v3989_v50 = vpop.eup %3988  ;;  %1927 = vst [vmem:[#allocation4 + $0x90] sm:$0xff] %v1919_v40 }
 0x5fb   : > { %v2177_v12 = vmul.f32 %v3989_v50, %v4529_v43  ;;  %v2190_v43 = vmul.f32 %v5383_v3, %v2182_v21  ;;  %v2232_v50 = vld [vmem:[#allocation4 + $0xa0] sm:$0xff] }
 0x5fd   : > { %v2239_v31 = vpop.permute.xlu0 %2238  ;;  %2209 = vadd.xlane.f32.xlu0 %v2177_v12  ;;  %2337 = vmatmul.f32.gmra.mxu3 %v2177_v12  ;;  %v2186_v12 = vld [vmem:[#allocation3 + $0xf8] sm:$0xff] }
 0x5fe   : > { %v2276_v2 = vmul.f32 %v2239_v31, %v2228_v46 }
 0x600   : > { %v2341_v42 = vadd.f32 %v2317_v36, %v2276_v2 }
 0x602   : > { %2349 = vst [vmem:[#allocation4 + $0xa8] sm:$0xff] %v2341_v42  ;;  %v2181_v42 = vld [vmem:[#allocation3 + $0xd0] sm:$0xff] }
 0x603   : > { %v2196_v33 = vpop.xlane.xlu2 %2195 }
 0x604   : > { %v2211_v38 = vadd.f32 %v2196_v33, %v2187_v55  ;;  %v2235_v55 = vld [vmem:[#allocation4 + $0x98] sm:$0xff]  ;;  %v2189_v33 = vmul.f32 %v5322_v32, %v2181_v42 }
 0x605   : > { %v2254_v22 = vpop.permute.xlu0 %2253 }
 0x606   : > { %2219 = vst.msk [vmem:[#allocation3 + $0xc0] sm:$0xff] %vm535_vm0, %v2211_v38  ;;  %v2279_v34 = vmul.f32 %v2254_v22, %v2231_v60 }
 0x608   : > { %v2344_v23 = vadd.f32 %v2326_v25, %v2279_v34  ;;  %v2184_v25 = vld [vmem:[#allocation3 + $0xe8] sm:$0xff] }
 0x60a   : > { %2352 = vst [vmem:[#allocation4 + $0x28] sm:$0xff] %v2344_v23  ;;  %2199 = vadd.xlane.f32.xlu1 %v5328_v45 }
 0x60b   : > { %v2202_v6 = vpop.xlane.xlu2 %2201 }
 0x60c   : > { %v2214_v39 = vadd.f32 %v2202_v6, %v2190_v43 }
 0x60d   : > { %v2269_v3 = vpop.permute.xlu0 %2268 }
 0x60e   : > { %2222 = vst.msk [vmem:[#allocation3 + $0xd8] sm:$0xff] %vm535_vm0, %v2214_v39  ;;  %v2282_v16 = vmul.f32 %v2269_v3, %v2234_v10 }
 0x612   : > { %2205 = vadd.xlane.f32.xlu1 %v5404_v57  ;;  %v2233_v57 = vld [vmem:[#allocation4 + $0xf8] sm:$0xff] }
 0x613   : > { %v2281_v5 = vmul.f32 %v2264_v48, %v2233_v57 }
 0x61a   : > { %v1775_v28 = vpop.xlane.xlu1 %1774 }
 0x61b   : > { %v1787_v18 = vadd.f32 %v1775_v28, %v1763_v20 }
 0x61d   : > { %1795 = vst.msk [vmem:[#allocation3 + $0x98] sm:$0xff] %vm535_vm0, %v1787_v18 }
 0x628   : > { %v2208_v17 = vpop.xlane.xlu2 %2207 }
 0x629   : > { %v2217_v45 = vadd.f32 %v2208_v17, %v2193_v29 }
 0x62b   : > { %2225 = vst.msk [vmem:[#allocation3 + $0xf0] sm:$0xff] %vm535_vm0, %v2217_v45 }
 0x630   : > { %v2329_v9 = vpop.f32.mrf.mxu3 }
 0x632   : > { %v1822_v24 = vpop.permute.xlu1 %1821 }
 0x633   : > { %v1851_v36 = vmul.f32 %v1822_v24, %v1803_v51 }
 0x635   : > { %v1916_v8 = vadd.f32 %v5376_v53, %v1851_v36  ;;  %v2191_v53 = vmul.f32 %v5425_v41, %v2183_v56  ;;  %v2194_v41 = vmul.f32 %v5428_v27, %v2186_v12  ;;  %v2192_v27 = vmul.f32 %v5330_v11, %v2184_v25 }
 0x637   : > { %1924 = vst [vmem:[#allocation4 + $0x40] sm:$0xff] %v1916_v8 }
 0x638   : > { %v2198_v1 = vpop.xlane.xlu0 %2197  ;;  %v2332_v49 = vpop.f32.mrf.mxu3 }
 0x639   : > { %v2212_v15 = vadd.f32 %v2198_v1, %v2188_v54  ;;  %v2346_v0 = vadd.f32 %v2332_v49, %v2281_v5 }
 0x63a   : > { %v1842_v19 = vpop.permute.xlu1 %1841 }
 0x63b   : > { %2220 = vst.msk [vmem:[#allocation3 + $0xc8] sm:$0xff] %vm535_vm0, %v2212_v15  ;;  %v1855_v7 = vmul.f32 %v1842_v19, %v1807_v4 }
 0x63c   : > { %2354 = vst [vmem:[#allocation4 + $0xf8] sm:$0xff] %v2346_v0 }
 0x63d   : > { %v1920_v30 = vadd.f32 %v5406_v61, %v1855_v7 }
 0x63f   : > { %1928 = vst [vmem:[#allocation4 + $0x70] sm:$0xff] %v1920_v30 }
 0x640   : > { %v2204_v13 = vpop.xlane.xlu0 %2203  ;;  %v2335_v52 = vpop.f32.mrf.mxu3 }
 0x641   : > { %v2215_v26 = vadd.f32 %v2204_v13, %v2191_v53  ;;  %v2347_v59 = vadd.f32 %v2335_v52, %v2282_v16 }
 0x642   : > { %v2244_v35 = vpop.permute.xlu1 %2243 }
 0x643   : > { %2223 = vst.msk [vmem:[#allocation3 + $0xe0] sm:$0xff] %vm535_vm0, %v2215_v26  ;;  %v2277_v37 = vmul.f32 %v2244_v35, %v2229_v63 }
 0x644   : > { %2355 = vst [vmem:[#allocation4 + $0x20] sm:$0xff] %v2347_v59 }
 0x645   : > { %v2342_v40 = vadd.f32 %v5431_v14, %v2277_v37 }
 0x647   : > { %2350 = vst [vmem:[#allocation4 + $0xd0] sm:$0xff] %v2342_v40 }
 0x64a   : > { %v2259_v48 = vpop.permute.xlu1 %2258 }
 0x64b   : > { %v2280_v61 = vmul.f32 %v2259_v48, %v2232_v50 }
 0x64d   : > { %v2345_v46 = vadd.f32 %v2329_v9, %v2280_v61 }
 0x64f   : > { %2353 = vst [vmem:[#allocation4 + $0xa0] sm:$0xff] %v2345_v46 }
 0x652   : > { %v2274_v62 = vpop.permute.xlu1 %2273 }
 0x653   : > { %v2283_v38 = vmul.f32 %v2274_v62, %v2235_v55 }
 0x670   : > { %v2210_v31 = vpop.xlane.xlu0 %2209 }
 0x671   : > { %v2218_v2 = vadd.f32 %v2210_v31, %v2194_v41 }
 0x673   : > { %2226 = vst.msk [vmem:[#allocation3 + $0xf8] sm:$0xff] %vm535_vm0, %v2218_v2 }
 0x67d   : > { %v2200_v60 = vpop.xlane.xlu1 %2199 }
 0x67e   : > { %v2213_v14 = vadd.f32 %v2200_v60, %v2189_v33 }
 0x680   : > { %2221 = vst.msk [vmem:[#allocation3 + $0xd0] sm:$0xff] %vm535_vm0, %v2213_v14  ;;  %v2338_v22 = vpop.f32.mrf.mxu3 }
 0x681   : > { %v2348_v34 = vadd.f32 %v2338_v22, %v2283_v38 }
 0x683   : > { %2356 = vst [vmem:[#allocation4 + $0x98] sm:$0xff] %v2348_v34 }
 0x685   : > { %v2206_v21 = vpop.xlane.xlu1 %2205 }
 0x686   : > { %v2216_v23 = vadd.f32 %v2206_v21, %v2192_v27 }
 0x688   : > { %2224 = vst.msk [vmem:[#allocation3 + $0xe8] sm:$0xff] %vm535_vm0, %v2216_v23 }
 0x689 PF: > { %v2372_v43 = vld [vmem:[#allocation3 + $0x20] sm:$0xff]  ;;  %v2370_v6 = vld [vmem:[#allocation3 + $0x10] sm:$0xff]  ;;  %v4134_v32 = vmov 0   ;;  %v2373_v18 = vld [vmem:[#allocation3 + $0x28] sm:$0xff]  ;;  %s3628_s14 = sshll.u32 %s4120_s11, 6 }
 0x68a   : > { %v2368_v39 = vld [vmem:[#allocation3] sm:$0xff]  ;;  %3992 = vset.pattern.permute.xlu2 %v4134_v32  ;;  %3991 = vset.pattern.permute.xlu1 %v4134_v32  ;;  %v2380_v44 = vmax.f32 %v2372_v43, 1e-30  ;;  %v2378_v20 = vmax.f32 %v2370_v6, 1e-30  ;;  %v2371_v17 = vld [vmem:[#allocation3 + $0x18] sm:$0xff] }
 0x68b   : > { %v5461_v28 = vmax.f32 %v2368_v39, 1e-30  ;;  %3990 = vset.pattern.permute.xlu0 %v4134_v32  ;;  %v2369_v3 = vld [vmem:[#allocation3 + $0x8] sm:$0xff]  ;;  %v2561_v24 = vld [vmem:[#allocation3 + $0x40] sm:$0xff]  ;;  %v5466_v36 = vmax.f32 %v2373_v18, 1e-30 }
 0x68c   : > { %3996 = vrcp.f32 %v2380_v44  ;;  %v2449_v58 = vand.u32 2147483647, %v2380_v44  ;;  %v2451_v11 = vand.u32 2147483648, %v2380_v44  ;;  %v2421_v29 = vand.u32 2147483647, %v2378_v20  ;;  %v2375_v47 = vld [vmem:[#allocation3 + $0x38] sm:$0xff] }
 0x68d   : > { %3998 = vrcp.f32 %v2378_v20  ;;  %v2423_v45 = vand.u32 2147483648, %v2378_v20  ;;  %v2393_v9 = vand.u32 2147483647, %v5461_v28  ;;  %v2395_v51 = vand.u32 2147483648, %v5461_v28  ;;  %v2567_v55 = vld [vmem:[#allocation3 + $0x70] sm:$0xff] }
 0x68e   : > { %4000 = vrcp.f32 %v5461_v28  ;;  %vm2445_vm0 = vweird.f32 %v2380_v44  ;;  %vm2417_vm14 = vweird.f32 %v2378_v20  ;;  %v5468_v57 = vmax.f32 %v2371_v17, 1e-30 }
 0x68f   : > { %vm5470_vm6 = vcmp.eq.f32.partialorder %v2449_v58, 8.507059e+37  ;;  %v2452_v5 = vor.u32 1.1754944e-38, %v2451_v11  ;;  %vm2389_vm10 = vweird.f32 %v5461_v28  ;;  %v5475_v54 = vmax.f32 %v2369_v3, 1e-30 }
 0x690   : > { %vm5477_vm12 = vcmp.eq.f32.partialorder %v2421_v29, 8.507059e+37  ;;  %v2424_v4 = vor.u32 1.1754944e-38, %v2423_v45  ;;  %v2396_v15 = vor.u32 1.1754944e-38, %v2395_v51  ;;  %4002 = vrcp.f32 %v5466_v36 }
 0x691   : > { %v5482_v0 = vmax.f32 %v2561_v24, 1e-30  ;;  %vm5484_vm15 = vcmp.eq.f32.partialorder %v2393_v9, 8.507059e+37  ;;  %v2463_v56 = vand.u32 2147483647, %v5466_v36  ;;  %4004 = vrcp.f32 %v5468_v57 }
 0x692   : > { %v3997_v1 = vpop.eup %3996  ;;  %v5490_v30 = vmax.f32 %v2375_v47, 1e-30  ;;  %vm2459_vm4 = vweird.f32 %v5466_v36  ;;  %v2465_v13 = vand.u32 2147483648, %v5466_v36  ;;  %vm2431_vm7 = vweird.f32 %v5468_v57 }
 0x693   : > { %v3999_v19 = vpop.eup %3998  ;;  %v2441_v7 = vmul.f32 %v3997_v1, %v2380_v44  ;;  %vm2446_vm3 = vweird.f32 %v3997_v1  ;;  %v2435_v26 = vand.u32 2147483647, %v5468_v57  ;;  %v2437_v35 = vand.u32 2147483648, %v5468_v57 }
 0x694   : > { %v4001_v16 = vpop.eup %4000  ;;  %v2413_v53 = vmul.f32 %v3999_v19, %v2378_v20  ;;  %vm2418_vm5 = vweird.f32 %v3999_v19  ;;  %4006 = vrcp.f32 %v5475_v54  ;;  %vm5499_vm2 = vcmp.eq.f32.partialorder %v2463_v56, 8.507059e+37  ;;  %vm5505_vm1 = vmor %vm2445_vm0, %vm2446_vm3 }
 0x695   : > { %v2442_v52 = vsub.f32 1.0, %v2441_v7  ;;  %v2385_v63 = vmul.f32 %v4001_v16, %v5461_v28  ;;  %vm2390_vm9 = vweird.f32 %v4001_v16  ;;  %v2466_v12 = vor.u32 1.1754944e-38, %v2465_v13  ;;  %vm5513_vm11 = vmor %vm2417_vm14, %vm2418_vm5 }
 0x696   : > { %v2414_v59 = vsub.f32 1.0, %v2413_v53  ;;  %v4003_v48 = vpop.eup %4002  ;;  %vm2403_vm8 = vweird.f32 %v5475_v54  ;;  %4008 = vrcp.f32 %v5482_v0  ;;  %vm5518_vm13 = vcmp.eq.f32.partialorder %v2435_v26, 8.507059e+37  ;;  %vm5525_vm0 = vmor %vm2389_vm10, %vm2390_vm9 }
 0x697   : > { %v2443_v37 = vmul.f32 %v3997_v1, %v2442_v52  ;;  %v2386_v40 = vsub.f32 1.0, %v2385_v63  ;;  %v4005_v41 = vpop.eup %4004  ;;  %v2455_v42 = vmul.f32 %v4003_v48, %v5466_v36  ;;  %v2438_v38 = vor.u32 1.1754944e-38, %v2437_v35 }
 0x698   : > { %v2415_v46 = vmul.f32 %v3999_v19, %v2414_v59  ;;  %v2427_v14 = vmul.f32 %v4005_v41, %v5468_v57  ;;  %v2407_v22 = vand.u32 2147483647, %v5475_v54  ;;  %vm2460_vm14 = vweird.f32 %v4003_v48 }
 0x699   : > { %v2444_v31 = vadd.f32 %v3997_v1, %v2443_v37  ;;  %v2387_v62 = vmul.f32 %v4001_v16, %v2386_v40  ;;  %v2456_v27 = vsub.f32 1.0, %v2455_v42  ;;  %vm2432_vm10 = vweird.f32 %v4005_v41 }
 0x69a   : > { %v2416_v33 = vadd.f32 %v3999_v19, %v2415_v46  ;;  %v4007_v21 = vpop.eup %4006  ;;  %v2428_v6 = vsub.f32 1.0, %v2427_v14  ;;  %v2409_v29 = vand.u32 2147483648, %v5475_v54  ;;  %vm5557_vm3 = vmor %vm2431_vm7, %vm2432_vm10  ;;  %v2586_v24 = vand.u32 2147483647, %v5482_v0 }
 0x69b   : > { %v2448_v34 = vsel %vm5505_vm1, %v3997_v1, %v2444_v31  ;;  %v2388_v25 = vadd.f32 %v4001_v16, %v2387_v62  ;;  %v2457_v44 = vmul.f32 %v4003_v48, %v2456_v27  ;;  %v2399_v20 = vmul.f32 %v4007_v21, %v5475_v54  ;;  %v2564_v1 = vld [vmem:[#allocation3 + $0x58] sm:$0xff]  ;;  %v2562_v31 = vld [vmem:[#allocation3 + $0x48] sm:$0xff] }
 0x69c   : > { %v2453_v23 = vsel %vm5470_vm6, %v2452_v5, %v2448_v34  ;;  %v2420_v43 = vsel %vm5513_vm11, %v3999_v19, %v2416_v33  ;;  %v5542_v28 = vpop.eup %4008  ;;  %vm5548_vm6 = vmor %vm2459_vm4, %vm2460_vm14  ;;  %v2429_v11 = vmul.f32 %v4005_v41, %v2428_v6  ;;  %4010 = vrcp.f32 %v5490_v30  ;;  %v2374_v5 = vld [vmem:[#allocation3 + $0x30] sm:$0xff] }
 0x69d   : > { %2526 = vperm.xlu2 %3992, %v2453_v23   ;;  %v2425_v39 = vsel %vm5477_vm12, %v2424_v4, %v2420_v43  ;;  %v2392_v32 = vsel %vm5525_vm0, %v4001_v16, %v2388_v25  ;;  %vm2582_vm12 = vweird.f32 %v5482_v0  ;;  %v2458_v17 = vadd.f32 %v4003_v48, %v2457_v44  ;;  %v2563_v16 = vld [vmem:[#allocation3 + $0x50] sm:$0xff]  ;;  %v2566_v25 = vld [vmem:[#allocation3 + $0x68] sm:$0xff] }
 0x69e   : > { %2516 = vperm.xlu1 %3991, %v2425_v39   ;;  %v2397_v18 = vsel %vm5484_vm15, %v2396_v15, %v2392_v32  ;;  %v2400_v3 = vsub.f32 1.0, %v2399_v20  ;;  %vm2404_vm15 = vweird.f32 %v4007_v21  ;;  %v2578_v9 = vmul.f32 %v5542_v28, %v5482_v0 }
 0x69f   : > { %2506 = vperm.xlu0 %3990, %v2397_v18   ;;  %v2430_v51 = vadd.f32 %v4005_v41, %v2429_v11  ;;  %vm2583_vm4 = vweird.f32 %v5542_v28  ;;  %v2462_v36 = vsel %vm5548_vm6, %v4003_v48, %v2458_v17  ;;  %v2588_v8 = vand.u32 2147483648, %v5482_v0  ;;  %vm5575_vm7 = vmor %vm2403_vm8, %vm2404_vm15 }
 0x6a0   : > { %v2401_v57 = vmul.f32 %v4007_v21, %v2400_v3  ;;  %v2579_v47 = vsub.f32 1.0, %v2578_v9  ;;  %v2467_v49 = vsel %vm5499_vm2, %v2466_v12, %v2462_v36  ;;  %v2410_v19 = vor.u32 1.1754944e-38, %v2409_v29  ;;  %vm5586_vm9 = vmor %vm2582_vm12, %vm2583_vm4 }
 0x6a1   : > { %v2434_v4 = vsel %vm5557_vm3, %v4005_v41, %v2430_v51  ;;  %vm2408_vm5 = vcmp.eq.f32.partialorder %v2407_v22, 8.507059e+37  ;;  %v2491_v54 = vand.u32 2147483647, %v5490_v30  ;;  %v5591_v13 = vmax.f32 %v2374_v5, 1e-30 }
 0x6a2   : > { %v2439_v7 = vsel %vm5518_vm13, %v2438_v38, %v2434_v4  ;;  %v2402_v10 = vadd.f32 %v4007_v21, %v2401_v57  ;;  %v2580_v56 = vmul.f32 %v5542_v28, %v2579_v47  ;;  %v5593_v52 = vmax.f32 %v2564_v1, 1e-30  ;;  %v4011_v35 = vpop.eup %4010 }
 0x6a3   : > { %vm5598_vm2 = vcmp.eq.f32.partialorder %v2586_v24, 8.507059e+37  ;;  %v2589_v0 = vor.u32 1.1754944e-38, %v2588_v8  ;;  %v2493_v40 = vand.u32 2147483648, %v5490_v30  ;;  %4012 = vrcp.f32 %v5591_v13 }
 0x6a4   : > { %v2406_v63 = vsel %vm5575_vm7, %v4007_v21, %v2402_v10  ;;  %v2581_v26 = vadd.f32 %v5542_v28, %v2580_v56  ;;  %v5604_v50 = vmax.f32 %v2563_v16, 1e-30  ;;  %v2483_v61 = vmul.f32 %v4011_v35, %v5490_v30 }
 0x6a5   : > { %2531 = vperm.xlu2 %3992, %v2467_v49   ;;  %v2411_v37 = vsel %vm2408_vm5, %v2410_v19, %v2406_v63  ;;  %v2477_v46 = vand.u32 2147483647, %v5591_v13  ;;  %v2479_v12 = vand.u32 2147483648, %v5591_v13  ;;  %vm2487_vm1 = vweird.f32 %v5490_v30 }
 0x6a6   : > { %2521 = vperm.xlu1 %3991, %v2439_v7   ;;  %v2585_v48 = vsel %vm5586_vm9, %v5542_v28, %v2581_v26  ;;  %vm5613_vm8 = vcmp.eq.f32.partialorder %v2491_v54, 8.507059e+37  ;;  %4014 = vrcp.f32 %v5593_v52  ;;  %v2484_v2 = vsub.f32 1.0, %v2483_v61  ;;  %v2756_v26 = vld [vmem:[#allocation3 + $0x88] sm:$0xff] }
 0x6a7   : > { %2511 = vperm.xlu0 %3990, %v2411_v37   ;;  %vm2488_vm11 = vweird.f32 %v4011_v35  ;;  %v2628_v62 = vand.u32 2147483647, %v5593_v52  ;;  %v2630_v42 = vand.u32 2147483648, %v5593_v52  ;;  %v2590_v33 = vsel %vm5598_vm2, %v2589_v0, %v2585_v48 }
 0x6a8   : > { %v2494_v60 = vor.u32 1.1754944e-38, %v2493_v40  ;;  %vm2473_vm13 = vweird.f32 %v5591_v13  ;;  %4016 = vrcp.f32 %v5604_v50  ;;  %v2485_v14 = vmul.f32 %v4011_v35, %v2484_v2  ;;  %vm5634_vm10 = vmor %vm2487_vm1, %vm2488_vm11 }
 0x6a9   : > { %vm5624_vm0 = vcmp.eq.f32.partialorder %v2477_v46, 8.507059e+37  ;;  %v2480_v22 = vor.u32 1.1754944e-38, %v2479_v12  ;;  %vm2624_vm14 = vweird.f32 %v5593_v52  ;;  %v5629_v34 = vmax.f32 %v2562_v31, 1e-30  ;;  %v4013_v27 = vpop.eup %4012 }
 0x6aa   : > { %vm2610_vm6 = vweird.f32 %v5604_v50  ;;  %v2614_v23 = vand.u32 2147483647, %v5604_v50  ;;  %v2616_v43 = vand.u32 2147483648, %v5604_v50  ;;  %v5641_v6 = vmax.f32 %v2567_v55, 1e-30 }
 0x6ab   : > { %v2486_v39 = vadd.f32 %v4011_v35, %v2485_v14  ;;  %v2469_v32 = vmul.f32 %v4013_v27, %v5591_v13  ;;  %vm5644_vm12 = vcmp.eq.f32.partialorder %v2628_v62, 8.507059e+37  ;;  %v2631_v30 = vor.u32 1.1754944e-38, %v2630_v42 }
 0x6ac   : > { %4018 = vrcp.f32 %v5629_v34  ;;  %v4015_v20 = vpop.eup %4014  ;;  %v2600_v28 = vand.u32 2147483647, %v5629_v34  ;;  %v2602_v18 = vand.u32 2147483648, %v5629_v34  ;;  %v5652_v58 = vmax.f32 %v2566_v25, 1e-30 }
 0x6ad   : > { %2700 = vperm.xlu2 %3992, %v2590_v33   ;;  %4020 = vrcp.f32 %v5641_v6  ;;  %v2490_v11 = vsel %vm5634_vm10, %v4011_v35, %v2486_v39  ;;  %v2470_v29 = vsub.f32 1.0, %v2469_v32  ;;  %vm2474_vm3 = vweird.f32 %v4013_v27 }
 0x6ae   : > { %v2620_v17 = vmul.f32 %v4015_v20, %v5593_v52  ;;  %v4017_v45 = vpop.eup %4016  ;;  %v2495_v3 = vsel %vm5613_vm8, %v2494_v60, %v2490_v11  ;;  %vm5659_vm15 = vcmp.eq.f32.partialorder %v2614_v23, 8.507059e+37  ;;  %v2617_v51 = vor.u32 1.1754944e-38, %v2616_v43  ;;  %vm5667_vm5 = vmor %vm2473_vm13, %vm2474_vm3  ;;  %v2565_v52 = vld [vmem:[#allocation3 + $0x60] sm:$0xff] }
 0x6af   : > { %vm2596_vm4 = vweird.f32 %v5629_v34  ;;  %2541 = vperm.xlu1 %3991, %v2495_v3   ;;  %v2471_v24 = vmul.f32 %v4013_v27, %v2470_v29  ;;  %vm2625_vm7 = vweird.f32 %v4015_v20  ;;  %v2606_v57 = vmul.f32 %v4017_v45, %v5604_v50  ;;  %v2755_v43 = vld [vmem:[#allocation3 + $0x80] sm:$0xff] }
 0x6b0   : > { %v2621_v36 = vsub.f32 1.0, %v2620_v17  ;;  %vm5671_vm9 = vcmp.eq.f32.partialorder %v2600_v28, 8.507059e+37  ;;  %v2603_v5 = vor.u32 1.1754944e-38, %v2602_v18  ;;  %vm2666_vm2 = vweird.f32 %v5641_v6  ;;  %vm5679_vm8 = vmor %vm2624_vm14, %vm2625_vm7  ;;  %v2759_v11 = vld [vmem:[#allocation3 + $0xa0] sm:$0xff] }
 0x6b1   : > { %4022 = vrcp.f32 %v5652_v58  ;;  %v2472_v49 = vadd.f32 %v4013_v27, %v2471_v24  ;;  %v2607_v15 = vsub.f32 1.0, %v2606_v57  ;;  %vm2611_vm1 = vweird.f32 %v4017_v45 }
 0x6b2   : > { %v4019_v1 = vpop.eup %4018  ;;  %v2622_v4 = vmul.f32 %v4015_v20, %v2621_v36  ;;  %v2670_v56 = vand.u32 2147483647, %v5641_v6  ;;  %v2672_v16 = vand.u32 2147483648, %v5641_v6  ;;  %vm2652_vm11 = vweird.f32 %v5652_v58  ;;  %vm5694_vm13 = vmor %vm2610_vm6, %vm2611_vm1 }
 0x6b3   : > { %v4021_v19 = vpop.eup %4020  ;;  %v2592_v10 = vmul.f32 %v4019_v1, %v5629_v34  ;;  %v2476_v53 = vsel %vm5667_vm5, %v4013_v27, %v2472_v49  ;;  %v2608_v13 = vmul.f32 %v4017_v45, %v2607_v15  ;;  %vm2597_vm14 = vweird.f32 %v4019_v1 }
 0x6b4   : > { %v2623_v54 = vadd.f32 %v4015_v20, %v2622_v4  ;;  %v2662_v63 = vmul.f32 %v4021_v19, %v5641_v6  ;;  %v2481_v59 = vsel %vm5624_vm0, %v2480_v22, %v2476_v53  ;;  %v2656_v37 = vand.u32 2147483647, %v5652_v58  ;;  %vm5711_vm0 = vmor %vm2596_vm4, %vm2597_vm14  ;;  %v2568_v6 = vld [vmem:[#allocation3 + $0x78] sm:$0xff] }
 0x6b5   : > { %v2593_v35 = vsub.f32 1.0, %v2592_v10  ;;  %2536 = vperm.xlu0 %3990, %v2481_v59   ;;  %v2609_v48 = vadd.f32 %v4017_v45, %v2608_v13  ;;  %vm2667_vm10 = vweird.f32 %v4021_v19  ;;  %v5703_v41 = vmax.f32 %v2565_v52, 1e-30  ;;  %v2757_v10 = vld [vmem:[#allocation3 + $0x90] sm:$0xff] }
 0x6b6   : > { %v2627_v40 = vsel %vm5679_vm8, %v4015_v20, %v2623_v54  ;;  %v2663_v61 = vsub.f32 1.0, %v2662_v63  ;;  %v5705_v31 = vmax.f32 %v2756_v26, 1e-30  ;;  %v2673_v55 = vor.u32 1.1754944e-38, %v2672_v16  ;;  %vm5720_vm6 = vmor %vm2666_vm2, %vm2667_vm10 }
 0x6b7   : > { %v4023_v46 = vpop.eup %4022  ;;  %v2632_v12 = vsel %vm5644_vm12, %v2631_v30, %v2627_v40  ;;  %v2594_v50 = vmul.f32 %v4019_v1, %v2593_v35  ;;  %v2613_v2 = vsel %vm5694_vm13, %v4017_v45, %v2609_v48  ;;  %v2658_v22 = vand.u32 2147483648, %v5652_v58 }
 0x6b8   : > { %2715 = vperm.xlu2 %3992, %v2632_v12   ;;  %v2664_v42 = vmul.f32 %v4021_v19, %v2663_v61  ;;  %v2648_v33 = vmul.f32 %v4023_v46, %v5652_v58  ;;  %v2618_v60 = vsel %vm5659_vm15, %v2617_v51, %v2613_v2  ;;  %4024 = vrcp.f32 %v5703_v41  ;;  %v2758_v58 = vld [vmem:[#allocation3 + $0x98] sm:$0xff] }
 0x6b9   : > { %v2595_v14 = vadd.f32 %v4019_v1, %v2594_v50  ;;  %2710 = vperm.xlu1 %3991, %v2618_v60   ;;  %vm2671_vm12 = vcmp.eq.f32.partialorder %v2670_v56, 8.507059e+37  ;;  %vm2653_vm3 = vweird.f32 %v4023_v46  ;;  %v2642_v21 = vand.u32 2147483647, %v5703_v41 }
 0x6ba   : > { %v2665_v34 = vadd.f32 %v4021_v19, %v2664_v42  ;;  %v2649_v25 = vsub.f32 1.0, %v2648_v33  ;;  %v2644_v23 = vand.u32 2147483648, %v5703_v41  ;;  %4026 = vrcp.f32 %v5705_v31  ;;  %vm5737_vm15 = vmor %vm2652_vm11, %vm2653_vm3 }
 0x6bb   : > { %v2599_v27 = vsel %vm5711_vm0, %v4019_v1, %v2595_v14  ;;  %vm5741_vm4 = vcmp.eq.f32.partialorder %v2656_v37, 8.507059e+37  ;;  %v2659_v18 = vor.u32 1.1754944e-38, %v2658_v22  ;;  %vm2638_vm7 = vweird.f32 %v5703_v41 }
 0x6bc   : > { %v2604_v39 = vsel %vm5671_vm9, %v2603_v5, %v2599_v27  ;;  %v2669_v32 = vsel %vm5720_vm6, %v4021_v19, %v2665_v34  ;;  %v2650_v44 = vmul.f32 %v4023_v46, %v2649_v25  ;;  %vm2790_vm5 = vweird.f32 %v5705_v31 }
 0x6bd   : > { %v2674_v30 = vsel %vm2671_vm12, %v2673_v55, %v2669_v32  ;;  %2705 = vperm.xlu0 %3990, %v2604_v39   ;;  %v5747_v17 = vmax.f32 %v2755_v43, 1e-30  ;;  %v5749_v45 = vmax.f32 %v2568_v6, 1e-30  ;;  %vm5751_vm9 = vcmp.eq.f32.partialorder %v2642_v21, 8.507059e+37  ;;  %v2762_v21 = vld [vmem:[#allocation3 + $0xb8] sm:$0xff] }
 0x6be   : > { %v2651_v29 = vadd.f32 %v4023_v46, %v2650_v44  ;;  %v4025_v3 = vpop.eup %4024  ;;  %v2645_v51 = vor.u32 1.1754944e-38, %v2644_v23  ;;  %v2794_v24 = vand.u32 2147483647, %v5705_v31  ;;  %v2796_v36 = vand.u32 2147483648, %v5705_v31 }
 0x6bf   : > { %v2634_v47 = vmul.f32 %v4025_v3, %v5703_v41  ;;  %4028 = vrcp.f32 %v5747_v17  ;;  %v5761_v8 = vmax.f32 %v2759_v11, 1e-30  ;;  %v2780_v49 = vand.u32 2147483647, %v5747_v17 }
 0x6c0   : > { %2730 = vperm.xlu2 %3992, %v2674_v30   ;;  %v2655_v57 = vsel %vm5737_vm15, %v4023_v46, %v2651_v29  ;;  %v4027_v5 = vpop.eup %4026  ;;  %v2782_v4 = vand.u32 2147483648, %v5747_v17  ;;  %v5767_v15 = vmax.f32 %v2758_v58, 1e-30  ;;  %vm2639_vm2 = vweird.f32 %v4025_v3  ;;  %v2950_v46 = vld [vmem:[#allocation3 + $0xc8] sm:$0xff] }
 0x6c1   : > { %v2660_v1 = vsel %vm5741_vm4, %v2659_v18, %v2655_v57  ;;  %v2635_v19 = vsub.f32 1.0, %v2634_v47  ;;  %v2786_v7 = vmul.f32 %v4027_v5, %v5705_v31  ;;  %4030 = vrcp.f32 %v5749_v45  ;;  %vm5780_vm11 = vmor %vm2638_vm7, %vm2639_vm2  ;;  %v2761_v57 = vld [vmem:[#allocation3 + $0xb0] sm:$0xff] }
 0x6c2   : > { %2725 = vperm.xlu1 %3991, %v2660_v1   ;;  %vm2791_vm1 = vweird.f32 %v4027_v5  ;;  %vm5771_vm8 = vcmp.eq.f32.partialorder %v2794_v24, 8.507059e+37  ;;  %v2797_v16 = vor.u32 1.1754944e-38, %v2796_v36  ;;  %v2684_v53 = vand.u32 2147483647, %v5749_v45 }
 0x6c3   : > { %v2636_v54 = vmul.f32 %v4025_v3, %v2635_v19  ;;  %v2787_v13 = vsub.f32 1.0, %v2786_v7  ;;  %v2686_v63 = vand.u32 2147483648, %v5749_v45  ;;  %4032 = vrcp.f32 %v5761_v8  ;;  %vm5796_vm0 = vmor %vm2790_vm5, %vm2791_vm1 }
 0x6c4   : > { %vm2776_vm13 = vweird.f32 %v5747_v17  ;;  %vm5785_vm14 = vcmp.eq.f32.partialorder %v2780_v49, 8.507059e+37  ;;  %v2783_v59 = vor.u32 1.1754944e-38, %v2782_v4  ;;  %v5789_v0 = vmax.f32 %v2757_v10, 1e-30  ;;  %v2760_v4 = vld [vmem:[#allocation3 + $0xa8] sm:$0xff] }
 0x6c5   : > { %v4029_v35 = vpop.eup %4028  ;;  %v2637_v37 = vadd.f32 %v4025_v3, %v2636_v54  ;;  %v2788_v40 = vmul.f32 %v4027_v5, %v2787_v13  ;;  %vm2680_vm10 = vweird.f32 %v5749_v45  ;;  %4034 = vrcp.f32 %v5767_v15 }
 0x6c6   : > { %v2772_v61 = vmul.f32 %v4029_v35, %v5747_v17  ;;  %vm5801_vm6 = vcmp.eq.f32.partialorder %v2684_v53, 8.507059e+37  ;;  %vm2832_vm12 = vweird.f32 %v5761_v8  ;;  %v2836_v12 = vand.u32 2147483647, %v5761_v8 }
 0x6c7   : > { %v4031_v50 = vpop.eup %4030  ;;  %v2641_v41 = vsel %vm5780_vm11, %v4025_v3, %v2637_v37  ;;  %v2789_v2 = vadd.f32 %v4027_v5, %v2788_v40  ;;  %v2687_v31 = vor.u32 1.1754944e-38, %v2686_v63  ;;  %v2838_v62 = vand.u32 2147483648, %v5761_v8 }
 0x6c8   : > { %v2646_v42 = vsel %vm5751_vm9, %v2645_v51, %v2641_v41  ;;  %v2773_v55 = vsub.f32 1.0, %v2772_v61  ;;  %vm2777_vm3 = vweird.f32 %v4029_v35  ;;  %v2676_v33 = vmul.f32 %v4031_v50, %v5749_v45  ;;  %v2951_v61 = vld [vmem:[#allocation3 + $0xd0] sm:$0xff] }
 0x6c9   : > { %v4033_v60 = vpop.eup %4032  ;;  %2720 = vperm.xlu0 %3990, %v2646_v42   ;;  %v2793_v14 = vsel %vm5796_vm0, %v4027_v5, %v2789_v2  ;;  %vm2681_vm15 = vweird.f32 %v4031_v50  ;;  %v2822_v38 = vand.u32 2147483647, %v5767_v15  ;;  %4036 = vrcp.f32 %v5789_v0  ;;  %vm5823_vm4 = vmor %vm2776_vm13, %vm2777_vm3  ;;  %v2949_v2 = vld [vmem:[#allocation3 + $0xc0] sm:$0xff] }
 0x6ca   : > { %v2798_v22 = vsel %vm5771_vm8, %v2797_v16, %v2793_v14  ;;  %v2774_v34 = vmul.f32 %v4029_v35, %v2773_v55  ;;  %v2677_v25 = vsub.f32 1.0, %v2676_v33  ;;  %v2828_v27 = vmul.f32 %v4033_v60, %v5761_v8  ;;  %vm5836_vm9 = vmor %vm2680_vm10, %vm2681_vm15 }
 0x6cb   : > { %v4035_v23 = vpop.eup %4034  ;;  %2899 = vperm.xlu2 %3992, %v2798_v22   ;;  %vm2833_vm7 = vweird.f32 %v4033_v60  ;;  %vm5827_vm5 = vcmp.eq.f32.partialorder %v2836_v12, 8.507059e+37  ;;  %v2839_v39 = vor.u32 1.1754944e-38, %v2838_v62  ;;  %v2824_v32 = vand.u32 2147483648, %v5767_v15 }
 0x6cc   : > { %v2775_v44 = vadd.f32 %v4029_v35, %v2774_v34  ;;  %v2678_v30 = vmul.f32 %v4031_v50, %v2677_v25  ;;  %v2829_v20 = vsub.f32 1.0, %v2828_v27  ;;  %v2814_v28 = vmul.f32 %v4035_v23, %v5767_v15  ;;  %vm5854_vm11 = vmor %vm2832_vm12, %vm2833_vm7 }
 0x6cd   : > { %vm2818_vm2 = vweird.f32 %v5767_v15  ;;  %vm2819_vm1 = vweird.f32 %v4035_v23  ;;  %vm5841_vm8 = vcmp.eq.f32.partialorder %v2822_v38, 8.507059e+37  ;;  %v5845_v29 = vmax.f32 %v2762_v21, 1e-30 }
 0x6ce   : > { %v2779_v17 = vsel %vm5823_vm4, %v4029_v35, %v2775_v44  ;;  %v2679_v58 = vadd.f32 %v4031_v50, %v2678_v30  ;;  %v2830_v3 = vmul.f32 %v4033_v60, %v2829_v20  ;;  %v2815_v9 = vsub.f32 1.0, %v2814_v28 }
 0x6cf   : > { %v4037_v45 = vpop.eup %4036  ;;  %v2784_v51 = vsel %vm5785_vm14, %v2783_v59, %v2779_v17  ;;  %v2825_v36 = vor.u32 1.1754944e-38, %v2824_v32  ;;  %vm2804_vm13 = vweird.f32 %v5789_v0  ;;  %4038 = vrcp.f32 %v5845_v29  ;;  %vm5868_vm14 = vmor %vm2818_vm2, %vm2819_vm1 }
 0x6d0   : > { %2894 = vperm.xlu1 %3991, %v2784_v51   ;;  %v2683_v47 = vsel %vm5836_vm9, %v4031_v50, %v2679_v58  ;;  %v2831_v5 = vadd.f32 %v4033_v60, %v2830_v3  ;;  %v2816_v1 = vmul.f32 %v4035_v23, %v2815_v9  ;;  %v2800_v49 = vmul.f32 %v4037_v45, %v5789_v0 }
 0x6d1   : > { %v2688_v8 = vsel %vm5801_vm6, %v2687_v31, %v2683_v47  ;;  %vm2805_vm10 = vweird.f32 %v4037_v45  ;;  %v2808_v7 = vand.u32 2147483647, %v5789_v0  ;;  %v2810_v10 = vand.u32 2147483648, %v5789_v0 }
 0x6d2   : > { %2735 = vperm.xlu0 %3990, %v2688_v8   ;;  %v2835_v56 = vsel %vm5854_vm11, %v4033_v60, %v2831_v5  ;;  %v2817_v16 = vadd.f32 %v4035_v23, %v2816_v1  ;;  %v2801_v53 = vsub.f32 1.0, %v2800_v49  ;;  %v5876_v54 = vmax.f32 %v2761_v57, 1e-30  ;;  %vm5892_vm0 = vmor %vm2804_vm13, %vm2805_vm10 }
 0x6d3   : > { %v2840_v15 = vsel %vm5827_vm5, %v2839_v39, %v2835_v56  ;;  %v2878_v13 = vand.u32 2147483647, %v5845_v29  ;;  %v2880_v63 = vand.u32 2147483648, %v5845_v29  ;;  %v5882_v52 = vmax.f32 %v2760_v4, 1e-30 }
 0x6d4   : > { %2914 = vperm.xlu2 %3992, %v2840_v15   ;;  %v2821_v26 = vsel %vm5868_vm14, %v4035_v23, %v2817_v16  ;;  %v2802_v59 = vmul.f32 %v4037_v45, %v2801_v53  ;;  %4040 = vrcp.f32 %v5876_v54  ;;  %v2811_v48 = vor.u32 1.1754944e-38, %v2810_v10  ;;  %v2953_v53 = vld [vmem:[#allocation3 + $0xe0] sm:$0xff] }
 0x6d5   : > { %v4039_v35 = vpop.eup %4038  ;;  %v2826_v37 = vsel %vm5841_vm8, %v2825_v36, %v2821_v26  ;;  %4042 = vrcp.f32 %v5882_v52  ;;  %vm2809_vm6 = vcmp.eq.f32.partialorder %v2808_v7, 8.507059e+37  ;;  %vm2874_vm12 = vweird.f32 %v5845_v29 }
 0x6d6   : > { %v2803_v12 = vadd.f32 %v4037_v45, %v2802_v59  ;;  %v2870_v50 = vmul.f32 %v4039_v35, %v5845_v29  ;;  %vm2875_vm3 = vweird.f32 %v4039_v35  ;;  %vm5899_vm15 = vcmp.eq.f32.partialorder %v2878_v13, 8.507059e+37  ;;  %v2954_v29 = vld [vmem:[#allocation3 + $0xe8] sm:$0xff] }
 0x6d7   : > { %v2881_v0 = vor.u32 1.1754944e-38, %v2880_v63  ;;  %v5905_v42 = vmax.f32 %v2951_v61, 1e-30  ;;  %v5907_v55 = vmax.f32 %v2950_v46, 1e-30  ;;  %vm2860_vm4 = vweird.f32 %v5876_v54  ;;  %vm5919_vm5 = vmor %vm2874_vm12, %vm2875_vm3 }
 0x6d8   : > { %2909 = vperm.xlu1 %3991, %v2826_v37   ;;  %v2807_v31 = vsel %vm5892_vm0, %v4037_v45, %v2803_v12  ;;  %v2871_v62 = vsub.f32 1.0, %v2870_v50  ;;  %v2864_v60 = vand.u32 2147483647, %v5876_v54  ;;  %v2866_v14 = vand.u32 2147483648, %v5876_v54  ;;  %v2952_v37 = vld [vmem:[#allocation3 + $0xd8] sm:$0xff] }
 0x6d9   : > { %v2812_v33 = vsel %vm2809_vm6, %v2811_v48, %v2807_v31  ;;  %vm2846_vm7 = vweird.f32 %v5882_v52  ;;  %4044 = vrcp.f32 %v5905_v42  ;;  %v5914_v34 = vmax.f32 %v2949_v2, 1e-30  ;;  %v2956_v12 = vld [vmem:[#allocation3 + $0xf8] sm:$0xff] }
 0x6da   : > { %v4041_v38 = vpop.eup %4040  ;;  %2904 = vperm.xlu0 %3990, %v2812_v33   ;;  %v2872_v22 = vmul.f32 %v4039_v35, %v2871_v62  ;;  %v2850_v23 = vand.u32 2147483647, %v5882_v52  ;;  %v2852_v43 = vand.u32 2147483648, %v5882_v52  ;;  %4046 = vrcp.f32 %v5907_v55 }
 0x6db   : > { %v4043_v25 = vpop.eup %4042  ;;  %v2856_v21 = vmul.f32 %v4041_v38, %v5876_v54  ;;  %v3002_v32 = vand.u32 2147483647, %v5905_v42  ;;  %v3004_v44 = vand.u32 2147483648, %v5905_v42  ;;  %vm2861_vm9 = vweird.f32 %v4041_v38 }
 0x6dc   : > { %v2873_v6 = vadd.f32 %v4039_v35, %v2872_v22  ;;  %v2842_v39 = vmul.f32 %v4043_v25, %v5882_v52  ;;  %vm5930_vm2 = vcmp.eq.f32.partialorder %v2864_v60, 8.507059e+37  ;;  %v2867_v28 = vor.u32 1.1754944e-38, %v2866_v14  ;;  %vm5945_vm11 = vmor %vm2860_vm4, %vm2861_vm9 }
 0x6dd   : > { %v2857_v30 = vsub.f32 1.0, %v2856_v21  ;;  %vm2847_vm1 = vweird.f32 %v4043_v25  ;;  %4048 = vrcp.f32 %v5914_v34  ;;  %vm5939_vm8 = vcmp.eq.f32.partialorder %v2850_v23, 8.507059e+37 }
 0x6de   : > { %v2877_v18 = vsel %vm5919_vm5, %v4039_v35, %v2873_v6  ;;  %v2843_v11 = vsub.f32 1.0, %v2842_v39  ;;  %v2853_v9 = vor.u32 1.1754944e-38, %v2852_v43  ;;  %vm2998_vm13 = vweird.f32 %v5905_v42  ;;  %vm5957_vm10 = vmor %vm2846_vm7, %vm2847_vm1 }
 0x6df   : > { %v2882_v17 = vsel %vm5899_vm15, %v2881_v0, %v2877_v18  ;;  %v2858_v58 = vmul.f32 %v4041_v38, %v2857_v30  ;;  %v4045_v45 = vpop.eup %4044  ;;  %vm5950_vm14 = vcmp.eq.f32.partialorder %v3002_v32, 8.507059e+37  ;;  %v3005_v57 = vor.u32 1.1754944e-38, %v3004_v44  ;;  %v2955_v44 = vld [vmem:[#allocation3 + $0xf0] sm:$0xff] }
 0x6e0   : > { %2929 = vperm.xlu2 %3992, %v2882_v17   ;;  %v2844_v24 = vmul.f32 %v4043_v25, %v2843_v11  ;;  %v4047_v47 = vpop.eup %4046  ;;  %v2994_v49 = vmul.f32 %v4045_v45, %v5905_v42  ;;  %vm2984_vm0 = vweird.f32 %v5907_v55  ;;  %v5963_v4 = vmax.f32 %v2954_v29, 1e-30  ;;  %v2502_v11 = vld [vmem:[#allocation4 + $0x30] sm:$0xff] }
 0x6e1   : > { %v2859_v5 = vadd.f32 %v4041_v38, %v2858_v58  ;;  %v2980_v19 = vmul.f32 %v4047_v47, %v5907_v55  ;;  %v2988_v7 = vand.u32 2147483647, %v5907_v55  ;;  %v2990_v10 = vand.u32 2147483648, %v5907_v55 }
 0x6e2   : > { %v2845_v8 = vadd.f32 %v4043_v25, %v2844_v24  ;;  %v2995_v16 = vsub.f32 1.0, %v2994_v49  ;;  %vm2999_vm6 = vweird.f32 %v4045_v45  ;;  %4050 = vrcp.f32 %v5963_v4  ;;  %v2692_v49 = vld [vmem:[#allocation4 + $0xe8] sm:$0xff] }
 0x6e3   : > { %v2863_v56 = vsel %vm5945_vm11, %v4041_v38, %v2859_v5  ;;  %v4049_v54 = vpop.eup %4048  ;;  %v2981_v63 = vsub.f32 1.0, %v2980_v19  ;;  %vm2985_vm12 = vweird.f32 %v4047_v47  ;;  %v2974_v35 = vand.u32 2147483647, %v5914_v34  ;;  %vm5982_vm3 = vmor %vm2998_vm13, %vm2999_vm6 }
 0x6e4   : > { %v2868_v15 = vsel %vm5930_vm2, %v2867_v28, %v2863_v56  ;;  %v2849_v13 = vsel %vm5957_vm10, %v4043_v25, %v2845_v8  ;;  %v2996_v26 = vmul.f32 %v4045_v45, %v2995_v16  ;;  %v2966_v59 = vmul.f32 %v4049_v54, %v5914_v34  ;;  %vm5991_vm4 = vmor %vm2984_vm0, %vm2985_vm12 }
 0x6e5   : > { %2924 = vperm.xlu1 %3991, %v2868_v15   ;;  %v2854_v52 = vsel %vm5939_vm8, %v2853_v9, %v2849_v13  ;;  %v2982_v48 = vmul.f32 %v4047_v47, %v2981_v63  ;;  %vm2970_vm15 = vweird.f32 %v5914_v34  ;;  %v2976_v61 = vand.u32 2147483648, %v5914_v34 }
 0x6e6   : > { %2919 = vperm.xlu0 %3990, %v2854_v52   ;;  %v2961_v46 = vmax.f32 %v2953_v53, 1e-30  ;;  %v2997_v50 = vadd.f32 %v4045_v45, %v2996_v26  ;;  %v2991_v0 = vor.u32 1.1754944e-38, %v2990_v10  ;;  %v2967_v2 = vsub.f32 1.0, %v2966_v59  ;;  %v6088_v59 = vld [vmem:[%s6272_s5] ss:$0 sm:$0xff] }
 0x6e7   : > { %vm2971_vm7 = vweird.f32 %v4049_v54  ;;  %v2983_v31 = vadd.f32 %v4047_v47, %v2982_v48  ;;  %vm2989_vm5 = vcmp.eq.f32.partialorder %v2988_v7, 8.507059e+37  ;;  %v5995_v62 = vmax.f32 %v2952_v37, 1e-30  ;;  %v2497_v48 = vld [vmem:[#allocation4] sm:$0xff] }
 0x6e8   : > { %4052 = vrcp.f32 %v2961_v46  ;;  %v4051_v42 = vpop.eup %4050  ;;  %v3001_v33 = vsel %vm5982_vm3, %v4045_v45, %v2997_v50  ;;  %v2968_v60 = vmul.f32 %v4049_v54, %v2967_v2  ;;  %vm5999_vm9 = vcmp.eq.f32.partialorder %v2974_v35, 8.507059e+37  ;;  %vm6011_vm2 = vmor %vm2970_vm15, %vm2971_vm7 }
 0x6e9   : > { %v6003_v55 = vmax.f32 %v2956_v12, 1e-30  ;;  %v3006_v38 = vsel %vm5950_vm14, %v3005_v57, %v3001_v33  ;;  %v2987_v22 = vsel %vm5991_vm4, %v4047_v47, %v2983_v31  ;;  %v2977_v27 = vor.u32 1.1754944e-38, %v2976_v61 }
 0x6ea   : > { %v3036_v21 = vmul.f32 %v4051_v42, %v5963_v4  ;;  %3098 = vperm.xlu2 %3992, %v3006_v38   ;;  %v2992_v23 = vsel %vm2989_vm5, %v2991_v0, %v2987_v22  ;;  %v2969_v43 = vadd.f32 %v4049_v54, %v2968_v60  ;;  %vm3040_vm1 = vweird.f32 %v5963_v4 }
 0x6eb   : > { %v3046_v6 = vand.u32 2147483648, %v5963_v4  ;;  %vm3041_vm8 = vweird.f32 %v4051_v42  ;;  %v3044_v32 = vand.u32 2147483647, %v5963_v4  ;;  %4054 = vrcp.f32 %v5995_v62 }
 0x6ec   : > { %v3037_v39 = vsub.f32 1.0, %v3036_v21  ;;  %v2973_v34 = vsel %vm6011_vm2, %v4049_v54, %v2969_v43  ;;  %4056 = vrcp.f32 %v6003_v55  ;;  %v3030_v18 = vand.u32 2147483647, %v2961_v46  ;;  %vm6027_vm11 = vmor %vm3040_vm1, %vm3041_vm8  ;;  %v2693_v21 = vld [vmem:[#allocation4 + $0xb8] sm:$0xff] }
 0x6ed   : > { %3093 = vperm.xlu1 %3991, %v2992_v23   ;;  %v2978_v20 = vsel %vm5999_vm9, %v2977_v27, %v2973_v34  ;;  %v3047_v29 = vor.u32 1.1754944e-38, %v3046_v6  ;;  %vm3045_vm13 = vcmp.eq.f32.partialorder %v3044_v32, 8.507059e+37  ;;  %v3032_v3 = vand.u32 2147483648, %v2961_v46  ;;  %v2499_v6 = vld [vmem:[#allocation4 + $0x18] sm:$0xff] }
 0x6ee   : > { %v4053_v30 = vpop.eup %4052  ;;  %v3038_v28 = vmul.f32 %v4051_v42, %v3037_v39  ;;  %3088 = vperm.xlu0 %3990, %v2978_v20   ;;  %v2963_v9 = vmax.f32 %v2955_v44, 1e-30  ;;  %vm3026_vm14 = vweird.f32 %v2961_v46  ;;  %vm6033_vm0 = vcmp.eq.f32.partialorder %v3030_v18, 8.507059e+37  ;;  %v2696_v20 = vld [vmem:[#allocation4 + $0x8] sm:$0xff] }
 0x6ef   : > { %v3022_v17 = vmul.f32 %v4053_v30, %v2961_v46  ;;  %vm3027_vm10 = vweird.f32 %v4053_v30  ;;  %vm3012_vm6 = vweird.f32 %v5995_v62  ;;  %v3033_v4 = vor.u32 1.1754944e-38, %v3032_v3 }
 0x6f0   : > { %v3039_v58 = vadd.f32 %v4051_v42, %v3038_v28  ;;  %4058 = vrcp.f32 %v2963_v9  ;;  %vm6039_vm12 = vmor %vm3026_vm14, %vm3027_vm10  ;;  %v3016_v8 = vand.u32 2147483647, %v5995_v62  ;;  %v3018_v19 = vand.u32 2147483648, %v5995_v62 }
 0x6f1   : > { %v3023_v45 = vsub.f32 1.0, %v3022_v17  ;;  %v4055_v51 = vpop.eup %4054  ;;  %v3072_v16 = vand.u32 2147483647, %v6003_v55  ;;  %vm3068_vm15 = vweird.f32 %v6003_v55  ;;  %v3074_v54 = vand.u32 2147483648, %v6003_v55 }
 0x6f2   : > { %v3043_v24 = vsel %vm6027_vm11, %v4051_v42, %v3039_v58  ;;  %v4057_v57 = vpop.eup %4056  ;;  %v3008_v1 = vmul.f32 %v4055_v51, %v5995_v62  ;;  %vm3013_vm3 = vweird.f32 %v4055_v51  ;;  %v3019_v35 = vor.u32 1.1754944e-38, %v3018_v19  ;;  %v2886_v19 = vld [vmem:[#allocation4 + $0x40] sm:$0xff] }
 0x6f3   : > { %v3048_v47 = vsel %vm3045_vm13, %v3047_v29, %v3043_v24  ;;  %v3024_v5 = vmul.f32 %v4053_v30, %v3023_v45  ;;  %v3064_v7 = vmul.f32 %v4057_v57, %v6003_v55  ;;  %vm3069_vm4 = vweird.f32 %v4057_v57  ;;  %vm6057_vm7 = vmor %vm3012_vm6, %vm3013_vm3 }
 0x6f4   : > { %3113 = vperm.xlu2 %3992, %v3048_v47   ;;  %v3009_v56 = vsub.f32 1.0, %v3008_v1  ;;  %vm3017_vm5 = vcmp.eq.f32.partialorder %v3016_v8, 8.507059e+37  ;;  %vm6061_vm9 = vmor %vm3068_vm15, %vm3069_vm4  ;;  %vm3073_vm2 = vcmp.eq.f32.partialorder %v3072_v16, 8.507059e+37  ;;  %v3075_v12 = vor.u32 1.1754944e-38, %v3074_v54 }
 0x6f5   : > { %v3025_v10 = vadd.f32 %v4053_v30, %v3024_v5  ;;  %v3065_v53 = vsub.f32 1.0, %v3064_v7  ;;  %vm3054_vm1 = vweird.f32 %v2963_v9  ;;  %v3060_v50 = vand.u32 2147483648, %v2963_v9 }
 0x6f6   : > { %v3010_v63 = vmul.f32 %v4055_v51, %v3009_v56  ;;  %v4059_v52 = vpop.eup %4058  ;;  %v3058_v2 = vand.u32 2147483647, %v2963_v9 }
 0x6f7   : > { %v6049_v15 = vpop.permute.xlu2 %2526  ;;  %v3029_v13 = vsel %vm6039_vm12, %v4053_v30, %v3025_v10  ;;  %v3066_v37 = vmul.f32 %v4057_v57, %v3065_v53  ;;  %v3050_v61 = vmul.f32 %v4059_v52, %v2963_v9  ;;  %vm3055_vm8 = vweird.f32 %v4059_v52  ;;  %v3080_v10 = vld [vmem:[#allocation4 + $0x10] sm:$0xff] }
 0x6f8   : > { %v3034_v26 = vsel %vm6033_vm0, %v3033_v4, %v3029_v13  ;;  %v3011_v40 = vadd.f32 %v4055_v51, %v3010_v63  ;;  %vm3056_vm11 = vmor %vm3054_vm1, %vm3055_vm8  ;;  %v3061_v60 = vor.u32 1.1754944e-38, %v3060_v50  ;;  %vm3059_vm13 = vcmp.eq.f32.partialorder %v3058_v2, 8.507059e+37  ;;  %v2498_v4 = vld [vmem:[#allocation4 + $0xd8] sm:$0xff]  ;;  %v2690_v50 = vld [vmem:[#allocation4 + $0x80] sm:$0xff] }
 0x6f9   : > { %3108 = vperm.xlu1 %3991, %v3034_v26   ;;  %v3067_v46 = vadd.f32 %v4057_v57, %v3066_v37  ;;  %v3051_v0 = vsub.f32 1.0, %v3050_v61  ;;  %v2691_v37 = vld [vmem:[#allocation4 + $0x88] sm:$0xff] }
 0x6fa   : > { %v3015_v41 = vsel %vm6057_vm7, %v4055_v51, %v3011_v40  ;;  %v2501_v2 = vld [vmem:[#allocation4 + $0x68] sm:$0xff] }
 0x6fb   : > { %v3020_v31 = vsel %vm3017_vm5, %v3019_v35, %v3015_v41  ;;  %v3071_v62 = vsel %vm6061_vm9, %v4057_v57, %v3067_v46  ;;  %v3052_v42 = vmul.f32 %v4059_v52, %v3051_v0  ;;  %v2496_v41 = vld [vmem:[#allocation4 + $0xb0] sm:$0xff] }
 0x6fc   : > { %3103 = vperm.xlu0 %3990, %v3020_v31   ;;  %v3076_v33 = vsel %vm3073_vm2, %v3075_v12, %v3071_v62  ;;  %v2695_v0 = vld [vmem:[#allocation4 + $0xf0] sm:$0xff]  ;;  %v2885_v62 = vld [vmem:[#allocation4 + $0x58] sm:$0xff] }
 0x6fd   : > { %v3053_v14 = vadd.f32 %v4059_v52, %v3052_v42  ;;  %v2884_v42 = vld [vmem:[#allocation4 + $0x38] sm:$0xff] }
 0x6ff   : > { %v6069_v55 = vpop.permute.xlu2 %2531  ;;  %v3057_v38 = vsel %vm3056_vm11, %v4059_v52, %v3053_v14 }
 0x700   : > { %v3062_v22 = vsel %vm3059_vm13, %v3061_v60, %v3057_v38 }
 0x701   : > { %3123 = vperm.xlu1 %3991, %v3076_v33   ;;  %v2889_v33 = vld [vmem:[#allocation4 + $0x90] sm:$0xff] }
 0x704   : > { %3118 = vperm.xlu0 %3990, %v3062_v22  }
 0x707   : > { %v2701_v25 = vpop.permute.xlu2 %2700 }
 0x708   : > { %v2738_v60 = vmul.f32 %v2701_v25, %v2690_v50 }
 0x710   : > { %v2517_v27 = vpop.permute.xlu1 %2516 }
 0x711   : > { %v2507_v23 = vpop.permute.xlu0 %2506  ;;  %v2546_v7 = vmul.f32 %v2517_v27, %v2498_v4  ;;  %v3079_v27 = vld [vmem:[#allocation4 + $0xd0] sm:$0xff] }
 0x712   : > { %v2716_v43 = vpop.permute.xlu2 %2715  ;;  %v2544_v14 = vmul.f32 %v2507_v23, %v2496_v41  ;;  %v2697_v41 = vld [vmem:[#allocation4 + $0x78] sm:$0xff] }
 0x713   : > { %v2741_v39 = vmul.f32 %v2716_v43, %v2693_v21  ;;  %v2549_v21 = vmul.f32 %v6069_v55, %v2501_v2 }
 0x718   : > { %v2522_v32 = vpop.permute.xlu1 %2521 }
 0x719   : > { %v2547_v34 = vmul.f32 %v2522_v32, %v2499_v6  ;;  %v2512_v30 = vpop.permute.xlu0 %2511 }
 0x71a   : > { %v2731_v28 = vpop.permute.xlu2 %2730  ;;  %v2545_v31 = vmul.f32 %v2512_v30, %v2497_v48  ;;  %v3083_v30 = vld [vmem:[#allocation4 + $0xf8] sm:$0xff] }
 0x71b   : > { %v6071_v44 = vadd.f32 %v2741_v39, %v2547_v34  ;;  %v2744_v29 = vmul.f32 %v2731_v28, %v2696_v20  ;;  %v3078_v34 = vld [vmem:[#allocation4 + $0xa8] sm:$0xff]  ;;  %v2746_v20 = vadd.f32 %v2738_v60, %v2544_v14  ;;  %v3084_v60 = vld [vmem:[#allocation4 + $0x20] sm:$0xff] }
 0x721   : > { %v6073_v18 = vpop.permute.xlu1 %2541 }
 0x725   : > { %v2900_v9 = vpop.permute.xlu2 %2899 }
 0x726   : > { %v2933_v43 = vmul.f32 %v2900_v9, %v2885_v62 }
 0x727   : > { %v2537_v17 = vpop.permute.xlu0 %2536 }
 0x728   : > { %v2550_v58 = vmul.f32 %v2537_v17, %v2502_v11 }
 0x72a   : > { %v6075_v3 = vadd.f32 %v2744_v29, %v2550_v58 }
 0x72b   : > { %v2711_v45 = vpop.permute.xlu1 %2710 }
 0x72c   : > { %v2740_v8 = vmul.f32 %v2711_v45, %v2692_v49 }
 0x72e   : > { %v6077_v24 = vpop.permute.xlu2 %2914  ;;  %v2748_v53 = vadd.f32 %v2740_v8, %v2546_v7  ;;  %v2887_v7 = vld [vmem:[#allocation4 + $0xc8] sm:$0xff] }
 0x72f   : > { %v2706_v51 = vpop.permute.xlu0 %2705 }
 0x730   : > { %v2739_v46 = vmul.f32 %v2706_v51, %v2691_v37  ;;  %v3082_v37 = vld [vmem:[#allocation4 + $0xa0] sm:$0xff] }
 0x732   : > { %v2747_v38 = vadd.f32 %v2739_v46, %v2545_v31  ;;  %v2503_v31 = vld [vmem:[#allocation4 + $0x48] sm:$0xff] }
 0x733   : > { %v2551_v14 = vmul.f32 %v6073_v18, %v2503_v31 }
 0x734   : > { %v2726_v36 = vpop.permute.xlu1 %2725  ;;  %v2941_v11 = vadd.f32 %v2933_v43, %v2747_v38 }
 0x735   : > { %v2743_v22 = vmul.f32 %v2726_v36, %v2695_v0  ;;  %v2890_v0 = vld [vmem:[#allocation4 + $0x70] sm:$0xff] }
 0x737   : > { %v2751_v28 = vadd.f32 %v2743_v22, %v2549_v21  ;;  %v2891_v22 = vld [vmem:[#allocation4 + $0xc0] sm:$0xff] }
 0x73a   : > { %v6081_v47 = vpop.permute.xlu2 %2929 }
 0x73b   : > { %v6079_v57 = vpop.permute.xlu0 %2720 }
 0x742   : > { %v2895_v5 = vpop.permute.xlu1 %2894 }
 0x743   : > { %v2932_v6 = vmul.f32 %v2895_v5, %v2884_v42 }
 0x744   : > { %v6083_v1 = vpop.permute.xlu0 %2735  ;;  %v3099_v56 = vpop.permute.xlu2 %3098 }
 0x745   : > { %v3128_v63 = vmul.f32 %v3099_v56, %v3080_v10  ;;  %v2940_v45 = vadd.f32 %v2932_v6, %v2746_v20  ;;  %v2500_v56 = vld [vmem:[#allocation4 + $0x50] sm:$0xff] }
 0x74a   : > { %v2910_v54 = vpop.permute.xlu1 %2909 }
 0x74c   : > { %v2905_v16 = vpop.permute.xlu0 %2904 }
 0x74d   : > { %v2934_v13 = vmul.f32 %v2905_v16, %v2886_v19  ;;  %v2694_v19 = vld [vmem:[#allocation4 + $0x60] sm:$0xff] }
 0x74e   : > { %v3114_v17 = vpop.permute.xlu2 %3113  ;;  %v2742_v16 = vmul.f32 %v6079_v57, %v2694_v19 }
 0x74f   : > { %v2942_v52 = vadd.f32 %v2934_v13, %v2748_v53  ;;  %v3131_v36 = vmul.f32 %v3114_v17, %v3083_v30  ;;  %v2935_v53 = vmul.f32 %v2910_v54, %v2887_v7 }
 0x751   : > { %v3136_v26 = vadd.f32 %v3128_v63, %v2942_v52  ;;  %v3081_v63 = vld [vmem:[#allocation4 + $0x28] sm:$0xff]  ;;  %v2548_v52 = vmul.f32 %v6049_v15, %v2500_v56  ;;  %v2745_v15 = vmul.f32 %v6083_v1, %v2697_v41  ;;  %v2939_v1 = vmul.f32 %v6081_v47, %v2891_v22 }
 0x753   : > { %v3144_v35 = vmul.f32 0.25, %v3136_v26  ;;  %v2750_v46 = vadd.f32 %v2742_v16, %v2548_v52 }
 0x755   : > { %v6091_v40 = vadd.f32 %v6088_v59, %v3144_v35  ;;  %v2888_v35 = vld [vmem:[#allocation4 + $0xe0] sm:$0xff] }
 0x756   : > { %v2936_v57 = vmul.f32 %v6077_v24, %v2888_v35  ;;  %v2753_v24 = vadd.f32 %v2745_v15, %v2551_v14 }
 0x757   : > { %v6093_v61 = vpop.permute.xlu1 %2924  ;;  %3168 = vadd.xlane.f32.xlu1 %v6091_v40 }
 0x758   : > { %v2920_v12 = vpop.permute.xlu0 %2919  ;;  %v2938_v62 = vmul.f32 %v6093_v61, %v2890_v0  ;;  %v2944_v42 = vadd.f32 %v2936_v57, %v2750_v46  ;;  %v2947_v20 = vadd.f32 %v2939_v1, %v2753_v24 }
 0x759   : > { %v2937_v39 = vmul.f32 %v2920_v12, %v2889_v33  ;;  %v2943_v12 = vadd.f32 %v2935_v53, %v6071_v44 }
 0x75a   : > { %v2946_v6 = vadd.f32 %v2938_v62, %v6075_v3  ;;  %v3196_v3 = vlaneseq }
 0x75b   : > { %v2945_v25 = vadd.f32 %v2937_v39, %v2751_v28 }
 0x75d   : > { %v3139_v5 = vadd.f32 %v3131_v36, %v2945_v25 }
 0x75f   : > { %v3094_v32 = vpop.permute.xlu1 %3093  ;;  %v3147_v10 = vmul.f32 0.25, %v3139_v5 }
 0x760   : > { %v3127_v29 = vmul.f32 %v3094_v32, %v3079_v27  ;;  %v3089_v58 = vpop.permute.xlu0 %3088  ;;  %v3085_v27 = vld [vmem:[#allocation4 + $0x98] sm:$0xff] }
 0x761   : > { %v3126_v51 = vmul.f32 %v3089_v58, %v3078_v34  ;;  %v6108_v26 = vadd.f32 %v6088_v59, %v3147_v10 }
 0x762   : > { %v3135_v23 = vadd.f32 %v3127_v29, %v2941_v11 }
 0x763   : > { %v3134_v4 = vadd.f32 %v3126_v51, %v2940_v45  ;;  %v3197_v45 = vand.u32 127, %v3196_v3 }
 0x764   : > { %v3143_v49 = vmul.f32 0.25, %v3135_v23 }
 0x765   : > { %v3142_v55 = vmul.f32 0.25, %v3134_v4  ;;  %vm3198_vm14 = vcmp.lt.s32.totalorder %v3197_v45, 32 }
 0x766   : > { %v6098_v9 = vadd.f32 %v6088_v59, %v3143_v49 }
 0x767   : > { %v6102_v8 = vadd.f32 %v6088_v59, %v3142_v55 }
 0x768   : > { %3166 = vadd.xlane.f32.xlu0 %v6098_v9 }
 0x769   : > { %3164 = vadd.xlane.f32.xlu2 %v6102_v8 }
 0x76b   : > { %v3109_v13 = vpop.permute.xlu1 %3108 }
 0x76c   : > { %v3130_v54 = vmul.f32 %v3109_v13, %v3082_v37 }
 0x76e   : > { %v3104_v48 = vpop.permute.xlu0 %3103  ;;  %v3138_v44 = vadd.f32 %v3130_v54, %v2944_v42 }
 0x76f   : > { %v3129_v50 = vmul.f32 %v3104_v48, %v3081_v63 }
 0x770   : > { %3174 = vadd.xlane.f32.xlu0 %v6108_v26  ;;  %v3146_v61 = vmul.f32 0.25, %v3138_v44 }
 0x771   : > { %v3137_v2 = vadd.f32 %v3129_v50, %v2943_v12 }
 0x772   : > { %v3158_v11 = vadd.f32 %v6088_v59, %v3146_v61 }
 0x773   : > { %v3145_v33 = vmul.f32 0.25, %v3137_v2  ;;  %v3124_v21 = vpop.permute.xlu1 %3123 }
 0x774   : > { %v3133_v32 = vmul.f32 %v3124_v21, %v3085_v27 }
 0x775   : > { %v3157_v38 = vadd.f32 %v6088_v59, %v3145_v33 }
 0x776   : > { %v3119_v43 = vpop.permute.xlu0 %3118  ;;  %v3141_v18 = vadd.f32 %v3133_v32, %v2947_v20  ;;  %v6172_v20 = vld [vmem:[%s6273_s6] ss:$0 sm:$0xff] }
 0x777   : > { %v3132_v39 = vmul.f32 %v3119_v43, %v3084_v60  ;;  %3170 = vadd.xlane.f32.xlu2 %v3157_v38  ;;  %v6166_v43 = vshrl.u32 %v3196_v3, 7 }
 0x778   : > { %v3149_v30 = vmul.f32 0.25, %v3141_v18  ;;  %v6175_v18 = vstv %s3628_s14 }
 0x779   : > { %v3140_v34 = vadd.f32 %v3132_v39, %v2946_v6 }
 0x77a   : > { %v3161_v17 = vadd.f32 %v6088_v59, %v3149_v30  ;;  %v6180_v30 = vld [vmem:[%s6274_s7] ss:$0 sm:$0xff] }
 0x77b   : > { %v3148_v28 = vmul.f32 0.25, %v3140_v34 }
 0x77d   : > { %v3160_v29 = vadd.f32 %v6088_v59, %v3148_v28  ;;  %v3385_v28 = vadd.s32 16, %v6166_v43 }
 0x77f   : > { %3172 = vadd.xlane.f32.xlu2 %v3158_v11  ;;  %3176 = vadd.xlane.f32.xlu1 %v3160_v29  ;;  %v3394_v3 = vadd.s32 %v6175_v18, %v3385_v28 }
 0x781   : > { %vm3402_vm12 = vcmp.lt.s32.totalorder %v3394_v3, 16 }
 0x787   : > { %3178 = vadd.xlane.f32.xlu2 %v3161_v17 }
 0x7ca   : > { %v3169_v58 = vpop.xlane.xlu1 %3168 }
 0x7cb   : > { %v3182_v47 = vmul.f32 0.03125, %v3169_v58 }
 0x7cd   : > { %v6123_v25 = vsub.f32 %v6091_v40, %v3182_v47 }
 0x7cf   : > { %v3201_v23 = vmul.f32 %v6123_v25, %v6123_v25 }
 0x7d1   : > { %v3209_v51 = vsel %vm3198_vm14, %v3201_v23, 0.0 }
 0x7d2   : > { %3219 = vadd.xlane.f32.xlu2 %v3209_v51 }
 0x7db   : > { %v3167_v36 = vpop.xlane.xlu0 %3166 }
 0x7dc   : > { %v3181_v49 = vmul.f32 0.03125, %v3167_v36  ;;  %v3165_v4 = vpop.xlane.xlu2 %3164 }
 0x7dd   : > { %v3180_v55 = vmul.f32 0.03125, %v3165_v4 }
 0x7de   : > { %v6129_v59 = vsub.f32 %v6098_v9, %v3181_v49 }
 0x7df   : > { %v6132_v5 = vsub.f32 %v6102_v8, %v3180_v55 }
 0x7e0   : > { %v3200_v40 = vmul.f32 %v6129_v59, %v6129_v59 }
 0x7e1   : > { %v3199_v19 = vmul.f32 %v6132_v5, %v6132_v5 }
 0x7e2   : > { %v3208_v7 = vsel %vm3198_vm14, %v3200_v40, 0.0 }
 0x7e3   : > { %3217 = vadd.xlane.f32.xlu1 %v3208_v7  ;;  %v3175_v10 = vpop.xlane.xlu0 %3174  ;;  %v3207_v56 = vsel %vm3198_vm14, %v3199_v19, 0.0 }
 0x7e4   : > { %v3185_v16 = vmul.f32 0.03125, %v3175_v10  ;;  %3215 = vadd.xlane.f32.xlu0 %v3207_v56 }
 0x7e6   : > { %v6141_v9 = vsub.f32 %v6108_v26, %v3185_v16 }
 0x7e8   : > { %v3204_v8 = vmul.f32 %v6141_v9, %v6141_v9 }
 0x7ea   : > { %v3212_v53 = vsel %vm3198_vm14, %v3204_v8, 0.0  ;;  %v3171_v13 = vpop.xlane.xlu2 %3170  ;;  %v3384_v8 = vadd.s32 8, %v6166_v43 }
 0x7eb   : > { %3225 = vadd.xlane.f32.xlu2 %v3212_v53  ;;  %v3183_v63 = vmul.f32 0.03125, %v3171_v13 }
 0x7ed   : > { %v6146_v52 = vsub.f32 %v3157_v38, %v3183_v63 }
 0x7ef   : > { %v3202_v35 = vmul.f32 %v6146_v52, %v6146_v52 }
 0x7f1   : > { %v3210_v37 = vsel %vm3198_vm14, %v3202_v35, 0.0 }
 0x7f2   : > { %3221 = vadd.xlane.f32.xlu0 %v3210_v37  ;;  %v3173_v48 = vpop.xlane.xlu2 %3172  ;;  %v3177_v46 = vpop.xlane.xlu1 %3176 }
 0x7f3   : > { %v3184_v26 = vmul.f32 0.03125, %v3173_v48  ;;  %v3186_v12 = vmul.f32 0.03125, %v3177_v46 }
 0x7f5   : > { %v6151_v50 = vsub.f32 %v3158_v11, %v3184_v26  ;;  %v6153_v41 = vsub.f32 %v3160_v29, %v3186_v12  ;;  %v3393_v12 = vadd.s32 %v6175_v18, %v3384_v8 }
 0x7f7   : > { %v3205_v0 = vmul.f32 %v6153_v41, %v6153_v41  ;;  %v3203_v57 = vmul.f32 %v6151_v50, %v6151_v50  ;;  %vm3401_vm1 = vcmp.lt.s32.totalorder %v3393_v12, 16 }
 0x7f9   : > { %v3213_v54 = vsel %vm3198_vm14, %v3205_v0, 0.0  ;;  %v3211_v2 = vsel %vm3198_vm14, %v3203_v57, 0.0 }
 0x7fa   : > { %v3179_v31 = vpop.xlane.xlu2 %3178  ;;  %3227 = vadd.xlane.f32.xlu0 %v3213_v54  ;;  %3223 = vadd.xlane.f32.xlu1 %v3211_v2 }
 0x7fb   : > { %v3187_v15 = vmul.f32 0.03125, %v3179_v31 }
 0x7fd   : > { %v6161_v62 = vsub.f32 %v3161_v17, %v3187_v15 }
 0x7ff   : > { %v3206_v42 = vmul.f32 %v6161_v62, %v6161_v62 }
 0x801   : > { %v3214_v33 = vsel %vm3198_vm14, %v3206_v42, 0.0 }
 0x802   : > { %3229 = vadd.xlane.f32.xlu1 %v3214_v33 }
 0x845   : > { %v3220_v60 = vpop.xlane.xlu2 %3219 }
 0x846   : > { %v3233_v14 = vmul.f32 0.03125, %v3220_v60 }
 0x848   : > { %v3241_v44 = vadd.f32 1e-05, %v3233_v14 }
 0x84a   : > { %4060 = vrsqrt.f32 %v3241_v44  ;;  %vm3273_vm0 = vweird.f32 %v3241_v44 }
 0x850   : > { %v4061_v38 = vpop.eup %4060 }
 0x851   : > { %v3268_v22 = vmul.f32 %v4061_v38, %v3241_v44  ;;  %vm3274_vm10 = vweird.f32 %v4061_v38 }
 0x852   : > { %vm3275_vm6 = vmor %vm3273_vm0, %vm3274_vm10 }
 0x853   : > { %v3269_v27 = vmul.f32 %v4061_v38, %v3268_v22 }
 0x855   : > { %v3270_v21 = vmul.f32 0.5, %v3269_v27 }
 0x856   : > { %v3218_v24 = vpop.xlane.xlu1 %3217 }
 0x857   : > { %v3271_v6 = vsub.f32 1.5, %v3270_v21  ;;  %v3232_v39 = vmul.f32 0.03125, %v3218_v24  ;;  %v3216_v1 = vpop.xlane.xlu0 %3215 }
 0x858   : > { %v3231_v34 = vmul.f32 0.03125, %v3216_v1 }
 0x859   : > { %v3272_v61 = vmul.f32 %v4061_v38, %v3271_v6  ;;  %v3240_v32 = vadd.f32 1e-05, %v3232_v39  ;;  %v3388_v6 = vadd.s32 40, %v6166_v43 }
 0x85a   : > { %v3239_v29 = vadd.f32 1e-05, %v3231_v34 }
 0x85b   : > { %v3276_v11 = vsel %vm3275_vm6, %v4061_v38, %v3272_v61  ;;  %4062 = vrsqrt.f32 %v3240_v32  ;;  %vm3263_vm4 = vweird.f32 %v3240_v32  ;;  %v3392_v38 = vadd.s32 %v6175_v18, %v6166_v43 }
 0x85c   : > { %v3329_v17 = vmul.f32 %v3276_v11, %v6123_v25  ;;  %4064 = vrsqrt.f32 %v3239_v29  ;;  %vm3253_vm9 = vweird.f32 %v3239_v29 }
 0x85d   : > { %vm3400_vm10 = vcmp.lt.s32.totalorder %v3392_v38, 16 }
 0x85e   : > { %v3340_v58 = vmul.f32 %v6172_v20, %v3329_v17  ;;  %v3226_v45 = vpop.xlane.xlu2 %3225 }
 0x85f   : > { %v3236_v47 = vmul.f32 0.03125, %v3226_v45 }
 0x860   : > { %v3351_v23 = vadd.f32 %v6180_v30, %v3340_v58 }
 0x861   : > { %v4063_v51 = vpop.eup %4062  ;;  %v3244_v36 = vadd.f32 1e-05, %v3236_v47 }
 0x862   : > { %vm3359_vm3 = vcmp.ge.f32.partialorder %v3351_v23, 0.0  ;;  %v3367_v49 = vmul.f32 0.1, %v3351_v23  ;;  %v3258_v4 = vmul.f32 %v4063_v51, %v3240_v32  ;;  %v4065_v55 = vpop.eup %4064  ;;  %vm3264_vm15 = vweird.f32 %v4063_v51 }
 0x863   : > { %4066 = vrsqrt.f32 %v3244_v36  ;;  %v3248_v19 = vmul.f32 %v4065_v55, %v3239_v29  ;;  %vm3254_vm7 = vweird.f32 %v4065_v55  ;;  %vm3265_vm5 = vmor %vm3263_vm4, %vm3264_vm15  ;;  %vm3303_vm11 = vweird.f32 %v3244_v36 }
 0x864   : > { %v3375_v40 = vsel %vm3359_vm3, %v3351_v23, %v3367_v49  ;;  %v3259_v25 = vmul.f32 %v4063_v51, %v3258_v4  ;;  %vm3255_vm2 = vmor %vm3253_vm9, %vm3254_vm7 }
 0x865   : > { %v3410_v7 = vsel %vm3402_vm12, %v3375_v40, 0.0  ;;  %v3249_v56 = vmul.f32 %v4065_v55, %v3248_v19  ;;  %v3222_v16 = vpop.xlane.xlu0 %3221 }
 0x866   : > { %3418 = vst [vmem:[%s4316_s18 + $0x10] sm:$0xff] %v3410_v7  ;;  %v3260_v10 = vmul.f32 0.5, %v3259_v25  ;;  %v3234_v53 = vmul.f32 0.03125, %v3222_v16 }
 0x867   : > { %v3250_v63 = vmul.f32 0.5, %v3249_v56 }
 0x868   : > { %v3261_v13 = vsub.f32 1.5, %v3260_v10  ;;  %v6188_v37 = vadd.f32 1e-05, %v3234_v53 }
 0x869   : > { %v4067_v35 = vpop.eup %4066  ;;  %v3251_v46 = vsub.f32 1.5, %v3250_v63 }
 0x86a   : > { %v3262_v48 = vmul.f32 %v4063_v51, %v3261_v13  ;;  %v3298_v26 = vmul.f32 %v4067_v35, %v3244_v36  ;;  %4068 = vrsqrt.f32 %v6188_v37  ;;  %vm3304_vm8 = vweird.f32 %v4067_v35 }
 0x86b   : > { %v3252_v57 = vmul.f32 %v4065_v55, %v3251_v46  ;;  %vm3305_vm14 = vmor %vm3303_vm11, %vm3304_vm8  ;;  %vm3283_vm12 = vweird.f32 %v6188_v37 }
 0x86c   : > { %v3266_v0 = vsel %vm3265_vm5, %v4063_v51, %v3262_v48  ;;  %v3299_v54 = vmul.f32 %v4067_v35, %v3298_v26  ;;  %v3397_v51 = vadd.s32 %v6175_v18, %v3388_v6 }
 0x86d   : > { %v3328_v2 = vmul.f32 %v3266_v0, %v6129_v59  ;;  %v3256_v31 = vsel %vm3255_vm2, %v4065_v55, %v3252_v57  ;;  %v3224_v42 = vpop.xlane.xlu1 %3223  ;;  %v3228_v33 = vpop.xlane.xlu0 %3227 }
 0x86e   : > { %v3300_v15 = vmul.f32 0.5, %v3299_v54  ;;  %v3327_v14 = vmul.f32 %v3256_v31, %v6132_v5  ;;  %v3235_v44 = vmul.f32 0.03125, %v3224_v42  ;;  %v3237_v27 = vmul.f32 0.03125, %v3228_v33 }
 0x86f   : > { %v3339_v60 = vmul.f32 %v6172_v20, %v3328_v2  ;;  %vm3405_vm3 = vcmp.lt.s32.totalorder %v3397_v51, 16 }
 0x870   : > { %v3301_v22 = vsub.f32 1.5, %v3300_v15  ;;  %v4069_v21 = vpop.eup %4068  ;;  %v3338_v24 = vmul.f32 %v6172_v20, %v3327_v14  ;;  %v6200_v39 = vadd.f32 1e-05, %v3235_v44  ;;  %v6203_v61 = vadd.f32 1e-05, %v3237_v27 }
 0x871   : > { %v3350_v59 = vadd.f32 %v6180_v30, %v3339_v60  ;;  %v3278_v5 = vmul.f32 %v4069_v21, %v6188_v37  ;;  %vm3284_vm6 = vweird.f32 %v4069_v21  ;;  %v3387_v15 = vadd.s32 32, %v6166_v43 }
 0x872   : > { %v3302_v1 = vmul.f32 %v4067_v35, %v3301_v22  ;;  %v3349_v34 = vadd.f32 %v6180_v30, %v3338_v24  ;;  %4070 = vrsqrt.f32 %v6200_v39  ;;  %vm3285_vm4 = vmor %vm3283_vm12, %vm3284_vm6  ;;  %vm3293_vm2 = vweird.f32 %v6200_v39 }
 0x873   : > { %vm3358_vm13 = vcmp.ge.f32.partialorder %v3350_v59, 0.0  ;;  %v3366_v32 = vmul.f32 0.1, %v3350_v59  ;;  %v3279_v11 = vmul.f32 %v4069_v21, %v3278_v5  ;;  %4072 = vrsqrt.f32 %v6203_v61 }
 0x874   : > { %v3306_v28 = vsel %vm3305_vm14, %v4067_v35, %v3302_v1  ;;  %vm3357_vm0 = vcmp.ge.f32.partialorder %v3349_v34, 0.0  ;;  %v3365_v17 = vmul.f32 0.1, %v3349_v34  ;;  %v3389_v44 = vadd.s32 48, %v6166_v43 }
 0x875   : > { %v3374_v29 = vsel %vm3358_vm13, %v3350_v59, %v3366_v32  ;;  %v3332_v3 = vmul.f32 %v3306_v28, %v6141_v9  ;;  %v3280_v45 = vmul.f32 0.5, %v3279_v11  ;;  %v3230_v47 = vpop.xlane.xlu1 %3229  ;;  %v3386_v9 = vadd.s32 24, %v6166_v43 }
 0x876   : > { %v3409_v58 = vsel %vm3401_vm1, %v3374_v29, 0.0  ;;  %v3373_v23 = vsel %vm3357_vm0, %v3349_v34, %v3365_v17  ;;  %v3238_v49 = vmul.f32 0.03125, %v3230_v47  ;;  %vm3313_vm1 = vweird.f32 %v6203_v61 }
 0x877   : > { %3417 = vst [vmem:[%s4316_s18 + $0x8] sm:$0xff] %v3409_v58  ;;  %v3343_v36 = vmul.f32 %v6172_v20, %v3332_v3  ;;  %v3408_v4 = vsel %vm3400_vm10, %v3373_v23, 0.0  ;;  %v3281_v55 = vsub.f32 1.5, %v3280_v45  ;;  %v3395_v35 = vadd.s32 %v6175_v18, %v3386_v9 }
 0x878   : > { %v4071_v40 = vpop.eup %4070  ;;  %3416 = vst [vmem:[%s4316_s18] sm:$0xff] %v3408_v4  ;;  %v6217_v19 = vadd.f32 1e-05, %v3238_v49  ;;  %v3396_v24 = vadd.s32 %v6175_v18, %v3387_v15  ;;  %v3398_v5 = vadd.s32 %v6175_v18, %v3389_v44  ;;  %v3390_v29 = vadd.s32 56, %v6166_v43 }
 0x879   : > { %v3354_v25 = vadd.f32 %v6180_v30, %v3343_v36  ;;  %v4073_v7 = vpop.eup %4072  ;;  %v3282_v10 = vmul.f32 %v4069_v21, %v3281_v55  ;;  %v3288_v56 = vmul.f32 %v4071_v40, %v6200_v39  ;;  %vm3294_vm7 = vweird.f32 %v4071_v40 }
 0x87a   : > { %v3308_v8 = vmul.f32 %v4073_v7, %v6203_v61  ;;  %4074 = vrsqrt.f32 %v6217_v19  ;;  %vm3403_vm5 = vcmp.lt.s32.totalorder %v3395_v35, 16  ;;  %vm3314_vm9 = vweird.f32 %v4073_v7  ;;  %vm3295_vm11 = vmor %vm3293_vm2, %vm3294_vm7 }
 0x87b   : > { %vm3362_vm15 = vcmp.ge.f32.partialorder %v3354_v25, 0.0  ;;  %v3370_v16 = vmul.f32 0.1, %v3354_v25  ;;  %v3286_v53 = vsel %vm3285_vm4, %v4069_v21, %v3282_v10  ;;  %v3289_v13 = vmul.f32 %v4071_v40, %v3288_v56  ;;  %vm3315_vm13 = vmor %vm3313_vm1, %vm3314_vm9 }
 0x87c   : > { %v3330_v48 = vmul.f32 %v3286_v53, %v6146_v52  ;;  %v3309_v46 = vmul.f32 %v4073_v7, %v3308_v8  ;;  %vm3404_vm10 = vcmp.lt.s32.totalorder %v3396_v24, 16  ;;  %vm3323_vm6 = vweird.f32 %v6217_v19 }
 0x87d   : > { %v3378_v63 = vsel %vm3362_vm15, %v3354_v25, %v3370_v16  ;;  %v3290_v26 = vmul.f32 0.5, %v3289_v13  ;;  %vm3406_vm12 = vcmp.lt.s32.totalorder %v3398_v5, 16  ;;  %v3399_v51 = vadd.s32 %v6175_v18, %v3390_v29 }
 0x87e   : > { %v3413_v37 = vsel %vm3405_vm3, %v3378_v63, 0.0  ;;  %v3341_v12 = vmul.f32 %v6172_v20, %v3330_v48  ;;  %v3310_v0 = vmul.f32 0.5, %v3309_v46 }
 0x87f   : > { %3421 = vst [vmem:[%s4316_s18 + $0x28] sm:$0xff] %v3413_v37  ;;  %v3291_v57 = vsub.f32 1.5, %v3290_v26  ;;  %vm3407_vm4 = vcmp.lt.s32.totalorder %v3399_v51, 16 }
 0x880   : > { %v3352_v54 = vadd.f32 %v6180_v30, %v3341_v12  ;;  %v3311_v2 = vsub.f32 1.5, %v3310_v0  ;;  %v4075_v31 = vpop.eup %4074 }
 0x881   : > { %v3292_v42 = vmul.f32 %v4071_v40, %v3291_v57  ;;  %v3318_v60 = vmul.f32 %v4075_v31, %v6217_v19  ;;  %vm3324_vm14 = vweird.f32 %v4075_v31 }
 0x882   : > { %vm3360_vm8 = vcmp.ge.f32.partialorder %v3352_v54, 0.0  ;;  %v3368_v52 = vmul.f32 0.1, %v3352_v54  ;;  %v3312_v33 = vmul.f32 %v4073_v7, %v3311_v2  ;;  %vm3325_vm15 = vmor %vm3323_vm6, %vm3324_vm14 }
 0x883   : > { %v3296_v14 = vsel %vm3295_vm11, %v4071_v40, %v3292_v42  ;;  %v3319_v21 = vmul.f32 %v4075_v31, %v3318_v60 }
 0x884   : > { %v3376_v38 = vsel %vm3360_vm8, %v3352_v54, %v3368_v52  ;;  %v3331_v22 = vmul.f32 %v3296_v14, %v6151_v50  ;;  %v3316_v27 = vsel %vm3315_vm13, %v4073_v7, %v3312_v33 }
 0x885   : > { %v3411_v59 = vsel %vm3403_vm5, %v3376_v38, 0.0  ;;  %v3333_v6 = vmul.f32 %v3316_v27, %v6153_v41  ;;  %v3320_v1 = vmul.f32 0.5, %v3319_v21 }
 0x886   : > { %3419 = vst [vmem:[%s4316_s18 + $0x18] sm:$0xff] %v3411_v59  ;;  %v3342_v39 = vmul.f32 %v6172_v20, %v3331_v22 }
 0x887   : > { %v3344_v61 = vmul.f32 %v6172_v20, %v3333_v6  ;;  %v3321_v34 = vsub.f32 1.5, %v3320_v1 }
 0x888   : > { %v3353_v32 = vadd.f32 %v6180_v30, %v3342_v39 }
 0x889   : > { %v3355_v50 = vadd.f32 %v6180_v30, %v3344_v61  ;;  %v3322_v41 = vmul.f32 %v4075_v31, %v3321_v34 }
 0x88a   : > { %vm3361_vm0 = vcmp.ge.f32.partialorder %v3353_v32, 0.0  ;;  %v3369_v28 = vmul.f32 0.1, %v3353_v32 }
 0x88b   : > { %vm3363_vm3 = vcmp.ge.f32.partialorder %v3355_v50, 0.0  ;;  %v3371_v11 = vmul.f32 0.1, %v3355_v50  ;;  %v3326_v3 = vsel %vm3325_vm15, %v4075_v31, %v3322_v41 }
 0x88c   : > { %v3377_v17 = vsel %vm3361_vm0, %v3353_v32, %v3369_v28  ;;  %v3334_v47 = vmul.f32 %v3326_v3, %v6161_v62 }
 0x88d   : > { %v3412_v58 = vsel %vm3404_vm10, %v3377_v17, 0.0  ;;  %v3379_v45 = vsel %vm3363_vm3, %v3355_v50, %v3371_v11 }
 0x88e   : > { %3420 = vst [vmem:[%s4316_s18 + $0x20] sm:$0xff] %v3412_v58  ;;  %v3414_v23 = vsel %vm3406_vm12, %v3379_v45, 0.0  ;;  %v3345_v36 = vmul.f32 %v6172_v20, %v3334_v47 }
 0x88f   : > { %3422 = vst [vmem:[%s4316_s18 + $0x30] sm:$0xff] %v3414_v23 }
 0x890   : > { %v3356_v49 = vadd.f32 %v6180_v30, %v3345_v36 }
 0x892   : > { %vm3364_vm7 = vcmp.ge.f32.partialorder %v3356_v49, 0.0  ;;  %v3372_v43 = vmul.f32 0.1, %v3356_v49 }
 0x894   : > { %v3380_v4 = vsel %vm3364_vm7, %v3356_v49, %v3372_v43 }
 0x895   : > { %v3415_v55 = vsel %vm3407_vm4, %v3380_v4, 0.0 }
 0x896   : > { %3423 = vst [vmem:[%s4316_s18 + $0x38] sm:$0xff] %v3415_v55 }
 0x897 PF: > { %s26_s13 = sadd.s32 1, %s4128_s13   ;;  %s6399_s9 = smov %s4116_s10 }
 0x898   : > { %p23_p11 = scmp.ge.s32.totalorder %s26_s13, 4   ;;  %s6400_s10 = smov %s4218_s16 }
 0x899   : > { %s6401_s11 = smov %s4124_s12  ;;  %s6402_s12 = smov %s6404_s0 }
 0x89a   :  { %25 = sbr.rel (!%p23_p11) target bundleno = 9 (0x9), region = 166 }

</bundles_post_ra>
